<compile_context>
chip_gen: v5e
topology: v5e:2x2
jax: 0.10.0
libtpu: 0.0.40
codegen_flags: <defaults>
</compile_context>

<pallas_src>
from functools import partial

import jax
import jax.numpy as jnp
from jax.experimental import pallas as pl
from jax.experimental.pallas import tpu as pltpu


MATMUL_DTYPE = jnp.bfloat16      # MXU operand dtype; accumulation stays f32.
_LN_EPS = 1e-5                   # nn.LayerNorm default


def _round_up(x, m):
    return ((x + m - 1) // m) * m


def _hardswish(x):
    # PyTorch Hardswish: x * relu6(x + 3) / 6   (f32 on the VPU)
    return x * jnp.clip(x + 3.0, 0.0, 6.0) * (1.0 / 6.0)


# ---------------------------------------------------------------------------
# Fused attention branch:  out = a + proj(softmax(q k^T) v),
# with q = norm1(a) @ (q_w * scale), k/v from attn-LN(pooled(b)) @ kv_w.
# One grid step per batch element; B=2 gives both v7x TensorCores one step each.
# ---------------------------------------------------------------------------

def _attn_branch_kernel(*refs, sizes, heads):
    n = len(sizes)
    a_ref = refs[0]
    pool_refs = refs[1:1 + n]
    dww_refs = refs[1 + n:1 + 2 * n]
    dwb_refs = refs[1 + 2 * n:1 + 3 * n]
    (ln1_g, ln1_b, attn_g, attn_b, qw_ref, kvw_ref,
     pw_ref, pb_ref, o_ref, kvbuf) = refs[1 + 3 * n:]

    N, C = a_ref.shape[1], a_ref.shape[2]
    P_pad = kvbuf.shape[0]
    P = sum(oh * ow for oh, ow in sizes)

    # Zero only the padding tail (not the whole buffer).  Done every grid step on purpose:
    # with a "parallel" batch axis split across v7x's two TensorCores a pl.when(pid==0)
    # guard would never run on the second core; the tail is only a few vregs anyway.
    if P_pad > P:
        kvbuf[P:, :] = jnp.zeros((P_pad - P, C), jnp.float32)

    # Pooled-token pipeline: depthwise 3x3 conv (+bias) + residual, one contiguous store
    # per pool (replaces the old row-by-row sublane-partial stores).  Taps are ref slices.
    off = 0
    for (oh, ow), xp_ref, w_ref, b_ref in zip(sizes, pool_refs, dww_refs, dwb_refs):
        w = w_ref[...]                                     # (3, 3, C) f32
        acc = jnp.zeros((oh, ow, C), jnp.float32)
        for dy in range(3):
            for dx in range(3):
                acc = acc + xp_ref[0, dy:dy + oh, dx:dx + ow, :] * w[dy, dx, :]
        acc = acc + b_ref[...]                             # conv bias
        acc = acc + xp_ref[0, 1:1 + oh, 1:1 + ow, :]       # residual: pool + l(pool)
        kvbuf[off:off + oh * ow, :] = acc.reshape(oh * ow, C)
        off += oh * ow

    # attn.norm (LayerNorm) over pooled tokens (f32), then cast once for the MXU.
    pk = kvbuf[...]
    mu = jnp.mean(pk, axis=-1, keepdims=True)
    pc = pk - mu
    var = jnp.mean(pc * pc, axis=-1, keepdims=True)
    xn_kv = (pc * jax.lax.rsqrt(var + _LN_EPS) * attn_g[...] + attn_b[...]).astype(MATMUL_DTYPE)

    # norm1 of the query tokens (fused; q never round-trips through HBM).
    a = a_ref[0]                                           # (N, C) f32
    mu = jnp.mean(a, axis=-1, keepdims=True)
    ac = a - mu
    var = jnp.mean(ac * ac, axis=-1, keepdims=True)
    xn_q = (ac * jax.lax.rsqrt(var + _LN_EPS) * ln1_g[...] + ln1_b[...]).astype(MATMUL_DTYPE)

    # Additive key-padding mask row, built once per call (replaces per-head compare+select).
    if P_pad > P:
        key_idx = jax.lax.broadcasted_iota(jnp.int32, (1, P_pad), 1)
        neg_mask = jnp.where(key_idx < P, 0.0, -1e30).astype(jnp.float32)
    else:
        neg_mask = None

    out = jnp.zeros((N, C), jnp.float32)
    for h in range(heads):                                 # static unroll; leading-axis ref views
        qh = jnp.dot(xn_q, qw_ref[h], preferred_element_type=jnp.float32)        # (N, hd)
        kh = jnp.dot(xn_kv, kvw_ref[0, h], preferred_element_type=jnp.float32)   # (P_pad, hd)
        vh = jnp.dot(xn_kv, kvw_ref[1, h], preferred_element_type=jnp.float32)   # (P_pad, hd)
        # q @ k^T without materializing a transpose; scores stay f32.
        s = jax.lax.dot_general(qh.astype(MATMUL_DTYPE), kh.astype(MATMUL_DTYPE),
                                (((1,), (1,)), ((), ())),
                                preferred_element_type=jnp.float32)               # (N, P_pad)
        if neg_mask is not None:
            s = s + neg_mask
        m = jnp.max(s, axis=-1, keepdims=True)
        p = jnp.exp(s - m)
        l = jnp.sum(p, axis=-1, keepdims=True)
        o_h = jnp.dot(p.astype(MATMUL_DTYPE), vh.astype(MATMUL_DTYPE),
                      preferred_element_type=jnp.float32)                          # (N, hd)
        o_h = o_h * pl.reciprocal(l, approx=True)          # EUP; approx=False for bit-exactness
        # concat(heads) @ proj_w  ==  sum_h  o_h @ proj_w[h]
        out = out + jnp.dot(o_h.astype(MATMUL_DTYPE), pw_ref[h],
                            preferred_element_type=jnp.float32)
    o_ref[0] = a + out + pb_ref[...]                       # residual fused into the store


def attn_branch(p, a, b_tokens, H, W, num_heads, pool_ratios):
    """Returns a + Pooling_cross_Attention(norm1(a), b_tokens)."""
    B, N, C = a.shape
    hd = C // num_heads
    scale = hd ** (-0.5)

    # Adaptive average pooling of the key/value branch (tiny; kept as XLA glue).
    # NOTE: k_x, v_x in the PyTorch reference are computed from the first argument but
    # never used (dead code) -> omitted; semantics unchanged.
    y_sp = b_tokens.reshape(B, H, W, C)
    pools_padded, sizes = [], []
    for r in pool_ratios:
        oh, ow = int(round(H / r)), int(round(W / r))
        # reshape+mean pooling only equals adaptive_avg_pool2d for evenly dividing sizes
        assert H % oh == 0 and W % ow == 0, "pool output must evenly divide H, W"
        pool = y_sp.reshape(B, oh, H // oh, ow, W // ow, C).mean(axis=(2, 4))
        pools_padded.append(jnp.pad(pool, ((0, 0), (1, 1), (1, 1), (0, 0))))
        sizes.append((oh, ow))
    P = sum(oh * ow for oh, ow in sizes)
    P_pad = _round_up(P, 128)      # lane-dense softmax rows / clean MXU tiles

    # Head-major weights (leading-axis head indexing in the kernel -> no lane slicing);
    # softmax scale folded into q_w so it disappears from the kernel.
    q_w = (p["q_w"] * scale).reshape(C, num_heads, hd).transpose(1, 0, 2).astype(MATMUL_DTYPE)
    kv_w = p["kv_w"].reshape(C, 2, num_heads, hd).transpose(1, 2, 0, 3).astype(MATMUL_DTYPE)
    proj_w = p["proj_w"].reshape(num_heads, hd, C).astype(MATMUL_DTYPE)
    dw_ws = [dw for dw, _ in p["d_convs"]]
    dw_bs = [db.reshape(1, 1, C) for _, db in p["d_convs"]]

    in_specs = (
        [pl.BlockSpec((1, N, C), lambda b: (b, 0, 0))]
        + [pl.BlockSpec((1, oh + 2, ow + 2, C), lambda b: (b, 0, 0, 0)) for oh, ow in sizes]
        + [pl.BlockSpec((3, 3, C), lambda b: (0, 0, 0)) for _ in sizes]
        + [pl.BlockSpec((1, 1, C), lambda b: (0, 0, 0)) for _ in sizes]
        + [pl.BlockSpec((1, C), lambda b: (0, 0))] * 4                      # ln1 g/b, attn g/b
        + [pl.BlockSpec((num_heads, C, hd), lambda b: (0, 0, 0)),           # q_w (head-major)
           pl.BlockSpec((2, num_heads, C, hd), lambda b: (0, 0, 0, 0)),     # kv_w
           pl.BlockSpec((num_heads, hd, C), lambda b: (0, 0, 0)),           # proj_w
           pl.BlockSpec((1, C), lambda b: (0, 0))]                          # proj_b
    )
    # TODO(synk): for production channel counts on v7x, single-buffer the grid-invariant
    # weight blocks (pipeline_mode=pl.Buffered(1)) and set vmem_limit_bytes explicitly.
    return pl.pallas_call(
        partial(_attn_branch_kernel, sizes=tuple(sizes), heads=num_heads),
        grid=(B,),
        in_specs=in_specs,
        out_specs=pl.BlockSpec((1, N, C), lambda b: (b, 0, 0)),
        out_shape=jax.ShapeDtypeStruct((B, N, C), jnp.float32),
        scratch_shapes=[pltpu.VMEM((P_pad, C), jnp.float32)],
        compiler_params=pltpu.CompilerParams(dimension_semantics=("parallel",)),
    )(a, *pools_padded, *dw_ws, *dw_bs,
      p["ln1_g"].reshape(1, C), p["ln1_b"].reshape(1, C),
      p["attn_ln_g"].reshape(1, C), p["attn_ln_b"].reshape(1, C),
      q_w, kv_w, proj_w, p["proj_b"].reshape(1, C))


# ---------------------------------------------------------------------------
# Fused IRB branch: out = x + fc2(hardswish(dwconv3x3(hardswish(fc1(norm2(x)))))).
# The (N, 4*dim) hidden activation and the padded conv input never touch HBM.
# ---------------------------------------------------------------------------

def _irb_kernel(x_ref, ln2_g, ln2_b, fc1w_ref, fc1b_ref, dww_ref, dwb_ref,
                fc2w_ref, fc2b_ref, o_ref, pad_buf, *, H, W):
    N, C = x_ref.shape[1], x_ref.shape[2]
    hid = fc1w_ref.shape[1]

    # norm2 (f32) + fc1 + hardswish
    x = x_ref[0]                                           # (N, C) f32
    mu = jnp.mean(x, axis=-1, keepdims=True)
    xc = x - mu
    var = jnp.mean(xc * xc, axis=-1, keepdims=True)
    xn = (xc * jax.lax.rsqrt(var + _LN_EPS) * ln2_g[...] + ln2_b[...]).astype(MATMUL_DTYPE)
    h1 = jnp.dot(xn, fc1w_ref[...], preferred_element_type=jnp.float32) + fc1b_ref[...]
    h1 = _hardswish(h1)                                    # (N, hid) f32

    # Depthwise 3x3 with the 1-px halo held in VMEM scratch (no host-side jnp.pad, no HBM
    # round trip).  The full zero-fill every step is a few dozen vreg stores and keeps the
    # halo correct even when the batch axis is split across v7x's two TensorCores.
    pad_buf[...] = jnp.zeros_like(pad_buf)
    pad_buf[1:1 + H, 1:1 + W, :] = h1.reshape(H, W, hid)
    w = dww_ref[...]                                       # (3, 3, hid) f32
    acc = jnp.zeros((H, W, hid), jnp.float32)
    for dy in range(3):
        for dx in range(3):                                # taps as ref slices (review item)
            acc = acc + pad_buf[dy:dy + H, dx:dx + W, :] * w[dy, dx, :]
    acc = _hardswish(acc + dwb_ref[...])

    # fc2 + residual fused into the single (N, C) store.
    h2 = acc.reshape(N, hid).astype(MATMUL_DTYPE)
    out = jnp.dot(h2, fc2w_ref[...], preferred_element_type=jnp.float32) + fc2b_ref[...]
    o_ref[0] = x + out


def irb(p, x_tokens, H, W):
    """Returns x + IRB(norm2(x))."""
    B, N, C = x_tokens.shape
    hid = p["fc1_w"].shape[1]
    return pl.pallas_call(
        partial(_irb_kernel, H=H, W=W),
        grid=(B,),
        in_specs=[pl.BlockSpec((1, N, C), lambda b: (b, 0, 0)),
                  pl.BlockSpec((1, C), lambda b: (0, 0)),
                  pl.BlockSpec((1, C), lambda b: (0, 0)),
                  pl.BlockSpec((C, hid), lambda b: (0, 0)),
                  pl.BlockSpec((1, hid), lambda b: (0, 0)),
                  pl.BlockSpec((3, 3, hid), lambda b: (0, 0, 0)),
                  pl.BlockSpec((1, 1, hid), lambda b: (0, 0, 0)),
                  pl.BlockSpec((hid, C), lambda b: (0, 0)),
                  pl.BlockSpec((1, C), lambda b: (0, 0))],
        out_specs=pl.BlockSpec((1, N, C), lambda b: (b, 0, 0)),
        out_shape=jax.ShapeDtypeStruct((B, N, C), jnp.float32),
        scratch_shapes=[pltpu.VMEM((H + 2, W + 2, hid), jnp.float32)],
        compiler_params=pltpu.CompilerParams(dimension_semantics=("parallel",)),
    )(x_tokens,
      p["ln2_g"].reshape(1, C), p["ln2_b"].reshape(1, C),
      p["fc1_w"].astype(MATMUL_DTYPE), p["fc1_b"].reshape(1, hid),
      p["dw_w"], p["dw_b"].reshape(1, 1, hid),
      p["fc2_w"].astype(MATMUL_DTYPE), p["fc2_b"].reshape(1, C))


# ------------------------------ Module forward ------------------------------

def block_cross(p, x, y, H, W, num_heads, pool_ratios):
    # drop_path = Identity (drop_path=0.0), dropouts = 0.0 -> identity.
    # Residual adds are fused inside the kernels.
    x = attn_branch(p, x, y, H, W, num_heads, pool_ratios)
    x = irb(p, x, H, W)
    y = attn_branch(p, y, x, H, W, num_heads, pool_ratios)   # uses updated x (as in reference)
    y = irb(p, y, H, W)
    return x, y


# ----------------------------- Parameter init -----------------------------

def init_params(key, dim, mlp_ratio, num_pools):
    hid = int(dim * mlp_ratio)
    keys = jax.random.split(key, 10 + 2 * num_pools)

    def w(k, shape, scale=0.05):
        return jax.random.normal(k, shape, jnp.float32) * scale

    p = {
        "ln1_g": jnp.ones((dim,), jnp.float32), "ln1_b": jnp.zeros((dim,), jnp.float32),
        "ln2_g": jnp.ones((dim,), jnp.float32), "ln2_b": jnp.zeros((dim,), jnp.float32),
        "attn_ln_g": jnp.ones((dim,), jnp.float32), "attn_ln_b": jnp.zeros((dim,), jnp.float32),
        "q_w": w(keys[0], (dim, dim)),               # qkv_bias=False
        "kv_w": w(keys[1], (dim, 2 * dim)),
        "proj_w": w(keys[2], (dim, dim)),
        "proj_b": w(keys[3], (dim,), 0.01),
        "fc1_w": w(keys[4], (dim, hid)),
        "fc1_b": w(keys[5], (hid,), 0.01),
        "dw_w": w(keys[6], (3, 3, hid)),
        "dw_b": w(keys[7], (hid,), 0.01),
        "fc2_w": w(keys[8], (hid, dim)),
        "fc2_b": w(keys[9], (dim,), 0.01),
        "d_convs": [(w(keys[10 + 2 * i], (3, 3, dim)),
                     w(keys[11 + 2 * i], (dim,), 0.01)) for i in range(num_pools)],
    }
    return p


# ----------------------------- Main -----------------------------

if __name__ == "__main__":
    B, H, W, dim, heads = 2, 16, 16, 32, 2
    N = H * W
    mlp_ratio = 4.0
    # pool ratios chosen so round(H/r) evenly divides H at this small test size
    pool_ratios = (2, 4, 8, 16)

    key = jax.random.PRNGKey(0)
    kx, ky, kp = jax.random.split(key, 3)
    x = jax.random.normal(kx, (B, N, dim), jnp.float32)
    y = jax.random.normal(ky, (B, N, dim), jnp.float32)
    params = init_params(kp, dim, mlp_ratio, len(pool_ratios))

    fwd = jax.jit(partial(block_cross, H=H, W=W, num_heads=heads, pool_ratios=pool_ratios))
    xo, yo = fwd(params, x, y)
    jax.block_until_ready((xo, yo))
    assert xo.shape == (B, N, dim) and yo.shape == (B, N, dim)
    assert bool(jnp.all(jnp.isfinite(xo))) and bool(jnp.all(jnp.isfinite(yo)))
    print("KERNEL_OK")
</pallas_src>

<mosaic_0001>
module attributes {stable_mosaic.version = 11 : i64} {
  func.func @_irb_kernel(%arg0: i32, %arg1: memref<1x256x32xf32, #tpu.memory_space<vmem>>, %arg2: memref<1x32xf32, #tpu.memory_space<vmem>>, %arg3: memref<1x32xf32, #tpu.memory_space<vmem>>, %arg4: memref<32x128xbf16, #tpu.memory_space<vmem>>, %arg5: memref<1x128xf32, #tpu.memory_space<vmem>>, %arg6: memref<3x3x128xf32, #tpu.memory_space<vmem>>, %arg7: memref<1x1x128xf32, #tpu.memory_space<vmem>>, %arg8: memref<128x32xbf16, #tpu.memory_space<vmem>>, %arg9: memref<1x32xf32, #tpu.memory_space<vmem>>, %arg10: memref<1x256x32xf32, #tpu.memory_space<vmem>>, %arg11: memref<18x18x128xf32, #tpu.memory_space<vmem>>) attributes {dimension_semantics = [#tpu.dimension_semantics<parallel>], iteration_bounds = array<i64: 2>, scalar_prefetch = 0 : i64, scratch_operands = 1 : i64, tpu.core_type = #tpu.core_type<tc>, window_params = [{transform_indices = @transform_0, window_bounds = array<i64: 1, 256, 32>}, {pipeline_mode = #tpu.pipeline_mode<synchronous>, transform_indices = @transform_1, window_bounds = array<i64: 1, 32>}, {pipeline_mode = #tpu.pipeline_mode<synchronous>, transform_indices = @transform_2, window_bounds = array<i64: 1, 32>}, {pipeline_mode = #tpu.pipeline_mode<synchronous>, transform_indices = @transform_3, window_bounds = array<i64: 32, 128>}, {pipeline_mode = #tpu.pipeline_mode<synchronous>, transform_indices = @transform_4, window_bounds = array<i64: 1, 128>}, {pipeline_mode = #tpu.pipeline_mode<synchronous>, transform_indices = @transform_5, window_bounds = array<i64: 3, 3, 128>}, {pipeline_mode = #tpu.pipeline_mode<synchronous>, transform_indices = @transform_6, window_bounds = array<i64: 1, 1, 128>}, {pipeline_mode = #tpu.pipeline_mode<synchronous>, transform_indices = @transform_7, window_bounds = array<i64: 128, 32>}, {pipeline_mode = #tpu.pipeline_mode<synchronous>, transform_indices = @transform_8, window_bounds = array<i64: 1, 32>}, {transform_indices = @transform_9, window_bounds = array<i64: 1, 256, 32>}]} {
    %c0 = arith.constant 0 : index
    %c0_0 = arith.constant 0 : index
    %c0_1 = arith.constant 0 : index
    %0 = vector.load %arg1[%c0, %c0_0, %c0_1] : memref<1x256x32xf32, #tpu.memory_space<vmem>>, vector<1x256x32xf32>
    %1 = vector.shape_cast %0 : vector<1x256x32xf32> to vector<256x32xf32>
    %cst = arith.constant dense<0.000000e+00> : vector<256xf32>
    %2 = vector.multi_reduction <add>, %1, %cst [1] : vector<256x32xf32> to vector<256xf32>
    %3 = vector.shape_cast %2 : vector<256xf32> to vector<256x1xf32>
    %cst_2 = arith.constant 3.200000e+01 : f32
    %4 = vector.broadcast %cst_2 : f32 to vector<256x1xf32>
    %5 = arith.divf %3, %4 : vector<256x1xf32>
    %6 = vector.broadcast %5 : vector<256x1xf32> to vector<256x32xf32>
    %7 = arith.subf %1, %6 : vector<256x32xf32>
    %8 = arith.mulf %7, %7 : vector<256x32xf32>
    %cst_3 = arith.constant dense<0.000000e+00> : vector<256xf32>
    %9 = vector.multi_reduction <add>, %8, %cst_3 [1] : vector<256x32xf32> to vector<256xf32>
    %10 = vector.shape_cast %9 : vector<256xf32> to vector<256x1xf32>
    %cst_4 = arith.constant 3.200000e+01 : f32
    %11 = vector.broadcast %cst_4 : f32 to vector<256x1xf32>
    %12 = arith.divf %10, %11 : vector<256x1xf32>
    %cst_5 = arith.constant 9.99999974E-6 : f32
    %13 = vector.broadcast %cst_5 : f32 to vector<256x1xf32>
    %14 = arith.addf %12, %13 : vector<256x1xf32>
    %15 = math.rsqrt %14 : vector<256x1xf32>
    %16 = vector.broadcast %15 : vector<256x1xf32> to vector<256x32xf32>
    %17 = arith.mulf %7, %16 : vector<256x32xf32>
    %c0_6 = arith.constant 0 : index
    %c0_7 = arith.constant 0 : index
    %18 = vector.load %arg2[%c0_6, %c0_7] : memref<1x32xf32, #tpu.memory_space<vmem>>, vector<1x32xf32>
    %19 = vector.broadcast %18 : vector<1x32xf32> to vector<256x32xf32>
    %20 = arith.mulf %17, %19 : vector<256x32xf32>
    %c0_8 = arith.constant 0 : index
    %c0_9 = arith.constant 0 : index
    %21 = vector.load %arg3[%c0_8, %c0_9] : memref<1x32xf32, #tpu.memory_space<vmem>>, vector<1x32xf32>
    %22 = vector.broadcast %21 : vector<1x32xf32> to vector<256x32xf32>
    %23 = arith.addf %20, %22 : vector<256x32xf32>
    %24 = arith.truncf %23 : vector<256x32xf32> to vector<256x32xbf16>
    %c0_10 = arith.constant 0 : index
    %c0_11 = arith.constant 0 : index
    %25 = vector.load %arg4[%c0_10, %c0_11] : memref<32x128xbf16, #tpu.memory_space<vmem>>, vector<32x128xbf16>
    %cst_12 = arith.constant dense<0.000000e+00> : vector<256x128xf32>
    %26 = tpu.matmul %24, %25, %cst_12 {dimension_numbers = #tpu.dot_dimension_numbers<[1], [0], [0], [1], [0, 0, 1, 1], [], []>} : vector<256x32xbf16>, vector<32x128xbf16>, vector<256x128xf32> -> vector<256x128xf32>
    %c0_13 = arith.constant 0 : index
    %c0_14 = arith.constant 0 : index
    %27 = vector.load %arg5[%c0_13, %c0_14] : memref<1x128xf32, #tpu.memory_space<vmem>>, vector<1x128xf32>
    %28 = vector.broadcast %27 : vector<1x128xf32> to vector<256x128xf32>
    %29 = arith.addf %26, %28 : vector<256x128xf32>
    %cst_15 = arith.constant 3.000000e+00 : f32
    %30 = vector.broadcast %cst_15 : f32 to vector<256x128xf32>
    %31 = arith.addf %29, %30 : vector<256x128xf32>
    %cst_16 = arith.constant 0.000000e+00 : f32
    %cst_17 = arith.constant 6.000000e+00 : f32
    %32 = vector.broadcast %cst_16 : f32 to vector<256x128xf32>
    %33 = arith.maximumf %32, %31 : vector<256x128xf32>
    %34 = vector.broadcast %cst_17 : f32 to vector<256x128xf32>
    %35 = arith.minimumf %34, %33 : vector<256x128xf32>
    %36 = arith.mulf %29, %35 : vector<256x128xf32>
    %cst_18 = arith.constant 0.166666672 : f32
    %37 = vector.broadcast %cst_18 : f32 to vector<256x128xf32>
    %38 = arith.mulf %36, %37 : vector<256x128xf32>
    %cst_19 = arith.constant 0.000000e+00 : f32
    %39 = vector.broadcast %cst_19 : f32 to vector<18x18x128xf32>
    %c0_20 = arith.constant 0 : index
    %c0_21 = arith.constant 0 : index
    %c0_22 = arith.constant 0 : index
    %40 = vector.load %arg11[%c0_20, %c0_21, %c0_22] : memref<18x18x128xf32, #tpu.memory_space<vmem>>, vector<18x18x128xf32>
    tpu.vector_store %arg11[%c0_20, %c0_21, %c0_22], %39 {strides = array<i32>} : memref<18x18x128xf32, #tpu.memory_space<vmem>>, vector<18x18x128xf32>,
    %41 = vector.shape_cast %38 : vector<256x128xf32> to vector<16x16x128xf32>
    %c1 = arith.constant 1 : index
    %c1_23 = arith.constant 1 : index
    %c0_24 = arith.constant 0 : index
    %42 = vector.load %arg11[%c1, %c1_23, %c0_24] : memref<18x18x128xf32, #tpu.memory_space<vmem>>, vector<16x16x128xf32>
    tpu.vector_store %arg11[%c1, %c1_23, %c0_24], %41 {strides = array<i32>} : memref<18x18x128xf32, #tpu.memory_space<vmem>>, vector<16x16x128xf32>,
    %c0_25 = arith.constant 0 : index
    %c0_26 = arith.constant 0 : index
    %c0_27 = arith.constant 0 : index
    %43 = vector.load %arg6[%c0_25, %c0_26, %c0_27] : memref<3x3x128xf32, #tpu.memory_space<vmem>>, vector<3x3x128xf32>
    %cst_28 = arith.constant 0.000000e+00 : f32
    %44 = vector.broadcast %cst_28 : f32 to vector<16x16x128xf32>
    %c0_29 = arith.constant 0 : index
    %c0_30 = arith.constant 0 : index
    %c0_31 = arith.constant 0 : index
    %45 = vector.load %arg11[%c0_29, %c0_30, %c0_31] : memref<18x18x128xf32, #tpu.memory_space<vmem>>, vector<16x16x128xf32>
    %46 = vector.extract_strided_slice %43 {offsets = [0, 0, 0], sizes = [1, 1, 128], strides = [1, 1, 1]} : vector<3x3x128xf32> to vector<1x1x128xf32>
    %47 = vector.shape_cast %46 : vector<1x1x128xf32> to vector<128xf32>
    %48 = vector.shape_cast %47 : vector<128xf32> to vector<1x1x128xf32>
    %49 = vector.broadcast %48 : vector<1x1x128xf32> to vector<16x16x128xf32>
    %50 = arith.mulf %45, %49 : vector<16x16x128xf32>
    %51 = arith.addf %44, %50 : vector<16x16x128xf32>
    %c0_32 = arith.constant 0 : index
    %c1_33 = arith.constant 1 : index
    %c0_34 = arith.constant 0 : index
    %52 = vector.load %arg11[%c0_32, %c1_33, %c0_34] : memref<18x18x128xf32, #tpu.memory_space<vmem>>, vector<16x16x128xf32>
    %53 = vector.extract_strided_slice %43 {offsets = [0, 1, 0], sizes = [1, 1, 128], strides = [1, 1, 1]} : vector<3x3x128xf32> to vector<1x1x128xf32>
    %54 = vector.shape_cast %53 : vector<1x1x128xf32> to vector<128xf32>
    %55 = vector.shape_cast %54 : vector<128xf32> to vector<1x1x128xf32>
    %56 = vector.broadcast %55 : vector<1x1x128xf32> to vector<16x16x128xf32>
    %57 = arith.mulf %52, %56 : vector<16x16x128xf32>
    %58 = arith.addf %51, %57 : vector<16x16x128xf32>
    %c0_35 = arith.constant 0 : index
    %c2 = arith.constant 2 : index
    %c0_36 = arith.constant 0 : index
    %59 = vector.load %arg11[%c0_35, %c2, %c0_36] : memref<18x18x128xf32, #tpu.memory_space<vmem>>, vector<16x16x128xf32>
    %60 = vector.extract_strided_slice %43 {offsets = [0, 2, 0], sizes = [1, 1, 128], strides = [1, 1, 1]} : vector<3x3x128xf32> to vector<1x1x128xf32>
    %61 = vector.shape_cast %60 : vector<1x1x128xf32> to vector<128xf32>
    %62 = vector.shape_cast %61 : vector<128xf32> to vector<1x1x128xf32>
    %63 = vector.broadcast %62 : vector<1x1x128xf32> to vector<16x16x128xf32>
    %64 = arith.mulf %59, %63 : vector<16x16x128xf32>
    %65 = arith.addf %58, %64 : vector<16x16x128xf32>
    %c1_37 = arith.constant 1 : index
    %c0_38 = arith.constant 0 : index
    %c0_39 = arith.constant 0 : index
    %66 = vector.load %arg11[%c1_37, %c0_38, %c0_39] : memref<18x18x128xf32, #tpu.memory_space<vmem>>, vector<16x16x128xf32>
    %67 = vector.extract_strided_slice %43 {offsets = [1, 0, 0], sizes = [1, 1, 128], strides = [1, 1, 1]} : vector<3x3x128xf32> to vector<1x1x128xf32>
    %68 = vector.shape_cast %67 : vector<1x1x128xf32> to vector<128xf32>
    %69 = vector.shape_cast %68 : vector<128xf32> to vector<1x1x128xf32>
    %70 = vector.broadcast %69 : vector<1x1x128xf32> to vector<16x16x128xf32>
    %71 = arith.mulf %66, %70 : vector<16x16x128xf32>
    %72 = arith.addf %65, %71 : vector<16x16x128xf32>
    %c1_40 = arith.constant 1 : index
    %c1_41 = arith.constant 1 : index
    %c0_42 = arith.constant 0 : index
    %73 = vector.load %arg11[%c1_40, %c1_41, %c0_42] : memref<18x18x128xf32, #tpu.memory_space<vmem>>, vector<16x16x128xf32>
    %74 = vector.extract_strided_slice %43 {offsets = [1, 1, 0], sizes = [1, 1, 128], strides = [1, 1, 1]} : vector<3x3x128xf32> to vector<1x1x128xf32>
    %75 = vector.shape_cast %74 : vector<1x1x128xf32> to vector<128xf32>
    %76 = vector.shape_cast %75 : vector<128xf32> to vector<1x1x128xf32>
    %77 = vector.broadcast %76 : vector<1x1x128xf32> to vector<16x16x128xf32>
    %78 = arith.mulf %73, %77 : vector<16x16x128xf32>
    %79 = arith.addf %72, %78 : vector<16x16x128xf32>
    %c1_43 = arith.constant 1 : index
    %c2_44 = arith.constant 2 : index
    %c0_45 = arith.constant 0 : index
    %80 = vector.load %arg11[%c1_43, %c2_44, %c0_45] : memref<18x18x128xf32, #tpu.memory_space<vmem>>, vector<16x16x128xf32>
    %81 = vector.extract_strided_slice %43 {offsets = [1, 2, 0], sizes = [1, 1, 128], strides = [1, 1, 1]} : vector<3x3x128xf32> to vector<1x1x128xf32>
    %82 = vector.shape_cast %81 : vector<1x1x128xf32> to vector<128xf32>
    %83 = vector.shape_cast %82 : vector<128xf32> to vector<1x1x128xf32>
    %84 = vector.broadcast %83 : vector<1x1x128xf32> to vector<16x16x128xf32>
    %85 = arith.mulf %80, %84 : vector<16x16x128xf32>
    %86 = arith.addf %79, %85 : vector<16x16x128xf32>
    %c2_46 = arith.constant 2 : index
    %c0_47 = arith.constant 0 : index
    %c0_48 = arith.constant 0 : index
    %87 = vector.load %arg11[%c2_46, %c0_47, %c0_48] : memref<18x18x128xf32, #tpu.memory_space<vmem>>, vector<16x16x128xf32>
    %88 = vector.extract_strided_slice %43 {offsets = [2, 0, 0], sizes = [1, 1, 128], strides = [1, 1, 1]} : vector<3x3x128xf32> to vector<1x1x128xf32>
    %89 = vector.shape_cast %88 : vector<1x1x128xf32> to vector<128xf32>
    %90 = vector.shape_cast %89 : vector<128xf32> to vector<1x1x128xf32>
    %91 = vector.broadcast %90 : vector<1x1x128xf32> to vector<16x16x128xf32>
    %92 = arith.mulf %87, %91 : vector<16x16x128xf32>
    %93 = arith.addf %86, %92 : vector<16x16x128xf32>
    %c2_49 = arith.constant 2 : index
    %c1_50 = arith.constant 1 : index
    %c0_51 = arith.constant 0 : index
    %94 = vector.load %arg11[%c2_49, %c1_50, %c0_51] : memref<18x18x128xf32, #tpu.memory_space<vmem>>, vector<16x16x128xf32>
    %95 = vector.extract_strided_slice %43 {offsets = [2, 1, 0], sizes = [1, 1, 128], strides = [1, 1, 1]} : vector<3x3x128xf32> to vector<1x1x128xf32>
    %96 = vector.shape_cast %95 : vector<1x1x128xf32> to vector<128xf32>
    %97 = vector.shape_cast %96 : vector<128xf32> to vector<1x1x128xf32>
    %98 = vector.broadcast %97 : vector<1x1x128xf32> to vector<16x16x128xf32>
    %99 = arith.mulf %94, %98 : vector<16x16x128xf32>
    %100 = arith.addf %93, %99 : vector<16x16x128xf32>
    %c2_52 = arith.constant 2 : index
    %c2_53 = arith.constant 2 : index
    %c0_54 = arith.constant 0 : index
    %101 = vector.load %arg11[%c2_52, %c2_53, %c0_54] : memref<18x18x128xf32, #tpu.memory_space<vmem>>, vector<16x16x128xf32>
    %102 = vector.extract_strided_slice %43 {offsets = [2, 2, 0], sizes = [1, 1, 128], strides = [1, 1, 1]} : vector<3x3x128xf32> to vector<1x1x128xf32>
    %103 = vector.shape_cast %102 : vector<1x1x128xf32> to vector<128xf32>
    %104 = vector.shape_cast %103 : vector<128xf32> to vector<1x1x128xf32>
    %105 = vector.broadcast %104 : vector<1x1x128xf32> to vector<16x16x128xf32>
    %106 = arith.mulf %101, %105 : vector<16x16x128xf32>
    %107 = arith.addf %100, %106 : vector<16x16x128xf32>
    %c0_55 = arith.constant 0 : index
    %c0_56 = arith.constant 0 : index
    %c0_57 = arith.constant 0 : index
    %108 = vector.load %arg7[%c0_55, %c0_56, %c0_57] : memref<1x1x128xf32, #tpu.memory_space<vmem>>, vector<1x1x128xf32>
    %109 = vector.broadcast %108 : vector<1x1x128xf32> to vector<16x16x128xf32>
    %110 = arith.addf %107, %109 : vector<16x16x128xf32>
    %cst_58 = arith.constant 3.000000e+00 : f32
    %111 = vector.broadcast %cst_58 : f32 to vector<16x16x128xf32>
    %112 = arith.addf %110, %111 : vector<16x16x128xf32>
    %cst_59 = arith.constant 0.000000e+00 : f32
    %cst_60 = arith.constant 6.000000e+00 : f32
    %113 = vector.broadcast %cst_59 : f32 to vector<16x16x128xf32>
    %114 = arith.maximumf %113, %112 : vector<16x16x128xf32>
    %115 = vector.broadcast %cst_60 : f32 to vector<16x16x128xf32>
    %116 = arith.minimumf %115, %114 : vector<16x16x128xf32>
    %117 = arith.mulf %110, %116 : vector<16x16x128xf32>
    %cst_61 = arith.constant 0.166666672 : f32
    %118 = vector.broadcast %cst_61 : f32 to vector<16x16x128xf32>
    %119 = arith.mulf %117, %118 : vector<16x16x128xf32>
    %120 = vector.shape_cast %119 : vector<16x16x128xf32> to vector<256x128xf32>
    %121 = arith.truncf %120 : vector<256x128xf32> to vector<256x128xbf16>
    %c0_62 = arith.constant 0 : index
    %c0_63 = arith.constant 0 : index
    %122 = vector.load %arg8[%c0_62, %c0_63] : memref<128x32xbf16, #tpu.memory_space<vmem>>, vector<128x32xbf16>
    %cst_64 = arith.constant dense<0.000000e+00> : vector<256x32xf32>
    %123 = tpu.matmul %121, %122, %cst_64 {dimension_numbers = #tpu.dot_dimension_numbers<[1], [0], [0], [1], [0, 0, 1, 1], [], []>} : vector<256x128xbf16>, vector<128x32xbf16>, vector<256x32xf32> -> vector<256x32xf32>
    %c0_65 = arith.constant 0 : index
    %c0_66 = arith.constant 0 : index
    %124 = vector.load %arg9[%c0_65, %c0_66] : memref<1x32xf32, #tpu.memory_space<vmem>>, vector<1x32xf32>
    %125 = vector.broadcast %124 : vector<1x32xf32> to vector<256x32xf32>
    %126 = arith.addf %123, %125 : vector<256x32xf32>
    %127 = arith.addf %1, %126 : vector<256x32xf32>
    %c0_67 = arith.constant 0 : index
    %c0_68 = arith.constant 0 : index
    %c0_69 = arith.constant 0 : index
    %128 = vector.load %arg10[%c0_67, %c0_68, %c0_69] : memref<1x256x32xf32, #tpu.memory_space<vmem>>, vector<1x256x32xf32>
    %129 = vector.shape_cast %128 : vector<1x256x32xf32> to vector<256x32xf32>
    %130 = vector.shape_cast %127 : vector<256x32xf32> to vector<1x256x32xf32>
    tpu.vector_store %arg10[%c0_67, %c0_68, %c0_69], %130 {strides = array<i32>} : memref<1x256x32xf32, #tpu.memory_space<vmem>>, vector<1x256x32xf32>,
    return
  }
  func.func @transform_0(%arg0: i32) -> (i32, i32, i32) {
    %c0_i32 = arith.constant 0 : i32
    %c0_i32_0 = arith.constant 0 : i32
    %c0_i32_1 = arith.constant 0 : i32
    return %arg0, %c0_i32, %c0_i32_0 : i32, i32, i32
  }
  func.func @transform_1(%arg0: i32) -> (i32, i32) {
    %c0_i32 = arith.constant 0 : i32
    %c0_i32_0 = arith.constant 0 : i32
    %c0_i32_1 = arith.constant 0 : i32
    return %c0_i32, %c0_i32_0 : i32, i32
  }
  func.func @transform_2(%arg0: i32) -> (i32, i32) {
    %c0_i32 = arith.constant 0 : i32
    %c0_i32_0 = arith.constant 0 : i32
    %c0_i32_1 = arith.constant 0 : i32
    return %c0_i32, %c0_i32_0 : i32, i32
  }
  func.func @transform_3(%arg0: i32) -> (i32, i32) {
    %c0_i32 = arith.constant 0 : i32
    %c0_i32_0 = arith.constant 0 : i32
    %c0_i32_1 = arith.constant 0 : i32
    return %c0_i32, %c0_i32_0 : i32, i32
  }
  func.func @transform_4(%arg0: i32) -> (i32, i32) {
    %c0_i32 = arith.constant 0 : i32
    %c0_i32_0 = arith.constant 0 : i32
    %c0_i32_1 = arith.constant 0 : i32
    return %c0_i32, %c0_i32_0 : i32, i32
  }
  func.func @transform_5(%arg0: i32) -> (i32, i32, i32) {
    %c0_i32 = arith.constant 0 : i32
    %c0_i32_0 = arith.constant 0 : i32
    %c0_i32_1 = arith.constant 0 : i32
    %c0_i32_2 = arith.constant 0 : i32
    return %c0_i32, %c0_i32_0, %c0_i32_1 : i32, i32, i32
  }
  func.func @transform_6(%arg0: i32) -> (i32, i32, i32) {
    %c0_i32 = arith.constant 0 : i32
    %c0_i32_0 = arith.constant 0 : i32
    %c0_i32_1 = arith.constant 0 : i32
    %c0_i32_2 = arith.constant 0 : i32
    return %c0_i32, %c0_i32_0, %c0_i32_1 : i32, i32, i32
  }
  func.func @transform_7(%arg0: i32) -> (i32, i32) {
    %c0_i32 = arith.constant 0 : i32
    %c0_i32_0 = arith.constant 0 : i32
    %c0_i32_1 = arith.constant 0 : i32
    return %c0_i32, %c0_i32_0 : i32, i32
  }
  func.func @transform_8(%arg0: i32) -> (i32, i32) {
    %c0_i32 = arith.constant 0 : i32
    %c0_i32_0 = arith.constant 0 : i32
    %c0_i32_1 = arith.constant 0 : i32
    return %c0_i32, %c0_i32_0 : i32, i32
  }
  func.func @transform_9(%arg0: i32) -> (i32, i32, i32) {
    %c0_i32 = arith.constant 0 : i32
    %c0_i32_0 = arith.constant 0 : i32
    %c0_i32_1 = arith.constant 0 : i32
    return %arg0, %c0_i32, %c0_i32_0 : i32, i32, i32
  }
}

module attributes {stable_mosaic.version = 11 : i64} {
  func.func @_attn_branch_kernel(%arg0: i32, %arg1: memref<1x256x32xf32, #tpu.memory_space<vmem>>, %arg2: memref<1x10x10x32xf32, #tpu.memory_space<vmem>>, %arg3: memref<1x6x6x32xf32, #tpu.memory_space<vmem>>, %arg4: memref<1x4x4x32xf32, #tpu.memory_space<vmem>>, %arg5: memref<1x3x3x32xf32, #tpu.memory_space<vmem>>, %arg6: memref<3x3x32xf32, #tpu.memory_space<vmem>>, %arg7: memref<3x3x32xf32, #tpu.memory_space<vmem>>, %arg8: memref<3x3x32xf32, #tpu.memory_space<vmem>>, %arg9: memref<3x3x32xf32, #tpu.memory_space<vmem>>, %arg10: memref<1x1x32xf32, #tpu.memory_space<vmem>>, %arg11: memref<1x1x32xf32, #tpu.memory_space<vmem>>, %arg12: memref<1x1x32xf32, #tpu.memory_space<vmem>>, %arg13: memref<1x1x32xf32, #tpu.memory_space<vmem>>, %arg14: memref<1x32xf32, #tpu.memory_space<vmem>>, %arg15: memref<1x32xf32, #tpu.memory_space<vmem>>, %arg16: memref<1x32xf32, #tpu.memory_space<vmem>>, %arg17: memref<1x32xf32, #tpu.memory_space<vmem>>, %arg18: memref<2x32x16xbf16, #tpu.memory_space<vmem>>, %arg19: memref<2x2x32x16xbf16, #tpu.memory_space<vmem>>, %arg20: memref<2x16x32xbf16, #tpu.memory_space<vmem>>, %arg21: memref<1x32xf32, #tpu.memory_space<vmem>>, %arg22: memref<1x256x32xf32, #tpu.memory_space<vmem>>, %arg23: memref<128x32xf32, #tpu.memory_space<vmem>>) attributes {dimension_semantics = [#tpu.dimension_semantics<parallel>], iteration_bounds = array<i64: 2>, scalar_prefetch = 0 : i64, scratch_operands = 1 : i64, tpu.core_type = #tpu.core_type<tc>, window_params = [{transform_indices = @transform_0, window_bounds = array<i64: 1, 256, 32>}, {transform_indices = @transform_1, window_bounds = array<i64: 1, 10, 10, 32>}, {transform_indices = @transform_2, window_bounds = array<i64: 1, 6, 6, 32>}, {transform_indices = @transform_3, window_bounds = array<i64: 1, 4, 4, 32>}, {transform_indices = @transform_4, window_bounds = array<i64: 1, 3, 3, 32>}, {pipeline_mode = #tpu.pipeline_mode<synchronous>, transform_indices = @transform_5, window_bounds = array<i64: 3, 3, 32>}, {pipeline_mode = #tpu.pipeline_mode<synchronous>, transform_indices = @transform_6, window_bounds = array<i64: 3, 3, 32>}, {pipeline_mode = #tpu.pipeline_mode<synchronous>, transform_indices = @transform_7, window_bounds = array<i64: 3, 3, 32>}, {pipeline_mode = #tpu.pipeline_mode<synchronous>, transform_indices = @transform_8, window_bounds = array<i64: 3, 3, 32>}, {pipeline_mode = #tpu.pipeline_mode<synchronous>, transform_indices = @transform_9, window_bounds = array<i64: 1, 1, 32>}, {pipeline_mode = #tpu.pipeline_mode<synchronous>, transform_indices = @transform_10, window_bounds = array<i64: 1, 1, 32>}, {pipeline_mode = #tpu.pipeline_mode<synchronous>, transform_indices = @transform_11, window_bounds = array<i64: 1, 1, 32>}, {pipeline_mode = #tpu.pipeline_mode<synchronous>, transform_indices = @transform_12, window_bounds = array<i64: 1, 1, 32>}, {pipeline_mode = #tpu.pipeline_mode<synchronous>, transform_indices = @transform_13, window_bounds = array<i64: 1, 32>}, {pipeline_mode = #tpu.pipeline_mode<synchronous>, transform_indices = @transform_14, window_bounds = array<i64: 1, 32>}, {pipeline_mode = #tpu.pipeline_mode<synchronous>, transform_indices = @transform_15, window_bounds = array<i64: 1, 32>}, {pipeline_mode = #tpu.pipeline_mode<synchronous>, transform_indices = @transform_16, window_bounds = array<i64: 1, 32>}, {pipeline_mode = #tpu.pipeline_mode<synchronous>, transform_indices = @transform_17, window_bounds = array<i64: 2, 32, 16>}, {pipeline_mode = #tpu.pipeline_mode<synchronous>, transform_indices = @transform_18, window_bounds = array<i64: 2, 2, 32, 16>}, {pipeline_mode = #tpu.pipeline_mode<synchronous>, transform_indices = @transform_19, window_bounds = array<i64: 2, 16, 32>}, {pipeline_mode = #tpu.pipeline_mode<synchronous>, transform_indices = @transform_20, window_bounds = array<i64: 1, 32>}, {transform_indices = @transform_21, window_bounds = array<i64: 1, 256, 32>}]} {
    %cst = arith.constant 0.000000e+00 : f32
    %0 = vector.broadcast %cst : f32 to vector<43x32xf32>
    %c85 = arith.constant 85 : index
    %c0 = arith.constant 0 : index
    %1 = vector.load %arg23[%c85, %c0] : memref<128x32xf32, #tpu.memory_space<vmem>>, vector<43x32xf32>
    tpu.vector_store %arg23[%c85, %c0], %0 {strides = array<i32>} : memref<128x32xf32, #tpu.memory_space<vmem>>, vector<43x32xf32>,
    %c0_0 = arith.constant 0 : index
    %c0_1 = arith.constant 0 : index
    %c0_2 = arith.constant 0 : index
    %2 = vector.load %arg6[%c0_0, %c0_1, %c0_2] : memref<3x3x32xf32, #tpu.memory_space<vmem>>, vector<3x3x32xf32>
    %cst_3 = arith.constant 0.000000e+00 : f32
    %3 = vector.broadcast %cst_3 : f32 to vector<8x8x32xf32>
    %c0_4 = arith.constant 0 : index
    %c0_5 = arith.constant 0 : index
    %c0_6 = arith.constant 0 : index
    %c0_7 = arith.constant 0 : index
    %4 = vector.load %arg2[%c0_4, %c0_5, %c0_6, %c0_7] : memref<1x10x10x32xf32, #tpu.memory_space<vmem>>, vector<1x8x8x32xf32>
    %5 = vector.shape_cast %4 : vector<1x8x8x32xf32> to vector<8x8x32xf32>
    %6 = vector.extract_strided_slice %2 {offsets = [0, 0, 0], sizes = [1, 1, 32], strides = [1, 1, 1]} : vector<3x3x32xf32> to vector<1x1x32xf32>
    %7 = vector.shape_cast %6 : vector<1x1x32xf32> to vector<32xf32>
    %8 = vector.shape_cast %7 : vector<32xf32> to vector<1x1x32xf32>
    %9 = vector.broadcast %8 : vector<1x1x32xf32> to vector<8x8x32xf32>
    %10 = arith.mulf %5, %9 : vector<8x8x32xf32>
    %11 = arith.addf %3, %10 : vector<8x8x32xf32>
    %c0_8 = arith.constant 0 : index
    %c0_9 = arith.constant 0 : index
    %c1 = arith.constant 1 : index
    %c0_10 = arith.constant 0 : index
    %12 = vector.load %arg2[%c0_8, %c0_9, %c1, %c0_10] : memref<1x10x10x32xf32, #tpu.memory_space<vmem>>, vector<1x8x8x32xf32>
    %13 = vector.shape_cast %12 : vector<1x8x8x32xf32> to vector<8x8x32xf32>
    %14 = vector.extract_strided_slice %2 {offsets = [0, 1, 0], sizes = [1, 1, 32], strides = [1, 1, 1]} : vector<3x3x32xf32> to vector<1x1x32xf32>
    %15 = vector.shape_cast %14 : vector<1x1x32xf32> to vector<32xf32>
    %16 = vector.shape_cast %15 : vector<32xf32> to vector<1x1x32xf32>
    %17 = vector.broadcast %16 : vector<1x1x32xf32> to vector<8x8x32xf32>
    %18 = arith.mulf %13, %17 : vector<8x8x32xf32>
    %19 = arith.addf %11, %18 : vector<8x8x32xf32>
    %c0_11 = arith.constant 0 : index
    %c0_12 = arith.constant 0 : index
    %c2 = arith.constant 2 : index
    %c0_13 = arith.constant 0 : index
    %20 = vector.load %arg2[%c0_11, %c0_12, %c2, %c0_13] : memref<1x10x10x32xf32, #tpu.memory_space<vmem>>, vector<1x8x8x32xf32>
    %21 = vector.shape_cast %20 : vector<1x8x8x32xf32> to vector<8x8x32xf32>
    %22 = vector.extract_strided_slice %2 {offsets = [0, 2, 0], sizes = [1, 1, 32], strides = [1, 1, 1]} : vector<3x3x32xf32> to vector<1x1x32xf32>
    %23 = vector.shape_cast %22 : vector<1x1x32xf32> to vector<32xf32>
    %24 = vector.shape_cast %23 : vector<32xf32> to vector<1x1x32xf32>
    %25 = vector.broadcast %24 : vector<1x1x32xf32> to vector<8x8x32xf32>
    %26 = arith.mulf %21, %25 : vector<8x8x32xf32>
    %27 = arith.addf %19, %26 : vector<8x8x32xf32>
    %c0_14 = arith.constant 0 : index
    %c1_15 = arith.constant 1 : index
    %c0_16 = arith.constant 0 : index
    %c0_17 = arith.constant 0 : index
    %28 = vector.load %arg2[%c0_14, %c1_15, %c0_16, %c0_17] : memref<1x10x10x32xf32, #tpu.memory_space<vmem>>, vector<1x8x8x32xf32>
    %29 = vector.shape_cast %28 : vector<1x8x8x32xf32> to vector<8x8x32xf32>
    %30 = vector.extract_strided_slice %2 {offsets = [1, 0, 0], sizes = [1, 1, 32], strides = [1, 1, 1]} : vector<3x3x32xf32> to vector<1x1x32xf32>
    %31 = vector.shape_cast %30 : vector<1x1x32xf32> to vector<32xf32>
    %32 = vector.shape_cast %31 : vector<32xf32> to vector<1x1x32xf32>
    %33 = vector.broadcast %32 : vector<1x1x32xf32> to vector<8x8x32xf32>
    %34 = arith.mulf %29, %33 : vector<8x8x32xf32>
    %35 = arith.addf %27, %34 : vector<8x8x32xf32>
    %c0_18 = arith.constant 0 : index
    %c1_19 = arith.constant 1 : index
    %c1_20 = arith.constant 1 : index
    %c0_21 = arith.constant 0 : index
    %36 = vector.load %arg2[%c0_18, %c1_19, %c1_20, %c0_21] : memref<1x10x10x32xf32, #tpu.memory_space<vmem>>, vector<1x8x8x32xf32>
    %37 = vector.shape_cast %36 : vector<1x8x8x32xf32> to vector<8x8x32xf32>
    %38 = vector.extract_strided_slice %2 {offsets = [1, 1, 0], sizes = [1, 1, 32], strides = [1, 1, 1]} : vector<3x3x32xf32> to vector<1x1x32xf32>
    %39 = vector.shape_cast %38 : vector<1x1x32xf32> to vector<32xf32>
    %40 = vector.shape_cast %39 : vector<32xf32> to vector<1x1x32xf32>
    %41 = vector.broadcast %40 : vector<1x1x32xf32> to vector<8x8x32xf32>
    %42 = arith.mulf %37, %41 : vector<8x8x32xf32>
    %43 = arith.addf %35, %42 : vector<8x8x32xf32>
    %c0_22 = arith.constant 0 : index
    %c1_23 = arith.constant 1 : index
    %c2_24 = arith.constant 2 : index
    %c0_25 = arith.constant 0 : index
    %44 = vector.load %arg2[%c0_22, %c1_23, %c2_24, %c0_25] : memref<1x10x10x32xf32, #tpu.memory_space<vmem>>, vector<1x8x8x32xf32>
    %45 = vector.shape_cast %44 : vector<1x8x8x32xf32> to vector<8x8x32xf32>
    %46 = vector.extract_strided_slice %2 {offsets = [1, 2, 0], sizes = [1, 1, 32], strides = [1, 1, 1]} : vector<3x3x32xf32> to vector<1x1x32xf32>
    %47 = vector.shape_cast %46 : vector<1x1x32xf32> to vector<32xf32>
    %48 = vector.shape_cast %47 : vector<32xf32> to vector<1x1x32xf32>
    %49 = vector.broadcast %48 : vector<1x1x32xf32> to vector<8x8x32xf32>
    %50 = arith.mulf %45, %49 : vector<8x8x32xf32>
    %51 = arith.addf %43, %50 : vector<8x8x32xf32>
    %c0_26 = arith.constant 0 : index
    %c2_27 = arith.constant 2 : index
    %c0_28 = arith.constant 0 : index
    %c0_29 = arith.constant 0 : index
    %52 = vector.load %arg2[%c0_26, %c2_27, %c0_28, %c0_29] : memref<1x10x10x32xf32, #tpu.memory_space<vmem>>, vector<1x8x8x32xf32>
    %53 = vector.shape_cast %52 : vector<1x8x8x32xf32> to vector<8x8x32xf32>
    %54 = vector.extract_strided_slice %2 {offsets = [2, 0, 0], sizes = [1, 1, 32], strides = [1, 1, 1]} : vector<3x3x32xf32> to vector<1x1x32xf32>
    %55 = vector.shape_cast %54 : vector<1x1x32xf32> to vector<32xf32>
    %56 = vector.shape_cast %55 : vector<32xf32> to vector<1x1x32xf32>
    %57 = vector.broadcast %56 : vector<1x1x32xf32> to vector<8x8x32xf32>
    %58 = arith.mulf %53, %57 : vector<8x8x32xf32>
    %59 = arith.addf %51, %58 : vector<8x8x32xf32>
    %c0_30 = arith.constant 0 : index
    %c2_31 = arith.constant 2 : index
    %c1_32 = arith.constant 1 : index
    %c0_33 = arith.constant 0 : index
    %60 = vector.load %arg2[%c0_30, %c2_31, %c1_32, %c0_33] : memref<1x10x10x32xf32, #tpu.memory_space<vmem>>, vector<1x8x8x32xf32>
    %61 = vector.shape_cast %60 : vector<1x8x8x32xf32> to vector<8x8x32xf32>
    %62 = vector.extract_strided_slice %2 {offsets = [2, 1, 0], sizes = [1, 1, 32], strides = [1, 1, 1]} : vector<3x3x32xf32> to vector<1x1x32xf32>
    %63 = vector.shape_cast %62 : vector<1x1x32xf32> to vector<32xf32>
    %64 = vector.shape_cast %63 : vector<32xf32> to vector<1x1x32xf32>
    %65 = vector.broadcast %64 : vector<1x1x32xf32> to vector<8x8x32xf32>
    %66 = arith.mulf %61, %65 : vector<8x8x32xf32>
    %67 = arith.addf %59, %66 : vector<8x8x32xf32>
    %c0_34 = arith.constant 0 : index
    %c2_35 = arith.constant 2 : index
    %c2_36 = arith.constant 2 : index
    %c0_37 = arith.constant 0 : index
    %68 = vector.load %arg2[%c0_34, %c2_35, %c2_36, %c0_37] : memref<1x10x10x32xf32, #tpu.memory_space<vmem>>, vector<1x8x8x32xf32>
    %69 = vector.shape_cast %68 : vector<1x8x8x32xf32> to vector<8x8x32xf32>
    %70 = vector.extract_strided_slice %2 {offsets = [2, 2, 0], sizes = [1, 1, 32], strides = [1, 1, 1]} : vector<3x3x32xf32> to vector<1x1x32xf32>
    %71 = vector.shape_cast %70 : vector<1x1x32xf32> to vector<32xf32>
    %72 = vector.shape_cast %71 : vector<32xf32> to vector<1x1x32xf32>
    %73 = vector.broadcast %72 : vector<1x1x32xf32> to vector<8x8x32xf32>
    %74 = arith.mulf %69, %73 : vector<8x8x32xf32>
    %75 = arith.addf %67, %74 : vector<8x8x32xf32>
    %c0_38 = arith.constant 0 : index
    %c0_39 = arith.constant 0 : index
    %c0_40 = arith.constant 0 : index
    %76 = vector.load %arg10[%c0_38, %c0_39, %c0_40] : memref<1x1x32xf32, #tpu.memory_space<vmem>>, vector<1x1x32xf32>
    %77 = vector.broadcast %76 : vector<1x1x32xf32> to vector<8x8x32xf32>
    %78 = arith.addf %75, %77 : vector<8x8x32xf32>
    %c0_41 = arith.constant 0 : index
    %c1_42 = arith.constant 1 : index
    %c1_43 = arith.constant 1 : index
    %c0_44 = arith.constant 0 : index
    %79 = vector.load %arg2[%c0_41, %c1_42, %c1_43, %c0_44] : memref<1x10x10x32xf32, #tpu.memory_space<vmem>>, vector<1x8x8x32xf32>
    %80 = vector.shape_cast %79 : vector<1x8x8x32xf32> to vector<8x8x32xf32>
    %81 = arith.addf %78, %80 : vector<8x8x32xf32>
    %82 = vector.shape_cast %81 : vector<8x8x32xf32> to vector<64x32xf32>
    %c0_45 = arith.constant 0 : index
    %c0_46 = arith.constant 0 : index
    %83 = vector.load %arg23[%c0_45, %c0_46] : memref<128x32xf32, #tpu.memory_space<vmem>>, vector<64x32xf32>
    tpu.vector_store %arg23[%c0_45, %c0_46], %82 {strides = array<i32>} : memref<128x32xf32, #tpu.memory_space<vmem>>, vector<64x32xf32>,
    %c0_47 = arith.constant 0 : index
    %c0_48 = arith.constant 0 : index
    %c0_49 = arith.constant 0 : index
    %84 = vector.load %arg7[%c0_47, %c0_48, %c0_49] : memref<3x3x32xf32, #tpu.memory_space<vmem>>, vector<3x3x32xf32>
    %cst_50 = arith.constant 0.000000e+00 : f32
    %85 = vector.broadcast %cst_50 : f32 to vector<4x4x32xf32>
    %c0_51 = arith.constant 0 : index
    %c0_52 = arith.constant 0 : index
    %c0_53 = arith.constant 0 : index
    %c0_54 = arith.constant 0 : index
    %86 = vector.load %arg3[%c0_51, %c0_52, %c0_53, %c0_54] : memref<1x6x6x32xf32, #tpu.memory_space<vmem>>, vector<1x4x4x32xf32>
    %87 = vector.shape_cast %86 : vector<1x4x4x32xf32> to vector<4x4x32xf32>
    %88 = vector.extract_strided_slice %84 {offsets = [0, 0, 0], sizes = [1, 1, 32], strides = [1, 1, 1]} : vector<3x3x32xf32> to vector<1x1x32xf32>
    %89 = vector.shape_cast %88 : vector<1x1x32xf32> to vector<32xf32>
    %90 = vector.shape_cast %89 : vector<32xf32> to vector<1x1x32xf32>
    %91 = vector.broadcast %90 : vector<1x1x32xf32> to vector<4x4x32xf32>
    %92 = arith.mulf %87, %91 : vector<4x4x32xf32>
    %93 = arith.addf %85, %92 : vector<4x4x32xf32>
    %c0_55 = arith.constant 0 : index
    %c0_56 = arith.constant 0 : index
    %c1_57 = arith.constant 1 : index
    %c0_58 = arith.constant 0 : index
    %94 = vector.load %arg3[%c0_55, %c0_56, %c1_57, %c0_58] : memref<1x6x6x32xf32, #tpu.memory_space<vmem>>, vector<1x4x4x32xf32>
    %95 = vector.shape_cast %94 : vector<1x4x4x32xf32> to vector<4x4x32xf32>
    %96 = vector.extract_strided_slice %84 {offsets = [0, 1, 0], sizes = [1, 1, 32], strides = [1, 1, 1]} : vector<3x3x32xf32> to vector<1x1x32xf32>
    %97 = vector.shape_cast %96 : vector<1x1x32xf32> to vector<32xf32>
    %98 = vector.shape_cast %97 : vector<32xf32> to vector<1x1x32xf32>
    %99 = vector.broadcast %98 : vector<1x1x32xf32> to vector<4x4x32xf32>
    %100 = arith.mulf %95, %99 : vector<4x4x32xf32>
    %101 = arith.addf %93, %100 : vector<4x4x32xf32>
    %c0_59 = arith.constant 0 : index
    %c0_60 = arith.constant 0 : index
    %c2_61 = arith.constant 2 : index
    %c0_62 = arith.constant 0 : index
    %102 = vector.load %arg3[%c0_59, %c0_60, %c2_61, %c0_62] : memref<1x6x6x32xf32, #tpu.memory_space<vmem>>, vector<1x4x4x32xf32>
    %103 = vector.shape_cast %102 : vector<1x4x4x32xf32> to vector<4x4x32xf32>
    %104 = vector.extract_strided_slice %84 {offsets = [0, 2, 0], sizes = [1, 1, 32], strides = [1, 1, 1]} : vector<3x3x32xf32> to vector<1x1x32xf32>
    %105 = vector.shape_cast %104 : vector<1x1x32xf32> to vector<32xf32>
    %106 = vector.shape_cast %105 : vector<32xf32> to vector<1x1x32xf32>
    %107 = vector.broadcast %106 : vector<1x1x32xf32> to vector<4x4x32xf32>
    %108 = arith.mulf %103, %107 : vector<4x4x32xf32>
    %109 = arith.addf %101, %108 : vector<4x4x32xf32>
    %c0_63 = arith.constant 0 : index
    %c1_64 = arith.constant 1 : index
    %c0_65 = arith.constant 0 : index
    %c0_66 = arith.constant 0 : index
    %110 = vector.load %arg3[%c0_63, %c1_64, %c0_65, %c0_66] : memref<1x6x6x32xf32, #tpu.memory_space<vmem>>, vector<1x4x4x32xf32>
    %111 = vector.shape_cast %110 : vector<1x4x4x32xf32> to vector<4x4x32xf32>
    %112 = vector.extract_strided_slice %84 {offsets = [1, 0, 0], sizes = [1, 1, 32], strides = [1, 1, 1]} : vector<3x3x32xf32> to vector<1x1x32xf32>
    %113 = vector.shape_cast %112 : vector<1x1x32xf32> to vector<32xf32>
    %114 = vector.shape_cast %113 : vector<32xf32> to vector<1x1x32xf32>
    %115 = vector.broadcast %114 : vector<1x1x32xf32> to vector<4x4x32xf32>
    %116 = arith.mulf %111, %115 : vector<4x4x32xf32>
    %117 = arith.addf %109, %116 : vector<4x4x32xf32>
    %c0_67 = arith.constant 0 : index
    %c1_68 = arith.constant 1 : index
    %c1_69 = arith.constant 1 : index
    %c0_70 = arith.constant 0 : index
    %118 = vector.load %arg3[%c0_67, %c1_68, %c1_69, %c0_70] : memref<1x6x6x32xf32, #tpu.memory_space<vmem>>, vector<1x4x4x32xf32>
    %119 = vector.shape_cast %118 : vector<1x4x4x32xf32> to vector<4x4x32xf32>
    %120 = vector.extract_strided_slice %84 {offsets = [1, 1, 0], sizes = [1, 1, 32], strides = [1, 1, 1]} : vector<3x3x32xf32> to vector<1x1x32xf32>
    %121 = vector.shape_cast %120 : vector<1x1x32xf32> to vector<32xf32>
    %122 = vector.shape_cast %121 : vector<32xf32> to vector<1x1x32xf32>
    %123 = vector.broadcast %122 : vector<1x1x32xf32> to vector<4x4x32xf32>
    %124 = arith.mulf %119, %123 : vector<4x4x32xf32>
    %125 = arith.addf %117, %124 : vector<4x4x32xf32>
    %c0_71 = arith.constant 0 : index
    %c1_72 = arith.constant 1 : index
    %c2_73 = arith.constant 2 : index
    %c0_74 = arith.constant 0 : index
    %126 = vector.load %arg3[%c0_71, %c1_72, %c2_73, %c0_74] : memref<1x6x6x32xf32, #tpu.memory_space<vmem>>, vector<1x4x4x32xf32>
    %127 = vector.shape_cast %126 : vector<1x4x4x32xf32> to vector<4x4x32xf32>
    %128 = vector.extract_strided_slice %84 {offsets = [1, 2, 0], sizes = [1, 1, 32], strides = [1, 1, 1]} : vector<3x3x32xf32> to vector<1x1x32xf32>
    %129 = vector.shape_cast %128 : vector<1x1x32xf32> to vector<32xf32>
    %130 = vector.shape_cast %129 : vector<32xf32> to vector<1x1x32xf32>
    %131 = vector.broadcast %130 : vector<1x1x32xf32> to vector<4x4x32xf32>
    %132 = arith.mulf %127, %131 : vector<4x4x32xf32>
    %133 = arith.addf %125, %132 : vector<4x4x32xf32>
    %c0_75 = arith.constant 0 : index
    %c2_76 = arith.constant 2 : index
    %c0_77 = arith.constant 0 : index
    %c0_78 = arith.constant 0 : index
    %134 = vector.load %arg3[%c0_75, %c2_76, %c0_77, %c0_78] : memref<1x6x6x32xf32, #tpu.memory_space<vmem>>, vector<1x4x4x32xf32>
    %135 = vector.shape_cast %134 : vector<1x4x4x32xf32> to vector<4x4x32xf32>
    %136 = vector.extract_strided_slice %84 {offsets = [2, 0, 0], sizes = [1, 1, 32], strides = [1, 1, 1]} : vector<3x3x32xf32> to vector<1x1x32xf32>
    %137 = vector.shape_cast %136 : vector<1x1x32xf32> to vector<32xf32>
    %138 = vector.shape_cast %137 : vector<32xf32> to vector<1x1x32xf32>
    %139 = vector.broadcast %138 : vector<1x1x32xf32> to vector<4x4x32xf32>
    %140 = arith.mulf %135, %139 : vector<4x4x32xf32>
    %141 = arith.addf %133, %140 : vector<4x4x32xf32>
    %c0_79 = arith.constant 0 : index
    %c2_80 = arith.constant 2 : index
    %c1_81 = arith.constant 1 : index
    %c0_82 = arith.constant 0 : index
    %142 = vector.load %arg3[%c0_79, %c2_80, %c1_81, %c0_82] : memref<1x6x6x32xf32, #tpu.memory_space<vmem>>, vector<1x4x4x32xf32>
    %143 = vector.shape_cast %142 : vector<1x4x4x32xf32> to vector<4x4x32xf32>
    %144 = vector.extract_strided_slice %84 {offsets = [2, 1, 0], sizes = [1, 1, 32], strides = [1, 1, 1]} : vector<3x3x32xf32> to vector<1x1x32xf32>
    %145 = vector.shape_cast %144 : vector<1x1x32xf32> to vector<32xf32>
    %146 = vector.shape_cast %145 : vector<32xf32> to vector<1x1x32xf32>
    %147 = vector.broadcast %146 : vector<1x1x32xf32> to vector<4x4x32xf32>
    %148 = arith.mulf %143, %147 : vector<4x4x32xf32>
    %149 = arith.addf %141, %148 : vector<4x4x32xf32>
    %c0_83 = arith.constant 0 : index
    %c2_84 = arith.constant 2 : index
    %c2_85 = arith.constant 2 : index
    %c0_86 = arith.constant 0 : index
    %150 = vector.load %arg3[%c0_83, %c2_84, %c2_85, %c0_86] : memref<1x6x6x32xf32, #tpu.memory_space<vmem>>, vector<1x4x4x32xf32>
    %151 = vector.shape_cast %150 : vector<1x4x4x32xf32> to vector<4x4x32xf32>
    %152 = vector.extract_strided_slice %84 {offsets = [2, 2, 0], sizes = [1, 1, 32], strides = [1, 1, 1]} : vector<3x3x32xf32> to vector<1x1x32xf32>
    %153 = vector.shape_cast %152 : vector<1x1x32xf32> to vector<32xf32>
    %154 = vector.shape_cast %153 : vector<32xf32> to vector<1x1x32xf32>
    %155 = vector.broadcast %154 : vector<1x1x32xf32> to vector<4x4x32xf32>
    %156 = arith.mulf %151, %155 : vector<4x4x32xf32>
    %157 = arith.addf %149, %156 : vector<4x4x32xf32>
    %c0_87 = arith.constant 0 : index
    %c0_88 = arith.constant 0 : index
    %c0_89 = arith.constant 0 : index
    %158 = vector.load %arg11[%c0_87, %c0_88, %c0_89] : memref<1x1x32xf32, #tpu.memory_space<vmem>>, vector<1x1x32xf32>
    %159 = vector.broadcast %158 : vector<1x1x32xf32> to vector<4x4x32xf32>
    %160 = arith.addf %157, %159 : vector<4x4x32xf32>
    %c0_90 = arith.constant 0 : index
    %c1_91 = arith.constant 1 : index
    %c1_92 = arith.constant 1 : index
    %c0_93 = arith.constant 0 : index
    %161 = vector.load %arg3[%c0_90, %c1_91, %c1_92, %c0_93] : memref<1x6x6x32xf32, #tpu.memory_space<vmem>>, vector<1x4x4x32xf32>
    %162 = vector.shape_cast %161 : vector<1x4x4x32xf32> to vector<4x4x32xf32>
    %163 = arith.addf %160, %162 : vector<4x4x32xf32>
    %164 = vector.shape_cast %163 : vector<4x4x32xf32> to vector<16x32xf32>
    %c64 = arith.constant 64 : index
    %c0_94 = arith.constant 0 : index
    %165 = vector.load %arg23[%c64, %c0_94] : memref<128x32xf32, #tpu.memory_space<vmem>>, vector<16x32xf32>
    tpu.vector_store %arg23[%c64, %c0_94], %164 {strides = array<i32>} : memref<128x32xf32, #tpu.memory_space<vmem>>, vector<16x32xf32>,
    %c0_95 = arith.constant 0 : index
    %c0_96 = arith.constant 0 : index
    %c0_97 = arith.constant 0 : index
    %166 = vector.load %arg8[%c0_95, %c0_96, %c0_97] : memref<3x3x32xf32, #tpu.memory_space<vmem>>, vector<3x3x32xf32>
    %cst_98 = arith.constant 0.000000e+00 : f32
    %167 = vector.broadcast %cst_98 : f32 to vector<2x2x32xf32>
    %c0_99 = arith.constant 0 : index
    %c0_100 = arith.constant 0 : index
    %c0_101 = arith.constant 0 : index
    %c0_102 = arith.constant 0 : index
    %168 = vector.load %arg4[%c0_99, %c0_100, %c0_101, %c0_102] : memref<1x4x4x32xf32, #tpu.memory_space<vmem>>, vector<1x2x2x32xf32>
    %169 = vector.shape_cast %168 : vector<1x2x2x32xf32> to vector<2x2x32xf32>
    %170 = vector.extract_strided_slice %166 {offsets = [0, 0, 0], sizes = [1, 1, 32], strides = [1, 1, 1]} : vector<3x3x32xf32> to vector<1x1x32xf32>
    %171 = vector.shape_cast %170 : vector<1x1x32xf32> to vector<32xf32>
    %172 = vector.shape_cast %171 : vector<32xf32> to vector<1x1x32xf32>
    %173 = vector.broadcast %172 : vector<1x1x32xf32> to vector<2x2x32xf32>
    %174 = arith.mulf %169, %173 : vector<2x2x32xf32>
    %175 = arith.addf %167, %174 : vector<2x2x32xf32>
    %c0_103 = arith.constant 0 : index
    %c0_104 = arith.constant 0 : index
    %c1_105 = arith.constant 1 : index
    %c0_106 = arith.constant 0 : index
    %176 = vector.load %arg4[%c0_103, %c0_104, %c1_105, %c0_106] : memref<1x4x4x32xf32, #tpu.memory_space<vmem>>, vector<1x2x2x32xf32>
    %177 = vector.shape_cast %176 : vector<1x2x2x32xf32> to vector<2x2x32xf32>
    %178 = vector.extract_strided_slice %166 {offsets = [0, 1, 0], sizes = [1, 1, 32], strides = [1, 1, 1]} : vector<3x3x32xf32> to vector<1x1x32xf32>
    %179 = vector.shape_cast %178 : vector<1x1x32xf32> to vector<32xf32>
    %180 = vector.shape_cast %179 : vector<32xf32> to vector<1x1x32xf32>
    %181 = vector.broadcast %180 : vector<1x1x32xf32> to vector<2x2x32xf32>
    %182 = arith.mulf %177, %181 : vector<2x2x32xf32>
    %183 = arith.addf %175, %182 : vector<2x2x32xf32>
    %c0_107 = arith.constant 0 : index
    %c0_108 = arith.constant 0 : index
    %c2_109 = arith.constant 2 : index
    %c0_110 = arith.constant 0 : index
    %184 = vector.load %arg4[%c0_107, %c0_108, %c2_109, %c0_110] : memref<1x4x4x32xf32, #tpu.memory_space<vmem>>, vector<1x2x2x32xf32>
    %185 = vector.shape_cast %184 : vector<1x2x2x32xf32> to vector<2x2x32xf32>
    %186 = vector.extract_strided_slice %166 {offsets = [0, 2, 0], sizes = [1, 1, 32], strides = [1, 1, 1]} : vector<3x3x32xf32> to vector<1x1x32xf32>
    %187 = vector.shape_cast %186 : vector<1x1x32xf32> to vector<32xf32>
    %188 = vector.shape_cast %187 : vector<32xf32> to vector<1x1x32xf32>
    %189 = vector.broadcast %188 : vector<1x1x32xf32> to vector<2x2x32xf32>
    %190 = arith.mulf %185, %189 : vector<2x2x32xf32>
    %191 = arith.addf %183, %190 : vector<2x2x32xf32>
    %c0_111 = arith.constant 0 : index
    %c1_112 = arith.constant 1 : index
    %c0_113 = arith.constant 0 : index
    %c0_114 = arith.constant 0 : index
    %192 = vector.load %arg4[%c0_111, %c1_112, %c0_113, %c0_114] : memref<1x4x4x32xf32, #tpu.memory_space<vmem>>, vector<1x2x2x32xf32>
    %193 = vector.shape_cast %192 : vector<1x2x2x32xf32> to vector<2x2x32xf32>
    %194 = vector.extract_strided_slice %166 {offsets = [1, 0, 0], sizes = [1, 1, 32], strides = [1, 1, 1]} : vector<3x3x32xf32> to vector<1x1x32xf32>
    %195 = vector.shape_cast %194 : vector<1x1x32xf32> to vector<32xf32>
    %196 = vector.shape_cast %195 : vector<32xf32> to vector<1x1x32xf32>
    %197 = vector.broadcast %196 : vector<1x1x32xf32> to vector<2x2x32xf32>
    %198 = arith.mulf %193, %197 : vector<2x2x32xf32>
    %199 = arith.addf %191, %198 : vector<2x2x32xf32>
    %c0_115 = arith.constant 0 : index
    %c1_116 = arith.constant 1 : index
    %c1_117 = arith.constant 1 : index
    %c0_118 = arith.constant 0 : index
    %200 = vector.load %arg4[%c0_115, %c1_116, %c1_117, %c0_118] : memref<1x4x4x32xf32, #tpu.memory_space<vmem>>, vector<1x2x2x32xf32>
    %201 = vector.shape_cast %200 : vector<1x2x2x32xf32> to vector<2x2x32xf32>
    %202 = vector.extract_strided_slice %166 {offsets = [1, 1, 0], sizes = [1, 1, 32], strides = [1, 1, 1]} : vector<3x3x32xf32> to vector<1x1x32xf32>
    %203 = vector.shape_cast %202 : vector<1x1x32xf32> to vector<32xf32>
    %204 = vector.shape_cast %203 : vector<32xf32> to vector<1x1x32xf32>
    %205 = vector.broadcast %204 : vector<1x1x32xf32> to vector<2x2x32xf32>
    %206 = arith.mulf %201, %205 : vector<2x2x32xf32>
    %207 = arith.addf %199, %206 : vector<2x2x32xf32>
    %c0_119 = arith.constant 0 : index
    %c1_120 = arith.constant 1 : index
    %c2_121 = arith.constant 2 : index
    %c0_122 = arith.constant 0 : index
    %208 = vector.load %arg4[%c0_119, %c1_120, %c2_121, %c0_122] : memref<1x4x4x32xf32, #tpu.memory_space<vmem>>, vector<1x2x2x32xf32>
    %209 = vector.shape_cast %208 : vector<1x2x2x32xf32> to vector<2x2x32xf32>
    %210 = vector.extract_strided_slice %166 {offsets = [1, 2, 0], sizes = [1, 1, 32], strides = [1, 1, 1]} : vector<3x3x32xf32> to vector<1x1x32xf32>
    %211 = vector.shape_cast %210 : vector<1x1x32xf32> to vector<32xf32>
    %212 = vector.shape_cast %211 : vector<32xf32> to vector<1x1x32xf32>
    %213 = vector.broadcast %212 : vector<1x1x32xf32> to vector<2x2x32xf32>
    %214 = arith.mulf %209, %213 : vector<2x2x32xf32>
    %215 = arith.addf %207, %214 : vector<2x2x32xf32>
    %c0_123 = arith.constant 0 : index
    %c2_124 = arith.constant 2 : index
    %c0_125 = arith.constant 0 : index
    %c0_126 = arith.constant 0 : index
    %216 = vector.load %arg4[%c0_123, %c2_124, %c0_125, %c0_126] : memref<1x4x4x32xf32, #tpu.memory_space<vmem>>, vector<1x2x2x32xf32>
    %217 = vector.shape_cast %216 : vector<1x2x2x32xf32> to vector<2x2x32xf32>
    %218 = vector.extract_strided_slice %166 {offsets = [2, 0, 0], sizes = [1, 1, 32], strides = [1, 1, 1]} : vector<3x3x32xf32> to vector<1x1x32xf32>
    %219 = vector.shape_cast %218 : vector<1x1x32xf32> to vector<32xf32>
    %220 = vector.shape_cast %219 : vector<32xf32> to vector<1x1x32xf32>
    %221 = vector.broadcast %220 : vector<1x1x32xf32> to vector<2x2x32xf32>
    %222 = arith.mulf %217, %221 : vector<2x2x32xf32>
    %223 = arith.addf %215, %222 : vector<2x2x32xf32>
    %c0_127 = arith.constant 0 : index
    %c2_128 = arith.constant 2 : index
    %c1_129 = arith.constant 1 : index
    %c0_130 = arith.constant 0 : index
    %224 = vector.load %arg4[%c0_127, %c2_128, %c1_129, %c0_130] : memref<1x4x4x32xf32, #tpu.memory_space<vmem>>, vector<1x2x2x32xf32>
    %225 = vector.shape_cast %224 : vector<1x2x2x32xf32> to vector<2x2x32xf32>
    %226 = vector.extract_strided_slice %166 {offsets = [2, 1, 0], sizes = [1, 1, 32], strides = [1, 1, 1]} : vector<3x3x32xf32> to vector<1x1x32xf32>
    %227 = vector.shape_cast %226 : vector<1x1x32xf32> to vector<32xf32>
    %228 = vector.shape_cast %227 : vector<32xf32> to vector<1x1x32xf32>
    %229 = vector.broadcast %228 : vector<1x1x32xf32> to vector<2x2x32xf32>
    %230 = arith.mulf %225, %229 : vector<2x2x32xf32>
    %231 = arith.addf %223, %230 : vector<2x2x32xf32>
    %c0_131 = arith.constant 0 : index
    %c2_132 = arith.constant 2 : index
    %c2_133 = arith.constant 2 : index
    %c0_134 = arith.constant 0 : index
    %232 = vector.load %arg4[%c0_131, %c2_132, %c2_133, %c0_134] : memref<1x4x4x32xf32, #tpu.memory_space<vmem>>, vector<1x2x2x32xf32>
    %233 = vector.shape_cast %232 : vector<1x2x2x32xf32> to vector<2x2x32xf32>
    %234 = vector.extract_strided_slice %166 {offsets = [2, 2, 0], sizes = [1, 1, 32], strides = [1, 1, 1]} : vector<3x3x32xf32> to vector<1x1x32xf32>
    %235 = vector.shape_cast %234 : vector<1x1x32xf32> to vector<32xf32>
    %236 = vector.shape_cast %235 : vector<32xf32> to vector<1x1x32xf32>
    %237 = vector.broadcast %236 : vector<1x1x32xf32> to vector<2x2x32xf32>
    %238 = arith.mulf %233, %237 : vector<2x2x32xf32>
    %239 = arith.addf %231, %238 : vector<2x2x32xf32>
    %c0_135 = arith.constant 0 : index
    %c0_136 = arith.constant 0 : index
    %c0_137 = arith.constant 0 : index
    %240 = vector.load %arg12[%c0_135, %c0_136, %c0_137] : memref<1x1x32xf32, #tpu.memory_space<vmem>>, vector<1x1x32xf32>
    %241 = vector.broadcast %240 : vector<1x1x32xf32> to vector<2x2x32xf32>
    %242 = arith.addf %239, %241 : vector<2x2x32xf32>
    %c0_138 = arith.constant 0 : index
    %c1_139 = arith.constant 1 : index
    %c1_140 = arith.constant 1 : index
    %c0_141 = arith.constant 0 : index
    %243 = vector.load %arg4[%c0_138, %c1_139, %c1_140, %c0_141] : memref<1x4x4x32xf32, #tpu.memory_space<vmem>>, vector<1x2x2x32xf32>
    %244 = vector.shape_cast %243 : vector<1x2x2x32xf32> to vector<2x2x32xf32>
    %245 = arith.addf %242, %244 : vector<2x2x32xf32>
    %246 = vector.shape_cast %245 : vector<2x2x32xf32> to vector<4x32xf32>
    %c80 = arith.constant 80 : index
    %c0_142 = arith.constant 0 : index
    %247 = vector.load %arg23[%c80, %c0_142] : memref<128x32xf32, #tpu.memory_space<vmem>>, vector<4x32xf32>
    tpu.vector_store %arg23[%c80, %c0_142], %246 {strides = array<i32>} : memref<128x32xf32, #tpu.memory_space<vmem>>, vector<4x32xf32>,
    %c0_143 = arith.constant 0 : index
    %c0_144 = arith.constant 0 : index
    %c0_145 = arith.constant 0 : index
    %248 = vector.load %arg9[%c0_143, %c0_144, %c0_145] : memref<3x3x32xf32, #tpu.memory_space<vmem>>, vector<3x3x32xf32>
    %cst_146 = arith.constant 0.000000e+00 : f32
    %249 = vector.broadcast %cst_146 : f32 to vector<1x1x32xf32>
    %c0_147 = arith.constant 0 : index
    %c0_148 = arith.constant 0 : index
    %c0_149 = arith.constant 0 : index
    %c0_150 = arith.constant 0 : index
    %250 = vector.load %arg5[%c0_147, %c0_148, %c0_149, %c0_150] : memref<1x3x3x32xf32, #tpu.memory_space<vmem>>, vector<1x1x1x32xf32>
    %251 = vector.shape_cast %250 : vector<1x1x1x32xf32> to vector<1x1x32xf32>
    %252 = vector.extract_strided_slice %248 {offsets = [0, 0, 0], sizes = [1, 1, 32], strides = [1, 1, 1]} : vector<3x3x32xf32> to vector<1x1x32xf32>
    %253 = vector.shape_cast %252 : vector<1x1x32xf32> to vector<32xf32>
    %254 = vector.shape_cast %253 : vector<32xf32> to vector<1x1x32xf32>
    %255 = arith.mulf %251, %254 : vector<1x1x32xf32>
    %256 = arith.addf %249, %255 : vector<1x1x32xf32>
    %c0_151 = arith.constant 0 : index
    %c0_152 = arith.constant 0 : index
    %c1_153 = arith.constant 1 : index
    %c0_154 = arith.constant 0 : index
    %257 = vector.load %arg5[%c0_151, %c0_152, %c1_153, %c0_154] : memref<1x3x3x32xf32, #tpu.memory_space<vmem>>, vector<1x1x1x32xf32>
    %258 = vector.shape_cast %257 : vector<1x1x1x32xf32> to vector<1x1x32xf32>
    %259 = vector.extract_strided_slice %248 {offsets = [0, 1, 0], sizes = [1, 1, 32], strides = [1, 1, 1]} : vector<3x3x32xf32> to vector<1x1x32xf32>
    %260 = vector.shape_cast %259 : vector<1x1x32xf32> to vector<32xf32>
    %261 = vector.shape_cast %260 : vector<32xf32> to vector<1x1x32xf32>
    %262 = arith.mulf %258, %261 : vector<1x1x32xf32>
    %263 = arith.addf %256, %262 : vector<1x1x32xf32>
    %c0_155 = arith.constant 0 : index
    %c0_156 = arith.constant 0 : index
    %c2_157 = arith.constant 2 : index
    %c0_158 = arith.constant 0 : index
    %264 = vector.load %arg5[%c0_155, %c0_156, %c2_157, %c0_158] : memref<1x3x3x32xf32, #tpu.memory_space<vmem>>, vector<1x1x1x32xf32>
    %265 = vector.shape_cast %264 : vector<1x1x1x32xf32> to vector<1x1x32xf32>
    %266 = vector.extract_strided_slice %248 {offsets = [0, 2, 0], sizes = [1, 1, 32], strides = [1, 1, 1]} : vector<3x3x32xf32> to vector<1x1x32xf32>
    %267 = vector.shape_cast %266 : vector<1x1x32xf32> to vector<32xf32>
    %268 = vector.shape_cast %267 : vector<32xf32> to vector<1x1x32xf32>
    %269 = arith.mulf %265, %268 : vector<1x1x32xf32>
    %270 = arith.addf %263, %269 : vector<1x1x32xf32>
    %c0_159 = arith.constant 0 : index
    %c1_160 = arith.constant 1 : index
    %c0_161 = arith.constant 0 : index
    %c0_162 = arith.constant 0 : index
    %271 = vector.load %arg5[%c0_159, %c1_160, %c0_161, %c0_162] : memref<1x3x3x32xf32, #tpu.memory_space<vmem>>, vector<1x1x1x32xf32>
    %272 = vector.shape_cast %271 : vector<1x1x1x32xf32> to vector<1x1x32xf32>
    %273 = vector.extract_strided_slice %248 {offsets = [1, 0, 0], sizes = [1, 1, 32], strides = [1, 1, 1]} : vector<3x3x32xf32> to vector<1x1x32xf32>
    %274 = vector.shape_cast %273 : vector<1x1x32xf32> to vector<32xf32>
    %275 = vector.shape_cast %274 : vector<32xf32> to vector<1x1x32xf32>
    %276 = arith.mulf %272, %275 : vector<1x1x32xf32>
    %277 = arith.addf %270, %276 : vector<1x1x32xf32>
    %c0_163 = arith.constant 0 : index
    %c1_164 = arith.constant 1 : index
    %c1_165 = arith.constant 1 : index
    %c0_166 = arith.constant 0 : index
    %278 = vector.load %arg5[%c0_163, %c1_164, %c1_165, %c0_166] : memref<1x3x3x32xf32, #tpu.memory_space<vmem>>, vector<1x1x1x32xf32>
    %279 = vector.shape_cast %278 : vector<1x1x1x32xf32> to vector<1x1x32xf32>
    %280 = vector.extract_strided_slice %248 {offsets = [1, 1, 0], sizes = [1, 1, 32], strides = [1, 1, 1]} : vector<3x3x32xf32> to vector<1x1x32xf32>
    %281 = vector.shape_cast %280 : vector<1x1x32xf32> to vector<32xf32>
    %282 = vector.shape_cast %281 : vector<32xf32> to vector<1x1x32xf32>
    %283 = arith.mulf %279, %282 : vector<1x1x32xf32>
    %284 = arith.addf %277, %283 : vector<1x1x32xf32>
    %c0_167 = arith.constant 0 : index
    %c1_168 = arith.constant 1 : index
    %c2_169 = arith.constant 2 : index
    %c0_170 = arith.constant 0 : index
    %285 = vector.load %arg5[%c0_167, %c1_168, %c2_169, %c0_170] : memref<1x3x3x32xf32, #tpu.memory_space<vmem>>, vector<1x1x1x32xf32>
    %286 = vector.shape_cast %285 : vector<1x1x1x32xf32> to vector<1x1x32xf32>
    %287 = vector.extract_strided_slice %248 {offsets = [1, 2, 0], sizes = [1, 1, 32], strides = [1, 1, 1]} : vector<3x3x32xf32> to vector<1x1x32xf32>
    %288 = vector.shape_cast %287 : vector<1x1x32xf32> to vector<32xf32>
    %289 = vector.shape_cast %288 : vector<32xf32> to vector<1x1x32xf32>
    %290 = arith.mulf %286, %289 : vector<1x1x32xf32>
    %291 = arith.addf %284, %290 : vector<1x1x32xf32>
    %c0_171 = arith.constant 0 : index
    %c2_172 = arith.constant 2 : index
    %c0_173 = arith.constant 0 : index
    %c0_174 = arith.constant 0 : index
    %292 = vector.load %arg5[%c0_171, %c2_172, %c0_173, %c0_174] : memref<1x3x3x32xf32, #tpu.memory_space<vmem>>, vector<1x1x1x32xf32>
    %293 = vector.shape_cast %292 : vector<1x1x1x32xf32> to vector<1x1x32xf32>
    %294 = vector.extract_strided_slice %248 {offsets = [2, 0, 0], sizes = [1, 1, 32], strides = [1, 1, 1]} : vector<3x3x32xf32> to vector<1x1x32xf32>
    %295 = vector.shape_cast %294 : vector<1x1x32xf32> to vector<32xf32>
    %296 = vector.shape_cast %295 : vector<32xf32> to vector<1x1x32xf32>
    %297 = arith.mulf %293, %296 : vector<1x1x32xf32>
    %298 = arith.addf %291, %297 : vector<1x1x32xf32>
    %c0_175 = arith.constant 0 : index
    %c2_176 = arith.constant 2 : index
    %c1_177 = arith.constant 1 : index
    %c0_178 = arith.constant 0 : index
    %299 = vector.load %arg5[%c0_175, %c2_176, %c1_177, %c0_178] : memref<1x3x3x32xf32, #tpu.memory_space<vmem>>, vector<1x1x1x32xf32>
    %300 = vector.shape_cast %299 : vector<1x1x1x32xf32> to vector<1x1x32xf32>
    %301 = vector.extract_strided_slice %248 {offsets = [2, 1, 0], sizes = [1, 1, 32], strides = [1, 1, 1]} : vector<3x3x32xf32> to vector<1x1x32xf32>
    %302 = vector.shape_cast %301 : vector<1x1x32xf32> to vector<32xf32>
    %303 = vector.shape_cast %302 : vector<32xf32> to vector<1x1x32xf32>
    %304 = arith.mulf %300, %303 : vector<1x1x32xf32>
    %305 = arith.addf %298, %304 : vector<1x1x32xf32>
    %c0_179 = arith.constant 0 : index
    %c2_180 = arith.constant 2 : index
    %c2_181 = arith.constant 2 : index
    %c0_182 = arith.constant 0 : index
    %306 = vector.load %arg5[%c0_179, %c2_180, %c2_181, %c0_182] : memref<1x3x3x32xf32, #tpu.memory_space<vmem>>, vector<1x1x1x32xf32>
    %307 = vector.shape_cast %306 : vector<1x1x1x32xf32> to vector<1x1x32xf32>
    %308 = vector.extract_strided_slice %248 {offsets = [2, 2, 0], sizes = [1, 1, 32], strides = [1, 1, 1]} : vector<3x3x32xf32> to vector<1x1x32xf32>
    %309 = vector.shape_cast %308 : vector<1x1x32xf32> to vector<32xf32>
    %310 = vector.shape_cast %309 : vector<32xf32> to vector<1x1x32xf32>
    %311 = arith.mulf %307, %310 : vector<1x1x32xf32>
    %312 = arith.addf %305, %311 : vector<1x1x32xf32>
    %c0_183 = arith.constant 0 : index
    %c0_184 = arith.constant 0 : index
    %c0_185 = arith.constant 0 : index
    %313 = vector.load %arg13[%c0_183, %c0_184, %c0_185] : memref<1x1x32xf32, #tpu.memory_space<vmem>>, vector<1x1x32xf32>
    %314 = arith.addf %312, %313 : vector<1x1x32xf32>
    %c0_186 = arith.constant 0 : index
    %c1_187 = arith.constant 1 : index
    %c1_188 = arith.constant 1 : index
    %c0_189 = arith.constant 0 : index
    %315 = vector.load %arg5[%c0_186, %c1_187, %c1_188, %c0_189] : memref<1x3x3x32xf32, #tpu.memory_space<vmem>>, vector<1x1x1x32xf32>
    %316 = vector.shape_cast %315 : vector<1x1x1x32xf32> to vector<1x1x32xf32>
    %317 = arith.addf %314, %316 : vector<1x1x32xf32>
    %318 = vector.shape_cast %317 : vector<1x1x32xf32> to vector<1x32xf32>
    %c84 = arith.constant 84 : index
    %c0_190 = arith.constant 0 : index
    %319 = vector.load %arg23[%c84, %c0_190] : memref<128x32xf32, #tpu.memory_space<vmem>>, vector<1x32xf32>
    tpu.vector_store %arg23[%c84, %c0_190], %318 {strides = array<i32>} : memref<128x32xf32, #tpu.memory_space<vmem>>, vector<1x32xf32>,
    %c0_191 = arith.constant 0 : index
    %c0_192 = arith.constant 0 : index
    %320 = vector.load %arg23[%c0_191, %c0_192] : memref<128x32xf32, #tpu.memory_space<vmem>>, vector<128x32xf32>
    %cst_193 = arith.constant dense<0.000000e+00> : vector<128xf32>
    %321 = vector.multi_reduction <add>, %320, %cst_193 [1] : vector<128x32xf32> to vector<128xf32>
    %322 = vector.shape_cast %321 : vector<128xf32> to vector<128x1xf32>
    %cst_194 = arith.constant 3.200000e+01 : f32
    %323 = vector.broadcast %cst_194 : f32 to vector<128x1xf32>
    %324 = arith.divf %322, %323 : vector<128x1xf32>
    %325 = vector.broadcast %324 : vector<128x1xf32> to vector<128x32xf32>
    %326 = arith.subf %320, %325 : vector<128x32xf32>
    %327 = arith.mulf %326, %326 : vector<128x32xf32>
    %cst_195 = arith.constant dense<0.000000e+00> : vector<128xf32>
    %328 = vector.multi_reduction <add>, %327, %cst_195 [1] : vector<128x32xf32> to vector<128xf32>
    %329 = vector.shape_cast %328 : vector<128xf32> to vector<128x1xf32>
    %cst_196 = arith.constant 3.200000e+01 : f32
    %330 = vector.broadcast %cst_196 : f32 to vector<128x1xf32>
    %331 = arith.divf %329, %330 : vector<128x1xf32>
    %cst_197 = arith.constant 9.99999974E-6 : f32
    %332 = vector.broadcast %cst_197 : f32 to vector<128x1xf32>
    %333 = arith.addf %331, %332 : vector<128x1xf32>
    %334 = math.rsqrt %333 : vector<128x1xf32>
    %335 = vector.broadcast %334 : vector<128x1xf32> to vector<128x32xf32>
    %336 = arith.mulf %326, %335 : vector<128x32xf32>
    %c0_198 = arith.constant 0 : index
    %c0_199 = arith.constant 0 : index
    %337 = vector.load %arg16[%c0_198, %c0_199] : memref<1x32xf32, #tpu.memory_space<vmem>>, vector<1x32xf32>
    %338 = vector.broadcast %337 : vector<1x32xf32> to vector<128x32xf32>
    %339 = arith.mulf %336, %338 : vector<128x32xf32>
    %c0_200 = arith.constant 0 : index
    %c0_201 = arith.constant 0 : index
    %340 = vector.load %arg17[%c0_200, %c0_201] : memref<1x32xf32, #tpu.memory_space<vmem>>, vector<1x32xf32>
    %341 = vector.broadcast %340 : vector<1x32xf32> to vector<128x32xf32>
    %342 = arith.addf %339, %341 : vector<128x32xf32>
    %343 = arith.truncf %342 : vector<128x32xf32> to vector<128x32xbf16>
    %c0_202 = arith.constant 0 : index
    %c0_203 = arith.constant 0 : index
    %c0_204 = arith.constant 0 : index
    %344 = vector.load %arg1[%c0_202, %c0_203, %c0_204] : memref<1x256x32xf32, #tpu.memory_space<vmem>>, vector<1x256x32xf32>
    %345 = vector.shape_cast %344 : vector<1x256x32xf32> to vector<256x32xf32>
    %cst_205 = arith.constant dense<0.000000e+00> : vector<256xf32>
    %346 = vector.multi_reduction <add>, %345, %cst_205 [1] : vector<256x32xf32> to vector<256xf32>
    %347 = vector.shape_cast %346 : vector<256xf32> to vector<256x1xf32>
    %cst_206 = arith.constant 3.200000e+01 : f32
    %348 = vector.broadcast %cst_206 : f32 to vector<256x1xf32>
    %349 = arith.divf %347, %348 : vector<256x1xf32>
    %350 = vector.broadcast %349 : vector<256x1xf32> to vector<256x32xf32>
    %351 = arith.subf %345, %350 : vector<256x32xf32>
    %352 = arith.mulf %351, %351 : vector<256x32xf32>
    %cst_207 = arith.constant dense<0.000000e+00> : vector<256xf32>
    %353 = vector.multi_reduction <add>, %352, %cst_207 [1] : vector<256x32xf32> to vector<256xf32>
    %354 = vector.shape_cast %353 : vector<256xf32> to vector<256x1xf32>
    %cst_208 = arith.constant 3.200000e+01 : f32
    %355 = vector.broadcast %cst_208 : f32 to vector<256x1xf32>
    %356 = arith.divf %354, %355 : vector<256x1xf32>
    %cst_209 = arith.constant 9.99999974E-6 : f32
    %357 = vector.broadcast %cst_209 : f32 to vector<256x1xf32>
    %358 = arith.addf %356, %357 : vector<256x1xf32>
    %359 = math.rsqrt %358 : vector<256x1xf32>
    %360 = vector.broadcast %359 : vector<256x1xf32> to vector<256x32xf32>
    %361 = arith.mulf %351, %360 : vector<256x32xf32>
    %c0_210 = arith.constant 0 : index
    %c0_211 = arith.constant 0 : index
    %362 = vector.load %arg14[%c0_210, %c0_211] : memref<1x32xf32, #tpu.memory_space<vmem>>, vector<1x32xf32>
    %363 = vector.broadcast %362 : vector<1x32xf32> to vector<256x32xf32>
    %364 = arith.mulf %361, %363 : vector<256x32xf32>
    %c0_212 = arith.constant 0 : index
    %c0_213 = arith.constant 0 : index
    %365 = vector.load %arg15[%c0_212, %c0_213] : memref<1x32xf32, #tpu.memory_space<vmem>>, vector<1x32xf32>
    %366 = vector.broadcast %365 : vector<1x32xf32> to vector<256x32xf32>
    %367 = arith.addf %364, %366 : vector<256x32xf32>
    %368 = arith.truncf %367 : vector<256x32xf32> to vector<256x32xbf16>
    %369 = tpu.iota {dimensions = array<i32: 1>} : vector<1x128xi32>
    %c85_i32 = arith.constant 85 : i32
    %370 = vector.broadcast %c85_i32 : i32 to vector<1x128xi32>
    %371 = arith.cmpi slt, %369, %370 : vector<1x128xi32>
    %cst_214 = arith.constant 0.000000e+00 : f32
    %cst_215 = arith.constant -1.000000e+30 : f32
    %372 = vector.broadcast %cst_214 : f32 to vector<1x128xf32>
    %373 = vector.broadcast %cst_215 : f32 to vector<1x128xf32>
    %374 = arith.select %371, %372, %373 : vector<1x128xi1>, vector<1x128xf32>
    %cst_216 = arith.constant 0.000000e+00 : f32
    %375 = vector.broadcast %cst_216 : f32 to vector<256x32xf32>
    %c0_217 = arith.constant 0 : index
    %c0_218 = arith.constant 0 : index
    %c0_219 = arith.constant 0 : index
    %376 = vector.load %arg18[%c0_217, %c0_218, %c0_219] : memref<2x32x16xbf16, #tpu.memory_space<vmem>>, vector<1x32x16xbf16>
    %377 = vector.shape_cast %376 : vector<1x32x16xbf16> to vector<32x16xbf16>
    %cst_220 = arith.constant dense<0.000000e+00> : vector<256x16xf32>
    %378 = tpu.matmul %368, %377, %cst_220 {dimension_numbers = #tpu.dot_dimension_numbers<[1], [0], [0], [1], [0, 0, 1, 1], [], []>} : vector<256x32xbf16>, vector<32x16xbf16>, vector<256x16xf32> -> vector<256x16xf32>
    %c0_221 = arith.constant 0 : index
    %c0_222 = arith.constant 0 : index
    %c0_223 = arith.constant 0 : index
    %c0_224 = arith.constant 0 : index
    %379 = vector.load %arg19[%c0_221, %c0_222, %c0_223, %c0_224] : memref<2x2x32x16xbf16, #tpu.memory_space<vmem>>, vector<1x1x32x16xbf16>
    %380 = vector.shape_cast %379 : vector<1x1x32x16xbf16> to vector<32x16xbf16>
    %cst_225 = arith.constant dense<0.000000e+00> : vector<128x16xf32>
    %381 = tpu.matmul %343, %380, %cst_225 {dimension_numbers = #tpu.dot_dimension_numbers<[1], [0], [0], [1], [0, 0, 1, 1], [], []>} : vector<128x32xbf16>, vector<32x16xbf16>, vector<128x16xf32> -> vector<128x16xf32>
    %c1_226 = arith.constant 1 : index
    %c0_227 = arith.constant 0 : index
    %c0_228 = arith.constant 0 : index
    %c0_229 = arith.constant 0 : index
    %382 = vector.load %arg19[%c1_226, %c0_227, %c0_228, %c0_229] : memref<2x2x32x16xbf16, #tpu.memory_space<vmem>>, vector<1x1x32x16xbf16>
    %383 = vector.shape_cast %382 : vector<1x1x32x16xbf16> to vector<32x16xbf16>
    %cst_230 = arith.constant dense<0.000000e+00> : vector<128x16xf32>
    %384 = tpu.matmul %343, %383, %cst_230 {dimension_numbers = #tpu.dot_dimension_numbers<[1], [0], [0], [1], [0, 0, 1, 1], [], []>} : vector<128x32xbf16>, vector<32x16xbf16>, vector<128x16xf32> -> vector<128x16xf32>
    %385 = arith.truncf %378 : vector<256x16xf32> to vector<256x16xbf16>
    %386 = arith.truncf %381 : vector<128x16xf32> to vector<128x16xbf16>
    %cst_231 = arith.constant dense<0.000000e+00> : vector<256x128xf32>
    %387 = tpu.matmul %385, %386, %cst_231 {dimension_numbers = #tpu.dot_dimension_numbers<[1], [1], [0], [0], [0, 0, 1, 0], [], []>} : vector<256x16xbf16>, vector<128x16xbf16>, vector<256x128xf32> -> vector<256x128xf32>
    %388 = vector.broadcast %374 : vector<1x128xf32> to vector<256x128xf32>
    %389 = arith.addf %387, %388 : vector<256x128xf32>
    %cst_232 = arith.constant dense<0xFF800000> : vector<256xf32>
    %390 = vector.multi_reduction <maximumf>, %389, %cst_232 [1] : vector<256x128xf32> to vector<256xf32>
    %391 = vector.shape_cast %390 : vector<256xf32> to vector<256x1xf32>
    %392 = vector.broadcast %391 : vector<256x1xf32> to vector<256x128xf32>
    %393 = arith.subf %389, %392 : vector<256x128xf32>
    %394 = math.exp %393 : vector<256x128xf32>
    %cst_233 = arith.constant dense<0.000000e+00> : vector<256xf32>
    %395 = vector.multi_reduction <add>, %394, %cst_233 [1] : vector<256x128xf32> to vector<256xf32>
    %396 = vector.shape_cast %395 : vector<256xf32> to vector<256x1xf32>
    %397 = arith.truncf %394 : vector<256x128xf32> to vector<256x128xbf16>
    %398 = arith.truncf %384 : vector<128x16xf32> to vector<128x16xbf16>
    %cst_234 = arith.constant dense<0.000000e+00> : vector<256x16xf32>
    %399 = tpu.matmul %397, %398, %cst_234 {dimension_numbers = #tpu.dot_dimension_numbers<[1], [0], [0], [1], [0, 0, 1, 1], [], []>} : vector<256x128xbf16>, vector<128x16xbf16>, vector<256x16xf32> -> vector<256x16xf32>
    %400 = tpu.reciprocal %396 {approx = true} : vector<256x1xf32> -> vector<256x1xf32>
    %401 = vector.broadcast %400 : vector<256x1xf32> to vector<256x16xf32>
    %402 = arith.mulf %399, %401 : vector<256x16xf32>
    %403 = arith.truncf %402 : vector<256x16xf32> to vector<256x16xbf16>
    %c0_235 = arith.constant 0 : index
    %c0_236 = arith.constant 0 : index
    %c0_237 = arith.constant 0 : index
    %404 = vector.load %arg20[%c0_235, %c0_236, %c0_237] : memref<2x16x32xbf16, #tpu.memory_space<vmem>>, vector<1x16x32xbf16>
    %405 = vector.shape_cast %404 : vector<1x16x32xbf16> to vector<16x32xbf16>
    %cst_238 = arith.constant dense<0.000000e+00> : vector<256x32xf32>
    %406 = tpu.matmul %403, %405, %cst_238 {dimension_numbers = #tpu.dot_dimension_numbers<[1], [0], [0], [1], [0, 0, 1, 1], [], []>} : vector<256x16xbf16>, vector<16x32xbf16>, vector<256x32xf32> -> vector<256x32xf32>
    %407 = arith.addf %375, %406 : vector<256x32xf32>
    %c1_239 = arith.constant 1 : index
    %c0_240 = arith.constant 0 : index
    %c0_241 = arith.constant 0 : index
    %408 = vector.load %arg18[%c1_239, %c0_240, %c0_241] : memref<2x32x16xbf16, #tpu.memory_space<vmem>>, vector<1x32x16xbf16>
    %409 = vector.shape_cast %408 : vector<1x32x16xbf16> to vector<32x16xbf16>
    %cst_242 = arith.constant dense<0.000000e+00> : vector<256x16xf32>
    %410 = tpu.matmul %368, %409, %cst_242 {dimension_numbers = #tpu.dot_dimension_numbers<[1], [0], [0], [1], [0, 0, 1, 1], [], []>} : vector<256x32xbf16>, vector<32x16xbf16>, vector<256x16xf32> -> vector<256x16xf32>
    %c0_243 = arith.constant 0 : index
    %c1_244 = arith.constant 1 : index
    %c0_245 = arith.constant 0 : index
    %c0_246 = arith.constant 0 : index
    %411 = vector.load %arg19[%c0_243, %c1_244, %c0_245, %c0_246] : memref<2x2x32x16xbf16, #tpu.memory_space<vmem>>, vector<1x1x32x16xbf16>
    %412 = vector.shape_cast %411 : vector<1x1x32x16xbf16> to vector<32x16xbf16>
    %cst_247 = arith.constant dense<0.000000e+00> : vector<128x16xf32>
    %413 = tpu.matmul %343, %412, %cst_247 {dimension_numbers = #tpu.dot_dimension_numbers<[1], [0], [0], [1], [0, 0, 1, 1], [], []>} : vector<128x32xbf16>, vector<32x16xbf16>, vector<128x16xf32> -> vector<128x16xf32>
    %c1_248 = arith.constant 1 : index
    %c1_249 = arith.constant 1 : index
    %c0_250 = arith.constant 0 : index
    %c0_251 = arith.constant 0 : index
    %414 = vector.load %arg19[%c1_248, %c1_249, %c0_250, %c0_251] : memref<2x2x32x16xbf16, #tpu.memory_space<vmem>>, vector<1x1x32x16xbf16>
    %415 = vector.shape_cast %414 : vector<1x1x32x16xbf16> to vector<32x16xbf16>
    %cst_252 = arith.constant dense<0.000000e+00> : vector<128x16xf32>
    %416 = tpu.matmul %343, %415, %cst_252 {dimension_numbers = #tpu.dot_dimension_numbers<[1], [0], [0], [1], [0, 0, 1, 1], [], []>} : vector<128x32xbf16>, vector<32x16xbf16>, vector<128x16xf32> -> vector<128x16xf32>
    %417 = arith.truncf %410 : vector<256x16xf32> to vector<256x16xbf16>
    %418 = arith.truncf %413 : vector<128x16xf32> to vector<128x16xbf16>
    %cst_253 = arith.constant dense<0.000000e+00> : vector<256x128xf32>
    %419 = tpu.matmul %417, %418, %cst_253 {dimension_numbers = #tpu.dot_dimension_numbers<[1], [1], [0], [0], [0, 0, 1, 0], [], []>} : vector<256x16xbf16>, vector<128x16xbf16>, vector<256x128xf32> -> vector<256x128xf32>
    %420 = vector.broadcast %374 : vector<1x128xf32> to vector<256x128xf32>
    %421 = arith.addf %419, %420 : vector<256x128xf32>
    %cst_254 = arith.constant dense<0xFF800000> : vector<256xf32>
    %422 = vector.multi_reduction <maximumf>, %421, %cst_254 [1] : vector<256x128xf32> to vector<256xf32>
    %423 = vector.shape_cast %422 : vector<256xf32> to vector<256x1xf32>
    %424 = vector.broadcast %423 : vector<256x1xf32> to vector<256x128xf32>
    %425 = arith.subf %421, %424 : vector<256x128xf32>
    %426 = math.exp %425 : vector<256x128xf32>
    %cst_255 = arith.constant dense<0.000000e+00> : vector<256xf32>
    %427 = vector.multi_reduction <add>, %426, %cst_255 [1] : vector<256x128xf32> to vector<256xf32>
    %428 = vector.shape_cast %427 : vector<256xf32> to vector<256x1xf32>
    %429 = arith.truncf %426 : vector<256x128xf32> to vector<256x128xbf16>
    %430 = arith.truncf %416 : vector<128x16xf32> to vector<128x16xbf16>
    %cst_256 = arith.constant dense<0.000000e+00> : vector<256x16xf32>
    %431 = tpu.matmul %429, %430, %cst_256 {dimension_numbers = #tpu.dot_dimension_numbers<[1], [0], [0], [1], [0, 0, 1, 1], [], []>} : vector<256x128xbf16>, vector<128x16xbf16>, vector<256x16xf32> -> vector<256x16xf32>
    %432 = tpu.reciprocal %428 {approx = true} : vector<256x1xf32> -> vector<256x1xf32>
    %433 = vector.broadcast %432 : vector<256x1xf32> to vector<256x16xf32>
    %434 = arith.mulf %431, %433 : vector<256x16xf32>
    %435 = arith.truncf %434 : vector<256x16xf32> to vector<256x16xbf16>
    %c1_257 = arith.constant 1 : index
    %c0_258 = arith.constant 0 : index
    %c0_259 = arith.constant 0 : index
    %436 = vector.load %arg20[%c1_257, %c0_258, %c0_259] : memref<2x16x32xbf16, #tpu.memory_space<vmem>>, vector<1x16x32xbf16>
    %437 = vector.shape_cast %436 : vector<1x16x32xbf16> to vector<16x32xbf16>
    %cst_260 = arith.constant dense<0.000000e+00> : vector<256x32xf32>
    %438 = tpu.matmul %435, %437, %cst_260 {dimension_numbers = #tpu.dot_dimension_numbers<[1], [0], [0], [1], [0, 0, 1, 1], [], []>} : vector<256x16xbf16>, vector<16x32xbf16>, vector<256x32xf32> -> vector<256x32xf32>
    %439 = arith.addf %407, %438 : vector<256x32xf32>
    %440 = arith.addf %345, %439 : vector<256x32xf32>
    %c0_261 = arith.constant 0 : index
    %c0_262 = arith.constant 0 : index
    %441 = vector.load %arg21[%c0_261, %c0_262] : memref<1x32xf32, #tpu.memory_space<vmem>>, vector<1x32xf32>
    %442 = vector.broadcast %441 : vector<1x32xf32> to vector<256x32xf32>
    %443 = arith.addf %440, %442 : vector<256x32xf32>
    %c0_263 = arith.constant 0 : index
    %c0_264 = arith.constant 0 : index
    %c0_265 = arith.constant 0 : index
    %444 = vector.load %arg22[%c0_263, %c0_264, %c0_265] : memref<1x256x32xf32, #tpu.memory_space<vmem>>, vector<1x256x32xf32>
    %445 = vector.shape_cast %444 : vector<1x256x32xf32> to vector<256x32xf32>
    %446 = vector.shape_cast %443 : vector<256x32xf32> to vector<1x256x32xf32>
    tpu.vector_store %arg22[%c0_263, %c0_264, %c0_265], %446 {strides = array<i32>} : memref<1x256x32xf32, #tpu.memory_space<vmem>>, vector<1x256x32xf32>,
    return
  }
  func.func @transform_0(%arg0: i32) -> (i32, i32, i32) {
    %c0_i32 = arith.constant 0 : i32
    %c0_i32_0 = arith.constant 0 : i32
    %c0_i32_1 = arith.constant 0 : i32
    return %arg0, %c0_i32, %c0_i32_0 : i32, i32, i32
  }
  func.func @transform_1(%arg0: i32) -> (i32, i32, i32, i32) {
    %c0_i32 = arith.constant 0 : i32
    %c0_i32_0 = arith.constant 0 : i32
    %c0_i32_1 = arith.constant 0 : i32
    %c0_i32_2 = arith.constant 0 : i32
    return %arg0, %c0_i32, %c0_i32_0, %c0_i32_1 : i32, i32, i32, i32
  }
  func.func @transform_2(%arg0: i32) -> (i32, i32, i32, i32) {
    %c0_i32 = arith.constant 0 : i32
    %c0_i32_0 = arith.constant 0 : i32
    %c0_i32_1 = arith.constant 0 : i32
    %c0_i32_2 = arith.constant 0 : i32
    return %arg0, %c0_i32, %c0_i32_0, %c0_i32_1 : i32, i32, i32, i32
  }
  func.func @transform_3(%arg0: i32) -> (i32, i32, i32, i32) {
    %c0_i32 = arith.constant 0 : i32
    %c0_i32_0 = arith.constant 0 : i32
    %c0_i32_1 = arith.constant 0 : i32
    %c0_i32_2 = arith.constant 0 : i32
    return %arg0, %c0_i32, %c0_i32_0, %c0_i32_1 : i32, i32, i32, i32
  }
  func.func @transform_4(%arg0: i32) -> (i32, i32, i32, i32) {
    %c0_i32 = arith.constant 0 : i32
    %c0_i32_0 = arith.constant 0 : i32
    %c0_i32_1 = arith.constant 0 : i32
    %c0_i32_2 = arith.constant 0 : i32
    return %arg0, %c0_i32, %c0_i32_0, %c0_i32_1 : i32, i32, i32, i32
  }
  func.func @transform_5(%arg0: i32) -> (i32, i32, i32) {
    %c0_i32 = arith.constant 0 : i32
    %c0_i32_0 = arith.constant 0 : i32
    %c0_i32_1 = arith.constant 0 : i32
    %c0_i32_2 = arith.constant 0 : i32
    return %c0_i32, %c0_i32_0, %c0_i32_1 : i32, i32, i32
  }
  func.func @transform_6(%arg0: i32) -> (i32, i32, i32) {
    %c0_i32 = arith.constant 0 : i32
    %c0_i32_0 = arith.constant 0 : i32
    %c0_i32_1 = arith.constant 0 : i32
    %c0_i32_2 = arith.constant 0 : i32
    return %c0_i32, %c0_i32_0, %c0_i32_1 : i32, i32, i32
  }
  func.func @transform_7(%arg0: i32) -> (i32, i32, i32) {
    %c0_i32 = arith.constant 0 : i32
    %c0_i32_0 = arith.constant 0 : i32
    %c0_i32_1 = arith.constant 0 : i32
    %c0_i32_2 = arith.constant 0 : i32
    return %c0_i32, %c0_i32_0, %c0_i32_1 : i32, i32, i32
  }
  func.func @transform_8(%arg0: i32) -> (i32, i32, i32) {
    %c0_i32 = arith.constant 0 : i32
    %c0_i32_0 = arith.constant 0 : i32
    %c0_i32_1 = arith.constant 0 : i32
    %c0_i32_2 = arith.constant 0 : i32
    return %c0_i32, %c0_i32_0, %c0_i32_1 : i32, i32, i32
  }
  func.func @transform_9(%arg0: i32) -> (i32, i32, i32) {
    %c0_i32 = arith.constant 0 : i32
    %c0_i32_0 = arith.constant 0 : i32
    %c0_i32_1 = arith.constant 0 : i32
    %c0_i32_2 = arith.constant 0 : i32
    return %c0_i32, %c0_i32_0, %c0_i32_1 : i32, i32, i32
  }
  func.func @transform_10(%arg0: i32) -> (i32, i32, i32) {
    %c0_i32 = arith.constant 0 : i32
    %c0_i32_0 = arith.constant 0 : i32
    %c0_i32_1 = arith.constant 0 : i32
    %c0_i32_2 = arith.constant 0 : i32
    return %c0_i32, %c0_i32_0, %c0_i32_1 : i32, i32, i32
  }
  func.func @transform_11(%arg0: i32) -> (i32, i32, i32) {
    %c0_i32 = arith.constant 0 : i32
    %c0_i32_0 = arith.constant 0 : i32
    %c0_i32_1 = arith.constant 0 : i32
    %c0_i32_2 = arith.constant 0 : i32
    return %c0_i32, %c0_i32_0, %c0_i32_1 : i32, i32, i32
  }
  func.func @transform_12(%arg0: i32) -> (i32, i32, i32) {
    %c0_i32 = arith.constant 0 : i32
    %c0_i32_0 = arith.constant 0 : i32
    %c0_i32_1 = arith.constant 0 : i32
    %c0_i32_2 = arith.constant 0 : i32
    return %c0_i32, %c0_i32_0, %c0_i32_1 : i32, i32, i32
  }
  func.func @transform_13(%arg0: i32) -> (i32, i32) {
    %c0_i32 = arith.constant 0 : i32
    %c0_i32_0 = arith.constant 0 : i32
    %c0_i32_1 = arith.constant 0 : i32
    return %c0_i32, %c0_i32_0 : i32, i32
  }
  func.func @transform_14(%arg0: i32) -> (i32, i32) {
    %c0_i32 = arith.constant 0 : i32
    %c0_i32_0 = arith.constant 0 : i32
    %c0_i32_1 = arith.constant 0 : i32
    return %c0_i32, %c0_i32_0 : i32, i32
  }
  func.func @transform_15(%arg0: i32) -> (i32, i32) {
    %c0_i32 = arith.constant 0 : i32
    %c0_i32_0 = arith.constant 0 : i32
    %c0_i32_1 = arith.constant 0 : i32
    return %c0_i32, %c0_i32_0 : i32, i32
  }
  func.func @transform_16(%arg0: i32) -> (i32, i32) {
    %c0_i32 = arith.constant 0 : i32
    %c0_i32_0 = arith.constant 0 : i32
    %c0_i32_1 = arith.constant 0 : i32
    return %c0_i32, %c0_i32_0 : i32, i32
  }
  func.func @transform_17(%arg0: i32) -> (i32, i32, i32) {
    %c0_i32 = arith.constant 0 : i32
    %c0_i32_0 = arith.constant 0 : i32
    %c0_i32_1 = arith.constant 0 : i32
    %c0_i32_2 = arith.constant 0 : i32
    return %c0_i32, %c0_i32_0, %c0_i32_1 : i32, i32, i32
  }
  func.func @transform_18(%arg0: i32) -> (i32, i32, i32, i32) {
    %c0_i32 = arith.constant 0 : i32
    %c0_i32_0 = arith.constant 0 : i32
    %c0_i32_1 = arith.constant 0 : i32
    %c0_i32_2 = arith.constant 0 : i32
    %c0_i32_3 = arith.constant 0 : i32
    return %c0_i32, %c0_i32_0, %c0_i32_1, %c0_i32_2 : i32, i32, i32, i32
  }
  func.func @transform_19(%arg0: i32) -> (i32, i32, i32) {
    %c0_i32 = arith.constant 0 : i32
    %c0_i32_0 = arith.constant 0 : i32
    %c0_i32_1 = arith.constant 0 : i32
    %c0_i32_2 = arith.constant 0 : i32
    return %c0_i32, %c0_i32_0, %c0_i32_1 : i32, i32, i32
  }
  func.func @transform_20(%arg0: i32) -> (i32, i32) {
    %c0_i32 = arith.constant 0 : i32
    %c0_i32_0 = arith.constant 0 : i32
    %c0_i32_1 = arith.constant 0 : i32
    return %c0_i32, %c0_i32_0 : i32, i32
  }
  func.func @transform_21(%arg0: i32) -> (i32, i32, i32) {
    %c0_i32 = arith.constant 0 : i32
    %c0_i32_0 = arith.constant 0 : i32
    %c0_i32_1 = arith.constant 0 : i32
    return %arg0, %c0_i32, %c0_i32_0 : i32, i32, i32
  }
}

</mosaic_0001>

<bundles_post_ra>
// kernel: block_cross.5
= control target key start
LH: loop header
LB: loop body
LE: loop exit
PB: predicated region body
PF: predicated region fallthrough
CT: control target
= control target key end

     0   :  { %s3208_s30 = smov 0   ;;  %s5271_s0 = inlined_call_operand.vmem [shape: f32[2,256,32], index: 0, kind: input, shape index: {}]   ;;  %s5272_s1 = inlined_call_operand.vmem [shape: f32[1,32], index: 1, kind: input, shape index: {}]   ;;  %s5273_s2 = inlined_call_operand.vmem [shape: f32[1,32], index: 2, kind: input, shape index: {}]   ;;  %s5274_s3 = inlined_call_operand.vmem [shape: bf16[32,128], index: 3, kind: input, shape index: {}]   ;;  %s5275_s4 = inlined_call_operand.vmem [shape: f32[1,128], index: 4, kind: input, shape index: {}]   ;;  %s5276_s5 = inlined_call_operand.vmem [shape: f32[3,3,128], index: 5, kind: input, shape index: {}]   ;;  %s5277_s6 = inlined_call_operand.vmem [shape: f32[1,1,128], index: 6, kind: input, shape index: {}]   ;;  %s5278_s7 = inlined_call_operand.vmem [shape: bf16[128,32], index: 7, kind: input, shape index: {}]   ;;  %s5279_s8 = inlined_call_operand.vmem [shape: f32[1,32], index: 8, kind: input, shape index: {}]   ;;  %s5280_s9 = inlined_call_operand.vmem [shape: f32[2,256,32], index: 9, kind: output, shape index: {}]  }
   0x1 LB: > { %s2935_s10 = sadd.s32 4294967295, %s3154_s30   ;;  %p2939_p0 = scmp.ge.s32.totalorder %s3154_s30, 1  ;;  %s3154_s30 = sphi %s3208_s30, %s19_s30  }
   0x2   : > { %p287_p1 = scmp.lt.s32.totalorder %s3154_s30, 3 }
   0x4   : > { %p288_p2 = pnand %p2939_p0, %p287_p1 }
   0x6   : > { %291 = sbr.rel (%p288_p2) target bundleno = 1182 (0x49e), region = 56 }
   0xb   : > { %p323_p3 = scmp.lt.s32.totalorder %s2935_s10, 1  ;;  %vm366_vm0 = vcmask 261120   ;;  %v3156_v14 = vmov 32.0  }
   0xc   : > { %3039 = vrcp.f32 %v3156_v14 }
   0xd   : > { %s5338_s10 = smov (!%p323_p3, %s2935_s10), 1 }
   0xe   : > { %s3002_s11 = sshll.u32 %s5338_s10, 8 }
   0xf   : > { %s3224_s14 = scalar_lea.vmem %s5271_s0, %s3002_s11  ;;  %s4497_s25 = scalar_lea.vmem %s5280_s9, %s3002_s11 }
  0x10   : > { %v336_v0 = vld [vmem:[%s3224_s14 + $0x10] sm:$0xff]  ;;  %v334_v1 = vld [vmem:[%s3224_s14] sm:$0xff]  ;;  %v337_v6 = vld [vmem:[%s3224_s14 + $0x18] sm:$0xff] }
  0x11   : > { %v373_v2 = vsel %vm366_vm0, %v336_v0, 0.0  ;;  %v367_v3 = vsel %vm366_vm0, %v334_v1, 0.0  ;;  %v338_v4 = vld [vmem:[%s3224_s14 + $0x20] sm:$0xff]  ;;  %v335_v7 = vld [vmem:[%s3224_s14 + $0x8] sm:$0xff]  ;;  %v376_v9 = vsel %vm366_vm0, %v337_v6, 0.0  ;;  %v340_v12 = vld [vmem:[%s3224_s14 + $0x30] sm:$0xff] }
  0x12   : > { %374 = vadd.xlane.f32.xlu1 %v373_v2  ;;  %368 = vadd.xlane.f32.xlu0 %v367_v3  ;;  %v379_v5 = vsel %vm366_vm0, %v338_v4, 0.0  ;;  %v339_v8 = vld [vmem:[%s3224_s14 + $0x28] sm:$0xff]  ;;  %v370_v10 = vsel %vm366_vm0, %v335_v7, 0.0  ;;  %v385_v13 = vsel %vm366_vm0, %v340_v12, 0.0  ;;  %v3040_v15 = vpop.eup %3039  ;;  %v3253_v34 = vld [vmem:[%s3224_s14 + $0x38] sm:$0xff]  ;;  %v3275_v47 = vld [vmem:[%s3224_s14 + $0x40] sm:$0xff] }
  0x13   : > { %380 = vadd.xlane.f32.xlu2 %v379_v5  ;;  %v382_v11 = vsel %vm366_vm0, %v339_v8, 0.0  ;;  %v464_v16 = vmul.f32 32.0, %v3040_v15  ;;  %vm468_vm1 = vweird.f32 %v3040_v15  ;;  %v388_v40 = vsel %vm366_vm0, %v3253_v34, 0.0  ;;  %v3289_v56 = vld [vmem:[%s3224_s14 + $0x58] sm:$0xff]  ;;  %v3292_v57 = vld [vmem:[%s3224_s14 + $0x48] sm:$0xff]  ;;  %v3304_v63 = vld [vmem:[%s3224_s14 + $0x60] sm:$0xff] }
  0x14   : > { %v391_v51 = vsel %vm366_vm0, %v3275_v47, 0.0  ;;  %v400_v59 = vsel %vm366_vm0, %v3289_v56, 0.0  ;;  %v394_v61 = vsel %vm366_vm0, %v3292_v57, 0.0  ;;  %v403_v2 = vsel %vm366_vm0, %v3304_v63, 0.0 }
  0x15   : > { %v465_v17 = vsub.f32 1.0, %v464_v16 }
  0x17   : > { %v466_v18 = vmul.f32 %v3040_v15, %v465_v17 }
  0x19   : > { %v467_v19 = vadd.f32 %v3040_v15, %v466_v18 }
  0x1a   : > { %377 = vadd.xlane.f32.xlu1 %v376_v9  ;;  %371 = vadd.xlane.f32.xlu0 %v370_v10  ;;  %v3005_v9 = vld [vmem:[%s5274_s3 + $0x8] sm:$0xff] }
  0x1b   : > { %383 = vadd.xlane.f32.xlu2 %v382_v11  ;;  %v3240_v20 = vsel %vm468_vm1, %v3040_v15, %v467_v19  ;;  %1240 = vmatpush.bf16.msra.mxu0 %v3005_v9 }
  0x1c   : > { %3014 = vmatpush.bf16.msra.mxu3 %v3005_v9 }
  0x23   : > { %386 = vadd.xlane.f32.xlu2 %v385_v13 }
  0x85   : > { %v375_v21 = vpop.xlane.xlu1 %374  ;;  %v369_v22 = vpop.xlane.xlu0 %368 }
  0x86   : > { %v470_v23 = vmul.f32 %v3240_v20, %v369_v22  ;;  %v381_v24 = vpop.xlane.xlu2 %380  ;;  %v472_v33 = vmul.f32 %v3240_v20, %v375_v21 }
  0x87   : > { %v474_v32 = vmul.f32 %v3240_v20, %v381_v24 }
  0x88   : > { %v3243_v25 = vsub.f32 %v334_v1, %v470_v23  ;;  %v3267_v42 = vsub.f32 %v336_v0, %v472_v33  ;;  %v3307_v0 = vld [vmem:[%s3224_s14 + $0x50] sm:$0xff] }
  0x89   : > { %v3259_v38 = vsub.f32 %v338_v4, %v474_v32  ;;  %v397_v3 = vsel %vm366_vm0, %v3307_v0, 0.0  ;;  %v3315_v4 = vld [vmem:[%s3224_s14 + $0x68] sm:$0xff] }
  0x8a   : > { %v534_v26 = vmul.f32 %v3243_v25, %v3243_v25  ;;  %v536_v48 = vmul.f32 %v3267_v42, %v3267_v42  ;;  %v406_v5 = vsel %vm366_vm0, %v3315_v4, 0.0 }
  0x8b   : > { %v538_v46 = vmul.f32 %v3259_v38, %v3259_v38 }
  0x8c   : > { %v566_v27 = vsel %vm366_vm0, %v534_v26, 0.0  ;;  %v572_v52 = vsel %vm366_vm0, %v536_v48, 0.0 }
  0x8d   : > { %v378_v28 = vpop.xlane.xlu1 %377  ;;  %567 = vadd.xlane.f32.xlu0 %v566_v27  ;;  %v372_v29 = vpop.xlane.xlu0 %371  ;;  %v578_v50 = vsel %vm366_vm0, %v538_v46, 0.0 }
  0x8e   : > { %v473_v30 = vmul.f32 %v3240_v20, %v378_v28  ;;  %v471_v31 = vmul.f32 %v3240_v20, %v372_v29  ;;  %v384_v37 = vpop.xlane.xlu2 %383 }
  0x8f   : > { %v475_v45 = vmul.f32 %v3240_v20, %v384_v37 }
  0x90   : > { %v3255_v35 = vsub.f32 %v337_v6, %v473_v30  ;;  %v3257_v36 = vsub.f32 %v335_v7, %v471_v31  ;;  %v3320_v6 = vld [vmem:[%s3224_s14 + $0x70] sm:$0xff] }
  0x91   : > { %v3279_v49 = vsub.f32 %v339_v8, %v475_v45  ;;  %v409_v7 = vsel %vm366_vm0, %v3320_v6, 0.0 }
  0x92   : > { %v537_v39 = vmul.f32 %v3255_v35, %v3255_v35  ;;  %v535_v41 = vmul.f32 %v3257_v36, %v3257_v36 }
  0x93   : > { %v539_v55 = vmul.f32 %v3279_v49, %v3279_v49 }
  0x94   : > { %v575_v43 = vsel %vm366_vm0, %v537_v39, 0.0  ;;  %v569_v44 = vsel %vm366_vm0, %v535_v41, 0.0 }
  0x95   : > { %576 = vadd.xlane.f32.xlu2 %v575_v43  ;;  %389 = vadd.xlane.f32.xlu0 %v388_v40  ;;  %v581_v60 = vsel %vm366_vm0, %v539_v55, 0.0 }
  0x96   : > { %570 = vadd.xlane.f32.xlu1 %v569_v44  ;;  %v387_v53 = vpop.xlane.xlu2 %386 }
  0x97   : > { %v476_v54 = vmul.f32 %v3240_v20, %v387_v53 }
  0x99   : > { %v3294_v58 = vsub.f32 %v340_v12, %v476_v54  ;;  %v3004_v12 = vld [vmem:[%s5274_s3] sm:$0xff] }
  0x9a   : > { %1241 = vmatpush.bf16.msra.mxu0 %v3004_v12  ;;  %3015 = vmatpush.bf16.msra.mxu3 %v3004_v12 }
  0x9b   : > { %v540_v62 = vmul.f32 %v3294_v58, %v3294_v58 }
  0x9d   : > { %579 = vadd.xlane.f32.xlu2 %v578_v50  ;;  %392 = vadd.xlane.f32.xlu0 %v391_v51  ;;  %v584_v1 = vsel %vm366_vm0, %v540_v62, 0.0 }
  0x9e   : > { %573 = vadd.xlane.f32.xlu1 %v572_v52 }
  0xa5   : > { %401 = vadd.xlane.f32.xlu2 %v400_v59  ;;  %582 = vadd.xlane.f32.xlu0 %v581_v60 }
  0xa6   : > { %395 = vadd.xlane.f32.xlu1 %v394_v61 }
  0xad   : > { %585 = vadd.xlane.f32.xlu0 %v584_v1  ;;  %404 = vadd.xlane.f32.xlu2 %v403_v2 }
  0xae   : > { %398 = vadd.xlane.f32.xlu1 %v397_v3 }
  0xb5   : > { %407 = vadd.xlane.f32.xlu0 %v406_v5 }
  0xbd   : > { %410 = vadd.xlane.f32.xlu0 %v409_v7 }
 0x100   : > { %v568_v8 = vpop.xlane.xlu0 %567 }
 0x101   : > { %v662_v10 = vmul.f32 %v568_v8, %v3240_v20 }
 0x103   : > { %v694_v11 = vadd.f32 1e-05, %v662_v10 }
 0x105   : > { %3041 = vrsqrt.f32 %v694_v11  ;;  %vm732_vm3 = vweird.f32 %v694_v11 }
 0x108   : > { %v577_v13 = vpop.xlane.xlu2 %576  ;;  %v390_v14 = vpop.xlane.xlu0 %389 }
 0x109   : > { %v665_v15 = vmul.f32 %v577_v13, %v3240_v20  ;;  %v571_v16 = vpop.xlane.xlu1 %570  ;;  %v477_v17 = vmul.f32 %v3240_v20, %v390_v14 }
 0x10a   : > { %v663_v18 = vmul.f32 %v571_v16, %v3240_v20 }
 0x10b   : > { %v3042_v19 = vpop.eup %3041  ;;  %v3334_v21 = vadd.f32 1e-05, %v665_v15  ;;  %v3337_v22 = vsub.f32 %v3253_v34, %v477_v17 }
 0x10c   : > { %v727_v23 = vmul.f32 %v3042_v19, %v694_v11  ;;  %v695_v24 = vadd.f32 1e-05, %v663_v18  ;;  %vm733_vm2 = vweird.f32 %v3042_v19  ;;  %v3383_v11 = vld [vmem:[%s3224_s14 + $0x78] sm:$0xff] }
 0x10d   : > { %3043 = vrsqrt.f32 %v3334_v21  ;;  %v541_v26 = vmul.f32 %v3337_v22, %v3337_v22  ;;  %vm3360_vm4 = vmor %vm732_vm3, %vm733_vm2  ;;  %v412_v18 = vsel %vm366_vm0, %v3383_v11, 0.0  ;;  %vm762_vm8 = vweird.f32 %v3334_v21 }
 0x10e   : > { %v728_v27 = vmul.f32 %v3042_v19, %v727_v23  ;;  %3045 = vrsqrt.f32 %v695_v24  ;;  %vm742_vm6 = vweird.f32 %v695_v24 }
 0x10f   : > { %v587_v28 = vsel %vm366_vm0, %v541_v26, 0.0 }
 0x110   : > { %v729_v29 = vmul.f32 0.5, %v728_v27  ;;  %v580_v30 = vpop.xlane.xlu2 %579  ;;  %588 = vadd.xlane.f32.xlu1 %v587_v28  ;;  %v393_v31 = vpop.xlane.xlu0 %392 }
 0x111   : > { %v574_v32 = vpop.xlane.xlu1 %573  ;;  %v478_v33 = vmul.f32 %v3240_v20, %v393_v31  ;;  %v666_v43 = vmul.f32 %v580_v30, %v3240_v20  ;;  %v3410_v30 = vld [vmem:[%s5273_s2] ss:$0 sm:$0xff] }
 0x112   : > { %v730_v34 = vsub.f32 1.5, %v729_v29  ;;  %v664_v37 = vmul.f32 %v574_v32, %v3240_v20 }
 0x113   : > { %v3345_v39 = vpop.eup %3043  ;;  %v3348_v40 = vsub.f32 %v3275_v47, %v478_v33  ;;  %v3358_v47 = vadd.f32 1e-05, %v666_v43 }
 0x114   : > { %v3046_v41 = vpop.eup %3045  ;;  %v3351_v44 = vadd.f32 1e-05, %v664_v37  ;;  %v731_v46 = vmul.f32 %v3042_v19, %v730_v34  ;;  %v757_v48 = vmul.f32 %v3345_v39, %v3334_v21  ;;  %v3417_v34 = vld [vmem:[%s3224_s14 + $0x90] sm:$0xff]  ;;  %vm763_vm9 = vweird.f32 %v3345_v39 }
 0x115   : > { %v737_v45 = vmul.f32 %v3046_v41, %v695_v24  ;;  %v542_v51 = vmul.f32 %v3348_v40, %v3348_v40  ;;  %vm743_vm5 = vweird.f32 %v3046_v41  ;;  %v421_v21 = vsel %vm366_vm0, %v3417_v34, 0.0  ;;  %vm3438_vm11 = vmor %vm762_vm8, %vm763_vm9 }
 0x116   : > { %3047 = vrsqrt.f32 %v3351_v44  ;;  %v735_v1 = vsel %vm3360_vm4, %v3042_v19, %v731_v46  ;;  %v758_v2 = vmul.f32 %v3345_v39, %v757_v48  ;;  %vm744_vm7 = vmor %vm742_vm6, %vm743_vm5  ;;  %v3430_v46 = vld [vmem:[%s3224_s14 + $0x80] sm:$0xff]  ;;  %vm752_vm12 = vweird.f32 %v3351_v44 }
 0x117   : > { %v738_v50 = vmul.f32 %v3046_v41, %v737_v45  ;;  %v590_v61 = vsel %vm366_vm0, %v542_v51, 0.0  ;;  %3049 = vrsqrt.f32 %v3358_v47  ;;  %v1046_v12 = vmul.f32 %v735_v1, %v3243_v25 }
 0x118   : > { %v402_v52 = vpop.xlane.xlu2 %401  ;;  %v583_v53 = vpop.xlane.xlu0 %582  ;;  %591 = vadd.xlane.f32.xlu1 %v590_v61  ;;  %v759_v15 = vmul.f32 0.5, %v758_v2  ;;  %vm772_vm1 = vweird.f32 %v3358_v47 }
 0x119   : > { %v739_v55 = vmul.f32 0.5, %v738_v50  ;;  %v481_v59 = vmul.f32 %v3240_v20, %v402_v52  ;;  %v396_v60 = vpop.xlane.xlu1 %395  ;;  %v667_v62 = vmul.f32 %v583_v53, %v3240_v20  ;;  %v3510_v53 = vld [vmem:[%s3224_s14 + $0xb8] sm:$0xff] }
 0x11a   : > { %v479_v3 = vmul.f32 %v3240_v20, %v396_v60 }
 0x11b   : > { %v740_v5 = vsub.f32 1.5, %v739_v55  ;;  %v3372_v7 = vsub.f32 %v3289_v56, %v481_v59  ;;  %v3374_v8 = vadd.f32 1e-05, %v667_v62  ;;  %v3392_v56 = vld [vmem:[%s5272_s1] ss:$0 sm:$0xff]  ;;  %v415_v59 = vsel %vm366_vm0, %v3430_v46, 0.0 }
 0x11c   : > { %v3376_v9 = vpop.eup %3047  ;;  %v3380_v10 = vsub.f32 %v3292_v57, %v479_v3  ;;  %v1082_v29 = vmul.f32 %v3392_v56, %v1046_v12 }
 0x11d   : > { %v741_v13 = vmul.f32 %v3046_v41, %v740_v5  ;;  %v747_v14 = vmul.f32 %v3376_v9, %v3351_v44  ;;  %3051 = vrsqrt.f32 %v3374_v8  ;;  %v545_v57 = vmul.f32 %v3372_v7, %v3372_v7  ;;  %v3412_v31 = vpop.eup %3049 }
 0x11e   : > { %v543_v25 = vmul.f32 %v3380_v10, %v3380_v10  ;;  %vm753_vm10 = vweird.f32 %v3376_v9  ;;  %v1118_v50 = vadd.f32 %v3410_v30, %v1082_v29  ;;  %vm782_vm14 = vweird.f32 %v3374_v8 }
 0x11f   : > { %v745_v16 = vsel %vm744_vm7, %v3046_v41, %v741_v13  ;;  %v748_v17 = vmul.f32 %v3376_v9, %v747_v14  ;;  %v599_v23 = vsel %vm366_vm0, %v545_v57, 0.0  ;;  %vm754_vm13 = vmor %vm752_vm12, %vm753_vm10  ;;  %v3464_v14 = vld [vmem:[%s3224_s14 + $0x88] sm:$0xff]  ;;  %v3467_v57 = vld [vmem:[%s3224_s14 + $0x98] sm:$0xff]  ;;  %vm773_vm2 = vweird.f32 %v3412_v31 }
 0x120   : > { %v1047_v19 = vmul.f32 %v745_v16, %v3257_v36  ;;  %v3403_v24 = vpop.xlane.xlu0 %585  ;;  %600 = vadd.xlane.f32.xlu0 %v599_v23  ;;  %v593_v27 = vsel %vm366_vm0, %v543_v25, 0.0  ;;  %v760_v36 = vsub.f32 1.5, %v759_v15  ;;  %413 = vadd.xlane.f32.xlu1 %v412_v18  ;;  %v405_v2 = vpop.xlane.xlu2 %404  ;;  %v418_v25 = vsel %vm366_vm0, %v3464_v14, 0.0  ;;  %vm774_vm4 = vmor %vm772_vm1, %vm773_vm2 }
 0x121   : > { %v749_v26 = vmul.f32 0.5, %v748_v17  ;;  %v399_v28 = vpop.xlane.xlu1 %398  ;;  %594 = vadd.xlane.f32.xlu2 %v593_v27  ;;  %v482_v13 = vmul.f32 %v3240_v20, %v405_v2 }
 0x122   : > { %v480_v32 = vmul.f32 %v3240_v20, %v399_v28  ;;  %v1083_v33 = vmul.f32 %v3392_v56, %v1047_v19  ;;  %v761_v52 = vmul.f32 %v3345_v39, %v760_v36 }
 0x123   : > { %v3419_v37 = vpop.eup %3051  ;;  %v750_v41 = vsub.f32 1.5, %v749_v26 }
 0x124   : > { %v777_v43 = vmul.f32 %v3419_v37, %v3374_v8  ;;  %v3427_v45 = vsub.f32 %v3307_v0, %v480_v32  ;;  %v1119_v51 = vadd.f32 %v3410_v30, %v1083_v33  ;;  %v767_v0 = vmul.f32 %v3412_v31, %v3358_v47  ;;  %v3495_v33 = vld [vmem:[%s3224_s14 + $0xa0] sm:$0xff] }
 0x125   : > { %v751_v48 = vmul.f32 %v3376_v9, %v750_v41  ;;  %v765_v3 = vsel %vm3438_vm11, %v3345_v39, %v761_v52  ;;  %vm783_vm15 = vweird.f32 %v3419_v37 }
 0x126   : > { %v544_v54 = vmul.f32 %v3427_v45, %v3427_v45  ;;  %v1150_v55 = vpack.c.bf16 %v1119_v51, %v1118_v50  ;;  %v778_v61 = vmul.f32 %v3419_v37, %v777_v43  ;;  %v768_v5 = vmul.f32 %v3412_v31, %v767_v0  ;;  %vm784_vm3 = vmor %vm782_vm14, %vm783_vm15  ;;  %v3513_v0 = vld [vmem:[%s3224_s14 + $0xa8] sm:$0xff] }
 0x127   : > { %v755_v60 = vsel %vm754_vm13, %v3376_v9, %v751_v48  ;;  %v1049_v16 = vmul.f32 %v765_v3, %v3255_v35  ;;  %v427_v48 = vsel %vm366_vm0, %v3495_v33, 0.0 }
 0x128   : > { %v596_v62 = vsel %vm366_vm0, %v544_v54, 0.0  ;;  %v408_v1 = vpop.xlane.xlu0 %407  ;;  %2952 = vmatmul.msk.bf16.vlgmr.msra.gmra.mxu0 %vm366_vm0, %v1150_v55  ;;  %422 = vadd.xlane.f32.xlu0 %v421_v21  ;;  %v1048_v9 = vmul.f32 %v755_v60, %v3267_v42  ;;  %v779_v15 = vmul.f32 0.5, %v778_v61  ;;  %v769_v17 = vmul.f32 0.5, %v768_v5  ;;  %v3524_v60 = vld [vmem:[%s3224_s14 + $0xb0] sm:$0xff] }
 0x129   : > { %v483_v44 = vmul.f32 %v3240_v20, %v408_v1  ;;  %597 = vadd.xlane.f32.xlu2 %v596_v62  ;;  %416 = vadd.xlane.f32.xlu1 %v415_v59  ;;  %v3475_v42 = vsub.f32 %v3304_v63, %v482_v13  ;;  %v1085_v27 = vmul.f32 %v3392_v56, %v1049_v16  ;;  %v436_v55 = vsel %vm366_vm0, %v3510_v53, 0.0 }
 0x12a   : > { %v1084_v19 = vmul.f32 %v3392_v56, %v1048_v9  ;;  %v780_v23 = vsub.f32 1.5, %v779_v15  ;;  %v770_v28 = vsub.f32 1.5, %v769_v17  ;;  %v668_v1 = vmul.f32 %v3403_v24, %v3240_v20 }
 0x12b   : > { %v3460_v12 = vsub.f32 %v3315_v4, %v483_v44  ;;  %v424_v4 = vsel %vm366_vm0, %v3467_v57, 0.0  ;;  %v546_v36 = vmul.f32 %v3475_v42, %v3475_v42  ;;  %v1121_v8 = vadd.f32 %v3410_v30, %v1085_v27 }
 0x12c   : > { %v1120_v29 = vadd.f32 %v3410_v30, %v1084_v19  ;;  %v781_v32 = vmul.f32 %v3419_v37, %v780_v23  ;;  %v771_v41 = vmul.f32 %v3412_v31, %v770_v28  ;;  %v700_v2 = vadd.f32 1e-05, %v668_v1 }
 0x12d   : > { %v547_v39 = vmul.f32 %v3460_v12, %v3460_v12  ;;  %v602_v47 = vsel %vm366_vm0, %v546_v36, 0.0 }
 0x12e   : > { %v1151_v43 = vpack.c.bf16 %v1121_v8, %v1120_v29  ;;  %v785_v51 = vsel %vm784_vm3, %v3419_v37, %v781_v32  ;;  %v775_v21 = vsel %vm774_vm4, %v3412_v31, %v771_v41  ;;  %v430_v37 = vsel %vm366_vm0, %v3513_v0, 0.0 }
 0x12f   : > { %v605_v18 = vsel %vm366_vm0, %v547_v39, 0.0  ;;  %v1051_v52 = vmul.f32 %v785_v51, %v3279_v49  ;;  %v1050_v54 = vmul.f32 %v775_v21, %v3259_v38  ;;  %v433_v38 = vsel %vm366_vm0, %v3524_v60, 0.0 }
 0x130   : > { %v411_v35 = vpop.xlane.xlu0 %410  ;;  %606 = vadd.xlane.f32.xlu0 %v605_v18  ;;  %3053 = vrsqrt.f32 %v700_v2  ;;  %vm792_vm5 = vweird.f32 %v700_v2 }
 0x131   : > { %v484_v26 = vmul.f32 %v3240_v20, %v411_v35  ;;  %419 = vadd.xlane.f32.xlu2 %v418_v25  ;;  %425 = vadd.xlane.f32.xlu1 %v424_v4  ;;  %v1087_v59 = vmul.f32 %v3392_v56, %v1051_v52  ;;  %v1086_v31 = vmul.f32 %v3392_v56, %v1050_v54 }
 0x133   : > { %v3486_v63 = vsub.f32 %v3320_v6, %v484_v26  ;;  %v1123_v49 = vadd.f32 %v3410_v30, %v1087_v59  ;;  %v1122_v61 = vadd.f32 %v3410_v30, %v1086_v31  ;;  %v3157_v26 = vmov 0.0  }
 0x134   : > { %1486 = vst [vmem:[#allocation2 + $0x18] sm:$0xff] %v3157_v26 }
 0x135   : > { %v548_v6 = vmul.f32 %v3486_v63, %v3486_v63  ;;  %v1152_v62 = vpack.c.bf16 %v1123_v49, %v1122_v61  ;;  %1487 = vst [vmem:[#allocation2 + $0x20] sm:$0xff] %v3157_v26 }
 0x136   : > { %v3054_v44 = vpop.eup %3053  ;;  %1483 = vst [vmem:[#allocation2] sm:$0xff] %v3157_v26 }
 0x137   : > { %v608_v50 = vsel %vm366_vm0, %v548_v6, 0.0  ;;  %v787_v3 = vmul.f32 %v3054_v44, %v700_v2  ;;  %vm793_vm6 = vweird.f32 %v3054_v44  ;;  %1484 = vst [vmem:[#allocation2 + $0x8] sm:$0xff] %v3157_v26 }
 0x138   : > { %2953 = vmatmul.msk.bf16.gmra.mxu0 %vm366_vm0, %v1151_v43  ;;  %609 = vadd.xlane.f32.xlu0 %v608_v50  ;;  %vm3536_vm7 = vmor %vm792_vm5, %vm793_vm6  ;;  %1485 = vst [vmem:[#allocation2 + $0x10] sm:$0x3] %v3157_v26 }
 0x139   : > { %603 = vadd.xlane.f32.xlu2 %v602_v47  ;;  %428 = vadd.xlane.f32.xlu1 %v427_v48  ;;  %v788_v9 = vmul.f32 %v3054_v44, %v787_v3  ;;  %1488 = vst [vmem:[#allocation2 + $0x28] sm:$0x3] %v3157_v26 }
 0x13a   : > { %1489 = vst [vmem:[#allocation2 + $0x30] sm:$0xff] %v3157_v26 }
 0x13b   : > { %v789_v16 = vmul.f32 0.5, %v788_v9  ;;  %1490 = vst [vmem:[#allocation2 + $0x38] sm:$0xff] %v3157_v26 }
 0x13c   : > { %1491 = vst [vmem:[#allocation2 + $0x40] sm:$0x3] %v3157_v26 }
 0x13d   : > { %v790_v39 = vsub.f32 1.5, %v789_v16  ;;  %1492 = vst [vmem:[#allocation2 + $0x48] sm:$0xff] %v3157_v26 }
 0x13e   : > { %1493 = vst [vmem:[#allocation2 + $0x50] sm:$0xff] %v3157_v26 }
 0x13f   : > { %v791_v24 = vmul.f32 %v3054_v44, %v790_v39  ;;  %1494 = vst [vmem:[#allocation2 + $0x58] sm:$0x3] %v3157_v26 }
 0x140   : > { %437 = vadd.xlane.f32.xlu0 %v436_v55  ;;  %1495 = vst [vmem:[#allocation2 + $0x60] sm:$0xff] %v3157_v26 }
 0x141   : > { %431 = vadd.xlane.f32.xlu2 %v430_v37  ;;  %v795_v28 = vsel %vm3536_vm7, %v3054_v44, %v791_v24  ;;  %1496 = vst [vmem:[#allocation2 + $0x68] sm:$0xff] %v3157_v26 }
 0x142   : > { %v1052_v48 = vmul.f32 %v795_v28, %v3294_v58  ;;  %1497 = vst [vmem:[#allocation2 + $0x70] sm:$0x3] %v3157_v26 }
 0x143   : > { %1498 = vst [vmem:[#allocation2 + $0x78] sm:$0xff] %v3157_v26 }
 0x144   : > { %v1088_v31 = vmul.f32 %v3392_v56, %v1052_v48  ;;  %1499 = vst [vmem:[#allocation2 + $0x80] sm:$0xff] %v3157_v26 }
 0x145   : > { %1500 = vst [vmem:[#allocation2 + $0x88] sm:$0x3] %v3157_v26 }
 0x146   : > { %v1124_v16 = vadd.f32 %v3410_v30, %v1088_v31  ;;  %1501 = vst [vmem:[#allocation2 + $0x90] sm:$0xff] %v3157_v26 }
 0x147   : > { %1502 = vst [vmem:[#allocation2 + $0x98] sm:$0xff] %v3157_v26 }
 0x148   : > { %2954 = vmatmul.msk.bf16.gmra.mxu0 %vm366_vm0, %v1152_v62  ;;  %1503 = vst [vmem:[#allocation2 + $0xa0] sm:$0x3] %v3157_v26 }
 0x149   : > { %434 = vadd.xlane.f32.xlu2 %v433_v38  ;;  %1504 = vst [vmem:[#allocation2 + $0xa8] sm:$0xff] %v3157_v26 }
 0x14a   : > { %1505 = vst [vmem:[#allocation2 + $0xb0] sm:$0xff] %v3157_v26 }
 0x14b   : > { %1506 = vst [vmem:[#allocation2 + $0xb8] sm:$0x3] %v3157_v26 }
 0x14c   : > { %1507 = vst [vmem:[#allocation2 + $0xc0] sm:$0xff] %v3157_v26 }
 0x14d   : > { %1508 = vst [vmem:[#allocation2 + $0xc8] sm:$0xff] %v3157_v26 }
 0x14e   : > { %1509 = vst [vmem:[#allocation2 + $0xd0] sm:$0x3] %v3157_v26 }
 0x14f   : > { %1510 = vst [vmem:[#allocation2 + $0xd8] sm:$0xff] %v3157_v26 }
 0x150   : > { %1511 = vst [vmem:[#allocation2 + $0xe0] sm:$0xff] %v3157_v26 }
 0x151   : > { %1512 = vst [vmem:[#allocation2 + $0xe8] sm:$0x3] %v3157_v26 }
 0x152   : > { %1513 = vst [vmem:[#allocation2 + $0xf0] sm:$0xff] %v3157_v26 }
 0x153   : > { %1514 = vst [vmem:[#allocation2 + $0xf8] sm:$0xff] %v3157_v26 }
 0x154   : > { %1515 = vst [vmem:[#allocation2 + $0x100] sm:$0x3] %v3157_v26 }
 0x155   : > { %1516 = vst [vmem:[#allocation2 + $0x108] sm:$0xff] %v3157_v26 }
 0x156   : > { %1517 = vst [vmem:[#allocation2 + $0x110] sm:$0xff] %v3157_v26 }
 0x157   : > { %1518 = vst [vmem:[#allocation2 + $0x118] sm:$0x3] %v3157_v26 }
 0x158   : > { %1519 = vst [vmem:[#allocation2 + $0x120] sm:$0xff] %v3157_v26 }
 0x159   : > { %1520 = vst [vmem:[#allocation2 + $0x128] sm:$0xff] %v3157_v26 }
 0x15a   : > { %1521 = vst [vmem:[#allocation2 + $0x130] sm:$0x3] %v3157_v26 }
 0x15b   : > { %1522 = vst [vmem:[#allocation2 + $0x138] sm:$0xff] %v3157_v26 }
 0x15c   : > { %1523 = vst [vmem:[#allocation2 + $0x140] sm:$0xff] %v3157_v26 }
 0x15d   : > { %1524 = vst [vmem:[#allocation2 + $0x148] sm:$0x3] %v3157_v26 }
 0x15e   : > { %1525 = vst [vmem:[#allocation2 + $0x150] sm:$0xff] %v3157_v26 }
 0x15f   : > { %1526 = vst [vmem:[#allocation2 + $0x158] sm:$0xff] %v3157_v26 }
 0x160   : > { %1527 = vst [vmem:[#allocation2 + $0x160] sm:$0x3] %v3157_v26 }
 0x161   : > { %1528 = vst [vmem:[#allocation2 + $0x168] sm:$0xff] %v3157_v26 }
 0x162   : > { %1529 = vst [vmem:[#allocation2 + $0x170] sm:$0xff] %v3157_v26 }
 0x163   : > { %1530 = vst [vmem:[#allocation2 + $0x178] sm:$0x3] %v3157_v26 }
 0x164   : > { %1531 = vst [vmem:[#allocation2 + $0x180] sm:$0xff] %v3157_v26 }
 0x165   : > { %1532 = vst [vmem:[#allocation2 + $0x188] sm:$0xff] %v3157_v26 }
 0x166   : > { %1533 = vst [vmem:[#allocation2 + $0x190] sm:$0x3] %v3157_v26 }
 0x167   : > { %1534 = vst [vmem:[#allocation2 + $0x198] sm:$0xff] %v3157_v26 }
 0x168   : > { %1535 = vst [vmem:[#allocation2 + $0x1a0] sm:$0xff] %v3157_v26 }
 0x169   : > { %1536 = vst [vmem:[#allocation2 + $0x1a8] sm:$0x3] %v3157_v26 }
 0x183   : > { %v589_v5 = vpop.xlane.xlu1 %588 }
 0x184   : > { %v669_v13 = vmul.f32 %v589_v5, %v3240_v20 }
 0x186   : > { %v701_v15 = vadd.f32 1e-05, %v669_v13 }
 0x188   : > { %3055 = vrsqrt.f32 %v701_v15  ;;  %vm802_vm8 = vweird.f32 %v701_v15 }
 0x18b   : > { %v592_v17 = vpop.xlane.xlu1 %591 }
 0x18c   : > { %v670_v4 = vmul.f32 %v592_v17, %v3240_v20 }
 0x18e   : > { %v3056_v25 = vpop.eup %3055  ;;  %v3534_v19 = vadd.f32 1e-05, %v670_v4 }
 0x18f   : > { %v797_v18 = vmul.f32 %v3056_v25, %v701_v15  ;;  %vm803_vm9 = vweird.f32 %v3056_v25 }
 0x190   : > { %3057 = vrsqrt.f32 %v3534_v19  ;;  %vm3548_vm10 = vmor %vm802_vm8, %vm803_vm9  ;;  %vm812_vm11 = vweird.f32 %v3534_v19 }
 0x191   : > { %v798_v35 = vmul.f32 %v3056_v25, %v797_v18 }
 0x193   : > { %v799_v27 = vmul.f32 0.5, %v798_v35  ;;  %v601_v29 = vpop.xlane.xlu0 %600  ;;  %v414_v8 = vpop.xlane.xlu1 %413 }
 0x194   : > { %v595_v32 = vpop.xlane.xlu2 %594  ;;  %v673_v6 = vmul.f32 %v601_v29, %v3240_v20  ;;  %v485_v47 = vmul.f32 %v3240_v20, %v414_v8 }
 0x195   : > { %v800_v36 = vsub.f32 1.5, %v799_v27  ;;  %v671_v43 = vmul.f32 %v595_v32, %v3240_v20  ;;  %v3624_v27 = vld [vmem:[%s5275_s4] ss:$0 sm:$0xff] }
 0x196   : > { %v3556_v51 = vadd.f32 1e-05, %v673_v6  ;;  %v3559_v21 = vpop.eup %3057  ;;  %v3564_v54 = vsub.f32 %v3383_v11, %v485_v47 }
 0x197   : > { %v801_v50 = vmul.f32 %v3056_v25, %v800_v36  ;;  %v3561_v52 = vadd.f32 1e-05, %v671_v43  ;;  %v807_v58 = vmul.f32 %v3559_v21, %v3534_v19  ;;  %vm813_vm12 = vweird.f32 %v3559_v21 }
 0x198   : > { %3059 = vrsqrt.f32 %v3556_v51  ;;  %v549_v59 = vmul.f32 %v3564_v54, %v3564_v54  ;;  %vm3629_vm13 = vmor %vm812_vm11, %vm813_vm12  ;;  %vm842_vm2 = vweird.f32 %v3556_v51 }
 0x199   : > { %v805_v55 = vsel %vm3548_vm10, %v3056_v25, %v801_v50  ;;  %3061 = vrsqrt.f32 %v3561_v52  ;;  %v808_v11 = vmul.f32 %v3559_v21, %v807_v58  ;;  %vm822_vm15 = vweird.f32 %v3561_v52 }
 0x19a   : > { %v1053_v37 = vmul.f32 %v805_v55, %v3337_v22  ;;  %v611_v38 = vsel %vm366_vm0, %v549_v59, 0.0  ;;  %v3651_v59 = vld [vmem:[%s3224_s14 + $0xc8] sm:$0xff] }
 0x19b   : > { %v423_v49 = vpop.xlane.xlu0 %422  ;;  %v809_v62 = vmul.f32 0.5, %v808_v11  ;;  %612 = vadd.xlane.f32.xlu1 %v611_v38 }
 0x19c   : > { %v1089_v61 = vmul.f32 %v3392_v56, %v1053_v37  ;;  %v598_v22 = vpop.xlane.xlu2 %597  ;;  %v417_v1 = vpop.xlane.xlu1 %416  ;;  %v488_v2 = vmul.f32 %v3240_v20, %v423_v49 }
 0x19d   : > { %v672_v44 = vmul.f32 %v598_v22, %v3240_v20  ;;  %v486_v3 = vmul.f32 %v3240_v20, %v417_v1  ;;  %v810_v13 = vsub.f32 1.5, %v809_v62 }
 0x19e   : > { %v1125_v5 = vadd.f32 %v3410_v30, %v1089_v61  ;;  %v3590_v9 = vpop.eup %3059  ;;  %v3593_v15 = vsub.f32 %v3417_v34, %v488_v2 }
 0x19f   : > { %v3597_v39 = vpop.eup %3061  ;;  %v3599_v17 = vadd.f32 1e-05, %v672_v44  ;;  %v3602_v25 = vsub.f32 %v3430_v46, %v486_v3  ;;  %v837_v18 = vmul.f32 %v3590_v9, %v3556_v51  ;;  %v811_v24 = vmul.f32 %v3559_v21, %v810_v13 }
 0x1a0   : > { %v817_v34 = vmul.f32 %v3597_v39, %v3561_v52  ;;  %v1153_v4 = vpack.c.bf16 %v1125_v5, %v1124_v16  ;;  %v552_v35 = vmul.f32 %v3593_v15, %v3593_v15  ;;  %vm823_vm14 = vweird.f32 %v3597_v39 }
 0x1a1   : > { %3063 = vrsqrt.f32 %v3599_v17  ;;  %v550_v46 = vmul.f32 %v3602_v25, %v3602_v25  ;;  %v838_v19 = vmul.f32 %v3590_v9, %v837_v18  ;;  %v815_v55 = vsel %vm3629_vm13, %v3559_v21, %v811_v24  ;;  %vm824_vm1 = vmor %vm822_vm15, %vm823_vm14 }
 0x1a2   : > { %v818_v23 = vmul.f32 %v3597_v39, %v817_v34  ;;  %2955 = vmatmul.msk.bf16.gmra.mxu0 %vm366_vm0, %v1153_v4  ;;  %v620_v41 = vsel %vm366_vm0, %v552_v35, 0.0  ;;  %v1054_v22 = vmul.f32 %v815_v55, %v3348_v40  ;;  %v442_v52 = vsel %vm366_vm0, %v3651_v59, 0.0  ;;  %v3697_v35 = vld [vmem:[%s3224_s14 + $0xd0] sm:$0xff] }
 0x1a3   : > { %v614_v29 = vsel %vm366_vm0, %v550_v46, 0.0  ;;  %v607_v36 = vpop.xlane.xlu0 %606  ;;  %621 = vadd.xlane.f32.xlu0 %v620_v41  ;;  %v839_v1 = vmul.f32 0.5, %v838_v19  ;;  %vm843_vm3 = vweird.f32 %v3590_v9  ;;  %vm832_vm6 = vweird.f32 %v3599_v17 }
 0x1a4   : > { %v819_v32 = vmul.f32 0.5, %v818_v23  ;;  %v420_v8 = vpop.xlane.xlu2 %419  ;;  %v426_v6 = vpop.xlane.xlu1 %425  ;;  %v675_v43 = vmul.f32 %v607_v36, %v3240_v20  ;;  %615 = vadd.xlane.f32.xlu1 %v614_v29  ;;  %v3694_v23 = vld [vmem:[%s3224_s14 + $0xc0] sm:$0xff]  ;;  %vm3740_vm5 = vmor %vm842_vm2, %vm843_vm3 }
 0x1a5   : > { %v487_v47 = vmul.f32 %v3240_v20, %v420_v8  ;;  %v489_v48 = vmul.f32 %v3240_v20, %v426_v6  ;;  %v1243_v50 = vpop.f32.mrf.mxu0  ;;  %v840_v29 = vsub.f32 1.5, %v839_v1 }
 0x1a6   : > { %v820_v58 = vsub.f32 1.5, %v819_v32  ;;  %v3646_v37 = vadd.f32 1e-05, %v675_v43  ;;  %v1244_v11 = vadd.f32 %v3624_v27, %v1243_v50  ;;  %v1090_v32 = vmul.f32 %v3392_v56, %v1054_v22 }
 0x1a7   : > { %v3653_v31 = vpop.eup %3063  ;;  %v3656_v49 = vsub.f32 %v3464_v14, %v487_v47  ;;  %v3659_v61 = vsub.f32 %v3467_v57, %v489_v48  ;;  %v439_v48 = vsel %vm366_vm0, %v3694_v23, 0.0  ;;  %v445_v50 = vsel %vm366_vm0, %v3697_v35, 0.0 }
 0x1a8   : > { %v821_v21 = vmul.f32 %v3597_v39, %v820_v58  ;;  %v827_v62 = vmul.f32 %v3653_v31, %v3599_v17  ;;  %3065 = vrsqrt.f32 %v3646_v37  ;;  %v1323_v14 = vadd.f32 3.0, %v1244_v11 }
 0x1a9   : > { %v551_v57 = vmul.f32 %v3656_v49, %v3656_v49  ;;  %v553_v40 = vmul.f32 %v3659_v61, %v3659_v61  ;;  %vm833_vm4 = vweird.f32 %v3653_v31  ;;  %vm862_vm8 = vweird.f32 %v3646_v37 }
 0x1aa   : > { %v825_v38 = vsel %vm824_vm1, %v3597_v39, %v821_v21  ;;  %v828_v2 = vmul.f32 %v3653_v31, %v827_v62  ;;  %v1355_v3 = vmax.f32 %v1323_v14, 0.0  ;;  %v841_v21 = vmul.f32 %v3590_v9, %v840_v29  ;;  %v3013_v14 = vld [vmem:[%s5278_s7 + $0x38] sm:$0xff]  ;;  %vm3749_vm7 = vmor %vm832_vm6, %vm833_vm4 }
 0x1ab   : > { %v1055_v44 = vmul.f32 %v825_v38, %v3380_v10  ;;  %v617_v5 = vsel %vm366_vm0, %v551_v57, 0.0  ;;  %v3684_v13 = vpop.xlane.xlu0 %609  ;;  %v623_v34 = vsel %vm366_vm0, %v553_v40, 0.0  ;;  %443 = vadd.xlane.f32.xlu0 %v442_v52  ;;  %2727 = vmatpush.bf16.msra.mxu1 %v3013_v14 }
 0x1ac   : > { %v829_v16 = vmul.f32 0.5, %v828_v2  ;;  %618 = vadd.xlane.f32.xlu2 %v617_v5  ;;  %v604_v39 = vpop.xlane.xlu2 %603  ;;  %v429_v4 = vpop.xlane.xlu1 %428  ;;  %v1387_v10 = vmin.f32 %v1355_v3, 6.0  ;;  %624 = vadd.xlane.f32.xlu1 %v623_v34  ;;  %v1570_v3 = vld [vmem:[%s5276_s5] sm:$0x7]  ;;  %v845_v34 = vsel %vm3740_vm5, %v3590_v9, %v841_v21 }
 0x1ad   : > { %v674_v18 = vmul.f32 %v604_v39, %v3240_v20  ;;  %v490_v46 = vmul.f32 %v3240_v20, %v429_v4  ;;  %v1245_v24 = vpop.f32.mrf.mxu0  ;;  %v1091_v8 = vmul.f32 %v3392_v56, %v1055_v44  ;;  %v3784_v9 = vperm.slane %v1570_v3, 0  ;;  %3016 = vmatpush.bf16.msra.mxu2 %v3013_v14 }
 0x1ae   : > { %v3699_v28 = vpop.eup %3065  ;;  %v830_v36 = vsub.f32 1.5, %v829_v16  ;;  %v1419_v41 = vmul.f32 %v1387_v10, %v1244_v11  ;;  %v3710_v19 = vadd.f32 %v3624_v27, %v1245_v24  ;;  %v3782_v24 = vld [vmem:[%s3224_s14 + $0xd8] sm:$0xff]  ;;  %v3786_v29 = vperm.slane %v1570_v3, 1 }
 0x1af   : > { %v857_v6 = vmul.f32 %v3699_v28, %v3646_v37  ;;  %v3707_v43 = vadd.f32 1e-05, %v674_v18  ;;  %v3715_v47 = vsub.f32 %v3495_v33, %v490_v46  ;;  %v1126_v33 = vadd.f32 %v3410_v30, %v1090_v32 }
 0x1b0   : > { %v831_v55 = vmul.f32 %v3653_v31, %v830_v36  ;;  %v3723_v11 = vmul.f32 0.16666667, %v1419_v41  ;;  %v1127_v62 = vadd.f32 %v3410_v30, %v1091_v8  ;;  %v1324_v52 = vadd.f32 3.0, %v3710_v19  ;;  %v3012_v41 = vld [vmem:[%s5278_s7 + $0x30] sm:$0xff] }
 0x1b1   : > { %v858_v58 = vmul.f32 %v3699_v28, %v857_v6  ;;  %3067 = vrsqrt.f32 %v3707_v43  ;;  %v554_v22 = vmul.f32 %v3715_v47, %v3715_v47  ;;  %vm863_vm9 = vweird.f32 %v3699_v28  ;;  %2728 = vmatpush.bf16.msra.mxu1 %v3012_v41  ;;  %3017 = vmatpush.bf16.msra.mxu2 %v3012_v41 }
 0x1b2   : > { %1538 = vst [vmem:[#allocation2 + $0x19] sm:$0xff] %v3723_v11  ;;  %v1154_v51 = vpack.c.bf16 %v1127_v62, %v1126_v33  ;;  %v835_v5 = vsel %vm3749_vm7, %v3653_v31, %v831_v55  ;;  %v1356_v18 = vmax.f32 %v1324_v52, 0.0  ;;  %vm852_vm10 = vweird.f32 %v3707_v43  ;;  %v3011_v33 = vld [vmem:[%s5278_s7 + $0x28] sm:$0xff]  ;;  %v3820_v52 = vld [vmem:[%s3224_s14 + $0xe0] sm:$0xff]  ;;  %vm3826_vm12 = vmor %vm862_vm8, %vm863_vm9 }
 0x1b3   : > { %v438_v38 = vpop.xlane.xlu0 %437  ;;  %v859_v2 = vmul.f32 0.5, %v858_v58  ;;  %v626_v44 = vsel %vm366_vm0, %v554_v22, 0.0  ;;  %446 = vadd.xlane.f32.xlu0 %v445_v50  ;;  %v448_v50 = vsel %vm366_vm0, %v3782_v24, 0.0 }
 0x1b4   : > { %440 = vadd.xlane.f32.xlu2 %v439_v48  ;;  %v432_v40 = vpop.xlane.xlu2 %431  ;;  %v493_v17 = vmul.f32 %v3240_v20, %v438_v38  ;;  %627 = vadd.xlane.f32.xlu1 %v626_v44  ;;  %v1388_v55 = vmin.f32 %v1356_v18, 6.0  ;;  %v1670_v38 = vld [vmem:[#allocation2 + $0x1] sm:$0xff]  ;;  %v3833_v44 = vmul.f32 0.0, %v3784_v9 }
 0x1b5   : > { %v491_v16 = vmul.f32 %v3240_v20, %v432_v40  ;;  %v1248_v39 = vpop.f32.mrf.mxu0  ;;  %2956 = vmatmul.msk.bf16.gmra.mxu0 %vm366_vm0, %v1154_v51  ;;  %v860_v36 = vsub.f32 1.5, %v859_v2  ;;  %2729 = vmatpush.bf16.msra.mxu1 %v3011_v33 }
 0x1b6   : > { %v3770_v4 = vsub.f32 %v3510_v53, %v493_v17  ;;  %v3773_v31 = vadd.f32 %v3624_v27, %v1248_v39  ;;  %v1056_v53 = vmul.f32 %v835_v5, %v3427_v45  ;;  %v3835_v17 = vperm.slane %v1570_v3, 2  ;;  %v1767_v39 = vld [vmem:[#allocation2 + $0x2] sm:$0xff]  ;;  %3018 = vmatpush.bf16.msra.mxu2 %v3011_v33  ;;  %v3009_v33 = vld [vmem:[%s5278_s7 + $0x18] sm:$0xff] }
 0x1b7   : > { %v3775_v10 = vpop.eup %3067  ;;  %v3779_v46 = vsub.f32 %v3513_v0, %v491_v16  ;;  %v1057_v0 = vmul.f32 %v845_v34, %v3372_v7  ;;  %v861_v62 = vmul.f32 %v3699_v28, %v860_v36  ;;  %v1420_v3 = vmul.f32 %v1388_v55, %v3710_v19  ;;  %v3010_v36 = vld [vmem:[%s5278_s7 + $0x20] sm:$0xff] }
 0x1b8   : > { %5299 = vst [vmem:[#allocation3_spill] sm:$0xff] %v3770_v4  ;;  %v847_v32 = vmul.f32 %v3775_v10, %v3707_v43  ;;  %v1325_v8 = vadd.f32 3.0, %v3773_v31  ;;  %v557_v45 = vmul.f32 %v3770_v4, %v3770_v4  ;;  %vm853_vm11 = vweird.f32 %v3775_v10 }
 0x1b9   : > { %5300 = vst [vmem:[#allocation4_spill] sm:$0xff] %v3779_v46  ;;  %v555_v6 = vmul.f32 %v3779_v46, %v3779_v46  ;;  %v1092_v57 = vmul.f32 %v3392_v56, %v1056_v53  ;;  %v1093_v16 = vmul.f32 %v3392_v56, %v1057_v0  ;;  %vm3845_vm13 = vmor %vm852_vm10, %vm853_vm11  ;;  %v451_v53 = vsel %vm366_vm0, %v3820_v52, 0.0  ;;  %2730 = vmatpush.bf16.msra.mxu1 %v3010_v36 }
 0x1ba   : > { %v848_v7 = vmul.f32 %v3775_v10, %v847_v32  ;;  %v1357_v48 = vmax.f32 %v1325_v8, 0.0  ;;  %v635_v21 = vsel %vm366_vm0, %v557_v45, 0.0  ;;  %v1703_v32 = vmul.f32 %v3786_v29, %v1670_v38  ;;  %v1571_v45 = vld [vmem:[%s5276_s5 + $0x4] sm:$0x7]  ;;  %3019 = vmatpush.bf16.msra.mxu2 %v3010_v36 }
 0x1bb   : > { %v629_v58 = vsel %vm366_vm0, %v555_v6, 0.0  ;;  %636 = vadd.xlane.f32.xlu0 %v635_v21  ;;  %v865_v43 = vsel %vm3826_vm12, %v3699_v28, %v861_v62  ;;  %v1128_v8 = vadd.f32 %v3410_v30, %v1092_v57  ;;  %v1800_v41 = vmul.f32 %v3835_v17, %v1767_v39  ;;  %v1864_v62 = vld [vmem:[#allocation2 + $0x18] sm:$0xff] }
 0x1bc   : > { %v849_v22 = vmul.f32 0.5, %v848_v7  ;;  %630 = vadd.xlane.f32.xlu2 %v629_v58  ;;  %v435_v14 = vpop.xlane.xlu2 %434  ;;  %v1389_v2 = vmin.f32 %v1357_v48, 6.0  ;;  %449 = vadd.xlane.f32.xlu1 %v448_v50  ;;  %v1735_v28 = vadd.f32 %v1703_v32, %v3833_v44  ;;  %v1671_v50 = vld [vmem:[#allocation2 + $0x9] sm:$0xff]  ;;  %v3879_v55 = vperm.slane %v1571_v45, 0 }
 0x1bd   : > { %v492_v51 = vmul.f32 %v3240_v20, %v435_v14  ;;  %v1250_v40 = vpop.f32.mrf.mxu0  ;;  %v1704_v1 = vmul.f32 %v3786_v29, %v1671_v50  ;;  %2731 = vmatpush.bf16.msra.mxu1 %v3009_v33  ;;  %v3915_v32 = vld [vmem:[%s3224_s14 + $0xf0] sm:$0xff] }
 0x1be   : > { %v850_v37 = vsub.f32 1.5, %v849_v22  ;;  %v1251_v5 = vadd.f32 %v3624_v27, %v1250_v40  ;;  %v1421_v0 = vmul.f32 %v1389_v2, %v3773_v31  ;;  %v1129_v31 = vadd.f32 %v3410_v30, %v1093_v16  ;;  %v3899_v40 = vld [vmem:[%s3224_s14 + $0xe8] sm:$0xff]  ;;  %5306 = vst [vmem:[#allocation6_spill] sm:$0xff] %v3915_v32  ;;  %3020 = vmatpush.bf16.msra.mxu2 %v3009_v33 }
 0x1bf   : > { %v3851_v18 = vsub.f32 %v3524_v60, %v492_v51  ;;  %v3889_v22 = vmul.f32 0.16666667, %v1420_v3  ;;  %v1832_v2 = vadd.f32 %v1800_v41, %v1735_v28  ;;  %v1768_v16 = vld [vmem:[#allocation2 + $0xa] sm:$0xff]  ;;  %v1897_v39 = vmul.f32 %v3879_v55, %v1864_v62 }
 0x1c0   : > { %v851_v19 = vmul.f32 %v3775_v10, %v850_v37  ;;  %v1326_v60 = vadd.f32 3.0, %v1251_v5  ;;  %v1155_v57 = vpack.c.bf16 %v1129_v31, %v1128_v8  ;;  %v1572_v37 = vld [vmem:[%s5276_s5 + $0x8] sm:$0x7]  ;;  %v454_v26 = vsel %vm366_vm0, %v3899_v40, 0.0 }
 0x1c1   : > { %5305 = vst [vmem:[#allocation5_spill] sm:$0xff] %v3851_v18  ;;  %v556_v6 = vmul.f32 %v3851_v18, %v3851_v18  ;;  %v3924_v8 = vperm.slane %v1572_v37, 1  ;;  %v457_v28 = vsel %vm366_vm0, %v3915_v32, 0.0  ;;  %v3007_v41 = vld [vmem:[%s5278_s7 + $0x8] sm:$0xff]  ;;  %v3938_v50 = vperm.slane %v1572_v37, 0 }
 0x1c2   : > { %v855_v7 = vsel %vm3845_vm13, %v3775_v10, %v851_v19  ;;  %v1358_v48 = vmax.f32 %v1326_v60, 0.0  ;;  %v1059_v10 = vmul.f32 %v865_v43, %v3460_v12  ;;  %1539 = vst [vmem:[#allocation2 + $0x21] sm:$0xff] %v3889_v22  ;;  %v3917_v43 = vperm.slane %v1571_v45, 1 }
 0x1c3   : > { %v1058_v58 = vmul.f32 %v855_v7, %v3475_v42  ;;  %v632_v21 = vsel %vm366_vm0, %v556_v6, 0.0  ;;  %v3892_v42 = vmul.f32 0.16666667, %v1421_v0  ;;  %v1736_v19 = vadd.f32 %v1704_v1, %v3833_v44 }
 0x1c4   : > { %v1390_v14 = vmin.f32 %v1358_v48, 6.0  ;;  %633 = vadd.xlane.f32.xlu2 %v632_v21  ;;  %452 = vadd.xlane.f32.xlu1 %v451_v53  ;;  %v1095_v36 = vmul.f32 %v3392_v56, %v1059_v10  ;;  %v1801_v60 = vmul.f32 %v3835_v17, %v1768_v16  ;;  %v1929_v6 = vadd.f32 %v1897_v39, %v1832_v2  ;;  %v3006_v2 = vld [vmem:[%s5278_s7] sm:$0xff] }
 0x1c5   : > { %v1253_v38 = vpop.f32.mrf.mxu0  ;;  %2957 = vmatmul.msk.bf16.gmra.mxu0 %vm366_vm0, %v1155_v57  ;;  %v1094_v34 = vmul.f32 %v3392_v56, %v1058_v58  ;;  %1540 = vst [vmem:[#allocation2 + $0x31] sm:$0xff] %v3892_v42  ;;  %v3933_v44 = vperm.slane %v1571_v45, 2  ;;  %v1994_v31 = vmul.f32 %v3917_v43, %v3723_v11  ;;  %v1995_v33 = vmul.f32 %v3917_v43, %v3889_v22 }
 0x1c6   : > { %v1422_v12 = vmul.f32 %v1390_v14, %v1251_v5  ;;  %v1254_v51 = vadd.f32 %v3624_v27, %v1253_v38  ;;  %v3008_v5 = vld [vmem:[%s5278_s7 + $0x10] sm:$0xff]  ;;  %v1131_v48 = vadd.f32 %v3410_v30, %v1095_v36  ;;  %v1833_v21 = vadd.f32 %v1801_v60, %v1736_v19 }
 0x1c7   : > { %v1130_v56 = vadd.f32 %v3410_v30, %v1094_v34  ;;  %2732 = vmatpush.bf16.msra.mxu1 %v3008_v5  ;;  %v2286_v10 = vmul.f32 %v3924_v8, %v3892_v42  ;;  %v3944_v14 = vperm.slane %v1572_v37, 2  ;;  %v2026_v38 = vadd.f32 %v1994_v31, %v1929_v6  ;;  %3021 = vmatpush.bf16.msra.mxu2 %v3008_v5 }
 0x1c8   : > { %v3911_v3 = vmul.f32 0.16666667, %v1422_v12  ;;  %v1327_v53 = vadd.f32 3.0, %v1254_v51  ;;  %v1608_v30 = vmul.f32 %v1864_v62, %v3784_v9  ;;  %v1705_v39 = vmul.f32 %v3786_v29, %v3723_v11 }
 0x1c9   : > { %v1156_v1 = vpack.c.bf16 %v1131_v48, %v1130_v56  ;;  %v1865_v12 = vld [vmem:[#allocation2 + $0x20] sm:$0xff]  ;;  %v1996_v37 = vmul.f32 %v3917_v43, %v3892_v42  ;;  %v1707_v4 = vmul.f32 %v3786_v29, %v3892_v42 }
 0x1ca   : > { %1541 = vst [vmem:[#allocation2 + $0x39] sm:$0xff] %v3911_v3  ;;  %v1359_v0 = vmax.f32 %v1327_v53, 0.0  ;;  %v2058_v16 = vld [vmem:[#allocation2 + $0x1a] sm:$0xff]  ;;  %v1898_v5 = vmul.f32 %v3879_v55, %v1865_v12  ;;  %v2059_v53 = vld [vmem:[#allocation2 + $0x22] sm:$0xff]  ;;  %v2287_v11 = vmul.f32 %v3924_v8, %v3911_v3  ;;  %v1737_v31 = vadd.f32 %v1705_v39, %v1608_v30 }
 0x1cb   : > { %2733 = vmatpush.bf16.msra.mxu1 %v3007_v41  ;;  %v2091_v36 = vmul.f32 %v3933_v44, %v2058_v16  ;;  %v1802_v6 = vmul.f32 %v2058_v16, %v3835_v17  ;;  %3022 = vmatpush.bf16.msra.mxu2 %v3007_v41  ;;  %v3979_v42 = vld [vmem:[%s5277_s6] ss:$0 sm:$0xff] }
 0x1cc   : > { %v1391_v7 = vmin.f32 %v1359_v0, 6.0  ;;  %455 = vadd.xlane.f32.xlu2 %v454_v26  ;;  %v2156_v26 = vld [vmem:[#allocation2 + $0x30] sm:$0xff] }
 0x1cd   : > { %v1255_v58 = vpop.f32.mrf.mxu0  ;;  %v2189_v60 = vmul.f32 %v3938_v50, %v2156_v26  ;;  %v2123_v48 = vadd.f32 %v2091_v36, %v2026_v38  ;;  %v1834_v38 = vadd.f32 %v1802_v6, %v1737_v31  ;;  %v1899_v41 = vmul.f32 %v2156_v26, %v3879_v55 }
 0x1ce   : > { %v1423_v45 = vmul.f32 %v1391_v7, %v1254_v51  ;;  %v1256_v57 = vadd.f32 %v3624_v27, %v1255_v58  ;;  %v1706_v51 = vmul.f32 %v3786_v29, %v3889_v22  ;;  %v1609_v22 = vmul.f32 %v1865_v12, %v3784_v9 }
 0x1cf   : > { %v1930_v7 = vadd.f32 %v1898_v5, %v1833_v21  ;;  %2734 = vmatpush.bf16.msra.mxu1 %v3006_v2  ;;  %v2092_v58 = vmul.f32 %v3933_v44, %v2059_v53  ;;  %v2221_v16 = vadd.f32 %v2189_v60, %v2123_v48  ;;  %v1803_v21 = vmul.f32 %v2059_v53, %v3835_v17 }
 0x1d0   : > { %v3957_v34 = vmul.f32 0.16666667, %v1423_v45  ;;  %v1328_v62 = vadd.f32 3.0, %v1256_v57  ;;  %v1738_v18 = vadd.f32 %v1706_v51, %v1609_v22  ;;  %v1931_v53 = vadd.f32 %v1899_v41, %v1834_v38  ;;  %3023 = vmatpush.bf16.msra.mxu2 %v3006_v2 }
 0x1d1   : > { %v2157_v19 = vld [vmem:[#allocation2 + $0x38] sm:$0xff]  ;;  %v2027_v12 = vadd.f32 %v1995_v33, %v1930_v7  ;;  %v1610_v60 = vmul.f32 %v2156_v26, %v3784_v9  ;;  %v1997_v2 = vmul.f32 %v3917_v43, %v3911_v3 }
 0x1d2   : > { %v2350_v0 = vld [vmem:[#allocation2 + $0x32] sm:$0xff]  ;;  %1542 = vst [vmem:[#allocation2 + $0x49] sm:$0xff] %v3957_v34  ;;  %v1360_v56 = vmax.f32 %v1328_v62, 0.0  ;;  %v2190_v45 = vmul.f32 %v3938_v50, %v2157_v19  ;;  %v1900_v30 = vmul.f32 %v2157_v19, %v3879_v55  ;;  %v2318_v62 = vadd.f32 %v2286_v10, %v2221_v16  ;;  %v2351_v33 = vld [vmem:[#allocation2 + $0x3a] sm:$0xff] }
 0x1d3   : > { %v2383_v46 = vmul.f32 %v3944_v14, %v2350_v0  ;;  %v2124_v51 = vadd.f32 %v2092_v58, %v2027_v12  ;;  %v1835_v5 = vadd.f32 %v1803_v21, %v1738_v18  ;;  %v2093_v36 = vmul.f32 %v2350_v0, %v3933_v44 }
 0x1d4   : > { %v1392_v32 = vmin.f32 %v1360_v56, 6.0  ;;  %458 = vadd.xlane.f32.xlu2 %v457_v28  ;;  %v1708_v28 = vmul.f32 %v3786_v29, %v3911_v3  ;;  %v1611_v10 = vmul.f32 %v2157_v19, %v3784_v9  ;;  %v2028_v6 = vadd.f32 %v1996_v37, %v1931_v53 }
 0x1d5   : > { %2958 = vmatmul.msk.bf16.gmra.mxu0 %vm366_vm0, %v1156_v1  ;;  %v2415_v1 = vadd.f32 %v2383_v46, %v2318_v62  ;;  %v1932_v22 = vadd.f32 %v1900_v30, %v1835_v5  ;;  %v1739_v7 = vadd.f32 %v1707_v4, %v1610_v60  ;;  %v1804_v48 = vmul.f32 %v2350_v0, %v3835_v17 }
 0x1d6   : > { %v1424_v39 = vmul.f32 %v1392_v32, %v1256_v57  ;;  %v2222_v57 = vadd.f32 %v2190_v45, %v2124_v51  ;;  %v2384_v18 = vmul.f32 %v3944_v14, %v2351_v33  ;;  %v2125_v46 = vadd.f32 %v2093_v36, %v2028_v6 }
 0x1d7   : > { %v2451_v58 = vadd.f32 %v3979_v42, %v2415_v1  ;;  %v1740_v45 = vadd.f32 %v1708_v28, %v1611_v10  ;;  %v1805_v19 = vmul.f32 %v2351_v33, %v3835_v17  ;;  %v1836_v4 = vadd.f32 %v1804_v48, %v1739_v7 }
 0x1d8   : > { %v1456_v32 = vmul.f32 0.16666667, %v1424_v39  ;;  %v2319_v31 = vadd.f32 %v2287_v11, %v2222_v57  ;;  %v2029_v11 = vadd.f32 %v1997_v2, %v1932_v22  ;;  %v1998_v41 = vmul.f32 %v3917_v43, %v3957_v34 }
 0x1d9   : > { %v2158_v56 = vld [vmem:[#allocation2 + $0x48] sm:$0xff]  ;;  %v2483_v12 = vadd.f32 3.0, %v2451_v58  ;;  %v1837_v38 = vadd.f32 %v1805_v19, %v1740_v45  ;;  %v2094_v62 = vmul.f32 %v2351_v33, %v3933_v44  ;;  %v2288_v28 = vmul.f32 %v3924_v8, %v3957_v34 }
 0x1da   : > { %1543 = vst [vmem:[#allocation2 + $0x51] sm:$0xff] %v1456_v32  ;;  %v2191_v26 = vmul.f32 %v3938_v50, %v2158_v56  ;;  %v2416_v37 = vadd.f32 %v2384_v18, %v2319_v31  ;;  %v1901_v0 = vmul.f32 %v2158_v56, %v3879_v55  ;;  %v1676_v16 = vld [vmem:[#allocation2 + $0x49] sm:$0xff]  ;;  %v1612_v51 = vmul.f32 %v2158_v56, %v3784_v9 }
 0x1db   : > { %v2515_v39 = vmax.f32 %v2483_v12, 0.0  ;;  %v1709_v5 = vmul.f32 %v3786_v29, %v1676_v16  ;;  %v2126_v57 = vadd.f32 %v2094_v62, %v2029_v11  ;;  %v2289_v10 = vmul.f32 %v3924_v8, %v1456_v32 }
 0x1dc   : > { %v2223_v21 = vadd.f32 %v2191_v26, %v2125_v46  ;;  %v2452_v30 = vadd.f32 %v3979_v42, %v2416_v37  ;;  %v1933_v3 = vadd.f32 %v1901_v0, %v1836_v4  ;;  %v1999_v48 = vmul.f32 %v3917_v43, %v1456_v32 }
 0x1dd   : > { %v2547_v36 = vmin.f32 %v2515_v39, 6.0  ;;  %v1741_v18 = vadd.f32 %v1709_v5, %v1612_v51 }
 0x1de   : > { %v2484_v53 = vadd.f32 3.0, %v2452_v30  ;;  %v2030_v60 = vadd.f32 %v1998_v41, %v1933_v3  ;;  %v2320_v22 = vadd.f32 %v2288_v28, %v2223_v21 }
 0x1df   : > { %v2579_v26 = vmul.f32 %v2547_v36, %v2451_v58 }
 0x1e0   : > { %v2516_v56 = vmax.f32 %v2484_v53, 0.0 }
 0x1e1   : > { %v2159_v1 = vld [vmem:[#allocation2 + $0x50] sm:$0xff]  ;;  %v2611_v3 = vmul.f32 0.16666667, %v2579_v26 }
 0x1e2   : > { %v2352_v6 = vld [vmem:[#allocation2 + $0x4a] sm:$0xff]  ;;  %v2353_v7 = vld [vmem:[#allocation2 + $0x52] sm:$0xff]  ;;  %v2192_v33 = vmul.f32 %v3938_v50, %v2159_v1  ;;  %v1902_v46 = vmul.f32 %v2159_v1, %v3879_v55  ;;  %v2548_v19 = vmin.f32 %v2516_v56, 6.0  ;;  %v1613_v16 = vmul.f32 %v2159_v1, %v3784_v9 }
 0x1e3   : > { %v2385_v31 = vmul.f32 %v3944_v14, %v2352_v6  ;;  %v1677_v34 = vld [vmem:[#allocation2 + $0x51] sm:$0xff]  ;;  %v2386_v2 = vmul.f32 %v3944_v14, %v2353_v7  ;;  %v2095_v45 = vmul.f32 %v2352_v6, %v3933_v44  ;;  %v2096_v4 = vmul.f32 %v2353_v7, %v3933_v44 }
 0x1e4   : > { %v2224_v37 = vadd.f32 %v2192_v33, %v2126_v57  ;;  %v1934_v32 = vadd.f32 %v1902_v46, %v1837_v38  ;;  %v1710_v11 = vmul.f32 %v3786_v29, %v1677_v34  ;;  %v2580_v21 = vmul.f32 %v2548_v19, %v2452_v30 }
 0x1e5   : > { %v2417_v12 = vadd.f32 %v2385_v31, %v2320_v22  ;;  %v4010_v0 = vadd.f32 %v2095_v45, %v2030_v60  ;;  %v1806_v39 = vmul.f32 %v2352_v6, %v3835_v17  ;;  %v1807_v28 = vmul.f32 %v2353_v7, %v3835_v17 }
 0x1e6   : > { %v2321_v58 = vadd.f32 %v2289_v10, %v2224_v37  ;;  %v2031_v51 = vadd.f32 %v1999_v48, %v1934_v32  ;;  %v1742_v62 = vadd.f32 %v1710_v11, %v1613_v16  ;;  %v2612_v5 = vmul.f32 0.16666667, %v2580_v21 }
 0x1e7   : > { %v2453_v41 = vadd.f32 %v3979_v42, %v2417_v12  ;;  %v4017_v36 = vadd.f32 %v1806_v39, %v1741_v18  ;;  %v676_v34 = vmul.f32 %v3684_v13, %v3240_v20 }
 0x1e8   : > { %v2418_v53 = vadd.f32 %v2386_v2, %v2321_v58  ;;  %v4019_v60 = vadd.f32 %v2096_v4, %v2031_v51  ;;  %v4021_v57 = vadd.f32 %v1807_v28, %v1742_v62  ;;  %v2643_v30 = vpack.c.bf16 %v2612_v5, %v2611_v3 }
 0x1e9   : > { %v2485_v38 = vadd.f32 3.0, %v2453_v41  ;;  %v708_v2 = vadd.f32 1e-05, %v676_v34 }
 0x1ea   : > { %v2454_v1 = vadd.f32 %v3979_v42, %v2418_v53  ;;  %2735 = vmatmul.bf16.vlgmr.msra.gmra.mxu1 %v2643_v30 }
 0x1eb   : > { %v2517_v10 = vmax.f32 %v2485_v38, 0.0  ;;  %3069 = vrsqrt.f32 %v708_v2  ;;  %vm872_vm14 = vweird.f32 %v708_v2 }
 0x1ec   : > { %v2486_v22 = vadd.f32 3.0, %v2454_v1 }
 0x1ed   : > { %v2549_v48 = vmin.f32 %v2517_v10, 6.0 }
 0x1ee   : > { %v2518_v6 = vmax.f32 %v2486_v22, 0.0 }
 0x1ef   : > { %v2581_v33 = vmul.f32 %v2549_v48, %v2453_v41 }
 0x1f0   : > { %v2550_v56 = vmin.f32 %v2518_v6, 6.0 }
 0x1f1   : > { %v2613_v18 = vmul.f32 0.16666667, %v2581_v33  ;;  %v3070_v46 = vpop.eup %3069  ;;  %v4047_v33 = vld [vmem:[%s5272_s1] ss:$0 sm:$0xff] }
 0x1f2   : > { %v2582_v7 = vmul.f32 %v2550_v56, %v2454_v1  ;;  %v867_v45 = vmul.f32 %v3070_v46, %v708_v2  ;;  %vm873_vm15 = vweird.f32 %v3070_v46 }
 0x1f3   : > { %vm874_vm1 = vmor %vm872_vm14, %vm873_vm15 }
 0x1f4   : > { %v2614_v31 = vmul.f32 0.16666667, %v2582_v7  ;;  %v868_v19 = vmul.f32 %v3070_v46, %v867_v45 }
 0x1f6   : > { %v2644_v26 = vpack.c.bf16 %v2614_v31, %v2613_v18  ;;  %v869_v37 = vmul.f32 0.5, %v868_v19 }
 0x1f8   : > { %v870_v32 = vsub.f32 1.5, %v869_v37 }
 0x1fa   : > { %2740 = vmatmul.bf16.gmra.mxu1 %v2644_v26  ;;  %v871_v11 = vmul.f32 %v3070_v46, %v870_v32 }
 0x1fc   : > { %v875_v39 = vsel %vm874_vm1, %v3070_v46, %v871_v11 }
 0x1fd   : > { %v1060_v5 = vmul.f32 %v875_v39, %v3486_v63 }
 0x1ff   : > { %v1096_v7 = vmul.f32 %v4047_v33, %v1060_v5 }
 0x20e   : > { %v613_v12 = vpop.xlane.xlu1 %612 }
 0x20f   : > { %v677_v4 = vmul.f32 %v613_v12, %v3240_v20 }
 0x211   : > { %v709_v16 = vadd.f32 1e-05, %v677_v4 }
 0x213   : > { %3071 = vrsqrt.f32 %v709_v16  ;;  %vm882_vm2 = vweird.f32 %v709_v16 }
 0x216   : > { %v622_v21 = vpop.xlane.xlu0 %621 }
 0x217   : > { %v616_v13 = vpop.xlane.xlu1 %615  ;;  %v680_v41 = vmul.f32 %v622_v21, %v3240_v20 }
 0x218   : > { %v678_v58 = vmul.f32 %v616_v13, %v3240_v20 }
 0x219   : > { %v4029_v3 = vpop.eup %3071  ;;  %v4033_v62 = vadd.f32 1e-05, %v680_v41 }
 0x21a   : > { %v4031_v51 = vadd.f32 1e-05, %v678_v58  ;;  %v877_v28 = vmul.f32 %v4029_v3, %v709_v16  ;;  %vm883_vm3 = vweird.f32 %v4029_v3 }
 0x21b   : > { %vm4067_vm4 = vmor %vm882_vm2, %vm883_vm3  ;;  %vm912_vm6 = vweird.f32 %v4033_v62 }
 0x21c   : > { %3073 = vrsqrt.f32 %v4031_v51  ;;  %v878_v53 = vmul.f32 %v4029_v3, %v877_v28  ;;  %vm892_vm5 = vweird.f32 %v4031_v51 }
 0x21d   : > { %3075 = vrsqrt.f32 %v4033_v62 }
 0x21e   : > { %v879_v1 = vmul.f32 0.5, %v878_v53  ;;  %v444_v6 = vpop.xlane.xlu0 %443 }
 0x21f   : > { %v619_v38 = vpop.xlane.xlu2 %618  ;;  %v1258_v30 = vpop.f32.mrf.mxu0  ;;  %v495_v63 = vmul.f32 %v3240_v20, %v444_v6 }
 0x220   : > { %v679_v10 = vmul.f32 %v619_v38, %v3240_v20  ;;  %v625_v22 = vpop.xlane.xlu1 %624  ;;  %v1259_v48 = vadd.f32 %v3624_v27, %v1258_v30  ;;  %v880_v31 = vsub.f32 1.5, %v879_v1 }
 0x221   : > { %v681_v56 = vmul.f32 %v625_v22, %v3240_v20  ;;  %v4058_v46 = vsub.f32 %v3651_v59, %v495_v63  ;;  %v4077_v59 = vld [vmem:[%s5273_s2] ss:$0 sm:$0xff] }
 0x222   : > { %v4051_v34 = vadd.f32 1e-05, %v679_v10  ;;  %v1329_v18 = vadd.f32 3.0, %v1259_v48  ;;  %v4053_v26 = vpop.eup %3073  ;;  %v881_v19 = vmul.f32 %v4029_v3, %v880_v31  ;;  %v4080_v32 = vadd.f32 %v4077_v59, %v1096_v7 }
 0x223   : > { %v4055_v2 = vadd.f32 1e-05, %v681_v56  ;;  %v4060_v45 = vpop.eup %3075  ;;  %v887_v37 = vmul.f32 %v4053_v26, %v4031_v51  ;;  %vm893_vm7 = vweird.f32 %v4053_v26  ;;  %v559_v58 = vmul.f32 %v4058_v46, %v4058_v46 }
 0x224   : > { %3077 = vrsqrt.f32 %v4051_v34  ;;  %v907_v4 = vmul.f32 %v4060_v45, %v4033_v62  ;;  %v1361_v16 = vmax.f32 %v1329_v18, 0.0  ;;  %vm913_vm8 = vweird.f32 %v4060_v45  ;;  %vm4113_vm10 = vmor %vm892_vm5, %vm893_vm7 }
 0x225   : > { %3079 = vrsqrt.f32 %v4055_v2  ;;  %v888_v11 = vmul.f32 %v4053_v26, %v887_v37  ;;  %v885_v39 = vsel %vm4067_vm4, %v4029_v3, %v881_v19  ;;  %v641_v6 = vsel %vm366_vm0, %v559_v58, 0.0  ;;  %vm4127_vm12 = vmor %vm912_vm6, %vm913_vm8 }
 0x226   : > { %v908_v13 = vmul.f32 %v4060_v45, %v907_v4  ;;  %v1393_v5 = vmin.f32 %v1361_v16, 6.0  ;;  %v447_v38 = vpop.xlane.xlu0 %446  ;;  %642 = vadd.xlane.f32.xlu1 %v641_v6  ;;  %v1061_v19 = vmul.f32 %v885_v39, %v3564_v54  ;;  %vm902_vm9 = vweird.f32 %v4051_v34 }
 0x227   : > { %v441_v21 = vpop.xlane.xlu2 %440  ;;  %v1260_v41 = vpop.f32.mrf.mxu0  ;;  %v889_v28 = vmul.f32 0.5, %v888_v11  ;;  %v496_v3 = vmul.f32 %v3240_v20, %v447_v38  ;;  %vm922_vm11 = vweird.f32 %v4055_v2 }
 0x228   : > { %v628_v53 = vpop.xlane.xlu1 %627  ;;  %v1261_v30 = vadd.f32 %v3624_v27, %v1260_v41  ;;  %v909_v1 = vmul.f32 0.5, %v908_v13  ;;  %v494_v10 = vmul.f32 %v3240_v20, %v441_v21  ;;  %v1425_v7 = vmul.f32 %v1393_v5, %v1259_v48 }
 0x229   : > { %v682_v22 = vmul.f32 %v628_v53, %v3240_v20  ;;  %v890_v63 = vsub.f32 1.5, %v889_v28  ;;  %v4140_v41 = vsub.f32 %v3697_v35, %v496_v3 }
 0x22a   : > { %v4097_v56 = vpop.eup %3077  ;;  %v1330_v31 = vadd.f32 3.0, %v1261_v30  ;;  %v910_v27 = vsub.f32 1.5, %v909_v1  ;;  %v4120_v11 = vmul.f32 0.16666667, %v1425_v7  ;;  %v4133_v21 = vsub.f32 %v3694_v23, %v494_v10 }
 0x22b   : > { %v4100_v18 = vpop.eup %3079  ;;  %v897_v37 = vmul.f32 %v4097_v56, %v4051_v34  ;;  %v4106_v12 = vadd.f32 1e-05, %v682_v22  ;;  %v891_v4 = vmul.f32 %v4053_v26, %v890_v63  ;;  %vm903_vm13 = vweird.f32 %v4097_v56 }
 0x22c   : > { %v917_v54 = vmul.f32 %v4100_v18, %v4055_v2  ;;  %v911_v16 = vmul.f32 %v4060_v45, %v910_v27  ;;  %1544 = vst [vmem:[#allocation2 + $0x61] sm:$0xff] %v4120_v11  ;;  %v1362_v62 = vmax.f32 %v1330_v31, 0.0  ;;  %vm923_vm14 = vweird.f32 %v4100_v18  ;;  %vm904_vm2 = vmor %vm902_vm9, %vm903_vm13 }
 0x22d   : > { %v898_v51 = vmul.f32 %v4097_v56, %v897_v37  ;;  %3081 = vrsqrt.f32 %v4106_v12  ;;  %v895_v39 = vsel %vm4113_vm10, %v4053_v26, %v891_v4  ;;  %v1097_v23 = vmul.f32 %v4047_v33, %v1061_v19  ;;  %vm4167_vm1 = vmor %vm922_vm11, %vm923_vm14 }
 0x22e   : > { %v918_v58 = vmul.f32 %v4100_v18, %v917_v54  ;;  %v915_v53 = vsel %vm4127_vm12, %v4060_v45, %v911_v16  ;;  %vm932_vm15 = vweird.f32 %v4106_v12  ;;  %v1394_v35 = vmin.f32 %v1362_v62, 6.0 }
 0x22f   : > { %v899_v28 = vmul.f32 0.5, %v898_v51  ;;  %v631_v5 = vpop.xlane.xlu2 %630  ;;  %v1133_v26 = vadd.f32 %v4077_v59, %v1097_v23  ;;  %v558_v63 = vmul.f32 %v4133_v21, %v4133_v21  ;;  %v560_v45 = vmul.f32 %v4140_v41, %v4140_v41 }
 0x230   : > { %v919_v38 = vmul.f32 0.5, %v918_v58  ;;  %v683_v1 = vmul.f32 %v631_v5, %v3240_v20  ;;  %v450_v10 = vpop.xlane.xlu1 %449  ;;  %v1426_v3 = vmul.f32 %v1394_v35, %v1261_v30  ;;  %v1062_v16 = vmul.f32 %v895_v39, %v3602_v25 }
 0x231   : > { %v900_v22 = vsub.f32 1.5, %v899_v28  ;;  %v497_v6 = vmul.f32 %v3240_v20, %v450_v10  ;;  %v1157_v30 = vpack.c.bf16 %v1133_v26, %v4080_v32  ;;  %v638_v48 = vsel %vm366_vm0, %v558_v63, 0.0  ;;  %v4187_v32 = vld [vmem:[%s3224_s14 + $0xf8] sm:$0xff] }
 0x232   : > { %v920_v7 = vsub.f32 1.5, %v919_v38  ;;  %v4156_v31 = vadd.f32 1e-05, %v683_v1  ;;  %v1263_v54 = vpop.f32.mrf.mxu0  ;;  %v4184_v51 = vmul.f32 0.16666667, %v1426_v3  ;;  %639 = vadd.xlane.f32.xlu0 %v638_v48  ;;  %v1064_v58 = vmul.f32 %v915_v53, %v3593_v15 }
 0x233   : > { %v4160_v19 = vpop.eup %3081  ;;  %v901_v27 = vmul.f32 %v4097_v56, %v900_v22  ;;  %v4173_v4 = vsub.f32 %v3782_v24, %v497_v6  ;;  %v637_v24 = vpop.xlane.xlu0 %636  ;;  %2959 = vmatmul.msk.bf16.gmra.mxu0 %vm366_vm0, %v1157_v30  ;;  %v644_v34 = vsel %vm366_vm0, %v560_v45, 0.0  ;;  %v460_v5 = vsel %vm366_vm0, %v4187_v32, 0.0 }
 0x234   : > { %v921_v2 = vmul.f32 %v4100_v18, %v920_v7  ;;  %v927_v13 = vmul.f32 %v4160_v19, %v4106_v12  ;;  %3083 = vrsqrt.f32 %v4156_v31  ;;  %vm933_vm3 = vweird.f32 %v4160_v19  ;;  %1545 = vst [vmem:[#allocation2 + $0x69] sm:$0xff] %v4184_v51  ;;  %645 = vadd.xlane.f32.xlu1 %v644_v34 }
 0x235   : > { %v905_v25 = vsel %vm904_vm2, %v4097_v56, %v901_v27  ;;  %v685_v15 = vmul.f32 %v637_v24, %v3240_v20  ;;  %v4205_v56 = vld [vmem:[%s5275_s4] ss:$0 sm:$0xff]  ;;  %v1098_v1 = vmul.f32 %v4047_v33, %v1062_v16  ;;  %vm4229_vm4 = vmor %vm932_vm15, %vm933_vm3  ;;  %vm942_vm5 = vweird.f32 %v4156_v31 }
 0x236   : > { %v1063_v62 = vmul.f32 %v905_v25, %v3656_v49  ;;  %v925_v39 = vsel %vm4167_vm1, %v4100_v18, %v921_v2  ;;  %v928_v28 = vmul.f32 %v4160_v19, %v927_v13  ;;  %v1264_v49 = vadd.f32 %v4205_v56, %v1263_v54 }
 0x237   : > { %v634_v23 = vpop.xlane.xlu2 %633  ;;  %v561_v18 = vmul.f32 %v4173_v4, %v4173_v4  ;;  %v4215_v22 = vadd.f32 1e-05, %v685_v15  ;;  %v1065_v7 = vmul.f32 %v925_v39, %v3659_v61  ;;  %v1134_v16 = vadd.f32 %v4077_v59, %v1098_v1 }
 0x238   : > { %v929_v53 = vmul.f32 0.5, %v928_v28  ;;  %v684_v38 = vmul.f32 %v634_v23, %v3240_v20  ;;  %v453_v35 = vpop.xlane.xlu1 %452  ;;  %v1099_v10 = vmul.f32 %v4047_v33, %v1063_v62  ;;  %v1331_v26 = vadd.f32 3.0, %v1264_v49 }
 0x239   : > { %v647_v6 = vsel %vm366_vm0, %v561_v18, 0.0  ;;  %v498_v63 = vmul.f32 %v3240_v20, %v453_v35  ;;  %3085 = vrsqrt.f32 %v4215_v22  ;;  %vm962_vm7 = vweird.f32 %v4215_v22 }
 0x23a   : > { %v930_v3 = vsub.f32 1.5, %v929_v53  ;;  %v4220_v45 = vadd.f32 1e-05, %v684_v38  ;;  %648 = vadd.xlane.f32.xlu2 %v647_v6  ;;  %v1135_v27 = vadd.f32 %v4077_v59, %v1099_v10  ;;  %v4223_v37 = vpop.eup %3083  ;;  %v1363_v48 = vmax.f32 %v1331_v26, 0.0  ;;  %v1265_v54 = vpop.f32.mrf.mxu0  ;;  %461 = vadd.xlane.f32.xlu0 %v460_v5 }
 0x23b   : > { %v4235_v61 = vsub.f32 %v3820_v52, %v498_v63  ;;  %v937_v13 = vmul.f32 %v4223_v37, %v4156_v31  ;;  %vm943_vm6 = vweird.f32 %v4223_v37  ;;  %v1266_v24 = vadd.f32 %v4205_v56, %v1265_v54 }
 0x23c   : > { %v931_v2 = vmul.f32 %v4160_v19, %v930_v3  ;;  %3087 = vrsqrt.f32 %v4220_v45  ;;  %v1395_v12 = vmin.f32 %v1363_v48, 6.0  ;;  %v1158_v52 = vpack.c.bf16 %v1135_v27, %v1134_v16  ;;  %vm4273_vm9 = vmor %vm942_vm5, %vm943_vm6  ;;  %v4284_v16 = vld [vmem:[#allocation2 + $0x60] sm:$0xff] }
 0x23d   : > { %v938_v34 = vmul.f32 %v4223_v37, %v937_v13  ;;  %v1100_v62 = vmul.f32 %v4047_v33, %v1064_v58  ;;  %v1101_v39 = vmul.f32 %v4047_v33, %v1065_v7  ;;  %v1332_v23 = vadd.f32 3.0, %v1266_v24 }
 0x23e   : > { %v935_v25 = vsel %vm4229_vm4, %v4160_v19, %v931_v2  ;;  %v1427_v15 = vmul.f32 %v1395_v12, %v1264_v49  ;;  %v562_v5 = vmul.f32 %v4235_v61, %v4235_v61  ;;  %vm952_vm8 = vweird.f32 %v4220_v45 }
 0x23f   : > { %v1066_v28 = vmul.f32 %v935_v25, %v3715_v47  ;;  %v456_v18 = vpop.xlane.xlu2 %455  ;;  %v939_v53 = vmul.f32 0.5, %v938_v34  ;;  %v1136_v38 = vadd.f32 %v4077_v59, %v1100_v62  ;;  %v1137_v19 = vadd.f32 %v4077_v59, %v1101_v39  ;;  %v4258_v1 = vpop.eup %3085  ;;  %v4298_v62 = vld [vmem:[#allocation2 + $0x68] sm:$0xff] }
 0x240   : > { %v499_v35 = vmul.f32 %v3240_v20, %v456_v18  ;;  %v4260_v58 = vmul.f32 0.16666667, %v1427_v15  ;;  %v1364_v10 = vmax.f32 %v1332_v23, 0.0  ;;  %v650_v47 = vsel %vm366_vm0, %v562_v5, 0.0 }
 0x241   : > { %v1102_v49 = vmul.f32 %v4047_v33, %v1066_v28  ;;  %v940_v6 = vsub.f32 1.5, %v939_v53  ;;  %v957_v63 = vmul.f32 %v4258_v1, %v4215_v22  ;;  %v1159_v7 = vpack.c.bf16 %v1137_v19, %v1136_v38 }
 0x242   : > { %v4264_v26 = vpop.eup %3087  ;;  %vm963_vm10 = vweird.f32 %v4258_v1  ;;  %1546 = vst [vmem:[#allocation2 + $0x79] sm:$0xff] %v4260_v58  ;;  %v1396_v30 = vmin.f32 %v1364_v10, 6.0  ;;  %v4282_v48 = vsub.f32 %v3899_v40, %v499_v35  ;;  %v1268_v54 = vpop.f32.mrf.mxu0  ;;  %651 = vadd.xlane.f32.xlu0 %v650_v47  ;;  %v2193_v23 = vmul.f32 %v3938_v50, %v4284_v16 }
 0x243   : > { %v947_v27 = vmul.f32 %v4264_v26, %v4220_v45  ;;  %v941_v31 = vmul.f32 %v4223_v37, %v940_v6  ;;  %v958_v2 = vmul.f32 %v4258_v1, %v957_v63  ;;  %vm953_vm11 = vweird.f32 %v4264_v26  ;;  %2961 = vmatmul.msk.bf16.vlgmr.msra.gmra.mxu3 %vm366_vm0, %v1159_v7  ;;  %2960 = vmatmul.msk.bf16.gmra.mxu0 %vm366_vm0, %v1158_v52  ;;  %vm4316_vm12 = vmor %vm962_vm7, %vm963_vm10 }
 0x244   : > { %v1269_v13 = vadd.f32 %v4205_v56, %v1268_v54  ;;  %v1428_v25 = vmul.f32 %v1396_v30, %v1266_v24  ;;  %v563_v40 = vmul.f32 %v4282_v48, %v4282_v48  ;;  %v4296_v34 = vadd.f32 %v4077_v59, %v1102_v49  ;;  %v5319_v24 = vld [vmem:[#allocation4_spill] sm:$0xff]  ;;  %vm4330_vm13 = vmor %vm952_vm8, %vm953_vm11  ;;  %v5324_v30 = vld [vmem:[#allocation6_spill] sm:$0xff] }
 0x245   : > { %v948_v12 = vmul.f32 %v4264_v26, %v947_v27  ;;  %v945_v39 = vsel %vm4273_vm9, %v4223_v37, %v941_v31  ;;  %v959_v28 = vmul.f32 0.5, %v958_v2  ;;  %v2194_v37 = vmul.f32 %v3938_v50, %v4298_v62 }
 0x246   : > { %v1333_v15 = vadd.f32 3.0, %v1269_v13  ;;  %v1067_v18 = vmul.f32 %v945_v39, %v5319_v24  ;;  %v4306_v5 = vmul.f32 0.16666667, %v1428_v25  ;;  %v653_v38 = vsel %vm366_vm0, %v563_v40, 0.0  ;;  %v5325_v24 = vld [vmem:[#allocation3_spill] sm:$0xff] }
 0x247   : > { %v949_v52 = vmul.f32 0.5, %v948_v12  ;;  %v459_v53 = vpop.xlane.xlu2 %458  ;;  %v960_v19 = vsub.f32 1.5, %v959_v28  ;;  %654 = vadd.xlane.f32.xlu1 %v653_v38  ;;  %v2225_v63 = vadd.f32 %v2193_v23, %v4010_v0  ;;  %v2290_v7 = vmul.f32 %v3924_v8, %v4120_v11  ;;  %v4350_v23 = vld [vmem:[#allocation2 + $0x6a] sm:$0xff] }
 0x248   : > { %v1365_v35 = vmax.f32 %v1333_v15, 0.0  ;;  %v500_v10 = vmul.f32 %v3240_v20, %v459_v53  ;;  %1547 = vst [vmem:[#allocation2 + $0x81] sm:$0xff] %v4306_v5  ;;  %v1103_v6 = vmul.f32 %v4047_v33, %v1067_v18  ;;  %v2226_v31 = vadd.f32 %v2194_v37, %v4019_v60  ;;  %v4348_v60 = vld [vmem:[#allocation2 + $0x62] sm:$0xff] }
 0x249   : > { %v950_v49 = vsub.f32 1.5, %v949_v52  ;;  %v961_v3 = vmul.f32 %v4258_v1, %v960_v19  ;;  %v2291_v25 = vmul.f32 %v3924_v8, %v4184_v51  ;;  %v2322_v40 = vadd.f32 %v2290_v7, %v2225_v63 }
 0x24a   : > { %v1397_v27 = vmin.f32 %v1365_v35, 6.0  ;;  %v4335_v54 = vsub.f32 %v5324_v30, %v500_v10  ;;  %v1270_v2 = vpop.f32.mrf.mxu0  ;;  %v1139_v12 = vadd.f32 %v4077_v59, %v1103_v6  ;;  %v2387_v37 = vmul.f32 %v3944_v14, %v4348_v60 }
 0x24b   : > { %v951_v0 = vmul.f32 %v4264_v26, %v950_v49  ;;  %v965_v45 = vsel %vm4316_vm12, %v4258_v1, %v961_v3  ;;  %v1271_v28 = vadd.f32 %v4205_v56, %v1270_v2  ;;  %v2323_v38 = vadd.f32 %v2291_v25, %v2226_v31  ;;  %v5326_v1 = vld [vmem:[#allocation5_spill] sm:$0xff] }
 0x24c   : > { %v1429_v39 = vmul.f32 %v1397_v27, %v1269_v13  ;;  %v564_v15 = vmul.f32 %v4335_v54, %v4335_v54  ;;  %v1069_v18 = vmul.f32 %v965_v45, %v5325_v24  ;;  %v1160_v53 = vpack.c.bf16 %v1139_v12, %v4296_v34 }
 0x24d   : > { %v955_v52 = vsel %vm4330_vm13, %v4264_v26, %v951_v0  ;;  %v1334_v35 = vadd.f32 3.0, %v1271_v28  ;;  %v2388_v47 = vmul.f32 %v3944_v14, %v4350_v23  ;;  %v1903_v26 = vmul.f32 %v4284_v16, %v3879_v55 }
 0x24e   : > { %v1068_v13 = vmul.f32 %v955_v52, %v5326_v1  ;;  %v4358_v19 = vmul.f32 0.16666667, %v1429_v39  ;;  %v656_v10 = vsel %vm366_vm0, %v564_v15, 0.0  ;;  %v1105_v49 = vmul.f32 %v4047_v33, %v1069_v18  ;;  %v4388_v15 = vld [vmem:[#allocation2 + $0x78] sm:$0xff] }
 0x24f   : > { %657 = vadd.xlane.f32.xlu2 %v656_v10  ;;  %v1366_v34 = vmax.f32 %v1334_v35, 0.0  ;;  %v1904_v63 = vmul.f32 %v4298_v62, %v3879_v55  ;;  %v2000_v7 = vmul.f32 %v3917_v43, %v4120_v11  ;;  %v2419_v3 = vadd.f32 %v2387_v37, %v2322_v40  ;;  %v4398_v35 = vld [vmem:[#allocation2 + $0x7a] sm:$0xff] }
 0x250   : > { %1548 = vst [vmem:[#allocation2 + $0x91] sm:$0xff] %v4358_v19  ;;  %v1104_v6 = vmul.f32 %v4047_v33, %v1068_v13  ;;  %v2420_v22 = vadd.f32 %v2388_v47, %v2323_v38  ;;  %v4375_v27 = vadd.f32 %v4077_v59, %v1105_v49  ;;  %v1935_v30 = vadd.f32 %v1903_v26, %v4017_v36  ;;  %v4390_v36 = vld [vmem:[#allocation2 + $0x80] sm:$0xff] }
 0x251   : > { %v1398_v31 = vmin.f32 %v1366_v34, 6.0  ;;  %v1936_v2 = vadd.f32 %v1904_v63, %v4021_v57  ;;  %v2001_v33 = vmul.f32 %v3917_v43, %v4184_v51  ;;  %v2455_v25 = vadd.f32 %v3979_v42, %v2419_v3  ;;  %v4406_v47 = vld [vmem:[#allocation2 + $0x82] sm:$0xff] }
 0x252   : > { %v4379_v0 = vadd.f32 %v4077_v59, %v1104_v6  ;;  %v1273_v12 = vpop.f32.mrf.mxu0  ;;  %v2456_v40 = vadd.f32 %v3979_v42, %v2420_v22  ;;  %v2032_v45 = vadd.f32 %v2000_v7, %v1935_v30  ;;  %v2097_v39 = vmul.f32 %v4348_v60, %v3933_v44 }
 0x253   : > { %v1430_v59 = vmul.f32 %v1398_v31, %v1271_v28  ;;  %2962 = vmatmul.msk.bf16.gmra.mxu3 %vm366_vm0, %v1160_v53  ;;  %v1274_v57 = vadd.f32 %v4205_v56, %v1273_v12  ;;  %v2033_v18 = vadd.f32 %v2001_v33, %v1936_v2  ;;  %v2487_v52 = vadd.f32 3.0, %v2455_v25 }
 0x254   : > { %v1161_v24 = vpack.c.bf16 %v4375_v27, %v4379_v0  ;;  %v2488_v38 = vadd.f32 3.0, %v2456_v40  ;;  %v2098_v1 = vmul.f32 %v4350_v23, %v3933_v44  ;;  %v2129_v13 = vadd.f32 %v2097_v39, %v2032_v45  ;;  %v4470_v0 = vld [vmem:[%s5279_s8] ss:$0 sm:$0xff] }
 0x255   : > { %v4400_v10 = vmul.f32 0.16666667, %v1430_v59  ;;  %v1335_v37 = vadd.f32 3.0, %v1274_v57  ;;  %v2195_v28 = vmul.f32 %v3938_v50, %v4388_v15  ;;  %v2196_v53 = vmul.f32 %v3938_v50, %v4390_v36 }
 0x256   : > { %v2519_v49 = vmax.f32 %v2487_v52, 0.0  ;;  %v2520_v26 = vmax.f32 %v2488_v38, 0.0  ;;  %v2130_v34 = vadd.f32 %v2098_v1, %v2033_v18  ;;  %v2292_v6 = vmul.f32 %v3924_v8, %v4260_v58 }
 0x257   : > { %1549 = vst [vmem:[#allocation2 + $0x99] sm:$0xff] %v4400_v10  ;;  %v1367_v63 = vmax.f32 %v1335_v37, 0.0  ;;  %v2227_v7 = vadd.f32 %v2195_v28, %v2129_v13  ;;  %v2293_v3 = vmul.f32 %v3924_v8, %v4306_v5  ;;  %v2389_v22 = vmul.f32 %v3944_v14, %v4398_v35 }
 0x258   : > { %v2551_v30 = vmin.f32 %v2519_v49, 6.0  ;;  %v2552_v31 = vmin.f32 %v2520_v26, 6.0  ;;  %v2228_v2 = vadd.f32 %v2196_v53, %v2130_v34  ;;  %v2390_v33 = vmul.f32 %v3944_v14, %v4406_v47 }
 0x259   : > { %v1399_v12 = vmin.f32 %v1367_v63, 6.0  ;;  %v2324_v45 = vadd.f32 %v2292_v6, %v2227_v7  ;;  %v1614_v39 = vmul.f32 %v4284_v16, %v3784_v9  ;;  %v1615_v59 = vmul.f32 %v4298_v62, %v3784_v9 }
 0x25a   : > { %v2583_v18 = vmul.f32 %v2551_v30, %v2455_v25  ;;  %v2584_v52 = vmul.f32 %v2552_v31, %v2456_v40  ;;  %v1275_v38 = vpop.f32.mrf.mxu0  ;;  %v2325_v1 = vadd.f32 %v2293_v3, %v2228_v2  ;;  %v1711_v13 = vmul.f32 %v3786_v29, %v4120_v11 }
 0x25b   : > { %v1431_v37 = vmul.f32 %v1399_v12, %v1274_v57  ;;  %v1276_v28 = vadd.f32 %v4205_v56, %v1275_v38  ;;  %v2421_v53 = vadd.f32 %v2389_v22, %v2324_v45  ;;  %v1712_v49 = vmul.f32 %v3786_v29, %v4184_v51  ;;  %v4441_v12 = vld [vmem:[#allocation2 + $0x90] sm:$0xff] }
 0x25c   : > { %v2615_v26 = vmul.f32 0.16666667, %v2583_v18  ;;  %v2616_v34 = vmul.f32 0.16666667, %v2584_v52  ;;  %v2422_v16 = vadd.f32 %v2390_v33, %v2325_v1  ;;  %v1743_v6 = vadd.f32 %v1711_v13, %v1614_v39 }
 0x25d   : > { %v4426_v63 = vmul.f32 0.16666667, %v1431_v37  ;;  %v1336_v62 = vadd.f32 3.0, %v1276_v28  ;;  %v2457_v25 = vadd.f32 %v3979_v42, %v2421_v53  ;;  %v1744_v40 = vadd.f32 %v1712_v49, %v1615_v59 }
 0x25e   : > { %v2645_v7 = vpack.c.bf16 %v2616_v34, %v2615_v26  ;;  %v2458_v11 = vadd.f32 %v3979_v42, %v2422_v16  ;;  %v1808_v57 = vmul.f32 %v4348_v60, %v3835_v17  ;;  %v1809_v3 = vmul.f32 %v4350_v23, %v3835_v17  ;;  %v4443_v23 = vld [vmem:[#allocation2 + $0x98] sm:$0xff] }
 0x25f   : > { %1550 = vst [vmem:[#allocation2 + $0xa9] sm:$0xff] %v4426_v63  ;;  %v1368_v51 = vmax.f32 %v1336_v62, 0.0  ;;  %v2489_v22 = vadd.f32 3.0, %v2457_v25  ;;  %v1905_v30 = vmul.f32 %v4388_v15, %v3879_v55  ;;  %v1906_v31 = vmul.f32 %v4390_v36, %v3879_v55  ;;  %v4451_v37 = vld [vmem:[#allocation2 + $0x92] sm:$0xff]  ;;  %v4461_v16 = vld [vmem:[#allocation2 + $0x9a] sm:$0xff] }
 0x260   : > { %2745 = vmatmul.bf16.gmra.mxu1 %v2645_v7  ;;  %v2490_v2 = vadd.f32 3.0, %v2458_v11  ;;  %v1840_v33 = vadd.f32 %v1808_v57, %v1743_v6  ;;  %v1841_v42 = vadd.f32 %v1809_v3, %v1744_v40  ;;  %v2002_v60 = vmul.f32 %v3917_v43, %v4260_v58 }
 0x261   : > { %v1400_v45 = vmin.f32 %v1368_v51, 6.0  ;;  %v2521_v39 = vmax.f32 %v2489_v22, 0.0  ;;  %v2003_v59 = vmul.f32 %v3917_v43, %v4306_v5  ;;  %v2099_v18 = vmul.f32 %v4398_v35, %v3933_v44 }
 0x262   : > { %v2522_v52 = vmax.f32 %v2490_v2, 0.0  ;;  %v1937_v38 = vadd.f32 %v1905_v30, %v1840_v33  ;;  %v1938_v1 = vadd.f32 %v1906_v31, %v1841_v42  ;;  %v2100_v13 = vmul.f32 %v4406_v47, %v3933_v44 }
 0x263   : > { %v1432_v53 = vmul.f32 %v1400_v45, %v1276_v28  ;;  %2963 = vmatmul.msk.bf16.gmra.mxu3 %vm366_vm0, %v1161_v24  ;;  %v2553_v49 = vmin.f32 %v2521_v39, 6.0  ;;  %v2197_v26 = vmul.f32 %v3938_v50, %v4441_v12  ;;  %v2198_v34 = vmul.f32 %v3938_v50, %v4443_v23 }
 0x264   : > { %v2554_v6 = vmin.f32 %v2522_v52, 6.0  ;;  %v2034_v62 = vadd.f32 %v2002_v60, %v1937_v38  ;;  %v2035_v40 = vadd.f32 %v2003_v59, %v1938_v1  ;;  %v2294_v28 = vmul.f32 %v3924_v8, %v4358_v19  ;;  %v3108_v1 = vld [vmem:[%s3224_s14] sm:$0xff] }
 0x265   : > { %v4465_v7 = vmul.f32 0.16666667, %v1432_v53  ;;  %v2585_v27 = vmul.f32 %v2553_v49, %v2457_v25  ;;  %v2295_v24 = vmul.f32 %v3924_v8, %v4400_v10  ;;  %v2391_v57 = vmul.f32 %v3944_v14, %v4451_v37 }
 0x266   : > { %v2586_v3 = vmul.f32 %v2554_v6, %v2458_v11  ;;  %v2131_v51 = vadd.f32 %v2099_v18, %v2034_v62  ;;  %v2132_v22 = vadd.f32 %v2100_v13, %v2035_v40  ;;  %v2392_v30 = vmul.f32 %v3944_v14, %v4461_v16  ;;  %v4504_v49 = vld [vmem:[#allocation2 + $0xa8] sm:$0xff] }
 0x267   : > { %1551 = vst [vmem:[#allocation2 + $0xb1] sm:$0xff] %v4465_v7  ;;  %v2617_v25 = vmul.f32 0.16666667, %v2585_v27  ;;  %v1616_v31 = vmul.f32 %v4388_v15, %v3784_v9  ;;  %v1617_v2 = vmul.f32 %v4390_v36, %v3784_v9  ;;  %v1713_v33 = vmul.f32 %v3786_v29, %v4260_v58  ;;  %v2736_v42 = vpop.f32.mrf.mxu1 }
 0x268   : > { %v2618_v11 = vmul.f32 0.16666667, %v2586_v3  ;;  %v2229_v60 = vadd.f32 %v2197_v26, %v2131_v51  ;;  %v2230_v45 = vadd.f32 %v2198_v34, %v2132_v22  ;;  %v1714_v39 = vmul.f32 %v3786_v29, %v4306_v5 }
 0x269   : > { %v2737_v59 = vadd.f32 %v4470_v0, %v2736_v42  ;;  %v1745_v18 = vadd.f32 %v1713_v33, %v1616_v31  ;;  %v1810_v15 = vmul.f32 %v4398_v35, %v3835_v17  ;;  %v1811_v36 = vmul.f32 %v4406_v47, %v3835_v17 }
 0x26a   : > { %v2646_v52 = vpack.c.bf16 %v2618_v11, %v2617_v25  ;;  %v2326_v58 = vadd.f32 %v2294_v28, %v2229_v60  ;;  %v2327_v38 = vadd.f32 %v2295_v24, %v2230_v45  ;;  %v1746_v5 = vadd.f32 %v1714_v39, %v1617_v2 }
 0x26b   : > { %v2816_v13 = vadd.f32 %v3108_v1, %v2737_v59  ;;  %v1842_v53 = vadd.f32 %v1810_v15, %v1745_v18  ;;  %v1907_v35 = vmul.f32 %v4441_v12, %v3879_v55  ;;  %v1908_v47 = vmul.f32 %v4443_v23, %v3879_v55  ;;  %v1682_v15 = vld [vmem:[#allocation2 + $0x91] sm:$0xff] }
 0x26c   : > { %v2423_v26 = vadd.f32 %v2391_v57, %v2326_v58  ;;  %v2424_v34 = vadd.f32 %v2392_v30, %v2327_v38  ;;  %v1843_v6 = vadd.f32 %v1811_v36, %v1746_v5  ;;  %v2004_v62 = vmul.f32 %v3917_v43, %v4358_v19  ;;  %v4519_v57 = vld [vmem:[%s5277_s6] ss:$0 sm:$0xff] }
 0x26d   : > { %2848 = vst.msk [vmem:[%s4497_s25] sm:$0xff] %vm366_vm0, %v2816_v13  ;;  %v1939_v40 = vadd.f32 %v1907_v35, %v1842_v53  ;;  %v2005_v28 = vmul.f32 %v3917_v43, %v4400_v10  ;;  %v2101_v27 = vmul.f32 %v4451_v37, %v3933_v44  ;;  %v2102_v24 = vmul.f32 %v4461_v16, %v3933_v44  ;;  %v3110_v35 = vld [vmem:[%s3224_s14 + $0x8] sm:$0xff] }
 0x26e   : > { %v2459_v3 = vadd.f32 %v4519_v57, %v2423_v26  ;;  %v2460_v19 = vadd.f32 %v4519_v57, %v2424_v34  ;;  %v1940_v51 = vadd.f32 %v1908_v47, %v1843_v6  ;;  %v4523_v22 = vld [vmem:[#allocation2 + $0xb0] sm:$0xff]  ;;  %v2199_v30 = vmul.f32 %v3938_v50, %v4504_v49 }
 0x26f   : > { %v4527_v25 = vld [vmem:[#allocation2 + $0xaa] sm:$0xff]  ;;  %v4529_v31 = vld [vmem:[#allocation2 + $0xb2] sm:$0xff]  ;;  %v2036_v2 = vadd.f32 %v2004_v62, %v1939_v40  ;;  %v2200_v33 = vmul.f32 %v3938_v50, %v4523_v22  ;;  %v2296_v11 = vmul.f32 %v3924_v8, %v4426_v63  ;;  %v2297_v42 = vmul.f32 %v3924_v8, %v4465_v7  ;;  %v2738_v60 = vpop.f32.mrf.mxu1 }
 0x270   : > { %2750 = vmatmul.bf16.gmra.mxu1 %v2646_v52  ;;  %v2491_v45 = vadd.f32 3.0, %v2459_v3  ;;  %v2492_v39 = vadd.f32 3.0, %v2460_v19  ;;  %v2037_v59 = vadd.f32 %v2005_v28, %v1940_v51  ;;  %v2393_v18 = vmul.f32 %v3944_v14, %v4527_v25 }
 0x271   : > { %v2739_v36 = vadd.f32 %v4470_v0, %v2738_v60  ;;  %v2133_v58 = vadd.f32 %v2101_v27, %v2036_v2  ;;  %v2394_v38 = vmul.f32 %v3944_v14, %v4529_v31  ;;  %v1618_v5 = vmul.f32 %v4441_v12, %v3784_v9 }
 0x272   : > { %v2523_v1 = vmax.f32 %v2491_v45, 0.0  ;;  %v2524_v52 = vmax.f32 %v2492_v39, 0.0  ;;  %v2134_v13 = vadd.f32 %v2102_v24, %v2037_v59  ;;  %v1619_v53 = vmul.f32 %v4443_v23, %v3784_v9 }
 0x273   : > { %v2817_v47 = vadd.f32 %v3110_v35, %v2739_v36  ;;  %v2231_v26 = vadd.f32 %v2199_v30, %v2133_v58  ;;  %v1715_v34 = vmul.f32 %v3786_v29, %v1682_v15  ;;  %v1716_v6 = vmul.f32 %v3786_v29, %v4400_v10 }
 0x274   : > { %v2555_v62 = vmin.f32 %v2523_v1, 6.0  ;;  %v2556_v40 = vmin.f32 %v2524_v52, 6.0  ;;  %v2232_v28 = vadd.f32 %v2200_v33, %v2134_v13  ;;  %v1812_v12 = vmul.f32 %v4451_v37, %v3835_v17  ;;  %v1685_v1 = vld [vmem:[#allocation2 + $0xb1] sm:$0xff] }
 0x275   : > { %2849 = vst.msk [vmem:[%s4497_s25 + $0x8] sm:$0xff] %vm366_vm0, %v2817_v47  ;;  %v2328_v27 = vadd.f32 %v2296_v11, %v2231_v26  ;;  %v1747_v24 = vadd.f32 %v1715_v34, %v1618_v5  ;;  %v1748_v51 = vadd.f32 %v1716_v6, %v1619_v53  ;;  %v1813_v23 = vmul.f32 %v4461_v16, %v3835_v17  ;;  %v3111_v13 = vld [vmem:[%s3224_s14 + $0x10] sm:$0xff] }
 0x276   : > { %v2587_v30 = vmul.f32 %v2555_v62, %v2459_v3  ;;  %v2588_v2 = vmul.f32 %v2556_v40, %v2460_v19  ;;  %v2329_v60 = vadd.f32 %v2297_v42, %v2232_v28  ;;  %v1909_v10 = vmul.f32 %v4504_v49, %v3879_v55  ;;  %v1684_v42 = vld [vmem:[#allocation2 + $0xa9] sm:$0xff] }
 0x277   : > { %v2425_v45 = vadd.f32 %v2393_v18, %v2328_v27  ;;  %v1844_v39 = vadd.f32 %v1812_v12, %v1747_v24  ;;  %v1845_v33 = vadd.f32 %v1813_v23, %v1748_v51  ;;  %v2741_v15 = vpop.f32.mrf.mxu1  ;;  %v2006_v11 = vmul.f32 %v3917_v43, %v4426_v63 }
 0x278   : > { %v2619_v59 = vmul.f32 0.16666667, %v2587_v30  ;;  %v2620_v37 = vmul.f32 0.16666667, %v2588_v2  ;;  %v2426_v36 = vadd.f32 %v2394_v38, %v2329_v60  ;;  %v2742_v58 = vadd.f32 %v4470_v0, %v2741_v15 }
 0x279   : > { %v2461_v16 = vadd.f32 %v4519_v57, %v2425_v45  ;;  %v1941_v3 = vadd.f32 %v1909_v10, %v1844_v39  ;;  %v2007_v19 = vmul.f32 %v3917_v43, %v4465_v7  ;;  %v1910_v5 = vmul.f32 %v4523_v22, %v3879_v55 }
 0x27a   : > { %v2462_v18 = vadd.f32 %v4519_v57, %v2426_v36  ;;  %v2103_v38 = vmul.f32 %v4527_v25, %v3933_v44  ;;  %v1620_v63 = vmul.f32 %v4504_v49, %v3784_v9  ;;  %v2647_v52 = vpack.c.bf16 %v2620_v37, %v2619_v59 }
 0x27b   : > { %v2818_v53 = vadd.f32 %v3111_v13, %v2742_v58  ;;  %v2493_v35 = vadd.f32 3.0, %v2461_v16  ;;  %v2038_v47 = vadd.f32 %v2006_v11, %v1941_v3  ;;  %v1942_v26 = vadd.f32 %v1910_v5, %v1845_v33  ;;  %v3112_v33 = vld [vmem:[%s3224_s14 + $0x18] sm:$0xff] }
 0x27c   : > { %v2494_v7 = vadd.f32 3.0, %v2462_v18  ;;  %v1621_v34 = vmul.f32 %v4523_v22, %v3784_v9  ;;  %v1717_v6 = vmul.f32 %v3786_v29, %v1684_v42  ;;  %v2104_v62 = vmul.f32 %v4529_v31, %v3933_v44 }
 0x27d   : > { %2850 = vst.msk [vmem:[%s4497_s25 + $0x10] sm:$0xff] %vm366_vm0, %v2818_v53  ;;  %v4579_v40 = vadd.f32 %v2103_v38, %v2038_v47  ;;  %v1718_v49 = vmul.f32 %v3786_v29, %v1685_v1  ;;  %v1814_v28 = vmul.f32 %v4527_v25, %v3835_v17  ;;  %v2525_v12 = vmax.f32 %v2493_v35, 0.0 }
 0x27e   : > { %v2526_v27 = vmax.f32 %v2494_v7, 0.0  ;;  %v2039_v24 = vadd.f32 %v2007_v19, %v1942_v26  ;;  %v1749_v22 = vadd.f32 %v1717_v6, %v1620_v63  ;;  %v1815_v23 = vmul.f32 %v4529_v31, %v3835_v17 }
 0x27f   : > { %v1750_v51 = vadd.f32 %v1718_v49, %v1621_v34  ;;  %v2743_v30 = vpop.f32.mrf.mxu1  ;;  %v2557_v25 = vmin.f32 %v2525_v12, 6.0 }
 0x280   : > { %2755 = vmatmul.bf16.gmra.mxu1 %v2647_v52  ;;  %v2558_v2 = vmin.f32 %v2526_v27, 6.0  ;;  %v4586_v60 = vadd.f32 %v2104_v62, %v2039_v24  ;;  %v4588_v10 = vadd.f32 %v1814_v28, %v1749_v22  ;;  %v2744_v45 = vadd.f32 %v4470_v0, %v2743_v30 }
 0x281   : > { %v4591_v39 = vadd.f32 %v1815_v23, %v1750_v51  ;;  %v2589_v15 = vmul.f32 %v2557_v25, %v2461_v16 }
 0x282   : > { %v2819_v59 = vadd.f32 %v3112_v33, %v2744_v45  ;;  %v2590_v37 = vmul.f32 %v2558_v2, %v2462_v18 }
 0x283   : > { %v2621_v31 = vmul.f32 0.16666667, %v2589_v15 }
 0x284   : > { %2851 = vst.msk [vmem:[%s4497_s25 + $0x18] sm:$0xff] %vm366_vm0, %v2819_v59  ;;  %v2622_v36 = vmul.f32 0.16666667, %v2590_v37 }
 0x286   : > { %v2648_v11 = vpack.c.bf16 %v2622_v36, %v2621_v31 }
 0x290   : > { %2760 = vmatmul.bf16.gmra.mxu1 %v2648_v11 }
 0x299   : > { %v643_v58 = vpop.xlane.xlu1 %642 }
 0x29a   : > { %v687_v3 = vmul.f32 %v643_v58, %v3240_v20 }
 0x29c   : > { %v719_v19 = vadd.f32 1e-05, %v687_v3 }
 0x29e   : > { %3089 = vrsqrt.f32 %v719_v19  ;;  %vm982_vm14 = vweird.f32 %v719_v19 }
 0x2a4   : > { %v3090_v5 = vpop.eup %3089 }
 0x2a5   : > { %v640_v42 = vpop.xlane.xlu0 %639  ;;  %v977_v63 = vmul.f32 %v3090_v5, %v719_v19  ;;  %vm983_vm15 = vweird.f32 %v3090_v5 }
 0x2a6   : > { %v686_v38 = vmul.f32 %v640_v42, %v3240_v20  ;;  %vm4610_vm1 = vmor %vm982_vm14, %vm983_vm15 }
 0x2a7   : > { %v646_v1 = vpop.xlane.xlu1 %645  ;;  %v978_v13 = vmul.f32 %v3090_v5, %v977_v63 }
 0x2a8   : > { %v688_v18 = vmul.f32 %v646_v1, %v3240_v20  ;;  %v718_v52 = vadd.f32 1e-05, %v686_v38 }
 0x2a9   : > { %v979_v53 = vmul.f32 0.5, %v978_v13 }
 0x2aa   : > { %v4599_v16 = vadd.f32 1e-05, %v688_v18  ;;  %3091 = vrsqrt.f32 %v718_v52  ;;  %vm972_vm3 = vweird.f32 %v718_v52 }
 0x2ab   : > { %v980_v7 = vsub.f32 1.5, %v979_v53 }
 0x2ac   : > { %3093 = vrsqrt.f32 %v4599_v16  ;;  %vm992_vm2 = vweird.f32 %v4599_v16 }
 0x2ad   : > { %v649_v35 = vpop.xlane.xlu2 %648  ;;  %v462_v26 = vpop.xlane.xlu0 %461  ;;  %v981_v12 = vmul.f32 %v3090_v5, %v980_v7 }
 0x2ae   : > { %v689_v47 = vmul.f32 %v649_v35, %v3240_v20  ;;  %v501_v6 = vmul.f32 %v3240_v20, %v462_v26 }
 0x2af   : > { %v985_v25 = vsel %vm4610_vm1, %v3090_v5, %v981_v12 }
 0x2b0   : > { %v721_v34 = vadd.f32 1e-05, %v689_v47  ;;  %v3092_v62 = vpop.eup %3091  ;;  %v4605_v49 = vsub.f32 %v4187_v32, %v501_v6  ;;  %v1278_v28 = vpop.f32.mrf.mxu0  ;;  %v1071_v19 = vmul.f32 %v985_v25, %v4058_v46  ;;  %v4657_v25 = vld [vmem:[%s5273_s2] ss:$0 sm:$0xff] }
 0x2b1   : > { %v967_v27 = vmul.f32 %v3092_v62, %v718_v52  ;;  %v1279_v24 = vadd.f32 %v4205_v56, %v1278_v28  ;;  %vm973_vm4 = vweird.f32 %v3092_v62 }
 0x2b2   : > { %3095 = vrsqrt.f32 %v721_v34  ;;  %v4608_v22 = vpop.eup %3093  ;;  %v565_v23 = vmul.f32 %v4605_v49, %v4605_v49  ;;  %vm1002_vm5 = vweird.f32 %v721_v34  ;;  %vm974_vm7 = vmor %vm972_vm3, %vm973_vm4 }
 0x2b3   : > { %v987_v30 = vmul.f32 %v4608_v22, %v4599_v16  ;;  %v968_v2 = vmul.f32 %v3092_v62, %v967_v27  ;;  %v1337_v32 = vadd.f32 3.0, %v1279_v24  ;;  %vm993_vm6 = vweird.f32 %v4608_v22  ;;  %v4635_v27 = vld [vmem:[%s5272_s1] ss:$0 sm:$0xff] }
 0x2b4   : > { %v659_v45 = vsel %vm366_vm0, %v565_v23, 0.0  ;;  %v1107_v52 = vmul.f32 %v4635_v27, %v1071_v19  ;;  %vm4643_vm9 = vmor %vm992_vm2, %vm993_vm6 }
 0x2b5   : > { %v988_v33 = vmul.f32 %v4608_v22, %v987_v30  ;;  %v969_v59 = vmul.f32 0.5, %v968_v2  ;;  %v1369_v37 = vmax.f32 %v1337_v32, 0.0  ;;  %660 = vadd.xlane.f32.xlu0 %v659_v45  ;;  %v652_v15 = vpop.xlane.xlu0 %651 }
 0x2b6   : > { %v690_v31 = vmul.f32 %v652_v15, %v3240_v20 }
 0x2b7   : > { %v989_v11 = vmul.f32 0.5, %v988_v33  ;;  %v970_v58 = vsub.f32 1.5, %v969_v59  ;;  %v1401_v42 = vmin.f32 %v1369_v37, 6.0  ;;  %v1143_v33 = vadd.f32 %v4657_v25, %v1107_v52 }
 0x2b8   : > { %v3096_v36 = vpop.eup %3095  ;;  %v722_v5 = vadd.f32 1e-05, %v690_v31  ;;  %v1280_v38 = vpop.f32.mrf.mxu0 }
 0x2b9   : > { %v997_v3 = vmul.f32 %v3096_v36, %v721_v34  ;;  %v990_v63 = vsub.f32 1.5, %v989_v11  ;;  %v971_v1 = vmul.f32 %v3092_v62, %v970_v58  ;;  %v1281_v13 = vadd.f32 %v4205_v56, %v1280_v38 }
 0x2ba   : > { %v655_v53 = vpop.xlane.xlu1 %654  ;;  %v1433_v35 = vmul.f32 %v1401_v42, %v1279_v24  ;;  %3097 = vrsqrt.f32 %v722_v5  ;;  %vm1003_vm8 = vweird.f32 %v3096_v36  ;;  %vm1012_vm11 = vweird.f32 %v722_v5 }
 0x2bb   : > { %v998_v18 = vmul.f32 %v3096_v36, %v997_v3  ;;  %v691_v47 = vmul.f32 %v655_v53, %v3240_v20  ;;  %v975_v7 = vsel %vm974_vm7, %v3092_v62, %v971_v1  ;;  %v1338_v26 = vadd.f32 3.0, %v1281_v13  ;;  %vm4648_vm10 = vmor %vm1002_vm5, %vm1003_vm8 }
 0x2bc   : > { %v1070_v6 = vmul.f32 %v975_v7, %v4133_v21  ;;  %v4630_v28 = vmul.f32 0.16666667, %v1433_v35  ;;  %v991_v24 = vmul.f32 %v4608_v22, %v990_v63 }
 0x2bd   : > { %v999_v46 = vmul.f32 0.5, %v998_v18  ;;  %v723_v12 = vadd.f32 1e-05, %v691_v47  ;;  %v1370_v51 = vmax.f32 %v1338_v26, 0.0 }
 0x2be   : > { %1552 = vst [vmem:[#allocation2 + $0xc1] sm:$0xff] %v4630_v28  ;;  %v1106_v30 = vmul.f32 %v4635_v27, %v1070_v6  ;;  %v995_v59 = vsel %vm4643_vm9, %v4608_v22, %v991_v24  ;;  %v2298_v23 = vmul.f32 %v3924_v8, %v4630_v28 }
 0x2bf   : > { %v1000_v21 = vsub.f32 1.5, %v999_v46  ;;  %3099 = vrsqrt.f32 %v723_v12  ;;  %v1402_v32 = vmin.f32 %v1370_v51, 6.0  ;;  %v1072_v38 = vmul.f32 %v995_v59, %v4140_v41 }
 0x2c0   : > { %v3098_v45 = vpop.eup %3097  ;;  %v1283_v16 = vpop.f32.mrf.mxu0  ;;  %v1142_v34 = vadd.f32 %v4657_v25, %v1106_v30  ;;  %vm1022_vm13 = vweird.f32 %v723_v12 }
 0x2c1   : > { %v1001_v2 = vmul.f32 %v3096_v36, %v1000_v21  ;;  %v1007_v15 = vmul.f32 %v3098_v45, %v722_v5  ;;  %v1434_v31 = vmul.f32 %v1402_v32, %v1281_v13  ;;  %v1284_v11 = vadd.f32 %v4205_v56, %v1283_v16 }
 0x2c2   : > { %v1162_v58 = vpack.c.bf16 %v1143_v33, %v1142_v34  ;;  %vm1013_vm12 = vweird.f32 %v3098_v45  ;;  %v1108_v5 = vmul.f32 %v4635_v27, %v1072_v38 }
 0x2c3   : > { %v1005_v37 = vsel %vm4648_vm10, %v3096_v36, %v1001_v2  ;;  %v1008_v3 = vmul.f32 %v3098_v45, %v1007_v15  ;;  %v4667_v19 = vmul.f32 0.16666667, %v1434_v31  ;;  %v1339_v1 = vadd.f32 3.0, %v1284_v11  ;;  %vm4674_vm14 = vmor %vm1012_vm11, %vm1013_vm12 }
 0x2c4   : > { %v1073_v63 = vmul.f32 %v1005_v37, %v4173_v4  ;;  %2964 = vmatmul.msk.bf16.gmra.mxu3 %vm366_vm0, %v1162_v58  ;;  %v1144_v59 = vadd.f32 %v4657_v25, %v1108_v5 }
 0x2c5   : > { %v3100_v42 = vpop.eup %3099  ;;  %v1009_v22 = vmul.f32 0.5, %v1008_v3  ;;  %1553 = vst [vmem:[#allocation2 + $0xc9] sm:$0xff] %v4667_v19  ;;  %v1371_v13 = vmax.f32 %v1339_v1, 0.0  ;;  %v4681_v51 = vld [vmem:[#allocation2 + $0xc0] sm:$0xff]  ;;  %v2299_v3 = vmul.f32 %v3924_v8, %v4667_v19 }
 0x2c6   : > { %v1017_v36 = vmul.f32 %v3100_v42, %v723_v12  ;;  %v1288_v18 = vpop.f32.mrf.mxu3  ;;  %v1109_v26 = vmul.f32 %v4635_v27, %v1073_v63  ;;  %vm1023_vm15 = vweird.f32 %v3100_v42  ;;  %v2201_v16 = vmul.f32 %v3938_v50, %v4681_v51  ;;  %v4709_v63 = vld [vmem:[%s5275_s4] ss:$0 sm:$0xff] }
 0x2c7   : > { %v1289_v53 = vadd.f32 %v4205_v56, %v1288_v18  ;;  %v1010_v35 = vsub.f32 1.5, %v1009_v22  ;;  %v1403_v4 = vmin.f32 %v1371_v13, 6.0  ;;  %vm4690_vm1 = vmor %vm1022_vm13, %vm1023_vm15 }
 0x2c8   : > { %v1018_v47 = vmul.f32 %v3100_v42, %v1017_v36  ;;  %v1285_v46 = vpop.f32.mrf.mxu0  ;;  %v1145_v37 = vadd.f32 %v4657_v25, %v1109_v26 }
 0x2c9   : > { %v1341_v7 = vadd.f32 3.0, %v1289_v53  ;;  %v1011_v6 = vmul.f32 %v3098_v45, %v1010_v35  ;;  %v1286_v24 = vadd.f32 %v4205_v56, %v1285_v46  ;;  %v1435_v62 = vmul.f32 %v1403_v4, %v1284_v11 }
 0x2ca   : > { %v1019_v52 = vmul.f32 0.5, %v1018_v47  ;;  %v1911_v35 = vmul.f32 %v4681_v51, %v3879_v55  ;;  %v1163_v46 = vpack.c.bf16 %v1145_v37, %v1144_v59 }
 0x2cb   : > { %v1373_v21 = vmax.f32 %v1341_v7, 0.0  ;;  %v1015_v30 = vsel %vm4674_vm14, %v3098_v45, %v1011_v6  ;;  %v1340_v32 = vadd.f32 3.0, %v1286_v24  ;;  %v4694_v56 = vmul.f32 0.16666667, %v1435_v62 }
 0x2cc   : > { %v1020_v2 = vsub.f32 1.5, %v1019_v52  ;;  %v4698_v15 = vld [vmem:[#allocation2 + $0xc8] sm:$0xff]  ;;  %v1074_v31 = vmul.f32 %v1015_v30, %v4235_v61  ;;  %v2233_v61 = vadd.f32 %v2201_v16, %v4579_v40 }
 0x2cd   : > { %v1405_v33 = vmin.f32 %v1373_v21, 6.0  ;;  %v4700_v45 = vld [vmem:[#allocation2 + $0xc2] sm:$0xff]  ;;  %v1372_v58 = vmax.f32 %v1340_v32, 0.0  ;;  %1554 = vst [vmem:[#allocation2 + $0xd9] sm:$0xff] %v4694_v56  ;;  %v2202_v22 = vmul.f32 %v3938_v50, %v4698_v15  ;;  %v4715_v36 = vld [vmem:[#allocation2 + $0xca] sm:$0xff]  ;;  %v1912_v34 = vmul.f32 %v4698_v15, %v3879_v55 }
 0x2ce   : > { %v1021_v11 = vmul.f32 %v3100_v42, %v1020_v2  ;;  %v1290_v12 = vpop.f32.mrf.mxu3  ;;  %v2330_v5 = vadd.f32 %v2298_v23, %v2233_v61  ;;  %v1110_v52 = vmul.f32 %v4635_v27, %v1074_v31  ;;  %v1943_v23 = vadd.f32 %v1911_v35, %v4588_v10 }
 0x2cf   : > { %v1437_v38 = vmul.f32 %v1405_v33, %v1289_v53  ;;  %v1291_v1 = vadd.f32 %v4709_v63, %v1290_v12  ;;  %v1404_v13 = vmin.f32 %v1372_v58, 6.0  ;;  %v2395_v53 = vmul.f32 %v3944_v14, %v4700_v45 }
 0x2d0   : > { %v1025_v18 = vsel %vm4690_vm1, %v3100_v42, %v1021_v11  ;;  %v2234_v7 = vadd.f32 %v2202_v22, %v4586_v60  ;;  %v2396_v42 = vmul.f32 %v3944_v14, %v4715_v36  ;;  %v4742_v16 = vadd.f32 %v4657_v25, %v1110_v52 }
 0x2d1   : > { %v1075_v47 = vmul.f32 %v1025_v18, %v4282_v48  ;;  %v4724_v41 = vmul.f32 0.16666667, %v1437_v38  ;;  %v1342_v4 = vadd.f32 3.0, %v1291_v1  ;;  %v1436_v40 = vmul.f32 %v1404_v13, %v1286_v24 }
 0x2d2   : > { %v2331_v6 = vadd.f32 %v2299_v3, %v2234_v7  ;;  %v2427_v21 = vadd.f32 %v2395_v53, %v2330_v5  ;;  %v2008_v33 = vmul.f32 %v3917_v43, %v4630_v28  ;;  %v1719_v10 = vmul.f32 %v3786_v29, %v4630_v28 }
 0x2d3   : > { %1556 = vst [vmem:[#allocation2 + $0xf1] sm:$0xff] %v4724_v41  ;;  %v1374_v26 = vmax.f32 %v1342_v4, 0.0  ;;  %v1111_v62 = vmul.f32 %v4635_v27, %v1075_v47  ;;  %v4732_v48 = vmul.f32 0.16666667, %v1436_v40  ;;  %v1944_v12 = vadd.f32 %v1912_v34, %v4591_v39 }
 0x2d4   : > { %2965 = vmatmul.msk.bf16.gmra.mxu3 %vm366_vm0, %v1163_v46  ;;  %v2428_v60 = vadd.f32 %v2396_v42, %v2331_v6  ;;  %v2463_v32 = vadd.f32 %v4519_v57, %v2427_v21  ;;  %v2009_v3 = vmul.f32 %v3917_v43, %v4667_v19  ;;  %v2040_v61 = vadd.f32 %v2008_v33, %v1943_v23  ;;  %v4764_v47 = vld [vmem:[#allocation2 + $0xd8] sm:$0xff] }
 0x2d5   : > { %v1406_v30 = vmin.f32 %v1374_v26, 6.0  ;;  %v4736_v24 = vadd.f32 %v4657_v25, %v1111_v62  ;;  %1555 = vst [vmem:[#allocation2 + $0xe1] sm:$0xff] %v4732_v48  ;;  %v2105_v53 = vmul.f32 %v4700_v45, %v3933_v44  ;;  %v2106_v28 = vmul.f32 %v4715_v36, %v3933_v44 }
 0x2d6   : > { %v1293_v2 = vpop.f32.mrf.mxu3  ;;  %v2464_v31 = vadd.f32 %v4519_v57, %v2428_v60  ;;  %v2495_v11 = vadd.f32 3.0, %v2463_v32  ;;  %v2041_v13 = vadd.f32 %v2009_v3, %v1944_v12  ;;  %v2300_v4 = vmul.f32 %v3924_v8, %v4694_v56 }
 0x2d7   : > { %v1438_v59 = vmul.f32 %v1406_v30, %v1291_v1  ;;  %v1294_v37 = vadd.f32 %v4709_v63, %v1293_v2  ;;  %v1164_v58 = vpack.c.bf16 %v4736_v24, %v4742_v16  ;;  %v2301_v7 = vmul.f32 %v3924_v8, %v4732_v48 }
 0x2d8   : > { %v2496_v1 = vadd.f32 3.0, %v2464_v31  ;;  %v2527_v18 = vmax.f32 %v2495_v11, 0.0  ;;  %v2137_v46 = vadd.f32 %v2105_v53, %v2040_v61  ;;  %v2138_v5 = vadd.f32 %v2106_v28, %v2041_v13 }
 0x2d9   : > { %v4757_v38 = vmul.f32 0.16666667, %v1438_v59  ;;  %v1343_v22 = vadd.f32 3.0, %v1294_v37  ;;  %v2203_v42 = vmul.f32 %v3938_v50, %v4764_v47  ;;  %v1622_v30 = vmul.f32 %v4681_v51, %v3784_v9 }
 0x2da   : > { %v2528_v39 = vmax.f32 %v2496_v1, 0.0  ;;  %v2559_v40 = vmin.f32 %v2527_v18, 6.0  ;;  %v1623_v60 = vmul.f32 %v4698_v15, %v3784_v9  ;;  %v3116_v1 = vld [vmem:[%s3224_s14 + $0x20] sm:$0xff] }
 0x2db   : > { %1557 = vst [vmem:[#allocation2 + $0xf9] sm:$0xff] %v4757_v38  ;;  %v1375_v35 = vmax.f32 %v1343_v22, 0.0  ;;  %v2235_v59 = vadd.f32 %v2203_v42, %v2137_v46  ;;  %v1817_v42 = vmul.f32 %v4715_v36, %v3835_v17 }
 0x2dc   : > { %v2560_v52 = vmin.f32 %v2528_v39, 6.0  ;;  %v4772_v62 = vld [vmem:[#allocation2 + $0xe0] sm:$0xff]  ;;  %v2591_v34 = vmul.f32 %v2559_v40, %v2463_v32  ;;  %v1751_v40 = vadd.f32 %v1719_v10, %v1622_v30  ;;  %v2010_v10 = vmul.f32 %v3917_v43, %v4694_v56 }
 0x2dd   : > { %v2746_v26 = vpop.f32.mrf.mxu1  ;;  %v1407_v6 = vmin.f32 %v1375_v35, 6.0  ;;  %v4774_v21 = vld [vmem:[#allocation2 + $0xda] sm:$0xff]  ;;  %v2204_v33 = vmul.f32 %v3938_v50, %v4772_v62  ;;  %v4783_v11 = vld [vmem:[#allocation2 + $0xe2] sm:$0xff]  ;;  %v2332_v13 = vadd.f32 %v2300_v4, %v2235_v59  ;;  %v1816_v4 = vmul.f32 %v4700_v45, %v3835_v17 }
 0x2de   : > { %v2747_v23 = vadd.f32 %v4470_v0, %v2746_v26  ;;  %v1295_v2 = vpop.f32.mrf.mxu3  ;;  %v2592_v22 = vmul.f32 %v2560_v52, %v2464_v31  ;;  %v2397_v51 = vmul.f32 %v3944_v14, %v4774_v21  ;;  %v2623_v61 = vmul.f32 0.16666667, %v2591_v34 }
 0x2df   : > { %v1439_v12 = vmul.f32 %v1407_v6, %v1294_v37  ;;  %v1296_v3 = vadd.f32 %v4709_v63, %v1295_v2  ;;  %v2236_v18 = vadd.f32 %v2204_v33, %v2138_v5  ;;  %v2398_v35 = vmul.f32 %v3944_v14, %v4783_v11 }
 0x2e0   : > { %v2820_v15 = vadd.f32 %v3116_v1, %v2747_v23  ;;  %v2624_v28 = vmul.f32 0.16666667, %v2592_v22  ;;  %v2429_v39 = vadd.f32 %v2397_v51, %v2332_v13  ;;  %v1720_v31 = vmul.f32 %v3786_v29, %v4667_v19 }
 0x2e1   : > { %v4789_v32 = vmul.f32 0.16666667, %v1439_v12  ;;  %v1344_v53 = vadd.f32 3.0, %v1296_v3  ;;  %v2333_v37 = vadd.f32 %v2301_v7, %v2236_v18  ;;  %v1913_v7 = vmul.f32 %v4764_v47, %v3879_v55  ;;  %v3117_v12 = vld [vmem:[%s3224_s14 + $0x28] sm:$0xff] }
 0x2e2   : > { %2852 = vst.msk [vmem:[%s4497_s25 + $0x20] sm:$0xff] %vm366_vm0, %v2820_v15  ;;  %v2649_v5 = vpack.c.bf16 %v2624_v28, %v2623_v61  ;;  %v2465_v6 = vadd.f32 %v4519_v57, %v2429_v39  ;;  %v1752_v52 = vadd.f32 %v1720_v31, %v1623_v60  ;;  %v1848_v45 = vadd.f32 %v1816_v4, %v1751_v40  ;;  %v4819_v61 = vld [vmem:[#allocation2 + $0xf0] sm:$0xff]  ;;  %v4821_v18 = vld [vmem:[#allocation2 + $0xf8] sm:$0xff] }
 0x2e3   : > { %1558 = vst [vmem:[#allocation2 + $0x109] sm:$0xff] %v4789_v32  ;;  %v1376_v46 = vmax.f32 %v1344_v53, 0.0  ;;  %v2430_v26 = vadd.f32 %v2398_v35, %v2333_v37  ;;  %v1914_v36 = vmul.f32 %v4772_v62, %v3879_v55  ;;  %v2108_v31 = vmul.f32 %v4783_v11, %v3933_v44  ;;  %v4831_v40 = vld [vmem:[#allocation2 + $0xf2] sm:$0xff] }
 0x2e4   : > { %2765 = vmatmul.bf16.gmra.mxu1 %v2649_v5  ;;  %2966 = vmatmul.msk.bf16.gmra.mxu3 %vm366_vm0, %v1164_v58  ;;  %v2497_v34 = vadd.f32 3.0, %v2465_v6  ;;  %v1849_v33 = vadd.f32 %v1817_v42, %v1752_v52  ;;  %v1945_v16 = vadd.f32 %v1913_v7, %v1848_v45  ;;  %v2011_v58 = vmul.f32 %v3917_v43, %v4732_v48 }
 0x2e5   : > { %v2748_v23 = vpop.f32.mrf.mxu1  ;;  %v1408_v19 = vmin.f32 %v1376_v46, 6.0  ;;  %v2466_v2 = vadd.f32 %v4519_v57, %v2430_v26  ;;  %v2205_v4 = vmul.f32 %v3938_v50, %v4819_v61  ;;  %v2206_v42 = vmul.f32 %v3938_v50, %v4821_v18 }
 0x2e6   : > { %v2749_v30 = vadd.f32 %v4470_v0, %v2748_v23  ;;  %v1298_v60 = vpop.f32.mrf.mxu3  ;;  %v2529_v1 = vmax.f32 %v2497_v34, 0.0  ;;  %v1946_v15 = vadd.f32 %v1914_v36, %v1849_v33  ;;  %v2042_v28 = vadd.f32 %v2010_v10, %v1945_v16 }
 0x2e7   : > { %v1440_v59 = vmul.f32 %v1408_v19, %v1296_v3  ;;  %v1299_v24 = vadd.f32 %v4709_v63, %v1298_v60  ;;  %v2498_v51 = vadd.f32 3.0, %v2466_v2  ;;  %v2107_v3 = vmul.f32 %v4774_v21, %v3933_v44  ;;  %v4840_v19 = vld [vmem:[#allocation2 + $0xfa] sm:$0xff] }
 0x2e8   : > { %v2821_v22 = vadd.f32 %v3117_v12, %v2749_v30  ;;  %v2561_v37 = vmin.f32 %v2529_v1, 6.0  ;;  %v2043_v39 = vadd.f32 %v2011_v58, %v1946_v15  ;;  %v2302_v23 = vmul.f32 %v3924_v8, %v4724_v41  ;;  %v3118_v1 = vld [vmem:[%s3224_s14 + $0x30] sm:$0xff] }
 0x2e9   : > { %v4823_v13 = vmul.f32 0.16666667, %v1440_v59  ;;  %v1345_v53 = vadd.f32 3.0, %v1299_v24  ;;  %v2530_v35 = vmax.f32 %v2498_v51, 0.0  ;;  %v2139_v5 = vadd.f32 %v2107_v3, %v2042_v28 }
 0x2ea   : > { %2853 = vst.msk [vmem:[%s4497_s25 + $0x28] sm:$0xff] %vm366_vm0, %v2821_v22  ;;  %v2593_v52 = vmul.f32 %v2561_v37, %v2465_v6  ;;  %v2140_v7 = vadd.f32 %v2108_v31, %v2043_v39  ;;  %v2303_v30 = vmul.f32 %v3924_v8, %v4757_v38  ;;  %v2399_v60 = vmul.f32 %v3944_v14, %v4831_v40 }
 0x2eb   : > { %1559 = vst [vmem:[#allocation2 + $0x111] sm:$0xff] %v4823_v13  ;;  %v1377_v46 = vmax.f32 %v1345_v53, 0.0  ;;  %v2562_v26 = vmin.f32 %v2530_v35, 6.0  ;;  %v2237_v10 = vadd.f32 %v2205_v4, %v2139_v5  ;;  %v2400_v51 = vmul.f32 %v3944_v14, %v4840_v19 }
 0x2ec   : > { %v2625_v59 = vmul.f32 0.16666667, %v2593_v52  ;;  %v2238_v16 = vadd.f32 %v2206_v42, %v2140_v7  ;;  %v1624_v3 = vmul.f32 %v4764_v47, %v3784_v9  ;;  %v1722_v5 = vmul.f32 %v3786_v29, %v4732_v48 }
 0x2ed   : > { %v2751_v45 = vpop.f32.mrf.mxu1  ;;  %v1409_v36 = vmin.f32 %v1377_v46, 6.0  ;;  %v2594_v6 = vmul.f32 %v2562_v26, %v2466_v2  ;;  %v2334_v22 = vadd.f32 %v2302_v23, %v2237_v10  ;;  %v1721_v46 = vmul.f32 %v3786_v29, %v4694_v56 }
 0x2ee   : > { %v2752_v34 = vadd.f32 %v4470_v0, %v2751_v45  ;;  %v1300_v33 = vpop.f32.mrf.mxu3  ;;  %v2335_v28 = vadd.f32 %v2303_v30, %v2238_v16  ;;  %v1818_v42 = vmul.f32 %v4774_v21, %v3835_v17  ;;  %v1915_v56 = vmul.f32 %v4819_v61, %v3879_v55 }
 0x2ef   : > { %v1441_v58 = vmul.f32 %v1409_v36, %v1299_v24  ;;  %v1301_v12 = vadd.f32 %v4709_v63, %v1300_v33  ;;  %v2626_v53 = vmul.f32 0.16666667, %v2594_v6  ;;  %v2431_v37 = vadd.f32 %v2399_v60, %v2334_v22  ;;  %v3119_v22 = vld [vmem:[%s3224_s14 + $0x38] sm:$0xff] }
 0x2f0   : > { %v2822_v15 = vadd.f32 %v3118_v1, %v2752_v34  ;;  %v1625_v24 = vmul.f32 %v4772_v62, %v3784_v9  ;;  %v2432_v31 = vadd.f32 %v2400_v51, %v2335_v28  ;;  %v1819_v62 = vmul.f32 %v4783_v11, %v3835_v17  ;;  %v4877_v34 = vld [vmem:[#allocation2 + $0x108] sm:$0xff] }
 0x2f1   : > { %v4853_v35 = vmul.f32 0.16666667, %v1441_v58  ;;  %v1346_v2 = vadd.f32 3.0, %v1301_v12  ;;  %v2650_v39 = vpack.c.bf16 %v2626_v53, %v2625_v59  ;;  %v2467_v4 = vadd.f32 %v4519_v57, %v2431_v37 }
 0x2f2   : > { %2854 = vst.msk [vmem:[%s4497_s25 + $0x30] sm:$0xff] %vm366_vm0, %v2822_v15  ;;  %v2468_v26 = vadd.f32 %v4519_v57, %v2432_v31  ;;  %v1753_v52 = vadd.f32 %v1721_v46, %v1624_v3  ;;  %v1754_v7 = vadd.f32 %v1722_v5, %v1625_v24  ;;  %v1916_v36 = vmul.f32 %v4821_v18, %v3879_v55  ;;  %v4883_v58 = vld [vmem:[#allocation2 + $0x110] sm:$0xff] }
 0x2f3   : > { %1560 = vst [vmem:[#allocation2 + $0x121] sm:$0xff] %v4853_v35  ;;  %v1378_v47 = vmax.f32 %v1346_v2, 0.0  ;;  %v2499_v45 = vadd.f32 3.0, %v2467_v4  ;;  %v2012_v21 = vmul.f32 %v3917_v43, %v4724_v41  ;;  %v2013_v59 = vmul.f32 %v3917_v43, %v4757_v38  ;;  %v4886_v28 = vld [vmem:[#allocation2 + $0x10a] sm:$0xff]  ;;  %v4894_v24 = vld [vmem:[#allocation2 + $0x112] sm:$0xff] }
 0x2f4   : > { %2770 = vmatmul.bf16.gmra.mxu1 %v2650_v39  ;;  %v2500_v10 = vadd.f32 3.0, %v2468_v26  ;;  %v1850_v30 = vadd.f32 %v1818_v42, %v1753_v52  ;;  %v1851_v60 = vadd.f32 %v1819_v62, %v1754_v7  ;;  %v2109_v16 = vmul.f32 %v4831_v40, %v3933_v44 }
 0x2f5   : > { %v2753_v23 = vpop.f32.mrf.mxu1  ;;  %v1410_v48 = vmin.f32 %v1378_v47, 6.0  ;;  %v2531_v6 = vmax.f32 %v2499_v45, 0.0  ;;  %v2110_v2 = vmul.f32 %v4840_v19, %v3933_v44  ;;  %v2207_v37 = vmul.f32 %v3938_v50, %v4877_v34 }
 0x2f6   : > { %v2754_v11 = vadd.f32 %v4470_v0, %v2753_v23  ;;  %v2532_v1 = vmax.f32 %v2500_v10, 0.0  ;;  %v1947_v15 = vadd.f32 %v1915_v56, %v1850_v30  ;;  %v1948_v53 = vadd.f32 %v1916_v36, %v1851_v60 }
 0x2f7   : > { %v1442_v33 = vmul.f32 %v1410_v48, %v1301_v12  ;;  %v2563_v12 = vmin.f32 %v2531_v6, 6.0  ;;  %v2208_v5 = vmul.f32 %v3938_v50, %v4883_v58  ;;  %v2304_v42 = vmul.f32 %v3924_v8, %v4789_v32 }
 0x2f8   : > { %v2823_v51 = vadd.f32 %v3119_v22, %v2754_v11  ;;  %v2564_v39 = vmin.f32 %v2532_v1, 6.0  ;;  %v2044_v31 = vadd.f32 %v2012_v21, %v1947_v15  ;;  %v2045_v46 = vadd.f32 %v2013_v59, %v1948_v53 }
 0x2f9   : > { %v4888_v3 = vmul.f32 0.16666667, %v1442_v33  ;;  %v2595_v47 = vmul.f32 %v2563_v12, %v2467_v4  ;;  %v2305_v62 = vmul.f32 %v3924_v8, %v4823_v13  ;;  %v2401_v52 = vmul.f32 %v3944_v14, %v4886_v28 }
 0x2fa   : > { %2855 = vst.msk [vmem:[%s4497_s25 + $0x38] sm:$0xff] %vm366_vm0, %v2823_v51  ;;  %v2596_v7 = vmul.f32 %v2564_v39, %v2468_v26  ;;  %v2141_v56 = vadd.f32 %v2109_v16, %v2044_v31  ;;  %v2142_v23 = vadd.f32 %v2110_v2, %v2045_v46  ;;  %v2402_v48 = vmul.f32 %v3944_v14, %v4894_v24 }
 0x2fb   : > { %1561 = vst [vmem:[#allocation2 + $0x129] sm:$0xff] %v4888_v3  ;;  %v2627_v36 = vmul.f32 0.16666667, %v2595_v47  ;;  %v1626_v4 = vmul.f32 %v4819_v61, %v3784_v9  ;;  %v1627_v21 = vmul.f32 %v4821_v18, %v3784_v9  ;;  %v1723_v11 = vmul.f32 %v3786_v29, %v4724_v41  ;;  %v3120_v18 = vld [vmem:[%s3224_s14 + $0x40] sm:$0xff] }
 0x2fc   : > { %v2628_v26 = vmul.f32 0.16666667, %v2596_v7  ;;  %v2239_v30 = vadd.f32 %v2207_v37, %v2141_v56  ;;  %v2240_v60 = vadd.f32 %v2208_v5, %v2142_v23  ;;  %v1724_v33 = vmul.f32 %v3786_v29, %v4757_v38 }
 0x2fd   : > { %v2756_v45 = vpop.f32.mrf.mxu1  ;;  %v1755_v6 = vadd.f32 %v1723_v11, %v1626_v4  ;;  %v1820_v59 = vmul.f32 %v4831_v40, %v3835_v17  ;;  %v1821_v61 = vmul.f32 %v4840_v19, %v3835_v17  ;;  %v1917_v53 = vmul.f32 %v4877_v34, %v3879_v55  ;;  %v4929_v19 = vld [vmem:[#allocation2 + $0x120] sm:$0xff] }
 0x2fe   : > { %v2757_v10 = vadd.f32 %v4470_v0, %v2756_v45  ;;  %v2651_v22 = vpack.c.bf16 %v2628_v26, %v2627_v36  ;;  %v2336_v41 = vadd.f32 %v2304_v42, %v2239_v30  ;;  %v2337_v51 = vadd.f32 %v2305_v62, %v2240_v60  ;;  %v658_v0 = vpop.xlane.xlu2 %657  ;;  %v4953_v36 = vld [vmem:[%s5279_s8] ss:$0 sm:$0xff] }
 0x2ff   : > { %v1756_v1 = vadd.f32 %v1724_v33, %v1627_v21  ;;  %v1852_v15 = vadd.f32 %v1820_v59, %v1755_v6  ;;  %v1918_v38 = vmul.f32 %v4883_v58, %v3879_v55  ;;  %v2014_v39 = vmul.f32 %v3917_v43, %v4789_v32  ;;  %v3122_v6 = vld [vmem:[%s3224_s14 + $0x48] sm:$0xff] }
 0x300   : > { %v2824_v16 = vadd.f32 %v3120_v18, %v2757_v10  ;;  %2775 = vmatmul.bf16.vlgmr.msra.gmra.mxu2 %v2651_v22  ;;  %v2433_v40 = vadd.f32 %v2401_v52, %v2336_v41  ;;  %v2434_v12 = vadd.f32 %v2402_v48, %v2337_v51  ;;  %v2111_v31 = vmul.f32 %v4886_v28, %v3933_v44 }
 0x301   : > { %v1853_v2 = vadd.f32 %v1821_v61, %v1756_v1  ;;  %v1949_v37 = vadd.f32 %v1917_v53, %v1852_v15  ;;  %v4938_v5 = vmul.f32 %v658_v0, %v3240_v20  ;;  %v2015_v62 = vmul.f32 %v3917_v43, %v4823_v13 }
 0x302   : > { %2856 = vst.msk [vmem:[%s4497_s25 + $0x40] sm:$0xff] %vm366_vm0, %v2824_v16  ;;  %v4935_v46 = vld [vmem:[#allocation2 + $0x128] sm:$0xff]  ;;  %v2469_v47 = vadd.f32 %v4519_v57, %v2433_v40  ;;  %v2470_v42 = vadd.f32 %v4519_v57, %v2434_v12  ;;  %v2112_v23 = vmul.f32 %v4894_v24, %v3933_v44  ;;  %v2209_v48 = vmul.f32 %v3938_v50, %v4929_v19 }
 0x303   : > { %v1950_v7 = vadd.f32 %v1918_v38, %v1853_v2  ;;  %v2046_v56 = vadd.f32 %v2014_v39, %v1949_v37  ;;  %v4948_v45 = vld [vmem:[#allocation2 + $0x122] sm:$0xff]  ;;  %v2210_v11 = vmul.f32 %v3938_v50, %v4935_v46  ;;  %v2306_v30 = vmul.f32 %v3924_v8, %v4853_v35  ;;  %v4962_v33 = vld [vmem:[#allocation2 + $0x12a] sm:$0xff] }
 0x304   : > { %v2501_v4 = vadd.f32 3.0, %v2469_v47  ;;  %v2502_v21 = vadd.f32 3.0, %v2470_v42  ;;  %v2307_v60 = vmul.f32 %v3924_v8, %v4888_v3  ;;  %v2403_v16 = vmul.f32 %v3944_v14, %v4948_v45 }
 0x305   : > { %v2758_v52 = vpop.f32.mrf.mxu1  ;;  %v2047_v10 = vadd.f32 %v2015_v62, %v1950_v7  ;;  %v2143_v26 = vadd.f32 %v2111_v31, %v2046_v56  ;;  %v1628_v51 = vmul.f32 %v4877_v34, %v3784_v9  ;;  %v1629_v0 = vmul.f32 %v4883_v58, %v3784_v9 }
 0x306   : > { %v2759_v57 = vadd.f32 %v4953_v36, %v2758_v52  ;;  %v2533_v61 = vmax.f32 %v2501_v4, 0.0  ;;  %v2534_v18 = vmax.f32 %v2502_v21, 0.0  ;;  %v2404_v53 = vmul.f32 %v3944_v14, %v4962_v33  ;;  %v3124_v21 = vld [vmem:[%s3224_s14 + $0x50] sm:$0xff] }
 0x307   : > { %v2144_v22 = vadd.f32 %v2112_v23, %v2047_v10  ;;  %v2241_v41 = vadd.f32 %v2209_v48, %v2143_v26  ;;  %v1725_v38 = vmul.f32 %v3786_v29, %v4789_v32  ;;  %v1726_v2 = vmul.f32 %v3786_v29, %v4823_v13 }
 0x308   : > { %v2825_v59 = vadd.f32 %v3122_v6, %v2759_v57  ;;  %v2565_v1 = vmin.f32 %v2533_v61, 6.0  ;;  %v2566_v15 = vmin.f32 %v2534_v18, 6.0  ;;  %v1822_v34 = vmul.f32 %v4886_v28, %v3835_v17 }
 0x309   : > { %v2242_v40 = vadd.f32 %v2210_v11, %v2144_v22  ;;  %v2338_v12 = vadd.f32 %v2306_v30, %v2241_v41  ;;  %v1757_v39 = vadd.f32 %v1725_v38, %v1628_v51  ;;  %v1823_v31 = vmul.f32 %v4894_v24, %v3835_v17 }
 0x30a   : > { %2857 = vst.msk [vmem:[%s4497_s25 + $0x48] sm:$0xff] %vm366_vm0, %v2825_v59  ;;  %v2597_v37 = vmul.f32 %v2565_v1, %v2469_v47  ;;  %v2598_v58 = vmul.f32 %v2566_v15, %v2470_v42  ;;  %v1758_v56 = vadd.f32 %v1726_v2, %v1629_v0  ;;  %v1919_v32 = vmul.f32 %v4929_v19, %v3879_v55  ;;  %v4989_v42 = vld [vmem:[%s5277_s6] ss:$0 sm:$0xff] }
 0x30b   : > { %v2339_v52 = vadd.f32 %v2307_v60, %v2242_v40  ;;  %v2435_v7 = vadd.f32 %v2403_v16, %v2338_v12  ;;  %v1854_v28 = vadd.f32 %v1822_v34, %v1757_v39  ;;  %v1920_v4 = vmul.f32 %v4935_v46, %v3879_v55 }
 0x30c   : > { %v2629_v13 = vmul.f32 0.16666667, %v2597_v37  ;;  %v2630_v48 = vmul.f32 0.16666667, %v2598_v58  ;;  %v1855_v57 = vadd.f32 %v1823_v31, %v1758_v56  ;;  %v2016_v30 = vmul.f32 %v3917_v43, %v4853_v35 }
 0x30d   : > { %v2761_v62 = vpop.f32.mrf.mxu1  ;;  %v2436_v47 = vadd.f32 %v2404_v53, %v2339_v52  ;;  %v2471_v24 = vadd.f32 %v4989_v42, %v2435_v7  ;;  %v1951_v26 = vadd.f32 %v1919_v32, %v1854_v28  ;;  %v2017_v61 = vmul.f32 %v3917_v43, %v4888_v3 }
 0x30e   : > { %v2762_v23 = vadd.f32 %v4953_v36, %v2761_v62  ;;  %v2652_v10 = vpack.c.bf16 %v2630_v48, %v2629_v13  ;;  %v1952_v59 = vadd.f32 %v1920_v4, %v1855_v57  ;;  %v2113_v16 = vmul.f32 %v4948_v45, %v3933_v44 }
 0x30f   : > { %v2472_v60 = vadd.f32 %v4989_v42, %v2436_v47  ;;  %v2503_v6 = vadd.f32 3.0, %v2471_v24  ;;  %v2048_v18 = vadd.f32 %v2016_v30, %v1951_v26  ;;  %v2114_v22 = vmul.f32 %v4962_v33, %v3933_v44 }
 0x310   : > { %v2826_v11 = vadd.f32 %v3124_v21, %v2762_v23  ;;  %2780 = vmatmul.bf16.gmra.mxu2 %v2652_v10  ;;  %v2049_v0 = vadd.f32 %v2017_v61, %v1952_v59  ;;  %v1630_v1 = vmul.f32 %v4929_v19, %v3784_v9  ;;  %v1631_v53 = vmul.f32 %v4935_v46, %v3784_v9 }
 0x311   : > { %v2504_v41 = vadd.f32 3.0, %v2472_v60  ;;  %v2535_v51 = vmax.f32 %v2503_v6, 0.0  ;;  %v5008_v15 = vadd.f32 %v2113_v16, %v2048_v18  ;;  %v1727_v38 = vmul.f32 %v3786_v29, %v4853_v35 }
 0x312   : > { %2858 = vst.msk [vmem:[%s4497_s25 + $0x50] sm:$0xff] %vm366_vm0, %v2826_v11  ;;  %v1728_v40 = vmul.f32 %v3786_v29, %v4888_v3  ;;  %v5016_v37 = vadd.f32 %v2114_v22, %v2049_v0  ;;  %v1824_v19 = vmul.f32 %v4948_v45, %v3835_v17  ;;  %v1825_v46 = vmul.f32 %v4962_v33, %v3835_v17  ;;  %v3125_v3 = vld [vmem:[%s3224_s14 + $0x58] sm:$0xff] }
 0x313   : > { %v2536_v2 = vmax.f32 %v2504_v41, 0.0  ;;  %v2567_v34 = vmin.f32 %v2535_v51, 6.0  ;;  %v1759_v39 = vadd.f32 %v1727_v38, %v1630_v1  ;;  %v724_v35 = vadd.f32 1e-05, %v4938_v5 }
 0x314   : > { %v1760_v31 = vadd.f32 %v1728_v40, %v1631_v53 }
 0x315   : > { %v2763_v12 = vpop.f32.mrf.mxu1  ;;  %v2568_v62 = vmin.f32 %v2536_v2, 6.0  ;;  %v2599_v7 = vmul.f32 %v2567_v34, %v2471_v24  ;;  %v5025_v56 = vadd.f32 %v1824_v19, %v1759_v39  ;;  %3101 = vrsqrt.f32 %v724_v35 }
 0x316   : > { %v2764_v58 = vadd.f32 %v4953_v36, %v2763_v12  ;;  %v5027_v32 = vadd.f32 %v1825_v46, %v1760_v31  ;;  %vm1032_vm2 = vweird.f32 %v724_v35 }
 0x317   : > { %v2600_v23 = vmul.f32 %v2568_v62, %v2472_v60  ;;  %v2631_v13 = vmul.f32 0.16666667, %v2599_v7 }
 0x318   : > { %v2827_v52 = vadd.f32 %v3125_v3, %v2764_v58 }
 0x319   : > { %v2632_v45 = vmul.f32 0.16666667, %v2600_v23 }
 0x31a   : > { %2859 = vst.msk [vmem:[%s4497_s25 + $0x58] sm:$0xff] %vm366_vm0, %v2827_v52 }
 0x31b   : > { %v2653_v48 = vpack.c.bf16 %v2632_v45, %v2631_v13  ;;  %v3102_v28 = vpop.eup %3101 }
 0x31c   : > { %v1027_v33 = vmul.f32 %v3102_v28, %v724_v35  ;;  %vm1033_vm3 = vweird.f32 %v3102_v28 }
 0x31d   : > { %vm1034_vm4 = vmor %vm1032_vm2, %vm1033_vm3 }
 0x31e   : > { %v1028_v47 = vmul.f32 %v3102_v28, %v1027_v33 }
 0x320   : > { %2785 = vmatmul.bf16.gmra.mxu2 %v2653_v48  ;;  %v1029_v24 = vmul.f32 0.5, %v1028_v47  ;;  %v3126_v47 = vld [vmem:[%s3224_s14 + $0x60] sm:$0xff] }
 0x322   : > { %v1030_v21 = vsub.f32 1.5, %v1029_v24 }
 0x324   : > { %v1031_v10 = vmul.f32 %v3102_v28, %v1030_v21 }
 0x326   : > { %v1035_v60 = vsel %vm1034_vm4, %v3102_v28, %v1031_v10 }
 0x327   : > { %v1076_v61 = vmul.f32 %v1035_v60, %v4335_v54 }
 0x328   : > { %v661_v5 = vpop.xlane.xlu0 %660 }
 0x329   : > { %v693_v57 = vmul.f32 %v661_v5, %v3240_v20  ;;  %v1112_v22 = vmul.f32 %v4635_v27, %v1076_v61 }
 0x32b   : > { %v725_v4 = vadd.f32 1e-05, %v693_v57  ;;  %v1148_v51 = vadd.f32 %v4657_v25, %v1112_v22 }
 0x32d   : > { %3103 = vrsqrt.f32 %v725_v4  ;;  %vm1042_vm6 = vweird.f32 %v725_v4 }
 0x333   : > { %v3104_v11 = vpop.eup %3103 }
 0x334   : > { %v1037_v26 = vmul.f32 %v3104_v11, %v725_v4  ;;  %vm1043_vm5 = vweird.f32 %v3104_v11 }
 0x335   : > { %vm1044_vm7 = vmor %vm1042_vm6, %vm1043_vm5 }
 0x336   : > { %v1038_v30 = vmul.f32 %v3104_v11, %v1037_v26 }
 0x338   : > { %v1039_v6 = vmul.f32 0.5, %v1038_v30 }
 0x33a   : > { %v1040_v59 = vsub.f32 1.5, %v1039_v6 }
 0x33c   : > { %v1041_v18 = vmul.f32 %v3104_v11, %v1040_v59 }
 0x33e   : > { %v1045_v20 = vsel %vm1044_vm7, %v3104_v11, %v1041_v18 }
 0x33f   : > { %v1077_v16 = vmul.f32 %v1045_v20, %v4605_v49 }
 0x341   : > { %v1113_v41 = vmul.f32 %v4635_v27, %v1077_v16 }
 0x343   : > { %v1149_v0 = vadd.f32 %v4657_v25, %v1113_v41 }
 0x345   : > { %v1165_v1 = vpack.c.bf16 %v1149_v0, %v1148_v51 }
 0x347   : > { %v1303_v53 = vpop.f32.mrf.mxu3  ;;  %2967 = vmatmul.msk.bf16.gmra.mxu3 %vm366_vm0, %v1165_v1 }
 0x348   : > { %v1304_v54 = vadd.f32 %v4709_v63, %v1303_v53 }
 0x34a   : > { %v1347_v38 = vadd.f32 3.0, %v1304_v54 }
 0x34c   : > { %v1379_v40 = vmax.f32 %v1347_v38, 0.0 }
 0x34e   : > { %v1411_v12 = vmin.f32 %v1379_v40, 6.0 }
 0x34f   : > { %v1305_v2 = vpop.f32.mrf.mxu3 }
 0x350   : > { %v1443_v34 = vmul.f32 %v1411_v12, %v1304_v54  ;;  %v1306_v49 = vadd.f32 %v4709_v63, %v1305_v2 }
 0x352   : > { %v5041_v19 = vmul.f32 0.16666667, %v1443_v34  ;;  %v1348_v27 = vadd.f32 3.0, %v1306_v49 }
 0x354   : > { %1562 = vst [vmem:[#allocation2 + $0x139] sm:$0xff] %v5041_v19  ;;  %v1380_v58 = vmax.f32 %v1348_v27, 0.0  ;;  %v2308_v59 = vmul.f32 %v3924_v8, %v5041_v19 }
 0x356   : > { %v1412_v25 = vmin.f32 %v1380_v58, 6.0 }
 0x357   : > { %v1308_v39 = vpop.f32.mrf.mxu3 }
 0x358   : > { %v1444_v31 = vmul.f32 %v1412_v25, %v1306_v49  ;;  %v1309_v46 = vadd.f32 %v4709_v63, %v1308_v39 }
 0x35a   : > { %v5045_v35 = vmul.f32 0.16666667, %v1444_v31  ;;  %v1349_v62 = vadd.f32 3.0, %v1309_v46 }
 0x35b   : > { %v2178_v24 = vld [vmem:[#allocation2 + $0x138] sm:$0xff] }
 0x35c   : > { %1563 = vst [vmem:[#allocation2 + $0x141] sm:$0xff] %v5045_v35  ;;  %v1381_v3 = vmax.f32 %v1349_v62, 0.0  ;;  %v2211_v11 = vmul.f32 %v3938_v50, %v2178_v24  ;;  %v2309_v38 = vmul.f32 %v3924_v8, %v5045_v35  ;;  %v1921_v12 = vmul.f32 %v2178_v24, %v3879_v55 }
 0x35e   : > { %v1413_v52 = vmin.f32 %v1381_v3, 6.0  ;;  %v2243_v6 = vadd.f32 %v2211_v11, %v5008_v15  ;;  %v3127_v15 = vld [vmem:[%s3224_s14 + $0x68] sm:$0xff]  ;;  %v1953_v3 = vadd.f32 %v1921_v12, %v5025_v56 }
 0x35f   : > { %v1310_v7 = vpop.f32.mrf.mxu3 }
 0x360   : > { %v1445_v23 = vmul.f32 %v1413_v52, %v1309_v46  ;;  %v1311_v45 = vadd.f32 %v4709_v63, %v1310_v7  ;;  %v2340_v41 = vadd.f32 %v2308_v59, %v2243_v6  ;;  %v2018_v7 = vmul.f32 %v3917_v43, %v5041_v19 }
 0x361   : > { %v2766_v13 = vpop.f32.mrf.mxu1 }
 0x362   : > { %v5049_v48 = vmul.f32 0.16666667, %v1445_v23  ;;  %v2767_v28 = vadd.f32 %v4953_v36, %v2766_v13  ;;  %v1350_v33 = vadd.f32 3.0, %v1311_v45 }
 0x363   : > { %v2179_v60 = vld [vmem:[#allocation2 + $0x140] sm:$0xff] }
 0x364   : > { %1564 = vst [vmem:[#allocation2 + $0x151] sm:$0xff] %v5049_v48  ;;  %v2828_v5 = vadd.f32 %v3126_v47, %v2767_v28  ;;  %v1382_v57 = vmax.f32 %v1350_v33, 0.0  ;;  %v5061_v61 = vld [vmem:[#allocation2 + $0x13a] sm:$0xff]  ;;  %v2212_v22 = vmul.f32 %v3938_v50, %v2179_v60  ;;  %v5067_v51 = vld [vmem:[#allocation2 + $0x142] sm:$0xff]  ;;  %v1922_v25 = vmul.f32 %v2179_v60, %v3879_v55  ;;  %v3128_v47 = vld [vmem:[%s3224_s14 + $0x70] sm:$0xff] }
 0x365   : > { %v2405_v0 = vmul.f32 %v3944_v14, %v5061_v61  ;;  %v2406_v49 = vmul.f32 %v3944_v14, %v5067_v51  ;;  %v2019_v33 = vmul.f32 %v3917_v43, %v5045_v35  ;;  %v2115_v56 = vmul.f32 %v5061_v61, %v3933_v44 }
 0x366   : > { %2860 = vst.msk [vmem:[%s4497_s25 + $0x60] sm:$0xff] %vm366_vm0, %v2828_v5  ;;  %v1414_v4 = vmin.f32 %v1382_v57, 6.0  ;;  %v2244_v54 = vadd.f32 %v2212_v22, %v5016_v37  ;;  %v1954_v52 = vadd.f32 %v1922_v25, %v5027_v32  ;;  %v1729_v32 = vmul.f32 %v3786_v29, %v5041_v19 }
 0x367   : > { %v1313_v21 = vpop.f32.mrf.mxu3  ;;  %v2437_v40 = vadd.f32 %v2405_v0, %v2340_v41  ;;  %v2116_v19 = vmul.f32 %v5067_v51, %v3933_v44  ;;  %v2310_v0 = vmul.f32 %v3924_v8, %v5049_v48 }
 0x368   : > { %v1446_v10 = vmul.f32 %v1414_v4, %v1311_v45  ;;  %v1314_v26 = vadd.f32 %v4709_v63, %v1313_v21  ;;  %v2341_v34 = vadd.f32 %v2309_v38, %v2244_v54  ;;  %v1633_v21 = vmul.f32 %v2179_v60, %v3784_v9 }
 0x369   : > { %v2768_v30 = vpop.f32.mrf.mxu1  ;;  %v2473_v58 = vadd.f32 %v4989_v42, %v2437_v40 }
 0x36a   : > { %v5063_v18 = vmul.f32 0.16666667, %v1446_v10  ;;  %v2769_v20 = vadd.f32 %v4953_v36, %v2768_v30  ;;  %v1351_v16 = vadd.f32 3.0, %v1314_v26  ;;  %v2438_v31 = vadd.f32 %v2406_v49, %v2341_v34 }
 0x36b   : > { %v2505_v62 = vadd.f32 3.0, %v2473_v58  ;;  %v2050_v10 = vadd.f32 %v2018_v7, %v1953_v3  ;;  %v1632_v30 = vmul.f32 %v2178_v24, %v3784_v9  ;;  %v1731_v34 = vmul.f32 %v3786_v29, %v5049_v48 }
 0x36c   : > { %1565 = vst [vmem:[#allocation2 + $0x159] sm:$0xff] %v5063_v18  ;;  %v2829_v1 = vadd.f32 %v3127_v15, %v2769_v20  ;;  %v1383_v53 = vmax.f32 %v1351_v16, 0.0  ;;  %v2474_v28 = vadd.f32 %v4989_v42, %v2438_v31  ;;  %v2180_v20 = vld [vmem:[#allocation2 + $0x150] sm:$0xff]  ;;  %v1730_v16 = vmul.f32 %v3786_v29, %v5045_v35 }
 0x36d   : > { %v2147_v41 = vadd.f32 %v2115_v56, %v2050_v10  ;;  %v2213_v60 = vmul.f32 %v3938_v50, %v2180_v20  ;;  %v1826_v35 = vmul.f32 %v5061_v61, %v3835_v17  ;;  %v3129_v61 = vld [vmem:[%s3224_s14 + $0x78] sm:$0xff] }
 0x36e   : > { %2861 = vst.msk [vmem:[%s4497_s25 + $0x68] sm:$0xff] %vm366_vm0, %v2829_v1  ;;  %v1415_v2 = vmin.f32 %v1383_v53, 6.0  ;;  %v2506_v4 = vadd.f32 3.0, %v2474_v28  ;;  %v1762_v1 = vadd.f32 %v1730_v16, %v1633_v21  ;;  %v1634_v53 = vmul.f32 %v2180_v20, %v3784_v9 }
 0x36f   : > { %v1315_v27 = vpop.f32.mrf.mxu3  ;;  %v2245_v12 = vadd.f32 %v2213_v60, %v2147_v41  ;;  %v2020_v60 = vmul.f32 %v3917_v43, %v5049_v48 }
 0x370   : > { %v1447_v39 = vmul.f32 %v1415_v2, %v1314_v26  ;;  %v1316_v37 = vadd.f32 %v4709_v63, %v1315_v27  ;;  %v2537_v63 = vmax.f32 %v2505_v62, 0.0  ;;  %v2051_v26 = vadd.f32 %v2019_v33, %v1954_v52 }
 0x371   : > { %v2771_v46 = vpop.f32.mrf.mxu1  ;;  %v2538_v59 = vmax.f32 %v2506_v4, 0.0  ;;  %v2342_v31 = vadd.f32 %v2310_v0, %v2245_v12  ;;  %v1923_v33 = vmul.f32 %v2180_v20, %v3879_v55 }
 0x372   : > { %v5088_v23 = vmul.f32 0.16666667, %v1447_v39  ;;  %v2772_v45 = vadd.f32 %v4953_v36, %v2771_v46  ;;  %v1352_v13 = vadd.f32 3.0, %v1316_v37  ;;  %v2569_v11 = vmin.f32 %v2537_v63, 6.0 }
 0x373   : > { %v2570_v24 = vmin.f32 %v2538_v59, 6.0  ;;  %v2148_v38 = vadd.f32 %v2116_v19, %v2051_v26  ;;  %v2181_v40 = vld [vmem:[#allocation2 + $0x158] sm:$0xff]  ;;  %v1827_v63 = vmul.f32 %v5067_v51, %v3835_v17  ;;  %v1732_v51 = vmul.f32 %v3786_v29, %v5063_v18 }
 0x374   : > { %1566 = vst [vmem:[#allocation2 + $0x169] sm:$0xff] %v5088_v23  ;;  %v2830_v5 = vadd.f32 %v3128_v47, %v2772_v45  ;;  %v1384_v57 = vmax.f32 %v1352_v13, 0.0  ;;  %v2601_v22 = vmul.f32 %v2569_v11, %v2473_v58  ;;  %v2374_v2 = vld [vmem:[#allocation2 + $0x152] sm:$0xff]  ;;  %v2214_v25 = vmul.f32 %v3938_v50, %v2181_v40  ;;  %v2375_v46 = vld [vmem:[#allocation2 + $0x15a] sm:$0xff] }
 0x375   : > { %v2602_v58 = vmul.f32 %v2570_v24, %v2474_v28  ;;  %v2407_v62 = vmul.f32 %v3944_v14, %v2374_v2  ;;  %v1763_v45 = vadd.f32 %v1731_v34, %v1634_v53  ;;  %v1761_v28 = vadd.f32 %v1729_v32, %v1632_v30 }
 0x376   : > { %2862 = vst.msk [vmem:[%s4497_s25 + $0x70] sm:$0xff] %vm366_vm0, %v2830_v5  ;;  %v1416_v6 = vmin.f32 %v1384_v57, 6.0  ;;  %v2633_v39 = vmul.f32 0.16666667, %v2601_v22  ;;  %v2246_v7 = vadd.f32 %v2214_v25, %v2148_v38  ;;  %v2408_v5 = vmul.f32 %v3944_v14, %v2375_v46 }
 0x377   : > { %v2634_v52 = vmul.f32 0.16666667, %v2602_v58  ;;  %v2439_v13 = vadd.f32 %v2407_v62, %v2342_v31  ;;  %v1858_v4 = vadd.f32 %v1826_v35, %v1761_v28  ;;  %v1859_v21 = vadd.f32 %v1827_v63, %v1762_v1 }
 0x378   : > { %v1448_v15 = vmul.f32 %v1416_v6, %v1316_v37  ;;  %v2311_v37 = vmul.f32 %v3924_v8, %v5063_v18  ;;  %v1924_v11 = vmul.f32 %v2181_v40, %v3879_v55  ;;  %v1635_v32 = vmul.f32 %v2181_v40, %v3784_v9 }
 0x379   : > { %v2773_v54 = vpop.f32.mrf.mxu1  ;;  %v2654_v56 = vpack.c.bf16 %v2634_v52, %v2633_v39  ;;  %v2475_v57 = vadd.f32 %v4989_v42, %v2439_v13  ;;  %v1828_v26 = vmul.f32 %v2374_v2, %v3835_v17  ;;  %v1955_v6 = vadd.f32 %v1923_v33, %v1858_v4 }
 0x37a   : > { %v5116_v49 = vmul.f32 0.16666667, %v1448_v15  ;;  %v2774_v27 = vadd.f32 %v4953_v36, %v2773_v54  ;;  %v2343_v47 = vadd.f32 %v2311_v37, %v2246_v7  ;;  %v1956_v59 = vadd.f32 %v1924_v11, %v1859_v21 }
 0x37b   : > { %2790 = vmatmul.bf16.gmra.mxu2 %v2654_v56  ;;  %v2507_v30 = vadd.f32 3.0, %v2475_v57  ;;  %v1764_v20 = vadd.f32 %v1732_v51, %v1635_v32  ;;  %v1829_v16 = vmul.f32 %v2375_v46, %v3835_v17  ;;  %v1860_v22 = vadd.f32 %v1828_v26, %v1763_v45  ;;  %v2182_v34 = vld [vmem:[#allocation2 + $0x168] sm:$0xff] }
 0x37c   : > { %1567 = vst [vmem:[#allocation2 + $0x171] sm:$0xff] %v5116_v49  ;;  %v2831_v3 = vadd.f32 %v3129_v61, %v2774_v27  ;;  %v2440_v10 = vadd.f32 %v2408_v5, %v2343_v47  ;;  %v2117_v0 = vmul.f32 %v2374_v2, %v3933_v44  ;;  %v2021_v1 = vmul.f32 %v3917_v43, %v5063_v18  ;;  %v3130_v27 = vld [vmem:[%s3224_s14 + $0x80] sm:$0xff] }
 0x37d   : > { %v2539_v41 = vmax.f32 %v2507_v30, 0.0  ;;  %v1861_v53 = vadd.f32 %v1829_v16, %v1764_v20  ;;  %v2052_v40 = vadd.f32 %v2020_v60, %v1955_v6  ;;  %v2118_v48 = vmul.f32 %v2375_v46, %v3933_v44 }
 0x37e   : > { %2863 = vst.msk [vmem:[%s4497_s25 + $0x78] sm:$0xff] %vm366_vm0, %v2831_v3  ;;  %v2476_v19 = vadd.f32 %v4989_v42, %v2440_v10  ;;  %v2053_v35 = vadd.f32 %v2021_v1, %v1956_v59  ;;  %v2215_v2 = vmul.f32 %v3938_v50, %v2182_v34  ;;  %v1925_v18 = vmul.f32 %v2182_v34, %v3879_v55 }
 0x37f   : > { %v2571_v38 = vmin.f32 %v2539_v41, 6.0  ;;  %v2149_v25 = vadd.f32 %v2117_v0, %v2052_v40  ;;  %v1636_v31 = vmul.f32 %v2182_v34, %v3784_v9  ;;  %v2312_v3 = vmul.f32 %v3924_v8, %v5088_v23 }
 0x380   : > { %v2508_v24 = vadd.f32 3.0, %v2476_v19  ;;  %v1733_v46 = vmul.f32 %v3786_v29, %v5088_v23  ;;  %v2150_v45 = vadd.f32 %v2118_v48, %v2053_v35  ;;  %v1957_v56 = vadd.f32 %v1925_v18, %v1860_v22 }
 0x381   : > { %v2603_v37 = vmul.f32 %v2571_v38, %v2475_v57  ;;  %v2247_v61 = vadd.f32 %v2215_v2, %v2149_v25  ;;  %v2022_v47 = vmul.f32 %v3917_v43, %v5088_v23  ;;  %v2313_v10 = vmul.f32 %v3924_v8, %v5116_v49 }
 0x382   : > { %v2540_v12 = vmax.f32 %v2508_v24, 0.0  ;;  %v1765_v5 = vadd.f32 %v1733_v46, %v1636_v31  ;;  %v1734_v0 = vmul.f32 %v3786_v29, %v5116_v49 }
 0x383   : > { %v2776_v15 = vpop.f32.mrf.mxu2  ;;  %v2183_v62 = vld [vmem:[#allocation2 + $0x170] sm:$0xff]  ;;  %v2344_v63 = vadd.f32 %v2312_v3, %v2247_v61  ;;  %v2635_v4 = vmul.f32 0.16666667, %v2603_v37  ;;  %v2054_v26 = vadd.f32 %v2022_v47, %v1957_v56 }
 0x384   : > { %v2777_v54 = vadd.f32 %v4953_v36, %v2776_v15  ;;  %v2572_v39 = vmin.f32 %v2540_v12, 6.0  ;;  %v2376_v52 = vld [vmem:[#allocation2 + $0x16a] sm:$0xff]  ;;  %v2216_v13 = vmul.f32 %v3938_v50, %v2183_v62  ;;  %v2377_v33 = vld [vmem:[#allocation2 + $0x172] sm:$0xff]  ;;  %v1926_v16 = vmul.f32 %v2183_v62, %v3879_v55 }
 0x385   : > { %v2409_v28 = vmul.f32 %v3944_v14, %v2376_v52  ;;  %v2410_v59 = vmul.f32 %v3944_v14, %v2377_v33  ;;  %v2119_v22 = vmul.f32 %v2376_v52, %v3933_v44  ;;  %v1637_v60 = vmul.f32 %v2183_v62, %v3784_v9  ;;  %v3132_v37 = vld [vmem:[%s3224_s14 + $0x90] sm:$0xff] }
 0x386   : > { %v2832_v58 = vadd.f32 %v3130_v27, %v2777_v54  ;;  %v2604_v7 = vmul.f32 %v2572_v39, %v2476_v19  ;;  %v2248_v11 = vadd.f32 %v2216_v13, %v2150_v45  ;;  %v3131_v19 = vld [vmem:[%s3224_s14 + $0x88] sm:$0xff]  ;;  %v1830_v15 = vmul.f32 %v2376_v52, %v3835_v17  ;;  %v3133_v45 = vld [vmem:[%s3224_s14 + $0x98] sm:$0xff] }
 0x387   : > { %v2441_v51 = vadd.f32 %v2409_v28, %v2344_v63  ;;  %v1958_v1 = vadd.f32 %v1926_v16, %v1861_v53  ;;  %v2023_v54 = vmul.f32 %v3917_v43, %v5116_v49  ;;  %v5176_v38 = vadd.f32 %v2119_v22, %v2054_v26 }
 0x388   : > { %2864 = vst.msk [vmem:[%s4497_s25 + $0x80] sm:$0xff] %vm366_vm0, %v2832_v58  ;;  %v2636_v21 = vmul.f32 0.16666667, %v2604_v7  ;;  %v2345_v6 = vadd.f32 %v2313_v10, %v2248_v11  ;;  %v1766_v12 = vadd.f32 %v1734_v0, %v1637_v60  ;;  %v1831_v9 = vmul.f32 %v2377_v33, %v3835_v17  ;;  %v3136_v11 = vld [vmem:[%s5275_s4] ss:$0 sm:$0xff] }
 0x389   : > { %v2477_v23 = vadd.f32 %v4989_v42, %v2441_v51  ;;  %v5180_v35 = vadd.f32 %v1830_v15, %v1765_v5  ;;  %v2055_v34 = vadd.f32 %v2023_v54, %v1958_v1  ;;  %v2120_v27 = vmul.f32 %v2377_v33, %v3933_v44  ;;  %v3134_v33 = vld [vmem:[%s3224_s14 + $0xa0] sm:$0xff] }
 0x38a   : > { %v2655_v30 = vpack.c.bf16 %v2636_v21, %v2635_v4  ;;  %v2442_v41 = vadd.f32 %v2410_v59, %v2345_v6  ;;  %v5183_v48 = vadd.f32 %v1831_v9, %v1766_v12 }
 0x38b   : > { %v2778_v57 = vpop.f32.mrf.mxu2  ;;  %v2509_v24 = vadd.f32 3.0, %v2477_v23  ;;  %v2152_v2 = vadd.f32 %v2120_v27, %v2055_v34 }
 0x38c   : > { %v2779_v32 = vadd.f32 %v4953_v36, %v2778_v57  ;;  %2795 = vmatmul.bf16.gmra.mxu2 %v2655_v30  ;;  %v2478_v40 = vadd.f32 %v4989_v42, %v2442_v41  ;;  %v3135_v57 = vld [vmem:[%s3224_s14 + $0xa8] sm:$0xff] }
 0x38d   : > { %v2541_v29 = vmax.f32 %v2509_v24, 0.0 }
 0x38e   : > { %v2833_v20 = vadd.f32 %v3131_v19, %v2779_v32  ;;  %v2510_v53 = vadd.f32 3.0, %v2478_v40 }
 0x38f   : > { %v2573_v25 = vmin.f32 %v2541_v29, 6.0 }
 0x390   : > { %2865 = vst.msk [vmem:[%s4497_s25 + $0x88] sm:$0xff] %vm366_vm0, %v2833_v20  ;;  %v2542_v39 = vmax.f32 %v2510_v53, 0.0 }
 0x391   : > { %v2605_v31 = vmul.f32 %v2573_v25, %v2477_v23 }
 0x392   : > { %v2574_v18 = vmin.f32 %v2542_v39, 6.0 }
 0x393   : > { %v2781_v58 = vpop.f32.mrf.mxu2  ;;  %v2637_v3 = vmul.f32 0.16666667, %v2605_v31 }
 0x394   : > { %v2782_v49 = vadd.f32 %v4953_v36, %v2781_v58  ;;  %v2606_v62 = vmul.f32 %v2574_v18, %v2478_v40 }
 0x396   : > { %v2834_v17 = vadd.f32 %v3132_v37, %v2782_v49  ;;  %v2638_v52 = vmul.f32 0.16666667, %v2606_v62 }
 0x398   : > { %2866 = vst.msk [vmem:[%s4497_s25 + $0x90] sm:$0xff] %vm366_vm0, %v2834_v17  ;;  %v2656_v7 = vpack.c.bf16 %v2638_v52, %v2637_v3 }
 0x39b   : > { %v2783_v61 = vpop.f32.mrf.mxu2 }
 0x39c   : > { %v2784_v46 = vadd.f32 %v4953_v36, %v2783_v61  ;;  %2800 = vmatmul.bf16.gmra.mxu2 %v2656_v7  ;;  %v3137_v7 = vld [vmem:[#allocation2] sm:$0xff] }
 0x39e   : > { %v2835_v13 = vadd.f32 %v3133_v45, %v2784_v46  ;;  %v2219_v45 = vmul.f32 %v3137_v7, %v3938_v50  ;;  %v3143_v7 = vld [vmem:[%s3224_s14 + $0xd8] sm:$0xff] }
 0x3a0   : > { %2867 = vst.msk [vmem:[%s4497_s25 + $0x98] sm:$0xff] %vm366_vm0, %v2835_v13 }
 0x3a3   : > { %v2786_v28 = vpop.f32.mrf.mxu2 }
 0x3a4   : > { %v2787_v63 = vadd.f32 %v4953_v36, %v2786_v28 }
 0x3a6   : > { %v2836_v56 = vadd.f32 %v3134_v33, %v2787_v63  ;;  %v2283_v63 = vld [vmem:[#allocation2 + $0x199] sm:$0xff] }
 0x3a8   : > { %2868 = vst.msk [vmem:[%s4497_s25 + $0xa0] sm:$0xff] %vm366_vm0, %v2836_v56 }
 0x3ab   : > { %v2788_v47 = vpop.f32.mrf.mxu2 }
 0x3ac   : > { %v2789_v5 = vadd.f32 %v4953_v36, %v2788_v47  ;;  %v2316_v47 = vmul.f32 %v3924_v8, %v2283_v63  ;;  %v3144_v63 = vld [vmem:[%s3224_s14 + $0xe0] sm:$0xff] }
 0x3ae   : > { %v2837_v4 = vadd.f32 %v3135_v57, %v2789_v5 }
 0x3b0   : > { %2869 = vst.msk [vmem:[%s4497_s25 + $0xa8] sm:$0xff] %vm366_vm0, %v2837_v4  ;;  %v2380_v4 = vld [vmem:[#allocation2 + $0x19a] sm:$0xff] }
 0x3ca   : > { %v1318_v21 = vpop.f32.mrf.mxu3 }
 0x3cb   : > { %v1319_v10 = vadd.f32 %v3136_v11, %v1318_v21 }
 0x3cd   : > { %v1353_v32 = vadd.f32 3.0, %v1319_v10 }
 0x3cf   : > { %v1385_v51 = vmax.f32 %v1353_v32, 0.0 }
 0x3d1   : > { %v1417_v26 = vmin.f32 %v1385_v51, 6.0 }
 0x3d2   : > { %v1320_v30 = vpop.f32.mrf.mxu3 }
 0x3d3   : > { %v1449_v6 = vmul.f32 %v1417_v26, %v1319_v10  ;;  %v1321_v59 = vadd.f32 %v3136_v11, %v1320_v30  ;;  %v2413_v10 = vmul.f32 %v3944_v14, %v2380_v4 }
 0x3d5   : > { %v1481_v19 = vmul.f32 0.16666667, %v1449_v6  ;;  %v1354_v20 = vadd.f32 3.0, %v1321_v59 }
 0x3d7   : > { %1568 = vst [vmem:[#allocation2 + $0x181] sm:$0xff] %v1481_v19  ;;  %v1386_v23 = vmax.f32 %v1354_v20, 0.0  ;;  %v2314_v54 = vmul.f32 %v3924_v8, %v1481_v19  ;;  %v2024_v17 = vmul.f32 %v3917_v43, %v1481_v19 }
 0x3d9   : > { %v1418_v16 = vmin.f32 %v1386_v23, 6.0 }
 0x3db   : > { %v1450_v22 = vmul.f32 %v1418_v16, %v1321_v59 }
 0x3dd   : > { %v1482_v41 = vmul.f32 0.16666667, %v1450_v22 }
 0x3de   : > { %v2184_v60 = vld [vmem:[#allocation2 + $0x180] sm:$0xff] }
 0x3df   : > { %1569 = vst [vmem:[#allocation2 + $0x189] sm:$0xff] %v1482_v41  ;;  %v2217_v24 = vmul.f32 %v3938_v50, %v2184_v60  ;;  %v1927_v12 = vmul.f32 %v2184_v60, %v3879_v55  ;;  %v2315_v34 = vmul.f32 %v3924_v8, %v1482_v41  ;;  %v2025_v46 = vmul.f32 %v3917_v43, %v1482_v41  ;;  %v2381_v43 = vld [vmem:[#allocation2 + $0x1a2] sm:$0xff] }
 0x3e0   : > { %v2414_v30 = vmul.f32 %v3944_v14, %v2381_v43 }
 0x3e1   : > { %v2249_v9 = vadd.f32 %v2217_v24, %v5176_v38  ;;  %v1959_v25 = vadd.f32 %v1927_v12, %v5180_v35 }
 0x3e3   : > { %v2346_v58 = vadd.f32 %v2314_v54, %v2249_v9 }
 0x3e6   : > { %v2185_v0 = vld [vmem:[#allocation2 + $0x188] sm:$0xff] }
 0x3e7   : > { %v2378_v15 = vld [vmem:[#allocation2 + $0x182] sm:$0xff]  ;;  %v2218_v1 = vmul.f32 %v3938_v50, %v2185_v0  ;;  %v2379_v40 = vld [vmem:[#allocation2 + $0x18a] sm:$0xff]  ;;  %v1928_v38 = vmul.f32 %v2185_v0, %v3879_v55 }
 0x3e8   : > { %v2411_v27 = vmul.f32 %v3944_v14, %v2378_v15  ;;  %v2412_v49 = vmul.f32 %v3944_v14, %v2379_v40  ;;  %v2121_v62 = vmul.f32 %v2378_v15, %v3933_v44  ;;  %v2122_v56 = vmul.f32 %v2379_v40, %v3933_v44 }
 0x3e9   : > { %v2250_v29 = vadd.f32 %v2218_v1, %v2152_v2  ;;  %v2056_v2 = vadd.f32 %v2024_v17, %v1959_v25  ;;  %v1960_v52 = vadd.f32 %v1928_v38, %v5183_v48  ;;  %v2284_v48 = vld [vmem:[#allocation2 + $0x1a1] sm:$0xff]  ;;  %v3138_v1 = vld [vmem:[%s3224_s14 + $0xb0] sm:$0xff] }
 0x3ea   : > { %v2443_v39 = vadd.f32 %v2411_v27, %v2346_v58  ;;  %v2317_v51 = vmul.f32 %v3924_v8, %v2284_v48  ;;  %v3141_v38 = vld [vmem:[%s3224_s14 + $0xc8] sm:$0xff] }
 0x3eb   : > { %v2347_v53 = vadd.f32 %v2315_v34, %v2250_v29  ;;  %v2153_v35 = vadd.f32 %v2121_v62, %v2056_v2  ;;  %v2057_v33 = vadd.f32 %v2025_v46, %v1960_v52 }
 0x3ec   : > { %v2479_v18 = vadd.f32 %v4989_v42, %v2443_v39 }
 0x3ed   : > { %v2444_v37 = vadd.f32 %v2412_v49, %v2347_v53  ;;  %v2251_v55 = vadd.f32 %v2219_v45, %v2153_v35  ;;  %v2154_v21 = vadd.f32 %v2122_v56, %v2057_v33  ;;  %v3139_v53 = vld [vmem:[%s3224_s14 + $0xb8] sm:$0xff] }
 0x3ee   : > { %v2511_v61 = vadd.f32 3.0, %v2479_v18 }
 0x3ef   : > { %v2480_v31 = vadd.f32 %v4989_v42, %v2444_v37  ;;  %v2348_v11 = vadd.f32 %v2316_v47, %v2251_v55  ;;  %v2252_v26 = vadd.f32 %v2219_v45, %v2154_v21  ;;  %v3140_v37 = vld [vmem:[%s3224_s14 + $0xc0] sm:$0xff]  ;;  %v3145_v47 = vld [vmem:[%s3224_s14 + $0xe8] sm:$0xff]  ;;  %v3146_v21 = vld [vmem:[%s3224_s14 + $0xf0] sm:$0xff] }
 0x3f0   : > { %v2543_v13 = vmax.f32 %v2511_v61, 0.0 }
 0x3f1   : > { %v2512_v3 = vadd.f32 3.0, %v2480_v31  ;;  %v2445_v44 = vadd.f32 %v2413_v10, %v2348_v11  ;;  %v2349_v19 = vadd.f32 %v2317_v51, %v2252_v26  ;;  %v3147_v10 = vld [vmem:[%s3224_s14 + $0xf8] sm:$0xff] }
 0x3f2   : > { %v2575_v5 = vmin.f32 %v2543_v13, 6.0 }
 0x3f3   : > { %v2544_v28 = vmax.f32 %v2512_v3, 0.0  ;;  %v2481_v20 = vadd.f32 %v4989_v42, %v2445_v44  ;;  %v2446_v16 = vadd.f32 %v2414_v30, %v2349_v19  ;;  %v3142_v3 = vld [vmem:[%s3224_s14 + $0xd0] sm:$0xff] }
 0x3f4   : > { %v2607_v32 = vmul.f32 %v2575_v5, %v2479_v18 }
 0x3f5   : > { %v2576_v57 = vmin.f32 %v2544_v28, 6.0  ;;  %v2513_v22 = vadd.f32 3.0, %v2481_v20  ;;  %v2482_v41 = vadd.f32 %v4989_v42, %v2446_v16 }
 0x3f6   : > { %v2639_v6 = vmul.f32 0.16666667, %v2607_v32 }
 0x3f7   : > { %v2608_v50 = vmul.f32 %v2576_v57, %v2480_v31  ;;  %v2545_v60 = vmax.f32 %v2513_v22, 0.0  ;;  %v2514_v0 = vadd.f32 3.0, %v2482_v41 }
 0x3f9   : > { %v2640_v59 = vmul.f32 0.16666667, %v2608_v50  ;;  %v2577_v8 = vmin.f32 %v2545_v60, 6.0  ;;  %v2546_v24 = vmax.f32 %v2514_v0, 0.0 }
 0x3fb   : > { %v2657_v23 = vpack.c.bf16 %v2640_v59, %v2639_v6  ;;  %v2578_v40 = vmin.f32 %v2546_v24, 6.0  ;;  %v2609_v12 = vmul.f32 %v2577_v8, %v2481_v20 }
 0x3fd   : > { %2805 = vmatmul.bf16.gmra.mxu2 %v2657_v23  ;;  %v2610_v9 = vmul.f32 %v2578_v40, %v2482_v41  ;;  %v2641_v29 = vmul.f32 0.16666667, %v2609_v12 }
 0x3fe   : > { %v2791_v15 = vpop.f32.mrf.mxu2 }
 0x3ff   : > { %v2792_v14 = vadd.f32 %v4953_v36, %v2791_v15  ;;  %v2642_v42 = vmul.f32 0.16666667, %v2610_v9 }
 0x401   : > { %v2838_v54 = vadd.f32 %v3138_v1, %v2792_v14  ;;  %v2658_v58 = vpack.c.bf16 %v2642_v42, %v2641_v29 }
 0x403   : > { %2870 = vst.msk [vmem:[%s4497_s25 + $0xb0] sm:$0xff] %vm366_vm0, %v2838_v54 }
 0x406   : > { %v2793_v34 = vpop.f32.mrf.mxu2 }
 0x407   : > { %v2794_v27 = vadd.f32 %v4953_v36, %v2793_v34 }
 0x409   : > { %v2839_v49 = vadd.f32 %v3139_v53, %v2794_v27 }
 0x40b   : > { %2871 = vst.msk [vmem:[%s4497_s25 + $0xb8] sm:$0xff] %vm366_vm0, %v2839_v49 }
 0x40d   : > { %2810 = vmatmul.bf16.gmra.mxu2 %v2658_v58 }
 0x40f   : > { %v2796_v25 = vpop.f32.mrf.mxu2 }
 0x410   : > { %v2797_v39 = vadd.f32 %v4953_v36, %v2796_v25 }
 0x412   : > { %v2840_v17 = vadd.f32 %v3140_v37, %v2797_v39 }
 0x414   : > { %2872 = vst.msk [vmem:[%s4497_s25 + $0xc0] sm:$0xff] %vm366_vm0, %v2840_v17 }
 0x417   : > { %v2798_v18 = vpop.f32.mrf.mxu2 }
 0x418   : > { %v2799_v31 = vadd.f32 %v4953_v36, %v2798_v18 }
 0x41a   : > { %v2841_v2 = vadd.f32 %v3141_v38, %v2799_v31 }
 0x41c   : > { %2873 = vst.msk [vmem:[%s4497_s25 + $0xc8] sm:$0xff] %vm366_vm0, %v2841_v2 }
 0x41f   : > { %v2801_v62 = vpop.f32.mrf.mxu2 }
 0x420   : > { %v2802_v61 = vadd.f32 %v4953_v36, %v2801_v62 }
 0x422   : > { %v2842_v52 = vadd.f32 %v3142_v3, %v2802_v61 }
 0x424   : > { %2874 = vst.msk [vmem:[%s4497_s25 + $0xd0] sm:$0xff] %vm366_vm0, %v2842_v52 }
 0x427   : > { %v2803_v46 = vpop.f32.mrf.mxu2 }
 0x428   : > { %v2804_v35 = vadd.f32 %v4953_v36, %v2803_v46 }
 0x42a   : > { %v2843_v45 = vadd.f32 %v3143_v7, %v2804_v35 }
 0x42c   : > { %2875 = vst.msk [vmem:[%s4497_s25 + $0xd8] sm:$0xff] %vm366_vm0, %v2843_v45 }
 0x480   : > { %v2806_v13 = vpop.f32.mrf.mxu2 }
 0x481   : > { %v2807_v28 = vadd.f32 %v4953_v36, %v2806_v13 }
 0x483   : > { %v2844_v33 = vadd.f32 %v3144_v63, %v2807_v28 }
 0x485   : > { %2876 = vst.msk [vmem:[%s4497_s25 + $0xe0] sm:$0xff] %vm366_vm0, %v2844_v33 }
 0x488   : > { %v2808_v56 = vpop.f32.mrf.mxu2 }
 0x489   : > { %v2809_v55 = vadd.f32 %v4953_v36, %v2808_v56 }
 0x48b   : > { %v2845_v5 = vadd.f32 %v3145_v47, %v2809_v55 }
 0x48d   : > { %2877 = vst.msk [vmem:[%s4497_s25 + $0xe8] sm:$0xff] %vm366_vm0, %v2845_v5 }
 0x490   : > { %v2811_v57 = vpop.f32.mrf.mxu2 }
 0x491   : > { %v2812_v4 = vadd.f32 %v4953_v36, %v2811_v57 }
 0x493   : > { %v2846_v48 = vadd.f32 %v3146_v21, %v2812_v4 }
 0x495   : > { %2878 = vst.msk [vmem:[%s4497_s25 + $0xf0] sm:$0xff] %vm366_vm0, %v2846_v48 }
 0x498   : > { %v2813_v11 = vpop.f32.mrf.mxu2 }
 0x499   : > { %v2814_v43 = vadd.f32 %v4953_v36, %v2813_v11 }
 0x49b   : > { %v2847_v32 = vadd.f32 %v3147_v10, %v2814_v43 }
 0x49d   : > { %2879 = vst.msk [vmem:[%s4497_s25 + $0xf8] sm:$0xff] %vm366_vm0, %v2847_v32 }
 0x49e PF: > { %s19_s30 = sadd.s32 1, %s3154_s30  }
 0x49f   : > { %p16_p4 = scmp.ge.s32.totalorder %s19_s30, 4  }
 0x4a1   :  { %18 = sbr.rel (!%p16_p4) target bundleno = 1 (0x1), region = 88 }

// kernel: block_cross.4
= control target key start
LH: loop header
LB: loop body
LE: loop exit
PB: predicated region body
PF: predicated region fallthrough
CT: control target
= control target key end

     0   :  { %s8256_s0 = inlined_call_operand.vmem [shape: f32[2,256,32], index: 0, kind: input, shape index: {}]   ;;  %s8257_s1 = inlined_call_operand.vmem [shape: f32[2,10,10,32], index: 1, kind: input, shape index: {}]   ;;  %s8258_s2 = inlined_call_operand.vmem [shape: f32[2,6,6,32], index: 2, kind: input, shape index: {}]   ;;  %s8259_s3 = inlined_call_operand.vmem [shape: f32[2,4,4,32], index: 3, kind: input, shape index: {}]   ;;  %s8260_s4 = inlined_call_operand.vmem [shape: f32[2,3,3,32], index: 4, kind: input, shape index: {}]   ;;  %s8261_s5 = inlined_call_operand.vmem [shape: f32[3,3,32], index: 5, kind: input, shape index: {}]   ;;  %s8262_s6 = inlined_call_operand.vmem [shape: f32[3,3,32], index: 6, kind: input, shape index: {}]   ;;  %s8263_s7 = inlined_call_operand.vmem [shape: f32[3,3,32], index: 7, kind: input, shape index: {}]   ;;  %s8264_s8 = inlined_call_operand.vmem [shape: f32[3,3,32], index: 8, kind: input, shape index: {}]   ;;  %s8265_s9 = inlined_call_operand.vmem [shape: f32[1,1,32], index: 9, kind: input, shape index: {}]   ;;  %s8266_s10 = inlined_call_operand.vmem [shape: f32[1,1,32], index: 10, kind: input, shape index: {}]   ;;  %s8267_s11 = inlined_call_operand.vmem [shape: f32[1,1,32], index: 11, kind: input, shape index: {}]   ;;  %s8268_s12 = inlined_call_operand.vmem [shape: f32[1,1,32], index: 12, kind: input, shape index: {}]   ;;  %s8269_s13 = inlined_call_operand.vmem [shape: f32[1,32], index: 13, kind: input, shape index: {}]   ;;  %s8270_s14 = inlined_call_operand.vmem [shape: f32[1,32], index: 14, kind: input, shape index: {}]   ;;  %s8271_s15 = inlined_call_operand.vmem [shape: f32[1,32], index: 15, kind: input, shape index: {}]   ;;  %s8272_s16 = inlined_call_operand.vmem [shape: f32[1,32], index: 16, kind: input, shape index: {}]   ;;  %s8273_s17 = inlined_call_operand.vmem [shape: bf16[2,32,16], index: 17, kind: input, shape index: {}]   ;;  %s8274_s18 = inlined_call_operand.vmem [shape: bf16[2,2,32,16], index: 18, kind: input, shape index: {}]   ;;  %s8275_s19 = inlined_call_operand.vmem [shape: bf16[2,16,32], index: 19, kind: input, shape index: {}]   ;;  %s8276_s20 = inlined_call_operand.vmem [shape: f32[1,32], index: 20, kind: input, shape index: {}]   ;;  %s8277_s21 = inlined_call_operand.vmem [shape: f32[2,256,32], index: 21, kind: output, shape index: {}]  }
   0x1   :  { %8309 = sst [smem:[#allocation20_spill]] %s8256_s0 }
   0x2   :  { %8310 = sst [smem:[#allocation21_spill]] %s8257_s1 }
   0x3   :  { %8311 = sst [smem:[#allocation22_spill]] %s8258_s2  ;;  %s5656_s2 = smov 0  }
   0x4   :  { %8312 = sst [smem:[#allocation23_spill]] %s8259_s3 }
   0x5   :  { %8313 = sst [smem:[#allocation24_spill]] %s8260_s4 }
   0x6   :  { %8314 = sst [smem:[#allocation25_spill]] %s8261_s5 }
   0x7 LB: > { %s4788_s25 = sadd.s32 4294967295, %s5541_s2   ;;  %p4792_p0 = scmp.ge.s32.totalorder %s5541_s2, 1  ;;  %s5541_s2 = sphi %s5656_s2, %s31_s2  }
   0x8   : > { %p627_p1 = scmp.lt.s32.totalorder %s5541_s2, 3 }
   0xa   : > { %p628_p2 = pnand %p4792_p0, %p627_p1 }
   0xc   : > { %631 = sbr.rel (%p628_p2) target bundleno = 2170 (0x87a), region = 104 }
  0x11   : > { %p707_p3 = scmp.lt.s32.totalorder %s4788_s25, 1  ;;  %s8315_s3 = sld [smem:[#allocation25_spill]]  ;;  %vm738_vm0 = vcmask 261120   ;;  %vm1238_vm2 = vcmask 257024   ;;  %vm1290_vm3 = vcmask 253952   ;;  %vm744_vm4 = vcmask 256000  }
  0x12   : > { %s8316_s1 = sld [smem:[#allocation20_spill]] }
  0x13   : > { %s8418_s25 = smov (!%p707_p3, %s4788_s25), 1  ;;  %s8317_s28 = sld [smem:[#allocation21_spill]] }
  0x14   : > { %s5096_s30 = sshll.u32 %s8418_s25, 8  ;;  %s5123_s5 = smul.u32 160, %s8418_s25 }
  0x15   : > { %s8319_s0 = sld [smem:[#allocation23_spill]] }
  0x17   : > { %v746_v0 = vld [vmem:[%s8315_s3] sm:$0x7]  ;;  %v747_v1 = vld [vmem:[%s8315_s3 + $0x4] sm:$0x7]  ;;  %v748_v2 = vld [vmem:[%s8315_s3 + $0x8] sm:$0x7] }
  0x18   : > { %v5675_v3 = vperm.slane %v746_v0, 0  ;;  %v5677_v4 = vperm.slane %v746_v0, 1  ;;  %v5679_v5 = vperm.slane %v746_v0, 2  ;;  %s5688_s24 = scalar_lea.vmem %s8316_s1, %s5096_s30  ;;  %v5701_v8 = vperm.slane %v747_v1, 0  ;;  %s8318_s1 = sld [smem:[#allocation22_spill]] }
  0x19   : > { %s5693_s29 = scalar_lea.vmem %s8317_s28, %s5123_s5  ;;  %v5696_v6 = vld [vmem:[%s5688_s24 + $0xf0] sm:$0xff]  ;;  %v5699_v7 = vld [vmem:[%s5688_s24 + $0xf8] sm:$0xff]  ;;  %v5703_v9 = vperm.slane %v748_v2, 0  ;;  %v5714_v14 = vperm.slane %v747_v1, 1  ;;  %v5716_v15 = vperm.slane %v747_v1, 2  ;;  %v5729_v21 = vperm.slane %v748_v2, 1 }
  0x1a   : > { %v1837_v10 = vsel %vm738_vm0, %v5696_v6, 0.0  ;;  %v751_v11 = vld [vmem:[%s5693_s29 + $0x20] sm:$0xff]  ;;  %v5724_v19 = vld [vmem:[%s5693_s29 + $0x30] sm:$0xff]  ;;  %v5735_v24 = vperm.slane %v748_v2, 2  ;;  %v1840_v25 = vsel %vm738_vm0, %v5699_v7, 0.0  ;;  %s5124_s5 = smul.u32 48, %s8418_s25 }
  0x1b   : > { %v5709_v12 = vld [vmem:[%s5693_s29 + $0x21] sm:$0xff]  ;;  %1838 = vadd.xlane.f32.xlu0 %v1837_v10  ;;  %v760_v16 = vmul.f32 %v5675_v3, %v751_v11  ;;  %v5727_v20 = vld [vmem:[%s5693_s29 + $0x31] sm:$0xff]  ;;  %v836_v27 = vmul.f32 %v5724_v19, %v5701_v8  ;;  %v910_v31 = vmul.f32 %v5703_v9, %v751_v11  ;;  %v761_v46 = vmul.f32 %v5724_v19, %v5675_v3  ;;  %s8320_s28 = sld [smem:[#allocation24_spill]] }
  0x1c   : > { %v5712_v13 = vld [vmem:[%s5693_s29 + $0x22] sm:$0xff]  ;;  %v785_v17 = vmul.f32 %v5677_v4, %v5709_v12  ;;  %v5732_v22 = vld [vmem:[%s5693_s29 + $0x32] sm:$0xff]  ;;  %v861_v32 = vmul.f32 %v5727_v20, %v5714_v14  ;;  %v935_v43 = vmul.f32 %v5729_v21, %v5709_v12  ;;  %v786_v47 = vmul.f32 %v5727_v20, %v5677_v4 }
  0x1d   : > { %v810_v18 = vmul.f32 %v5679_v5, %v5712_v13  ;;  %v4828_v23 = vld [vmem:[%s5693_s29 + $0x40] sm:$0xff]  ;;  %v4802_v38 = vld [vmem:[%s5693_s29 + $0x10] sm:$0xff]  ;;  %v886_v40 = vmul.f32 %v5732_v22, %v5716_v15  ;;  %v811_v48 = vmul.f32 %v5732_v22, %v5679_v5  ;;  %v960_v10 = vmul.f32 %v5735_v24, %v5712_v13 }
  0x1e   : > { %v793_v26 = vadd.f32 %v785_v17, %v760_v16  ;;  %v749_v28 = vld [vmem:[%s5693_s29] sm:$0xff]  ;;  %v834_v41 = vmul.f32 %v4802_v38, %v5701_v8  ;;  %v5759_v42 = vld [vmem:[%s5693_s29 + $0x11] sm:$0xff]  ;;  %v912_v50 = vmul.f32 %v4828_v23, %v5703_v9  ;;  %v794_v55 = vadd.f32 %v786_v47, %v761_v46  ;;  %s5915_s26 = scalar_lea.vmem %s8318_s1, %s5124_s5  ;;  %s5097_s1 = sshll.u32 %s8418_s25, 4 }
  0x1f   : > { %v774_v29 = vld [vmem:[%s5693_s29 + $0x1] sm:$0xff]  ;;  %v758_v35 = vmul.f32 %v5675_v3, %v749_v28  ;;  %v4818_v45 = vld [vmem:[%s5693_s29 + $0x12] sm:$0xff]  ;;  %v859_v54 = vmul.f32 %v5759_v42, %v5714_v14  ;;  %v837_v56 = vmul.f32 %v4828_v23, %v5701_v8  ;;  %v759_v60 = vmul.f32 %v4802_v38, %v5675_v3  ;;  %s6046_s4 = scalar_lea.vmem %s8319_s0, %s5097_s1 }
  0x20   : > { %v799_v30 = vld [vmem:[%s5693_s29 + $0x2] sm:$0xff]  ;;  %v783_v36 = vmul.f32 %v5677_v4, %v774_v29  ;;  %v818_v39 = vadd.f32 %v810_v18, %v793_v26  ;;  %v884_v58 = vmul.f32 %v4818_v45, %v5716_v15  ;;  %v5779_v59 = vld [vmem:[%s5693_s29 + $0x50] sm:$0xff]  ;;  %v784_v61 = vmul.f32 %v5759_v42, %v5677_v4 }
  0x21   : > { %v5748_v33 = vld [vmem:[%s5693_s29 + $0x41] sm:$0xff]  ;;  %v808_v37 = vmul.f32 %v5679_v5, %v799_v30  ;;  %v819_v63 = vadd.f32 %v811_v48, %v794_v55  ;;  %v809_v1 = vmul.f32 %v4818_v45, %v5679_v5  ;;  %v835_v17 = vmul.f32 %v5701_v8, %v751_v11  ;;  %v5794_v28 = vld [vmem:[%s5693_s29 + $0x51] sm:$0xff] }
  0x22   : > { %v4844_v34 = vld [vmem:[%s5693_s29 + $0x42] sm:$0xff]  ;;  %v791_v44 = vadd.f32 %v783_v36, %v758_v35  ;;  %v844_v49 = vadd.f32 %v836_v27, %v818_v39  ;;  %v937_v51 = vmul.f32 %v5748_v33, %v5729_v21  ;;  %v862_v0 = vmul.f32 %v5748_v33, %v5714_v14  ;;  %v5800_v38 = vld [vmem:[%s5693_s29 + $0x52] sm:$0xff] }
  0x23   : > { %v962_v52 = vmul.f32 %v4844_v34, %v5735_v24  ;;  %1841 = vadd.xlane.f32.xlu0 %v1840_v25  ;;  %v792_v16 = vadd.f32 %v784_v61, %v759_v60  ;;  %v845_v25 = vadd.f32 %v837_v56, %v819_v63  ;;  %v887_v26 = vmul.f32 %v4844_v34, %v5716_v15 }
  0x24   : > { %v816_v53 = vadd.f32 %v808_v37, %v791_v44  ;;  %v869_v57 = vadd.f32 %v861_v32, %v844_v49  ;;  %v913_v27 = vmul.f32 %v5779_v59, %v5703_v9  ;;  %v860_v32 = vmul.f32 %v5714_v14, %v5709_v12 }
  0x25   : > { %v817_v30 = vadd.f32 %v809_v1, %v792_v16  ;;  %v762_v35 = vmul.f32 %v4828_v23, %v5675_v3  ;;  %v870_v37 = vadd.f32 %v862_v0, %v845_v25  ;;  %v787_v11 = vmul.f32 %v5748_v33, %v5677_v4  ;;  %v5832_v1 = vld [vmem:[%s5693_s29 + $0x61] sm:$0xff] }
  0x26   : > { %v842_v62 = vadd.f32 %v834_v41, %v816_v53  ;;  %v894_v2 = vadd.f32 %v886_v40, %v869_v57  ;;  %v812_v39 = vmul.f32 %v4844_v34, %v5679_v5  ;;  %v5808_v41 = vld [vmem:[%s8265_s9] ss:$0 sm:$0xff]  ;;  %v938_v44 = vmul.f32 %v5794_v28, %v5729_v21  ;;  %v4846_v25 = vld [vmem:[%s5693_s29 + $0x62] sm:$0xff] }
  0x27   : > { %v843_v45 = vadd.f32 %v835_v17, %v817_v30  ;;  %v885_v23 = vmul.f32 %v5716_v15, %v5712_v13  ;;  %v895_v47 = vadd.f32 %v887_v26, %v870_v37  ;;  %v795_v48 = vadd.f32 %v787_v11, %v762_v35 }
  0x28   : > { %v867_v18 = vadd.f32 %v859_v54, %v842_v62  ;;  %v920_v29 = vadd.f32 %v912_v50, %v894_v2  ;;  %v838_v34 = vmul.f32 %v5779_v59, %v5701_v8  ;;  %v963_v50 = vmul.f32 %v5800_v38, %v5735_v24 }
  0x29   : > { %v911_v53 = vmul.f32 %v5724_v19, %v5703_v9  ;;  %v921_v55 = vadd.f32 %v913_v27, %v895_v47  ;;  %v820_v56 = vadd.f32 %v812_v39, %v795_v48  ;;  %v863_v13 = vmul.f32 %v5794_v28, %v5714_v14 }
  0x2a   : > { %v892_v36 = vadd.f32 %v884_v58, %v867_v18  ;;  %v945_v40 = vadd.f32 %v937_v51, %v920_v29  ;;  %v868_v51 = vadd.f32 %v860_v32, %v843_v45  ;;  %v4830_v58 = vld [vmem:[%s5693_s29 + $0x60] sm:$0xff]  ;;  %v888_v19 = vmul.f32 %v5800_v38, %v5716_v15 }
  0x2b   : > { %v946_v61 = vadd.f32 %v938_v44, %v921_v55  ;;  %v846_v62 = vadd.f32 %v838_v34, %v820_v56  ;;  %v961_v0 = vmul.f32 %v5732_v22, %v5735_v24  ;;  %v914_v18 = vmul.f32 %v4830_v58, %v5703_v9 }
  0x2c   : > { %v918_v46 = vadd.f32 %v910_v31, %v892_v36  ;;  %v970_v49 = vadd.f32 %v962_v52, %v945_v40  ;;  %v893_v57 = vadd.f32 %v885_v23, %v868_v51  ;;  %v936_v52 = vmul.f32 %v5727_v20, %v5729_v21 }
  0x2d   : > { %v971_v16 = vadd.f32 %v963_v50, %v946_v61  ;;  %v871_v17 = vadd.f32 %v863_v13, %v846_v62  ;;  %v939_v22 = vmul.f32 %v5832_v1, %v5729_v21  ;;  %v964_v35 = vmul.f32 %v4846_v25, %v5735_v24 }
  0x2e   : > { %v943_v54 = vadd.f32 %v935_v43, %v918_v46  ;;  %v982_v31 = vadd.f32 %v5808_v41, %v970_v49  ;;  %v919_v63 = vadd.f32 %v911_v53, %v893_v57  ;;  %v763_v50 = vmul.f32 %v5779_v59, %v5675_v3 }
  0x2f   : > { %v896_v27 = vadd.f32 %v888_v19, %v871_v17  ;;  %v788_v51 = vmul.f32 %v5794_v28, %v5677_v4  ;;  %v839_v56 = vmul.f32 %v4830_v58, %v5701_v8  ;;  %v5543_v57 = vmov 32.0  }
  0x30   : > { %v968_v60 = vadd.f32 %v960_v10, %v943_v54  ;;  %v990_v43 = vadd.f32 %v5727_v20, %v982_v31  ;;  %v944_v10 = vadd.f32 %v936_v52, %v919_v63  ;;  %v983_v20 = vadd.f32 %v5808_v41, %v971_v16  ;;  %v4839_v63 = vld [vmem:[%s5693_s29 + $0x71] sm:$0xff] }
  0x31   : > { %v922_v32 = vadd.f32 %v914_v18, %v896_v27  ;;  %v796_v53 = vadd.f32 %v788_v51, %v763_v50  ;;  %v813_v54 = vmul.f32 %v5800_v38, %v5679_v5  ;;  %v864_v31 = vmul.f32 %v5832_v1, %v5714_v14  ;;  %v4831_v38 = vld [vmem:[%s5693_s29 + $0x70] sm:$0xff] }
  0x32   : > { %v980_v2 = vadd.f32 %v5808_v41, %v968_v60  ;;  %998 = vst.msk [vmem:[#allocation2 + $0x10] sm:$0xff] %vm738_vm0, %v990_v43  ;;  %v969_v29 = vadd.f32 %v961_v0, %v944_v10  ;;  %v991_v30 = vadd.f32 %v5748_v33, %v983_v20  ;;  %5145 = vrcp.f32 %v5543_v57  ;;  %v4847_v18 = vld [vmem:[%s5693_s29 + $0x72] sm:$0xff] }
  0x33   : > { %v947_v37 = vadd.f32 %v939_v22, %v922_v32  ;;  %v821_v55 = vadd.f32 %v813_v54, %v796_v53  ;;  %v889_v59 = vmul.f32 %v4846_v25, %v5716_v15  ;;  %v789_v60 = vmul.f32 %v5832_v1, %v5677_v4  ;;  %v4832_v32 = vld [vmem:[%s5693_s29 + $0x80] sm:$0xff]  ;;  %v1009_v57 = vld [vmem:[%s5915_s26 + $0x10] sm:$0xf] }
  0x34   : > { %v988_v26 = vadd.f32 %v5759_v42, %v980_v2  ;;  %v981_v36 = vadd.f32 %v5808_v41, %v969_v29  ;;  %999 = vst.msk [vmem:[#allocation2 + $0x18] sm:$0xff] %vm738_vm0, %v991_v30  ;;  %v915_v62 = vmul.f32 %v4831_v38, %v5703_v9  ;;  %v814_v43 = vmul.f32 %v4846_v25, %v5679_v5  ;;  %v1004_v54 = vld [vmem:[%s8262_s6] sm:$0x7] }
  0x35   : > { %v972_v39 = vadd.f32 %v964_v35, %v947_v37  ;;  %v847_v13 = vadd.f32 %v839_v56, %v821_v55  ;;  %v940_v2 = vmul.f32 %v4839_v63, %v5729_v21  ;;  %v840_v17 = vmul.f32 %v4831_v38, %v5701_v8 }
  0x36   : > { %996 = vst.msk [vmem:[#allocation2] sm:$0xff] %vm738_vm0, %v988_v26  ;;  %v989_v42 = vadd.f32 %v981_v36, %v5709_v12  ;;  %v965_v26 = vmul.f32 %v4847_v18, %v5735_v24  ;;  %v865_v27 = vmul.f32 %v4839_v63, %v5714_v14  ;;  %v890_v30 = vmul.f32 %v4847_v18, %v5716_v15 }
  0x37   : > { %v984_v33 = vadd.f32 %v5808_v41, %v972_v39  ;;  %v872_v52 = vadd.f32 %v864_v31, %v847_v13  ;;  %v916_v37 = vmul.f32 %v4832_v32, %v5703_v9  ;;  %v1011_v56 = vperm.slane %v1004_v54, 0 }
  0x38   : > { %997 = vst.msk [vmem:[#allocation2 + $0x8] sm:$0xff] %vm738_vm0, %v989_v42  ;;  %v5899_v42 = vld [vmem:[%s5693_s29 + $0x81] sm:$0xff]  ;;  %v1024_v13 = vperm.slane %v1004_v54, 1 }
  0x39   : > { %v5848_v11 = vld [vmem:[#allocation2 + $0x10] sm:$0xff]  ;;  %v992_v23 = vadd.f32 %v5794_v28, %v984_v33  ;;  %v764_v28 = vmul.f32 %v4830_v58, %v5675_v3  ;;  %v897_v61 = vadd.f32 %v889_v59, %v872_v52  ;;  %v5146_v58 = vpop.eup %5145  ;;  %v765_v59 = vmul.f32 %v4831_v38, %v5675_v3  ;;  %v1035_v3 = vld [vmem:[%s5915_s26 + $0x12] sm:$0xf] }
  0x3a   : > { %v1314_v40 = vsel %vm738_vm0, %v5848_v11, 0.0  ;;  %v1357_v22 = vmul.f32 32.0, %v5146_v58  ;;  %vm1361_vm1 = vweird.f32 %v5146_v58  ;;  %v1010_v52 = vld [vmem:[%s5915_s26 + $0x18] sm:$0xf] }
  0x3b   : > { %1315 = vadd.xlane.f32.xlu2 %v1314_v40  ;;  %v5859_v12 = vld [vmem:[#allocation2 + $0x18] sm:$0xff]  ;;  %1000 = vst.msk [vmem:[#allocation2 + $0x20] sm:$0xff] %vm738_vm0, %v992_v23  ;;  %v797_v19 = vadd.f32 %v789_v60, %v764_v28  ;;  %v923_v0 = vadd.f32 %v915_v62, %v897_v61  ;;  %v790_v28 = vmul.f32 %v4839_v63, %v5677_v4  ;;  %v1022_v62 = vld [vmem:[%s5915_s26 + $0x11] sm:$0xf]  ;;  %v1036_v38 = vld [vmem:[%s5915_s26 + $0x1a] sm:$0xf] }
  0x3c   : > { %v1317_v46 = vsel %vm738_vm0, %v5859_v12, 0.0  ;;  %v1358_v39 = vsub.f32 1.0, %v1357_v22  ;;  %v5905_v23 = vld [vmem:[%s5693_s29 + $0x82] sm:$0xff]  ;;  %v1014_v60 = vmul.f32 %v1011_v56, %v1009_v57  ;;  %v1015_v61 = vmul.f32 %v1011_v56, %v1010_v52 }
  0x3d   : > { %v5854_v44 = vld [vmem:[#allocation2] sm:$0xff]  ;;  %v822_v16 = vadd.f32 %v814_v43, %v797_v19  ;;  %v948_v10 = vadd.f32 %v940_v2, %v923_v0  ;;  %v1023_v19 = vld [vmem:[%s5915_s26 + $0x19] sm:$0xf]  ;;  %v1007_v43 = vld [vmem:[%s5915_s26] sm:$0xf]  ;;  %v798_v4 = vadd.f32 %v790_v28, %v765_v59 }
  0x3e   : > { %v1308_v45 = vsel %vm738_vm0, %v5854_v44, 0.0  ;;  %v1005_v2 = vld [vmem:[%s8262_s6 + $0x4] sm:$0x7] }
  0x3f   : > { %1309 = vadd.xlane.f32.xlu1 %v1308_v45  ;;  %v5864_v47 = vld [vmem:[#allocation2 + $0x8] sm:$0xff]  ;;  %v848_v20 = vadd.f32 %v840_v17, %v822_v16  ;;  %v973_v25 = vadd.f32 %v965_v26, %v948_v10  ;;  %v941_v45 = vmul.f32 %v5899_v42, %v5729_v21  ;;  %v1027_v16 = vmul.f32 %v1024_v13, %v1022_v62 }
  0x40   : > { %v1311_v48 = vsel %vm738_vm0, %v5864_v47, 0.0  ;;  %v1028_v17 = vmul.f32 %v1024_v13, %v1023_v19  ;;  %v5942_v10 = vperm.slane %v1004_v54, 2  ;;  %v5944_v26 = vperm.slane %v1005_v2, 0  ;;  %v4833_v62 = vld [vmem:[%s5693_s29 + $0x90] sm:$0xff] }
  0x41   : > { %v873_v29 = vadd.f32 %v865_v27, %v848_v20  ;;  %v985_v35 = vadd.f32 %v5808_v41, %v973_v25  ;;  %v1008_v20 = vld [vmem:[%s5915_s26 + $0x8] sm:$0xf]  ;;  %v1031_v27 = vadd.f32 %v1027_v16, %v1014_v60  ;;  %v4852_v25 = vld [vmem:[%s5915_s26 + $0x18] sm:$0xf]  ;;  %v5974_v57 = vperm.slane %v1005_v2, 2 }
  0x42   : > { %v5868_v34 = vld [vmem:[#allocation2 + $0x20] sm:$0xff]  ;;  %v1032_v22 = vadd.f32 %v1028_v17, %v1015_v61  ;;  %v4861_v61 = vld [vmem:[%s5915_s26 + $0x22] sm:$0xf] }
  0x43   : > { %1318 = vadd.xlane.f32.xlu2 %v1317_v46  ;;  %v1320_v49 = vsel %vm738_vm0, %v5868_v34, 0.0  ;;  %v898_v36 = vadd.f32 %v890_v30, %v873_v29  ;;  %v993_v40 = vadd.f32 %v5832_v1, %v985_v35  ;;  %v4853_v29 = vld [vmem:[%s5915_s26 + $0x20] sm:$0xf]  ;;  %v1012_v30 = vmul.f32 %v1011_v56, %v1007_v43 }
  0x44   : > { %v1013_v35 = vmul.f32 %v1011_v56, %v1008_v20  ;;  %v4860_v56 = vld [vmem:[%s5915_s26 + $0x1a] sm:$0xf]  ;;  %v1081_v43 = vmul.f32 %v4861_v61, %v5974_v57  ;;  %v4864_v16 = vld [vmem:[%s5915_s26 + $0x20] sm:$0xf] }
  0x45   : > { %v924_v33 = vadd.f32 %v916_v37, %v898_v36  ;;  %1001 = vst.msk [vmem:[#allocation2 + $0x28] sm:$0xff] %vm738_vm0, %v993_v40  ;;  %v841_v37 = vmul.f32 %v4832_v32, %v5701_v8  ;;  %v1054_v40 = vmul.f32 %v4852_v25, %v5944_v26  ;;  %v866_v32 = vmul.f32 %v5899_v42, %v5714_v14 }
  0x46   : > { %v891_v14 = vmul.f32 %v5905_v23, %v5716_v15  ;;  %v1080_v19 = vmul.f32 %v4860_v56, %v5974_v57  ;;  %v917_v15 = vmul.f32 %v4833_v62, %v5703_v9  ;;  %v4851_v56 = vld [vmem:[%s5915_s26 + $0x10] sm:$0xf]  ;;  %v6021_v62 = vld [vmem:[%s8266_s10] ss:$0 sm:$0xff] }
  0x47   : > { %1312 = vadd.xlane.f32.xlu1 %v1311_v48  ;;  %v949_v46 = vadd.f32 %v941_v45, %v924_v33  ;;  %v966_v48 = vmul.f32 %v5905_v23, %v5735_v24  ;;  %v1055_v33 = vmul.f32 %v4853_v29, %v5944_v26  ;;  %v5957_v45 = vld [vmem:[%s5915_s26 + $0x19] sm:$0xf] }
  0x49   : > { %v974_v50 = vadd.f32 %v966_v48, %v949_v46  ;;  %v5960_v46 = vld [vmem:[%s5915_s26 + $0x21] sm:$0xf]  ;;  %v5962_v48 = vperm.slane %v1005_v2, 1  ;;  %v4865_v2 = vld [vmem:[%s5915_s26 + $0x28] sm:$0xf] }
  0x4b   : > { %1321 = vadd.xlane.f32.xlu2 %v1320_v49  ;;  %v1359_v49 = vmul.f32 %v5146_v58, %v1358_v39  ;;  %v986_v51 = vadd.f32 %v5808_v41, %v974_v50  ;;  %v1040_v39 = vmul.f32 %v5942_v10, %v1035_v3  ;;  %v1068_v54 = vmul.f32 %v5960_v46, %v5962_v48 }
  0x4c   : > { %v5920_v55 = vld [vmem:[#allocation2 + $0x28] sm:$0xff] }
  0x4d   : > { %v1360_v1 = vadd.f32 %v5146_v58, %v1359_v49  ;;  %v994_v53 = vadd.f32 %v4839_v63, %v986_v51  ;;  %v5924_v31 = vsel %vm738_vm0, %v5920_v55, 0.0  ;;  %v815_v63 = vmul.f32 %v4847_v18, %v5679_v5  ;;  %v1021_v18 = vld [vmem:[%s5915_s26 + $0x9] sm:$0xf] }
  0x4e   : > { %v1041_v5 = vmul.f32 %v5942_v10, %v1036_v38  ;;  %v1044_v50 = vadd.f32 %v1040_v39, %v1031_v27  ;;  %v1026_v52 = vmul.f32 %v1024_v13, %v1021_v18  ;;  %v4868_v27 = vld [vmem:[%s5915_s26 + $0x21] sm:$0xf]  ;;  %v1034_v39 = vld [vmem:[%s5915_s26 + $0xa] sm:$0xf]  ;;  %v4849_v18 = vld [vmem:[%s5693_s29 + $0x92] sm:$0xff] }
  0x4f   : > { %1002 = vst.msk [vmem:[#allocation2 + $0x30] sm:$0xff] %vm738_vm0, %v994_v53  ;;  %v5934_v0 = vsel %vm1361_vm1, %v5146_v58, %v1360_v1  ;;  %v1020_v58 = vld [vmem:[%s5915_s26 + $0x1] sm:$0xf]  ;;  %v823_v36 = vadd.f32 %v815_v63, %v798_v4  ;;  %v1006_v1 = vld [vmem:[%s8262_s6 + $0x8] sm:$0x7]  ;;  %v1067_v53 = vmul.f32 %v5957_v45, %v5962_v48  ;;  %v4841_v63 = vld [vmem:[%s5693_s29 + $0x91] sm:$0xff] }
  0x50   : > { %v1025_v49 = vmul.f32 %v1024_v13, %v1020_v58  ;;  %v1045_v51 = vadd.f32 %v1041_v5, %v1032_v22  ;;  %v1058_v28 = vadd.f32 %v1054_v40, %v1044_v50  ;;  %v5984_v17 = vperm.slane %v1006_v1, 0  ;;  %v1033_v4 = vld [vmem:[%s5915_s26 + $0x2] sm:$0xf]  ;;  %v4869_v22 = vld [vmem:[%s5915_s26 + $0x29] sm:$0xf]  ;;  %s5125_s29 = smul.u32 12, %s8418_s25 }
  0x51   : > { %v849_v8 = vadd.f32 %v841_v37, %v823_v36  ;;  %v5993_v25 = vperm.slane %v1006_v1, 1  ;;  %v1030_v29 = vadd.f32 %v1026_v52, %v1013_v35  ;;  %v942_v36 = vmul.f32 %v4841_v63, %v5729_v21 }
  0x52   : > { %v1059_v60 = vadd.f32 %v1055_v33, %v1045_v51  ;;  %v1029_v13 = vadd.f32 %v1025_v49, %v1012_v30  ;;  %v1071_v23 = vadd.f32 %v1067_v53, %v1058_v28  ;;  %v1094_v20 = vmul.f32 %v4864_v16, %v5984_v17  ;;  %v4872_v49 = vld [vmem:[%s5915_s26 + $0x22] sm:$0xf]  ;;  %v6013_v28 = vld [vmem:[%s5915_s26 + $0x9] sm:$0xf]  ;;  %s6097_s0 = scalar_lea.vmem %s8320_s28, %s5125_s29 }
  0x53   : > { %v874_v59 = vadd.f32 %v866_v32, %v849_v8  ;;  %v1095_v58 = vmul.f32 %v4865_v2, %v5984_v17  ;;  %v1107_v40 = vmul.f32 %v4868_v27, %v5993_v25  ;;  %v1108_v33 = vmul.f32 %v4869_v22, %v5993_v25  ;;  %v4873_v8 = vld [vmem:[%s5915_s26 + $0x2a] sm:$0xf]  ;;  %v4863_v22 = vld [vmem:[%s5915_s26 + $0x18] sm:$0xf] }
  0x54   : > { %v1072_v38 = vadd.f32 %v1068_v54, %v1059_v60  ;;  %v1084_v9 = vadd.f32 %v1080_v19, %v1071_v23  ;;  %v6002_v32 = vperm.slane %v1006_v1, 2  ;;  %v1038_v35 = vmul.f32 %v5942_v10, %v1033_v4  ;;  %v4850_v54 = vld [vmem:[%s5915_s26 + $0x8] sm:$0xf]  ;;  %v4859_v4 = vld [vmem:[%s5915_s26 + $0x12] sm:$0xf] }
  0x55   : > { %v899_v3 = vadd.f32 %v891_v14, %v874_v59  ;;  %v967_v51 = vmul.f32 %v4849_v18, %v5735_v24  ;;  %v1039_v1 = vmul.f32 %v5942_v10, %v1034_v39  ;;  %v1052_v2 = vmul.f32 %v4850_v54, %v5944_v26 }
  0x56   : > { %v1085_v37 = vadd.f32 %v1081_v43, %v1072_v38  ;;  %v1098_v53 = vadd.f32 %v1094_v20, %v1084_v9  ;;  %v1120_v59 = vmul.f32 %v4872_v49, %v6002_v32  ;;  %v1121_v14 = vmul.f32 %v4873_v8, %v6002_v32  ;;  %v6024_v43 = vld [vmem:[%s5915_s26 + $0x11] sm:$0xf] }
  0x57   : > { %v925_v30 = vadd.f32 %v917_v15, %v899_v3  ;;  %v1042_v19 = vadd.f32 %v1038_v35, %v1029_v13  ;;  %v1043_v10 = vadd.f32 %v1039_v1, %v1030_v29  ;;  %v4858_v3 = vld [vmem:[%s5915_s26 + $0xa] sm:$0xf]  ;;  %v1065_v13 = vmul.f32 %v6013_v28, %v5962_v48  ;;  %v4866_v9 = vld [vmem:[%s5915_s26 + $0x11] sm:$0xf]  ;;  %v1165_v1 = vld [vmem:[%s6046_s4 + $0x1] sm:$0x3] }
  0x58   : > { %v1099_v52 = vadd.f32 %v1095_v58, %v1085_v37  ;;  %v1111_v24 = vadd.f32 %v1107_v40, %v1098_v53  ;;  %v1066_v27 = vmul.f32 %v6024_v43, %v5962_v48  ;;  %v1079_v18 = vmul.f32 %v4859_v4, %v5974_v57  ;;  %v4870_v40 = vld [vmem:[%s5915_s26 + $0x12] sm:$0xf] }
  0x59   : > { %v950_v50 = vadd.f32 %v942_v36, %v925_v30  ;;  %v1056_v20 = vadd.f32 %v1052_v2, %v1042_v19  ;;  %v1078_v36 = vmul.f32 %v4858_v3, %v5974_v57  ;;  %v1155_v57 = vld [vmem:[%s8263_s7] sm:$0x7]  ;;  %v1105_v54 = vmul.f32 %v4866_v9, %v5993_v25  ;;  %v6104_v9 = vld [vmem:[%s6046_s4 + $0x9] sm:$0x3] }
  0x5a   : > { %v1112_v16 = vadd.f32 %v1108_v33, %v1099_v52  ;;  %v1124_v38 = vadd.f32 %v1120_v59, %v1111_v24  ;;  %v4871_v33 = vld [vmem:[%s5915_s26 + $0x1a] sm:$0xf]  ;;  %v1172_v2 = vld [vmem:[%s6046_s4 + $0x2] sm:$0x3] }
  0x5b   : > { %v975_v61 = vadd.f32 %v967_v51, %v950_v50  ;;  %v1069_v39 = vadd.f32 %v1065_v13, %v1056_v20 }
  0x5c   : > { %v1125_v63 = vadd.f32 %v1121_v14, %v1112_v16  ;;  %v1132_v30 = vadd.f32 %v6021_v62, %v1124_v38  ;;  %v1119_v14 = vmul.f32 %v4871_v33, %v6002_v32  ;;  %v1160_v16 = vperm.slane %v1155_v57, 0 }
  0x5d   : > { %v987_v23 = vadd.f32 %v5808_v41, %v975_v61  ;;  %v1082_v51 = vadd.f32 %v1078_v36, %v1069_v39  ;;  %v1166_v61 = vld [vmem:[%s6046_s4 + $0x5] sm:$0x3]  ;;  %v1157_v39 = vld [vmem:[%s8263_s7 + $0x8] sm:$0x7] }
  0x5e   : > { %v1133_v37 = vadd.f32 %v6021_v62, %v1125_v63  ;;  %v1136_v8 = vadd.f32 %v5957_v45, %v1132_v30  ;;  %v6069_v45 = vld [vmem:[%s8263_s7 + $0x4] sm:$0x7] }
  0x5f   : > { %v995_v41 = vadd.f32 %v5899_v42, %v987_v23  ;;  %v4867_v42 = vld [vmem:[%s5915_s26 + $0x19] sm:$0xf]  ;;  %v1182_v3 = vperm.slane %v6069_v45, 0  ;;  %v4874_v63 = vld [vmem:[%s6046_s4 + $0x4] sm:$0x3] }
  0x60   : > { %v1137_v50 = vadd.f32 %v5960_v46, %v1133_v37  ;;  %1146 = vst [vmem:[#allocation1 + $0x10] ss:$2 sm:$0xff] %v1136_v8  ;;  %v1106_v59 = vmul.f32 %v4867_v42, %v5993_v25  ;;  %v1118_v46 = vmul.f32 %v4870_v40, %v6002_v32  ;;  %v1174_v25 = vperm.slane %v1155_v57, 2  ;;  %v6101_v36 = vld [vmem:[%s6046_s4 + $0x5] sm:$0x3] }
  0x61   : > { %1003 = vst.msk [vmem:[#allocation2 + $0x38] sm:$0xff] %vm738_vm0, %v995_v41  ;;  %v1189_v32 = vperm.slane %v6069_v45, 1  ;;  %v4878_v42 = vld [vmem:[%s6046_s4 + $0x6] sm:$0x3]  ;;  %v4879_v8 = vld [vmem:[%s6046_s4 + $0xa] sm:$0x3] }
  0x62   : > { %1148 = vst [vmem:[#allocation1 + $0x11] ss:$2 sm:$0xff] %v1137_v50 }
  0x8e   : > { %v1839_v5 = vpop.xlane.xlu0 %1838 }
  0x8f   : > { %v1873_v21 = vmul.f32 %v1839_v5, %v5934_v0 }
  0x91   : > { %v6016_v60 = vsub.f32 %v5696_v6, %v1873_v21  ;;  %v1053_v6 = vmul.f32 %v4851_v56, %v5944_v26  ;;  %v4862_v26 = vld [vmem:[%s5915_s26 + $0x10] sm:$0xf]  ;;  %v1093_v21 = vmul.f32 %v4863_v22, %v5984_v17  ;;  %v1158_v56 = vld [vmem:[%s6046_s4] sm:$0x3]  ;;  %v4875_v22 = vld [vmem:[%s6046_s4 + $0x8] sm:$0x3] }
  0x92   : > { %v1092_v35 = vmul.f32 %v4862_v26, %v5984_v17  ;;  %v1159_v17 = vld [vmem:[%s6046_s4 + $0x4] sm:$0x3]  ;;  %v1161_v13 = vmul.f32 %v1160_v16, %v1158_v56  ;;  %v1175_v26 = vmul.f32 %v1174_v25, %v1172_v2  ;;  %v1218_v2 = vperm.slane %v1157_v39, 2 }
  0x93   : > { %v1937_v15 = vmul.f32 %v6016_v60, %v6016_v60  ;;  %v1057_v58 = vadd.f32 %v1053_v6, %v1043_v10  ;;  %v1167_v10 = vperm.slane %v1155_v57, 1  ;;  %v1173_v6 = vld [vmem:[%s6046_s4 + $0x6] sm:$0x3]  ;;  %v1162_v4 = vmul.f32 %v1160_v16, %v1159_v17  ;;  %v1150_v57 = vld.sshfl [vmem:[#allocation1 + $0x10] sm:$0xff pattern:$0x75316420] }
  0x94   : > { %v1096_v24 = vadd.f32 %v1092_v35, %v1082_v51  ;;  %v1176_v30 = vmul.f32 %v1174_v25, %v1173_v6  ;;  %v1240_v35 = vld [vmem:[%s8264_s8] sm:$0x7]  ;;  %1154 = vst.msk [vmem:[#allocation2 + $0x48] sm:$0xff] %vm738_vm0, %v1150_v57  ;;  %v4883_v16 = vld [vmem:[%s6046_s4 + $0xd] sm:$0x3] }
  0x95   : > { %v2029_v29 = vsel %vm738_vm0, %v1937_v15, 0.0  ;;  %v1070_v5 = vadd.f32 %v1066_v27, %v1057_v58  ;;  %v6087_v15 = vld [vmem:[#allocation2 + $0x30] sm:$0xff]  ;;  %v1168_v58 = vmul.f32 %v1167_v10, %v1165_v1  ;;  %v1169_v27 = vmul.f32 %v1167_v10, %v1166_v61  ;;  %v5139_v57 = vld [vmem:[%s8267_s11] ss:$0 sm:$0xff] }
  0x96   : > { %2030 = vadd.xlane.f32.xlu0 %v2029_v29  ;;  %v1842_v48 = vpop.xlane.xlu0 %1841  ;;  %v1109_v23 = vadd.f32 %v1105_v54, %v1096_v24  ;;  %v1326_v37 = vsel %vm738_vm0, %v6087_v15, 0.0  ;;  %v1191_v54 = vmul.f32 %v6104_v9, %v1189_v32  ;;  %v1211_v10 = vperm.slane %v1157_v39, 1 }
  0x97   : > { %v1874_v49 = vmul.f32 %v1842_v48, %v5934_v0  ;;  %v1083_v53 = vadd.f32 %v1079_v18, %v1070_v5  ;;  %v1196_v48 = vperm.slane %v6069_v45, 2  ;;  %v1171_v5 = vadd.f32 %v1169_v27, %v1162_v4  ;;  %v1246_v45 = vld [vmem:[%s6097_s0 + $0x1] sm:$0x1]  ;;  %v4884_v4 = vld [vmem:[%s6046_s4 + $0xa] sm:$0x3] }
  0x98   : > { %v1122_v29 = vadd.f32 %v1118_v46, %v1109_v23  ;;  %v1183_v18 = vmul.f32 %v4874_v63, %v1182_v3  ;;  %v4881_v46 = vld [vmem:[%s6046_s4 + $0xc] sm:$0x3]  ;;  %v1252_v23 = vld [vmem:[%s6097_s0 + $0x2] sm:$0x1]  ;;  %v4885_v63 = vld [vmem:[%s6046_s4 + $0xe] sm:$0x3] }
  0x99   : > { %v6074_v52 = vsub.f32 %v5699_v7, %v1874_v49  ;;  %v1097_v19 = vadd.f32 %v1093_v21, %v1083_v53  ;;  %v1184_v49 = vmul.f32 %v4875_v22, %v1182_v3  ;;  %v1243_v21 = vld [vmem:[%s6097_s0] sm:$0x1]  ;;  %v1178_v51 = vadd.f32 %v1176_v30, %v1171_v5 }
  0x9a   : > { %v1130_v40 = vadd.f32 %v6021_v62, %v1122_v29  ;;  %v1190_v53 = vmul.f32 %v6101_v36, %v1189_v32  ;;  %v1197_v17 = vmul.f32 %v4878_v42, %v1196_v48  ;;  %v1198_v24 = vmul.f32 %v4879_v8, %v1196_v48  ;;  %v6138_v29 = vld [vmem:[%s6097_s0 + $0x5] sm:$0x1] }
  0x9b   : > { %v1938_v7 = vmul.f32 %v6074_v52, %v6074_v52  ;;  %v1110_v38 = vadd.f32 %v1106_v59, %v1097_v19  ;;  %v4880_v59 = vld [vmem:[%s6046_s4 + $0x8] sm:$0x3]  ;;  %v1186_v61 = vadd.f32 %v1184_v49, %v1178_v51  ;;  %v1213_v22 = vmul.f32 %v4883_v16, %v1211_v10  ;;  %v4891_v16 = vld [vmem:[%s6097_s0 + $0xa] sm:$0x1] }
  0x9c   : > { %v4882_v19 = vld [vmem:[%s6046_s4 + $0x9] sm:$0x3]  ;;  %v1220_v42 = vmul.f32 %v4885_v63, %v1218_v2 }
  0x9d   : > { %v2032_v20 = vsel %vm738_vm0, %v1938_v7, 0.0  ;;  %v1123_v41 = vadd.f32 %v1119_v14, %v1110_v38  ;;  %v1204_v14 = vperm.slane %v1157_v39, 0  ;;  %v1248_v7 = vrot.slane %v1240_v35, 1  ;;  %v4886_v38 = vld [vmem:[%s6097_s0 + $0x4] sm:$0x1] }
  0x9e   : > { %1324 = vadd.xlane.f32.xlu0 %v5924_v31  ;;  %2033 = vadd.xlane.f32.xlu1 %v2032_v20  ;;  %v1170_v31 = vadd.f32 %v1168_v58, %v1161_v13  ;;  %v1193_v25 = vadd.f32 %v1191_v54, %v1186_v61  ;;  %v1212_v13 = vmul.f32 %v4882_v19, %v1211_v10  ;;  %v1253_v58 = vrot.slane %v1240_v35, 2 }
  0x9f   : > { %v1131_v33 = vadd.f32 %v6021_v62, %v1123_v41  ;;  %v1134_v62 = vadd.f32 %v6013_v28, %v1130_v40  ;;  %v1241_v28 = vld [vmem:[%s8264_s8 + $0x4] sm:$0x7]  ;;  %v1205_v3 = vmul.f32 %v4880_v59, %v1204_v14  ;;  %v1206_v32 = vmul.f32 %v4881_v46, %v1204_v14  ;;  %v1242_v40 = vld [vmem:[%s8264_s8 + $0x8] sm:$0x7] }
  0xa0   : > { %v1177_v50 = vadd.f32 %v1175_v26, %v1170_v31  ;;  %v1250_v20 = vmul.f32 %v1248_v7, %v1246_v45  ;;  %v1200_v26 = vadd.f32 %v1198_v24, %v1193_v25  ;;  %v1263_v41 = vrot.slane %v1241_v28, 1  ;;  %v4890_v59 = vld [vmem:[%s6097_s0 + $0x9] sm:$0x1] }
  0xa1   : > { %v1135_v56 = vadd.f32 %v6024_v43, %v1131_v33  ;;  %1142 = vst [vmem:[#allocation1] ss:$2 sm:$0xff] %v1134_v62  ;;  %v1244_v43 = vmul.f32 %v1243_v21, %v1240_v35  ;;  %v1255_v48 = vmul.f32 %v1253_v58, %v1252_v23  ;;  %v1259_v39 = vmul.f32 %v4886_v38, %v1241_v28  ;;  %v4888_v33 = vld [vmem:[%s6097_s0 + $0x6] sm:$0x1] }
  0xa2   : > { %v1185_v1 = vadd.f32 %v1183_v18, %v1177_v50  ;;  %v1268_v31 = vrot.slane %v1241_v28, 2  ;;  %v1208_v18 = vadd.f32 %v1206_v32, %v1200_v26  ;;  %v1265_v8 = vmul.f32 %v6138_v29, %v1263_v41  ;;  %v4889_v50 = vld [vmem:[%s6097_s0 + $0x8] sm:$0x1]  ;;  %s8099_s0 = scalar_lea.vmem %s8277_s21, %s5096_s30 }
  0xa3   : > { %1144 = vst [vmem:[#allocation1 + $0x1] ss:$2 sm:$0xff] %v1135_v56  ;;  %v1251_v30 = vadd.f32 %v1250_v20, %v1244_v43  ;;  %v1278_v45 = vrot.slane %v1242_v40, 1  ;;  %v1274_v14 = vmul.f32 %v4889_v50, %v1242_v40  ;;  %v5544_v19 = vmov 0.0  }
  0xa4   : > { %v1192_v6 = vadd.f32 %v1190_v53, %v1185_v1  ;;  %v1215_v21 = vadd.f32 %v1213_v22, %v1208_v18  ;;  %v1270_v54 = vmul.f32 %v4888_v33, %v1268_v31  ;;  %v1283_v1 = vrot.slane %v1242_v40, 2  ;;  %739 = vst.msk [vmem:[#allocation2 + $0x55] sm:$0xff] %vm738_vm0, %v5544_v19  ;;  %v6181_v22 = vld [vmem:[#allocation2 + $0x38] sm:$0xff]  ;;  %v6197_v18 = vld [vmem:[#allocation2 + $0x48] sm:$0xff] }
  0xa5   : > { %v1256_v49 = vadd.f32 %v1255_v48, %v1251_v30  ;;  %740 = vst.msk [vmem:[#allocation2 + $0x5d] sm:$0xff] %vm738_vm0, %v5544_v19  ;;  %v1280_v28 = vmul.f32 %v4890_v59, %v1278_v45  ;;  %v1329_v31 = vsel %vm738_vm0, %v6181_v22, 0.0  ;;  %v1335_v33 = vsel %vm738_vm0, %v6197_v18, 0.0 }
  0xa6   : > { %1327 = vadd.xlane.f32.xlu0 %v1326_v37  ;;  %v1199_v27 = vadd.f32 %v1197_v17, %v1192_v6  ;;  %v1219_v37 = vmul.f32 %v4884_v4, %v1218_v2  ;;  %v1222_v17 = vadd.f32 %v1220_v42, %v1215_v21  ;;  %741 = vst.msk [vmem:[#allocation2 + $0x65] sm:$0xff] %vm738_vm0, %v5544_v19 }
  0xa7   : > { %v1260_v53 = vadd.f32 %v1259_v39, %v1256_v49  ;;  %742 = vst.msk [vmem:[#allocation2 + $0x6d] sm:$0xff] %vm738_vm0, %v5544_v19 }
  0xa8   : > { %v1207_v5 = vadd.f32 %v1205_v3, %v1199_v27  ;;  %v1228_v24 = vadd.f32 %v5139_v57, %v1222_v17  ;;  %v1285_v3 = vmul.f32 %v4891_v16, %v1283_v1  ;;  %743 = vst.msk [vmem:[#allocation2 + $0x75] sm:$0xff] %vm738_vm0, %v5544_v19  ;;  %v6233_v17 = vld [vmem:[%s5688_s24 + $0x18] sm:$0xff] }
  0xa9   : > { %v1266_v46 = vadd.f32 %v1265_v8, %v1260_v53  ;;  %745 = vst.msk [vmem:[#allocation2 + $0x7d] sm:$0x7] %vm744_vm4, %v5544_v19 }
  0xaa   : > { %v1214_v35 = vadd.f32 %v1212_v13, %v1207_v5  ;;  %v1149_v51 = vld.sshfl [vmem:[#allocation1] sm:$0xff pattern:$0x75316420]  ;;  %v1230_v6 = vadd.f32 %v6104_v9, %v1228_v24  ;;  %v6247_v24 = vld [vmem:[%s5688_s24 + $0x28] sm:$0xff] }
  0xab   : > { %1153 = vst.msk [vmem:[#allocation2 + $0x40] sm:$0xff] %vm738_vm0, %v1149_v51  ;;  %v1271_v2 = vadd.f32 %v1270_v54, %v1266_v46  ;;  %v1287_v9 = vld [vmem:[%s8268_s12] sm:$0x1]  ;;  %v1762_v16 = vsel %vm738_vm0, %v6247_v24, 0.0 }
  0xac   : > { %v1221_v56 = vadd.f32 %v1219_v37, %v1214_v35  ;;  %1235 = vst [vmem:[#allocation1 + $0x1] ss:$4 sm:$0xff] %v1230_v6  ;;  %v6213_v35 = vld [vmem:[%s5688_s24 + $0x8] sm:$0xff]  ;;  %v6219_v51 = vld [vmem:[#allocation2 + $0x58] sm:$0xff] }
  0xad   : > { %v1275_v25 = vadd.f32 %v1274_v14, %v1271_v2  ;;  %v1341_v45 = vsel %vm738_vm0, %v6219_v51, 0.0  ;;  %v6240_v14 = vld [vmem:[#allocation2 + $0x60] sm:$0xff] }
  0xae   : > { %v1316_v62 = vpop.xlane.xlu2 %1315  ;;  %v1227_v61 = vadd.f32 %v5139_v57, %v1221_v56  ;;  %v6238_v46 = vld [vmem:[#allocation2 + $0x68] sm:$0xff] }
  0xaf   : > { %v1281_v23 = vadd.f32 %v1280_v28, %v1275_v25  ;;  %v1347_v1 = vsel %vm738_vm0, %v6238_v46, 0.0  ;;  %v5099_v25 = vld [vmem:[%s8273_s17] sm:$0xff] }
  0xb0   : > { %v1229_v7 = vadd.f32 %v6101_v36, %v1227_v61  ;;  %v1344_v61 = vsel %vm738_vm0, %v6240_v14, 0.0 }
  0xb1   : > { %v1286_v4 = vadd.f32 %v1285_v3, %v1281_v23 }
  0xb2   : > { %v1310_v10 = vpop.xlane.xlu1 %1309  ;;  %1233 = vst [vmem:[#allocation1] ss:$4 sm:$0xff] %v1229_v7  ;;  %v6199_v37 = vld [vmem:[#allocation2 + $0x40] sm:$0xff] }
  0xb3   : > { %v1363_v43 = vmul.f32 %v5934_v0, %v1310_v10  ;;  %v1288_v58 = vadd.f32 %v1287_v9, %v1286_v4  ;;  %v1332_v49 = vsel %vm738_vm0, %v6199_v37, 0.0  ;;  %v6251_v10 = vld [vmem:[#allocation2 + $0x70] sm:$0xff]  ;;  %v5100_v7 = vld [vmem:[%s8273_s17 + $0x8] sm:$0xff] }
  0xb4   : > { %v1350_v2 = vsel %vm738_vm0, %v6251_v10, 0.0  ;;  %5113 = vmatpush.bf16.msra.mxu1 %v5100_v7  ;;  %2613 = vmatpush.bf16.msra.mxu0 %v5100_v7 }
  0xb5   : > { %v6164_v32 = vsub.f32 %v5854_v44, %v1363_v43  ;;  %v1289_v41 = vadd.f32 %v6138_v29, %v1288_v58  ;;  %v6194_v29 = vld [vmem:[%s5688_s24] sm:$0xff] }
  0xb6   : > { %v1319_v38 = vpop.xlane.xlu2 %1318  ;;  %v1747_v42 = vsel %vm738_vm0, %v6194_v29, 0.0 }
  0xb7   : > { %v1395_v36 = vmul.f32 %v6164_v32, %v6164_v32  ;;  %v1366_v13 = vmul.f32 %v5934_v0, %v1319_v38  ;;  %1291 = vst.msk [vmem:[#allocation2 + $0x54] sm:$0x1] %vm1290_vm3, %v1289_v41 }
  0xb8   : > { %5114 = vmatpush.bf16.msra.mxu1 %v5099_v25  ;;  %2614 = vmatpush.bf16.msra.mxu0 %v5099_v25  ;;  %v5101_v25 = vld [vmem:[%s8274_s18] sm:$0xff] }
  0xb9   : > { %v1411_v44 = vsel %vm738_vm0, %v1395_v36, 0.0  ;;  %v6176_v63 = vsub.f32 %v5859_v12, %v1366_v13  ;;  %v1236_v12 = vld.sshfl [vmem:[#allocation1] sm:$0xff pattern:$0x73625140] }
  0xba   : > { %v1313_v20 = vpop.xlane.xlu1 %1312  ;;  %1412 = vadd.xlane.f32.xlu1 %v1411_v44  ;;  %1239 = vst.msk [vmem:[#allocation2 + $0x50] sm:$0xf] %vm1238_vm2, %v1236_v12 }
  0xbb   : > { %v1364_v27 = vmul.f32 %v5934_v0, %v1313_v20  ;;  %v1398_v26 = vmul.f32 %v6176_v63, %v6176_v63 }
  0xbd   : > { %v6185_v30 = vsub.f32 %v5864_v47, %v1364_v27  ;;  %v1420_v48 = vsel %vm738_vm0, %v1398_v26, 0.0  ;;  %v1365_v47 = vmul.f32 %v5934_v0, %v1316_v62 }
  0xbe   : > { %1421 = vadd.xlane.f32.xlu0 %v1420_v48  ;;  %v1322_v57 = vpop.xlane.xlu2 %1321  ;;  %v6273_v48 = vld [vmem:[%s5688_s24 + $0x10] sm:$0xff] }
  0xbf   : > { %v1396_v39 = vmul.f32 %v6185_v30, %v6185_v30  ;;  %v6204_v40 = vsub.f32 %v5848_v11, %v1365_v47  ;;  %v1750_v11 = vsel %vm738_vm0, %v6213_v35, 0.0  ;;  %v1367_v50 = vmul.f32 %v5934_v0, %v1322_v57 }
  0xc1   : > { %v1414_v5 = vsel %vm738_vm0, %v1396_v39, 0.0  ;;  %v1397_v8 = vmul.f32 %v6204_v40, %v6204_v40  ;;  %v6221_v53 = vld [vmem:[#allocation2 + $0x50] sm:$0xff]  ;;  %v6224_v54 = vsub.f32 %v5868_v34, %v1367_v50  ;;  %v1756_v34 = vsel %vm738_vm0, %v6233_v17, 0.0  ;;  %v6289_v50 = vld [vmem:[%s8269_s13] ss:$0 sm:$0xff] }
  0xc2   : > { %1415 = vadd.xlane.f32.xlu2 %v1414_v5  ;;  %1330 = vadd.xlane.f32.xlu1 %v1329_v31  ;;  %v1338_v62 = vsel %vm738_vm0, %v6221_v53, 0.0 }
  0xc3   : > { %v1417_v21 = vsel %vm738_vm0, %v1397_v8, 0.0  ;;  %v1399_v56 = vmul.f32 %v6224_v54, %v6224_v54 }
  0xc5   : > { %v1423_v59 = vsel %vm738_vm0, %v1399_v56, 0.0 }
  0xc6   : > { %1748 = vadd.xlane.f32.xlu0 %v1747_v42  ;;  %v1753_v42 = vsel %vm738_vm0, %v6273_v48, 0.0 }
  0xca   : > { %1336 = vadd.xlane.f32.xlu2 %v1335_v33  ;;  %1333 = vadd.xlane.f32.xlu1 %v1332_v49 }
  0xd2   : > { %1418 = vadd.xlane.f32.xlu2 %v1417_v21  ;;  %1751 = vadd.xlane.f32.xlu1 %v1750_v11  ;;  %v6283_v11 = vld [vmem:[#allocation2 + $0x78] sm:$0xff] }
  0xda   : > { %1342 = vadd.xlane.f32.xlu2 %v1341_v45  ;;  %1339 = vadd.xlane.f32.xlu1 %v1338_v62  ;;  %v1353_v62 = vsel %vm738_vm0, %v6283_v11, 0.0 }
  0xe2   : > { %1424 = vadd.xlane.f32.xlu2 %v1423_v59  ;;  %1757 = vadd.xlane.f32.xlu1 %v1756_v34 }
  0xea   : > { %1348 = vadd.xlane.f32.xlu2 %v1347_v1  ;;  %1345 = vadd.xlane.f32.xlu1 %v1344_v61  ;;  %v6298_v1 = vld [vmem:[%s8270_s14] ss:$0 sm:$0xff]  ;;  %v5104_v61 = vld [vmem:[%s8274_s18 + $0x28] sm:$0xff] }
  0xeb   : > { %2808 = vmatpush.bf16.msra.mxu2 %v5104_v61 }
  0xf2   : > { %1763 = vadd.xlane.f32.xlu1 %v1762_v16 }
  0xfa   : > { %1351 = vadd.xlane.f32.xlu1 %v1350_v2 }
 0x109   : > { %v2031_v28 = vpop.xlane.xlu0 %2030 }
 0x10a   : > { %v2065_v43 = vmul.f32 %v2031_v28, %v5934_v0 }
 0x10c   : > { %v2097_v6 = vadd.f32 1e-05, %v2065_v43 }
 0x10e   : > { %5147 = vrsqrt.f32 %v2097_v6  ;;  %vm2405_vm5 = vweird.f32 %v2097_v6 }
 0x111   : > { %v2034_v3 = vpop.xlane.xlu1 %2033  ;;  %v1325_v23 = vpop.xlane.xlu0 %1324 }
 0x112   : > { %v2066_v19 = vmul.f32 %v2034_v3, %v5934_v0  ;;  %v1368_v38 = vmul.f32 %v5934_v0, %v1325_v23  ;;  %v5103_v3 = vld [vmem:[%s8274_s18 + $0x20] sm:$0xff] }
 0x113   : > { %2809 = vmatpush.bf16.msra.mxu2 %v5103_v3 }
 0x114   : > { %v5148_v36 = vpop.eup %5147  ;;  %v2098_v9 = vadd.f32 1e-05, %v2066_v19  ;;  %v6266_v13 = vsub.f32 %v5920_v55, %v1368_v38 }
 0x115   : > { %v2400_v4 = vmul.f32 %v5148_v36, %v2097_v6  ;;  %vm2406_vm6 = vweird.f32 %v5148_v36 }
 0x116   : > { %5149 = vrsqrt.f32 %v2098_v9  ;;  %v1400_v44 = vmul.f32 %v6266_v13, %v6266_v13  ;;  %vm2407_vm7 = vmor %vm2405_vm5, %vm2406_vm6  ;;  %vm2415_vm8 = vweird.f32 %v2098_v9 }
 0x117   : > { %v2401_v20 = vmul.f32 %v5148_v36, %v2400_v4 }
 0x118   : > { %v1426_v58 = vsel %vm738_vm0, %v1400_v44, 0.0 }
 0x119   : > { %v2402_v27 = vmul.f32 0.5, %v2401_v20  ;;  %v1328_v26 = vpop.xlane.xlu0 %1327  ;;  %1427 = vadd.xlane.f32.xlu0 %v1426_v58 }
 0x11a   : > { %v1369_v41 = vmul.f32 %v5934_v0, %v1328_v26 }
 0x11b   : > { %v2403_v12 = vsub.f32 1.5, %v2402_v27 }
 0x11c   : > { %v5150_v55 = vpop.eup %5149  ;;  %v6276_v39 = vsub.f32 %v6087_v15, %v1369_v41 }
 0x11d   : > { %v2404_v31 = vmul.f32 %v5148_v36, %v2403_v12  ;;  %v2410_v5 = vmul.f32 %v5150_v55, %v2098_v9  ;;  %vm2416_vm9 = vweird.f32 %v5150_v55 }
 0x11e   : > { %v1401_v47 = vmul.f32 %v6276_v39, %v6276_v39  ;;  %vm2417_vm10 = vmor %vm2415_vm8, %vm2416_vm9 }
 0x11f   : > { %v2411_v33 = vmul.f32 %v5150_v55, %v2410_v5  ;;  %v2408_v8 = vsel %vm2407_vm7, %v5148_v36, %v2404_v31 }
 0x120   : > { %v1429_v49 = vsel %vm738_vm0, %v1401_v47, 0.0  ;;  %v2449_v57 = vmul.f32 %v2408_v8, %v6016_v60  ;;  %v5102_v60 = vld [vmem:[%s8274_s18 + $0x8] sm:$0xff]  ;;  %v6337_v8 = vld [vmem:[%s5688_s24 + $0x20] sm:$0xff] }
 0x121   : > { %v2412_v21 = vmul.f32 0.5, %v2411_v33  ;;  %1430 = vadd.xlane.f32.xlu2 %v1429_v49  ;;  %1754 = vadd.xlane.f32.xlu0 %v1753_v42 }
 0x122   : > { %v2485_v34 = vmul.f32 %v6289_v50, %v2449_v57  ;;  %2742 = vmatpush.bf16.msrb.mxu1 %v5102_v60 }
 0x123   : > { %v2413_v15 = vsub.f32 1.5, %v2412_v21 }
 0x124   : > { %v2521_v28 = vadd.f32 %v6298_v1, %v2485_v34 }
 0x125   : > { %v2414_v45 = vmul.f32 %v5150_v55, %v2413_v15 }
 0x126   : > { %2743 = vmatpush.bf16.msrb.mxu1 %v5101_v25 }
 0x127   : > { %v2418_v56 = vsel %vm2417_vm10, %v5150_v55, %v2414_v45 }
 0x128   : > { %v2450_v59 = vmul.f32 %v2418_v56, %v6074_v52 }
 0x129   : > { %1354 = vadd.xlane.f32.xlu2 %v1353_v62 }
 0x12a   : > { %v2486_v16 = vmul.f32 %v6289_v50, %v2450_v59  ;;  %v1759_v59 = vsel %vm738_vm0, %v6337_v8, 0.0 }
 0x12c   : > { %v2522_v43 = vadd.f32 %v6298_v1, %v2486_v16 }
 0x12d   : > { %v1413_v2 = vpop.xlane.xlu1 %1412 }
 0x12e   : > { %v1459_v52 = vmul.f32 %v1413_v2, %v5934_v0  ;;  %v6310_v6 = vpack.c.bf16 %v2522_v43, %v2521_v28 }
 0x130   : > { %v1475_v7 = vadd.f32 1e-05, %v1459_v52  ;;  %8321 = vst [vmem:[#allocation3_spill] sm:$0xff] %v6310_v6  ;;  %4915 = vmatmul.msk.bf16.vlgmr.msra.gmra.mxu1 %vm738_vm0, %v6310_v6 }
 0x131   : > { %v1422_v23 = vpop.xlane.xlu0 %1421 }
 0x132   : > { %5151 = vrsqrt.f32 %v1475_v7  ;;  %v1462_v19 = vmul.f32 %v1422_v23, %v5934_v0  ;;  %vm1497_vm12 = vweird.f32 %v1475_v7  ;;  %v6362_v23 = vld [vmem:[%s5688_s24 + $0x30] sm:$0xff] }
 0x134   : > { %v6321_v9 = vadd.f32 1e-05, %v1462_v19 }
 0x135   : > { %v1416_v38 = vpop.xlane.xlu2 %1415  ;;  %v1331_v36 = vpop.xlane.xlu1 %1330 }
 0x136   : > { %v1460_v4 = vmul.f32 %v1416_v38, %v5934_v0  ;;  %v1370_v44 = vmul.f32 %v5934_v0, %v1331_v36  ;;  %5153 = vrsqrt.f32 %v6321_v9  ;;  %vm1527_vm2 = vweird.f32 %v6321_v9 }
 0x138   : > { %v5152_v20 = vpop.eup %5151  ;;  %v1476_v58 = vadd.f32 1e-05, %v1460_v4  ;;  %v6326_v27 = vsub.f32 %v6181_v22, %v1370_v44 }
 0x139   : > { %v1492_v26 = vmul.f32 %v5152_v20, %v1475_v7  ;;  %vm1498_vm11 = vweird.f32 %v5152_v20  ;;  %v1749_v16 = vpop.xlane.xlu0 %1748 }
 0x13a   : > { %5155 = vrsqrt.f32 %v1476_v58  ;;  %v1402_v41 = vmul.f32 %v6326_v27, %v6326_v27  ;;  %vm6351_vm13 = vmor %vm1497_vm12, %vm1498_vm11  ;;  %vm1507_vm14 = vweird.f32 %v1476_v58  ;;  %v1843_v38 = vmul.f32 %v1749_v16, %v5934_v0 }
 0x13b   : > { %v1493_v12 = vmul.f32 %v5152_v20, %v1492_v26 }
 0x13c   : > { %v1432_v55 = vsel %vm738_vm0, %v1402_v41, 0.0  ;;  %v6332_v42 = vpop.eup %5153 }
 0x13d   : > { %v1494_v31 = vmul.f32 0.5, %v1493_v12  ;;  %v1337_v5 = vpop.xlane.xlu2 %1336  ;;  %v1334_v47 = vpop.xlane.xlu1 %1333  ;;  %1433 = vadd.xlane.f32.xlu0 %v1432_v55  ;;  %v1522_v62 = vmul.f32 %v6332_v42, %v6321_v9  ;;  %v1765_v12 = vsel %vm738_vm0, %v6362_v23, 0.0  ;;  %vm1528_vm3 = vweird.f32 %v6332_v42 }
 0x13e   : > { %v1371_v33 = vmul.f32 %v5934_v0, %v1334_v47  ;;  %v1372_v49 = vmul.f32 %v5934_v0, %v1337_v5  ;;  %vm6409_vm4 = vmor %vm1527_vm2, %vm1528_vm3 }
 0x13f   : > { %v1495_v22 = vsub.f32 1.5, %v1494_v31  ;;  %v1523_v28 = vmul.f32 %v6332_v42, %v1522_v62 }
 0x140   : > { %v5156_v21 = vpop.eup %5155  ;;  %v6340_v15 = vsub.f32 %v6199_v37, %v1371_v33  ;;  %v6349_v60 = vsub.f32 %v6197_v18, %v1372_v49  ;;  %v6391_v33 = vld [vmem:[%s8272_s16] ss:$0 sm:$0xff] }
 0x141   : > { %v1496_v57 = vmul.f32 %v5152_v20, %v1495_v22  ;;  %v1502_v45 = vmul.f32 %v5156_v21, %v1476_v58  ;;  %vm1508_vm15 = vweird.f32 %v5156_v21  ;;  %v1524_v41 = vmul.f32 0.5, %v1523_v28 }
 0x142   : > { %v1403_v56 = vmul.f32 %v6340_v15, %v6340_v15  ;;  %v1404_v19 = vmul.f32 %v6349_v60, %v6349_v60  ;;  %vm1509_vm1 = vmor %vm1507_vm14, %vm1508_vm15 }
 0x143   : > { %v1503_v34 = vmul.f32 %v5156_v21, %v1502_v45  ;;  %v1500_v2 = vsel %vm6351_vm13, %v5152_v20, %v1496_v57  ;;  %v6375_v20 = vld [vmem:[%s8271_s15] ss:$0 sm:$0xff]  ;;  %v1525_v22 = vsub.f32 1.5, %v1524_v41 }
 0x144   : > { %v1435_v61 = vsel %vm738_vm0, %v1403_v56, 0.0  ;;  %v1651_v36 = vmul.f32 %v1500_v2, %v6164_v32  ;;  %v1438_v55 = vsel %vm738_vm0, %v1404_v19, 0.0 }
 0x145   : > { %v1504_v52 = vmul.f32 0.5, %v1503_v34  ;;  %v1419_v43 = vpop.xlane.xlu2 %1418  ;;  %1436 = vadd.xlane.f32.xlu2 %v1435_v61  ;;  %v1752_v18 = vpop.xlane.xlu1 %1751  ;;  %1760 = vadd.xlane.f32.xlu0 %v1759_v59  ;;  %v1526_v61 = vmul.f32 %v6332_v42, %v1525_v22 }
 0x146   : > { %v1461_v7 = vmul.f32 %v1419_v43, %v5934_v0  ;;  %v1844_v25 = vmul.f32 %v1752_v18, %v5934_v0  ;;  %v1671_v47 = vmul.f32 %v6375_v20, %v1651_v36 }
 0x147   : > { %v1505_v3 = vsub.f32 1.5, %v1504_v52 }
 0x148   : > { %v1477_v4 = vadd.f32 1e-05, %v1461_v7  ;;  %v6370_v44 = vsub.f32 %v6213_v35, %v1844_v25  ;;  %v6383_v35 = vsub.f32 %v6194_v29, %v1843_v38  ;;  %v1691_v34 = vadd.f32 %v6391_v33, %v1671_v47 }
 0x149   : > { %v1506_v26 = vmul.f32 %v5156_v21, %v1505_v3  ;;  %v1530_v7 = vsel %vm6409_vm4, %v6332_v42, %v1526_v61  ;;  %v6438_v42 = vld [vmem:[%s5688_s24 + $0x38] sm:$0xff] }
 0x14a   : > { %5157 = vrsqrt.f32 %v1477_v4  ;;  %v1908_v32 = vmul.f32 %v6370_v44, %v6370_v44  ;;  %v1907_v45 = vmul.f32 %v6383_v35, %v6383_v35  ;;  %vm1517_vm5 = vweird.f32 %v1477_v4 }
 0x14b   : > { %v1510_v58 = vsel %vm1509_vm1, %v5156_v21, %v1506_v26  ;;  %v6431_v26 = vld [vmem:[%s5688_s24 + $0x40] sm:$0xff]  ;;  %v1654_v41 = vmul.f32 %v1530_v7, %v6176_v63 }
 0x14c   : > { %v1652_v31 = vmul.f32 %v1510_v58, %v6185_v30  ;;  %v1942_v5 = vsel %vm738_vm0, %v1908_v32, 0.0  ;;  %v1939_v28 = vsel %vm738_vm0, %v1907_v45, 0.0  ;;  %v1771_v32 = vsel %vm738_vm0, %v6431_v26, 0.0 }
 0x14d   : > { %v1343_v49 = vpop.xlane.xlu2 %1342  ;;  %1766 = vadd.xlane.f32.xlu2 %v1765_v12  ;;  %1943 = vadd.xlane.f32.xlu1 %v1942_v5  ;;  %v1340_v21 = vpop.xlane.xlu1 %1339 }
 0x14e   : > { %v1374_v57 = vmul.f32 %v5934_v0, %v1343_v49  ;;  %v1373_v29 = vmul.f32 %v5934_v0, %v1340_v21  ;;  %1439 = vadd.xlane.f32.xlu0 %v1438_v55  ;;  %v1672_v30 = vmul.f32 %v6375_v20, %v1652_v31  ;;  %v1768_v31 = vsel %vm738_vm0, %v6438_v42, 0.0 }
 0x150   : > { %v5158_v62 = vpop.eup %5157  ;;  %v6401_v56 = vsub.f32 %v6219_v51, %v1374_v57  ;;  %v6404_v59 = vsub.f32 %v6221_v53, %v1373_v29  ;;  %v1692_v37 = vadd.f32 %v6391_v33, %v1672_v30 }
 0x151   : > { %v1512_v16 = vmul.f32 %v5158_v62, %v1477_v4  ;;  %vm1518_vm6 = vweird.f32 %v5158_v62 }
 0x152   : > { %v6413_v2 = vpack.c.bf16 %v1692_v37, %v1691_v34  ;;  %v1406_v51 = vmul.f32 %v6401_v56, %v6401_v56  ;;  %v1405_v53 = vmul.f32 %v6404_v59, %v6404_v59  ;;  %vm1519_vm7 = vmor %vm1517_vm5, %vm1518_vm6 }
 0x153   : > { %v1513_v52 = vmul.f32 %v5158_v62, %v1512_v16 }
 0x154   : > { %8326 = vst [vmem:[#allocation4_spill] sm:$0xff] %v6413_v2  ;;  %4924 = vmatmul.msk.bf16.vlgmr.msrb.gmra.mxu1 %vm738_vm0, %v6413_v2  ;;  %4944 = vmatmul.msk.bf16.vlgmr.msra.gmra.mxu2 %vm738_vm0, %v6413_v2  ;;  %v1444_v43 = vsel %vm738_vm0, %v1406_v51, 0.0  ;;  %v1441_v18 = vsel %vm738_vm0, %v1405_v53, 0.0  ;;  %v7039_v2 = vld [vmem:[%s5688_s24 + $0xd0] sm:$0xff] }
 0x155   : > { %v1514_v25 = vmul.f32 0.5, %v1513_v52  ;;  %v1425_v3 = vpop.xlane.xlu2 %1424  ;;  %1445 = vadd.xlane.f32.xlu2 %v1444_v43  ;;  %1442 = vadd.xlane.f32.xlu1 %v1441_v18  ;;  %v1758_v19 = vpop.xlane.xlu1 %1757  ;;  %8358 = vst [vmem:[#allocation18_spill] sm:$0xff] %v7039_v2 }
 0x156   : > { %v1846_v38 = vmul.f32 %v1758_v19, %v5934_v0  ;;  %1940 = vadd.xlane.f32.xlu0 %v1939_v28  ;;  %v6488_v19 = vld [vmem:[%s5688_s24 + $0x50] sm:$0xff] }
 0x157   : > { %v1515_v36 = vsub.f32 1.5, %v1514_v25 }
 0x158   : > { %v6435_v12 = vsub.f32 %v6233_v17, %v1846_v38  ;;  %v1674_v17 = vmul.f32 %v6375_v20, %v1654_v41  ;;  %v1777_v38 = vsel %vm738_vm0, %v6488_v19, 0.0 }
 0x159   : > { %v1516_v4 = vmul.f32 %v5158_v62, %v1515_v36 }
 0x15a   : > { %v1910_v58 = vmul.f32 %v6435_v12, %v6435_v12  ;;  %v1694_v45 = vadd.f32 %v6391_v33, %v1674_v17 }
 0x15b   : > { %v1520_v55 = vsel %vm1519_vm7, %v5158_v62, %v1516_v4 }
 0x15c   : > { %v1653_v5 = vmul.f32 %v1520_v55, %v6204_v40  ;;  %v1948_v63 = vsel %vm738_vm0, %v1910_v58, 0.0 }
 0x15d   : > { %v1349_v47 = vpop.xlane.xlu2 %1348  ;;  %1772 = vadd.xlane.f32.xlu2 %v1771_v32  ;;  %1949 = vadd.xlane.f32.xlu1 %v1948_v63  ;;  %v1346_v22 = vpop.xlane.xlu1 %1345 }
 0x15e   : > { %v1376_v49 = vmul.f32 %v5934_v0, %v1349_v47  ;;  %v1375_v21 = vmul.f32 %v5934_v0, %v1346_v22  ;;  %1769 = vadd.xlane.f32.xlu0 %v1768_v31  ;;  %v1673_v57 = vmul.f32 %v6375_v20, %v1653_v5 }
 0x160   : > { %v6453_v29 = vsub.f32 %v6238_v46, %v1376_v49  ;;  %v6456_v40 = vsub.f32 %v6240_v14, %v1375_v21  ;;  %v1693_v30 = vadd.f32 %v6391_v33, %v1673_v57 }
 0x162   : > { %v6460_v62 = vpack.c.bf16 %v1694_v45, %v1693_v30  ;;  %v1408_v34 = vmul.f32 %v6453_v29, %v6453_v29  ;;  %v1407_v37 = vmul.f32 %v6456_v40, %v6456_v40 }
 0x164   : > { %8327 = vst [vmem:[#allocation5_spill] sm:$0xff] %v6460_v62  ;;  %4925 = vmatmul.msk.bf16.gmra.mxu1 %vm738_vm0, %v6460_v62  ;;  %4945 = vmatmul.msk.bf16.gmra.mxu2 %vm738_vm0, %v6460_v62  ;;  %v1450_v46 = vsel %vm738_vm0, %v1408_v34, 0.0  ;;  %v1447_v14 = vsel %vm738_vm0, %v1407_v37, 0.0 }
 0x165   : > { %1451 = vadd.xlane.f32.xlu2 %v1450_v46  ;;  %1448 = vadd.xlane.f32.xlu1 %v1447_v14  ;;  %v1764_v61 = vpop.xlane.xlu1 %1763 }
 0x166   : > { %v1848_v16 = vmul.f32 %v1764_v61, %v5934_v0  ;;  %v6503_v61 = vld [vmem:[%s5688_s24 + $0x48] sm:$0xff] }
 0x168   : > { %v6474_v9 = vsub.f32 %v6247_v24, %v1848_v16  ;;  %v1463_v24 = vmul.f32 %v1425_v3, %v5934_v0 }
 0x16a   : > { %v1912_v51 = vmul.f32 %v6474_v9, %v6474_v9  ;;  %v1479_v25 = vadd.f32 1e-05, %v1463_v24 }
 0x16c   : > { %v1954_v53 = vsel %vm738_vm0, %v1912_v51, 0.0  ;;  %5159 = vrsqrt.f32 %v1479_v25  ;;  %vm1537_vm8 = vweird.f32 %v1479_v25 }
 0x16d   : > { %1955 = vadd.xlane.f32.xlu1 %v1954_v53  ;;  %v1352_v52 = vpop.xlane.xlu1 %1351  ;;  %1778 = vadd.xlane.f32.xlu2 %v1777_v38 }
 0x16e   : > { %v1377_v28 = vmul.f32 %v5934_v0, %v1352_v52 }
 0x170   : > { %v6481_v43 = vsub.f32 %v6251_v10, %v1377_v28 }
 0x172   : > { %v1409_v18 = vmul.f32 %v6481_v43, %v6481_v43  ;;  %v5160_v36 = vpop.eup %5159 }
 0x173   : > { %v1532_v41 = vmul.f32 %v5160_v36, %v1479_v25  ;;  %vm1538_vm9 = vweird.f32 %v5160_v36 }
 0x174   : > { %v1453_v7 = vsel %vm738_vm0, %v1409_v18, 0.0  ;;  %vm1539_vm10 = vmor %vm1537_vm8, %vm1538_vm9  ;;  %v1774_v18 = vsel %vm738_vm0, %v6503_v61, 0.0 }
 0x175   : > { %1454 = vadd.xlane.f32.xlu1 %v1453_v7  ;;  %v1533_v10 = vmul.f32 %v5160_v36, %v1532_v41 }
 0x177   : > { %v1534_v58 = vmul.f32 0.5, %v1533_v10 }
 0x179   : > { %v1535_v31 = vsub.f32 1.5, %v1534_v58  ;;  %v6527_v58 = vld [vmem:[%s5688_s24 + $0x60] sm:$0xff] }
 0x17b   : > { %v1536_v47 = vmul.f32 %v5160_v36, %v1535_v31 }
 0x17d   : > { %v1540_v30 = vsel %vm1539_vm10, %v5160_v36, %v1536_v47 }
 0x17e   : > { %v1655_v16 = vmul.f32 %v1540_v30, %v6224_v54 }
 0x180   : > { %v1675_v54 = vmul.f32 %v6375_v20, %v1655_v16 }
 0x182   : > { %v1695_v38 = vadd.f32 %v6391_v33, %v1675_v54  ;;  %v6550_v54 = vld [vmem:[%s5688_s24 + $0x58] sm:$0xff] }
 0x18c   : > { %v1428_v4 = vpop.xlane.xlu0 %1427 }
 0x18d   : > { %v1464_v32 = vmul.f32 %v1428_v4, %v5934_v0 }
 0x18f   : > { %v1480_v55 = vadd.f32 1e-05, %v1464_v32 }
 0x191   : > { %5161 = vrsqrt.f32 %v1480_v55  ;;  %vm1547_vm11 = vweird.f32 %v1480_v55 }
 0x194   : > { %v1431_v5 = vpop.xlane.xlu2 %1430  ;;  %v1755_v3 = vpop.xlane.xlu0 %1754 }
 0x195   : > { %v1845_v63 = vmul.f32 %v1755_v3, %v5934_v0  ;;  %v1465_v37 = vmul.f32 %v1431_v5, %v5934_v0 }
 0x197   : > { %v5162_v17 = vpop.eup %5161  ;;  %v6495_v22 = vsub.f32 %v6273_v48, %v1845_v63  ;;  %v1481_v52 = vadd.f32 1e-05, %v1465_v37 }
 0x198   : > { %v1542_v49 = vmul.f32 %v5162_v17, %v1480_v55  ;;  %vm1548_vm12 = vweird.f32 %v5162_v17  ;;  %v1783_v55 = vsel %vm738_vm0, %v6527_v58, 0.0 }
 0x199   : > { %v1909_v21 = vmul.f32 %v6495_v22, %v6495_v22  ;;  %vm1549_vm13 = vmor %vm1547_vm11, %vm1548_vm12  ;;  %5163 = vrsqrt.f32 %v1481_v52  ;;  %vm1557_vm14 = vweird.f32 %v1481_v52 }
 0x19a   : > { %v1543_v57 = vmul.f32 %v5162_v17, %v1542_v49 }
 0x19b   : > { %v1945_v45 = vsel %vm738_vm0, %v1909_v21, 0.0 }
 0x19c   : > { %v1544_v34 = vmul.f32 0.5, %v1543_v57  ;;  %v1355_v46 = vpop.xlane.xlu2 %1354  ;;  %1946 = vadd.xlane.f32.xlu0 %v1945_v45 }
 0x19d   : > { %v1378_v14 = vmul.f32 %v5934_v0, %v1355_v46 }
 0x19e   : > { %v1545_v48 = vsub.f32 1.5, %v1544_v34 }
 0x19f   : > { %v6507_v51 = vsub.f32 %v6283_v11, %v1378_v14  ;;  %v5164_v10 = vpop.eup %5163 }
 0x1a0   : > { %v1546_v53 = vmul.f32 %v5162_v17, %v1545_v48  ;;  %vm1558_vm15 = vweird.f32 %v5164_v10 }
 0x1a1   : > { %v1410_v28 = vmul.f32 %v6507_v51, %v6507_v51  ;;  %vm6542_vm1 = vmor %vm1557_vm14, %vm1558_vm15 }
 0x1a2   : > { %v1550_v7 = vsel %vm1549_vm13, %v5162_v17, %v1546_v53 }
 0x1a3   : > { %v1656_v24 = vmul.f32 %v1550_v7, %v6266_v13  ;;  %v1456_v25 = vsel %vm738_vm0, %v1410_v28, 0.0  ;;  %v1552_v13 = vmul.f32 %v5164_v10, %v1481_v52 }
 0x1a4   : > { %1457 = vadd.xlane.f32.xlu2 %v1456_v25  ;;  %1775 = vadd.xlane.f32.xlu0 %v1774_v18 }
 0x1a5   : > { %v1676_v11 = vmul.f32 %v6375_v20, %v1656_v24  ;;  %v1553_v31 = vmul.f32 %v5164_v10, %v1552_v13 }
 0x1a7   : > { %v1696_v36 = vadd.f32 %v6391_v33, %v1676_v11  ;;  %v1554_v3 = vmul.f32 0.5, %v1553_v31  ;;  %v1780_v31 = vsel %vm738_vm0, %v6550_v54, 0.0 }
 0x1a9   : > { %v6519_v41 = vpack.c.bf16 %v1696_v36, %v1695_v38  ;;  %v1555_v57 = vsub.f32 1.5, %v1554_v3 }
 0x1ab   : > { %8328 = vst [vmem:[#allocation6_spill] sm:$0xff] %v6519_v41  ;;  %4926 = vmatmul.msk.bf16.gmra.mxu1 %vm738_vm0, %v6519_v41  ;;  %4946 = vmatmul.msk.bf16.gmra.mxu2 %vm738_vm0, %v6519_v41  ;;  %v1556_v14 = vmul.f32 %v5164_v10, %v1555_v57 }
 0x1ac   : > { %1784 = vadd.xlane.f32.xlu2 %v1783_v55 }
 0x1ad   : > { %v1560_v38 = vsel %vm6542_vm1, %v5164_v10, %v1556_v14 }
 0x1ae   : > { %v1657_v3 = vmul.f32 %v1560_v38, %v6276_v39 }
 0x1b0   : > { %v1434_v4 = vpop.xlane.xlu0 %1433  ;;  %v1677_v14 = vmul.f32 %v6375_v20, %v1657_v3 }
 0x1b1   : > { %v1466_v32 = vmul.f32 %v1434_v4, %v5934_v0 }
 0x1b2   : > { %v1697_v38 = vadd.f32 %v6391_v33, %v1677_v14 }
 0x1b3   : > { %v1482_v5 = vadd.f32 1e-05, %v1466_v32 }
 0x1b5   : > { %5165 = vrsqrt.f32 %v1482_v5  ;;  %vm1567_vm3 = vweird.f32 %v1482_v5 }
 0x1b8   : > { %v1437_v63 = vpop.xlane.xlu2 %1436  ;;  %v1761_v17 = vpop.xlane.xlu0 %1760 }
 0x1b9   : > { %v1467_v47 = vmul.f32 %v1437_v63, %v5934_v0  ;;  %v1847_v49 = vmul.f32 %v1761_v17, %v5934_v0 }
 0x1bb   : > { %v5166_v21 = vpop.eup %5165  ;;  %v6533_v30 = vadd.f32 1e-05, %v1467_v47  ;;  %v6536_v45 = vsub.f32 %v6337_v8, %v1847_v49 }
 0x1bc   : > { %v1562_v34 = vmul.f32 %v5166_v21, %v1482_v5  ;;  %vm1568_vm2 = vweird.f32 %v5166_v21 }
 0x1bd   : > { %5167 = vrsqrt.f32 %v6533_v30  ;;  %v1911_v37 = vmul.f32 %v6536_v45, %v6536_v45  ;;  %vm1569_vm4 = vmor %vm1567_vm3, %vm1568_vm2  ;;  %vm1577_vm5 = vweird.f32 %v6533_v30 }
 0x1be   : > { %v1563_v46 = vmul.f32 %v5166_v21, %v1562_v34 }
 0x1bf   : > { %v1951_v48 = vsel %vm738_vm0, %v1911_v37, 0.0 }
 0x1c0   : > { %v1564_v53 = vmul.f32 0.5, %v1563_v46  ;;  %v1767_v8 = vpop.xlane.xlu2 %1766  ;;  %v1944_v28 = vpop.xlane.xlu1 %1943  ;;  %1952 = vadd.xlane.f32.xlu0 %v1951_v48 }
 0x1c1   : > { %v1849_v52 = vmul.f32 %v1767_v8, %v5934_v0  ;;  %v2036_v18 = vmul.f32 %v1944_v28, %v5934_v0  ;;  %v1440_v7 = vpop.xlane.xlu0 %1439 }
 0x1c2   : > { %v1565_v24 = vsub.f32 1.5, %v1564_v53  ;;  %v1468_v25 = vmul.f32 %v1440_v7, %v5934_v0 }
 0x1c3   : > { %v5168_v11 = vpop.eup %5167  ;;  %v6554_v36 = vadd.f32 1e-05, %v2036_v18  ;;  %v6560_v55 = vsub.f32 %v6362_v23, %v1849_v52 }
 0x1c4   : > { %v1566_v13 = vmul.f32 %v5166_v21, %v1565_v24  ;;  %v1572_v4 = vmul.f32 %v5168_v11, %v6533_v30  ;;  %v6557_v32 = vadd.f32 1e-05, %v1468_v25  ;;  %vm1578_vm6 = vweird.f32 %v5168_v11 }
 0x1c5   : > { %5169 = vrsqrt.f32 %v6554_v36  ;;  %v1913_v39 = vmul.f32 %v6560_v55, %v6560_v55  ;;  %vm6590_vm7 = vmor %vm1577_vm5, %vm1578_vm6  ;;  %vm2115_vm10 = vweird.f32 %v6554_v36 }
 0x1c6   : > { %v1570_v10 = vsel %vm1569_vm4, %v5166_v21, %v1566_v13  ;;  %v1573_v63 = vmul.f32 %v5168_v11, %v1572_v4  ;;  %5171 = vrsqrt.f32 %v6557_v32  ;;  %vm1587_vm8 = vweird.f32 %v6557_v32 }
 0x1c7   : > { %v1658_v5 = vmul.f32 %v1570_v10, %v6326_v27  ;;  %v1957_v30 = vsel %vm738_vm0, %v1913_v39, 0.0 }
 0x1c8   : > { %v1574_v17 = vmul.f32 0.5, %v1573_v63  ;;  %v1446_v47 = vpop.xlane.xlu2 %1445  ;;  %v1443_v49 = vpop.xlane.xlu1 %1442  ;;  %1781 = vadd.xlane.f32.xlu0 %v1780_v31 }
 0x1c9   : > { %v1470_v23 = vmul.f32 %v1446_v47, %v5934_v0  ;;  %v1469_v57 = vmul.f32 %v1443_v49, %v5934_v0  ;;  %v1941_v34 = vpop.xlane.xlu0 %1940  ;;  %v1678_v37 = vmul.f32 %v6375_v20, %v1658_v5  ;;  %v6605_v5 = vld [vmem:[%s5688_s24 + $0x68] sm:$0xff] }
 0x1ca   : > { %v1575_v21 = vsub.f32 1.5, %v1574_v17  ;;  %v2035_v46 = vmul.f32 %v1941_v34, %v5934_v0  ;;  %v1786_v39 = vsel %vm738_vm0, %v6605_v5, 0.0 }
 0x1cb   : > { %v6575_v27 = vpop.eup %5169  ;;  %v6578_v48 = vadd.f32 1e-05, %v1470_v23  ;;  %v6580_v16 = vadd.f32 1e-05, %v1469_v57  ;;  %v1698_v18 = vadd.f32 %v6391_v33, %v1678_v37 }
 0x1cc   : > { %v5172_v53 = vpop.eup %5171  ;;  %v1576_v8 = vmul.f32 %v5168_v11, %v1575_v21  ;;  %v2110_v28 = vmul.f32 %v6575_v27, %v6554_v36  ;;  %v6584_v52 = vadd.f32 1e-05, %v2035_v46  ;;  %vm2116_vm11 = vweird.f32 %v6575_v27 }
 0x1cd   : > { %v1582_v7 = vmul.f32 %v5172_v53, %v6557_v32  ;;  %5173 = vrsqrt.f32 %v6578_v48  ;;  %v6600_v3 = vpack.c.bf16 %v1698_v18, %v1697_v38  ;;  %vm1588_vm9 = vweird.f32 %v5172_v53  ;;  %vm6656_vm1 = vmor %vm2115_vm10, %vm2116_vm11 }
 0x1ce   : > { %v2111_v25 = vmul.f32 %v6575_v27, %v2110_v28  ;;  %5175 = vrsqrt.f32 %v6580_v16  ;;  %v1580_v13 = vsel %vm6590_vm7, %v5168_v11, %v1576_v8  ;;  %vm6625_vm12 = vmor %vm1587_vm8, %vm1588_vm9  ;;  %vm1607_vm13 = vweird.f32 %v6578_v48 }
 0x1cf   : > { %v1583_v4 = vmul.f32 %v5172_v53, %v1582_v7  ;;  %5177 = vrsqrt.f32 %v6584_v52  ;;  %8333 = vst [vmem:[#allocation7_spill] sm:$0xff] %v6600_v3  ;;  %v1659_v49 = vmul.f32 %v1580_v13, %v6340_v15  ;;  %4927 = vmatmul.msk.bf16.gmra.mxu1 %vm738_vm0, %v6600_v3  ;;  %4947 = vmatmul.msk.bf16.gmra.mxu2 %vm738_vm0, %v6600_v3  ;;  %vm2105_vm14 = vweird.f32 %v6584_v52 }
 0x1d0   : > { %v2112_v31 = vmul.f32 0.5, %v2111_v25  ;;  %v1773_v10 = vpop.xlane.xlu2 %1772  ;;  %v6602_v63 = vpop.xlane.xlu1 %1949  ;;  %1958 = vadd.xlane.f32.xlu0 %v1957_v30  ;;  %vm1597_vm3 = vweird.f32 %v6580_v16 }
 0x1d1   : > { %v1584_v17 = vmul.f32 0.5, %v1583_v4  ;;  %v1770_v47 = vpop.xlane.xlu0 %1769  ;;  %v1851_v11 = vmul.f32 %v1773_v10, %v5934_v0  ;;  %v1679_v24 = vmul.f32 %v6375_v20, %v1659_v49 }
 0x1d2   : > { %v1850_v23 = vmul.f32 %v1770_v47, %v5934_v0  ;;  %v2113_v34 = vsub.f32 1.5, %v2112_v31 }
 0x1d3   : > { %v6615_v57 = vpop.eup %5173  ;;  %v1585_v37 = vsub.f32 1.5, %v1584_v17  ;;  %v6641_v30 = vsub.f32 %v6431_v26, %v1851_v11 }
 0x1d4   : > { %v6619_v21 = vpop.eup %5175  ;;  %v1602_v46 = vmul.f32 %v6615_v57, %v6578_v48  ;;  %v6632_v14 = vsub.f32 %v6438_v42, %v1850_v23  ;;  %v2114_v42 = vmul.f32 %v6575_v27, %v2113_v34  ;;  %vm1608_vm15 = vweird.f32 %v6615_v57 }
 0x1d5   : > { %v5178_v8 = vpop.eup %5177  ;;  %v1586_v28 = vmul.f32 %v5172_v53, %v1585_v37  ;;  %v1592_v18 = vmul.f32 %v6619_v21, %v6580_v16  ;;  %v6664_v37 = vld [vmem:[%s5688_s24 + $0x70] sm:$0xff]  ;;  %v1915_v36 = vmul.f32 %v6641_v30, %v6641_v30  ;;  %vm1598_vm4 = vweird.f32 %v6619_v21  ;;  %vm6687_vm6 = vmor %vm1607_vm13, %vm1608_vm15 }
 0x1d6   : > { %v1603_v32 = vmul.f32 %v6615_v57, %v1602_v46  ;;  %v2100_v7 = vmul.f32 %v5178_v8, %v6584_v52  ;;  %v1914_v13 = vmul.f32 %v6632_v14, %v6632_v14  ;;  %vm2106_vm2 = vweird.f32 %v5178_v8  ;;  %vm6692_vm7 = vmor %vm1597_vm3, %vm1598_vm4 }
 0x1d7   : > { %v1590_v25 = vsel %vm6625_vm12, %v5172_v53, %v1586_v28  ;;  %v1593_v38 = vmul.f32 %v6619_v21, %v1592_v18  ;;  %v2118_v18 = vsel %vm6656_vm1, %v6575_v27, %v2114_v42  ;;  %vm6676_vm5 = vmor %vm2105_vm14, %vm2106_vm2 }
 0x1d8   : > { %v1660_v4 = vmul.f32 %v1590_v25, %v6349_v60  ;;  %v1604_v31 = vmul.f32 0.5, %v1603_v32  ;;  %v2101_v26 = vmul.f32 %v5178_v8, %v2100_v7  ;;  %v1452_v10 = vpop.xlane.xlu2 %1451  ;;  %v1449_v17 = vpop.xlane.xlu1 %1448  ;;  %1787 = vadd.xlane.f32.xlu0 %v1786_v39  ;;  %v1960_v11 = vsel %vm738_vm0, %v1914_v13, 0.0 }
 0x1d9   : > { %v1594_v47 = vmul.f32 0.5, %v1593_v38  ;;  %v1472_v49 = vmul.f32 %v1452_v10, %v5934_v0  ;;  %v1471_v60 = vmul.f32 %v1449_v17, %v5934_v0  ;;  %1961 = vadd.xlane.f32.xlu1 %v1960_v11  ;;  %v1789_v25 = vsel %vm738_vm0, %v6664_v37, 0.0  ;;  %v6719_v11 = vld [vmem:[%s5688_s24 + $0x78] sm:$0xff] }
 0x1da   : > { %v1605_v23 = vsub.f32 1.5, %v1604_v31  ;;  %v2102_v34 = vmul.f32 0.5, %v2101_v26  ;;  %v1680_v28 = vmul.f32 %v6375_v20, %v1660_v4  ;;  %v1699_v13 = vadd.f32 %v6391_v33, %v1679_v24 }
 0x1db   : > { %v1595_v39 = vsub.f32 1.5, %v1594_v47  ;;  %v1488_v15 = vadd.f32 1e-05, %v1472_v49  ;;  %v1487_v46 = vadd.f32 1e-05, %v1471_v60  ;;  %v1963_v31 = vsel %vm738_vm0, %v1915_v36, 0.0 }
 0x1dc   : > { %v2103_v32 = vsub.f32 1.5, %v2102_v34  ;;  %v1606_v38 = vmul.f32 %v6615_v57, %v1605_v23  ;;  %v1700_v4 = vadd.f32 %v6391_v33, %v1680_v28  ;;  %v2420_v48 = vmul.f32 %v2118_v18, %v6370_v44 }
 0x1dd   : > { %5179 = vrsqrt.f32 %v1488_v15  ;;  %v1596_v16 = vmul.f32 %v6619_v21, %v1595_v39  ;;  %vm1627_vm8 = vweird.f32 %v1488_v15  ;;  %vm1617_vm10 = vweird.f32 %v1487_v46 }
 0x1de   : > { %v2104_v52 = vmul.f32 %v5178_v8, %v2103_v32  ;;  %5181 = vrsqrt.f32 %v1487_v46  ;;  %v6702_v10 = vpack.c.bf16 %v1700_v4, %v1699_v13  ;;  %v2456_v53 = vmul.f32 %v6289_v50, %v2420_v48 }
 0x1df   : > { %v1610_v24 = vsel %vm6687_vm6, %v6615_v57, %v1606_v38  ;;  %v1600_v47 = vsel %vm6692_vm7, %v6619_v21, %v1596_v16 }
 0x1e0   : > { %v2108_v26 = vsel %vm6676_vm5, %v5178_v8, %v2104_v52  ;;  %1790 = vadd.xlane.f32.xlu0 %v1789_v25  ;;  %8344 = vst [vmem:[#allocation8_spill] sm:$0xff] %v6702_v10  ;;  %4928 = vmatmul.msk.bf16.gmra.mxu1 %vm738_vm0, %v6702_v10  ;;  %v2492_v8 = vadd.f32 %v6298_v1, %v2456_v53  ;;  %v6733_v25 = vld [vmem:[%s5688_s24 + $0x80] sm:$0xff]  ;;  %v1956_v48 = vpop.xlane.xlu1 %1955 }
 0x1e1   : > { %v2419_v17 = vmul.f32 %v2108_v26, %v6383_v35  ;;  %1964 = vadd.xlane.f32.xlu1 %v1963_v31  ;;  %4948 = vmatmul.msk.bf16.gmra.mxu2 %vm738_vm0, %v6702_v10  ;;  %v1662_v57 = vmul.f32 %v1610_v24, %v6401_v56  ;;  %v1661_v21 = vmul.f32 %v1600_v47, %v6404_v59  ;;  %v1795_v42 = vsel %vm738_vm0, %v6733_v25, 0.0 }
 0x1e2   : > { %v2038_v53 = vmul.f32 %v6602_v63, %v5934_v0 }
 0x1e3   : > { %v5180_v44 = vpop.eup %5179  ;;  %v2455_v35 = vmul.f32 %v6289_v50, %v2419_v17  ;;  %v1792_v50 = vsel %vm738_vm0, %v6719_v11, 0.0  ;;  %v1681_v56 = vmul.f32 %v6375_v20, %v1661_v21  ;;  %v1682_v59 = vmul.f32 %v6375_v20, %v1662_v57 }
 0x1e4   : > { %v5182_v49 = vpop.eup %5181  ;;  %v1622_v60 = vmul.f32 %v5180_v44, %v1488_v15  ;;  %vm1628_vm9 = vweird.f32 %v5180_v44 }
 0x1e5   : > { %v1612_v23 = vmul.f32 %v5182_v49, %v1487_v46  ;;  %v2491_v34 = vadd.f32 %v6298_v1, %v2455_v35  ;;  %vm1618_vm11 = vweird.f32 %v5182_v49  ;;  %v1701_v38 = vadd.f32 %v6391_v33, %v1681_v56  ;;  %vm1629_vm12 = vmor %vm1627_vm8, %vm1628_vm9 }
 0x1e6   : > { %v1623_v36 = vmul.f32 %v5180_v44, %v1622_v60  ;;  %v1702_v27 = vadd.f32 %v6391_v33, %v1682_v59  ;;  %vm1619_vm13 = vmor %vm1617_vm10, %vm1618_vm11  ;;  %v1779_v60 = vpop.xlane.xlu2 %1778 }
 0x1e7   : > { %v1613_v39 = vmul.f32 %v5182_v49, %v1612_v23  ;;  %v6724_v28 = vpack.c.bf16 %v2492_v8, %v2491_v34 }
 0x1e8   : > { %v1624_v18 = vmul.f32 0.5, %v1623_v36  ;;  %v6739_v13 = vpack.c.bf16 %v1702_v27, %v1701_v38  ;;  %v1455_v8 = vpop.xlane.xlu1 %1454 }
 0x1e9   : > { %v1614_v32 = vmul.f32 0.5, %v1613_v39  ;;  %4900 = vmatmul.msk.bf16.vlgmr.msra.gmra.mxu0 %vm738_vm0, %v6724_v28  ;;  %1793 = vadd.xlane.f32.xlu1 %v1792_v50 }
 0x1ea   : > { %v1625_v7 = vsub.f32 1.5, %v1624_v18  ;;  %8345 = vst [vmem:[#allocation9_spill] sm:$0xff] %v6739_v13 }
 0x1eb   : > { %v1615_v1 = vsub.f32 1.5, %v1614_v32 }
 0x1ec   : > { %v1626_v16 = vmul.f32 %v5180_v44, %v1625_v7  ;;  %v1853_v7 = vmul.f32 %v1779_v60, %v5934_v0 }
 0x1ed   : > { %v1616_v52 = vmul.f32 %v5182_v49, %v1615_v1 }
 0x1ee   : > { %v1630_v15 = vsel %vm1629_vm12, %v5180_v44, %v1626_v16  ;;  %v2070_v44 = vadd.f32 1e-05, %v2038_v53 }
 0x1ef   : > { %v1620_v4 = vsel %vm1619_vm13, %v5182_v49, %v1616_v52  ;;  %v1664_v46 = vmul.f32 %v1630_v15, %v6453_v29  ;;  %v1473_v29 = vmul.f32 %v1455_v8, %v5934_v0  ;;  %v6771_v15 = vpop.f32.mrf.mxu1 }
 0x1f0   : > { %4929 = vmatmul.msk.bf16.gmra.mxu1 %vm738_vm0, %v6739_v13  ;;  %v1663_v31 = vmul.f32 %v1620_v4, %v6456_v40  ;;  %5183 = vrsqrt.f32 %v2070_v44  ;;  %vm2135_vm14 = vweird.f32 %v2070_v44  ;;  %8347 = vst [vmem:[#allocation11_spill] sm:$0xff] %v6771_v15 }
 0x1f1   : > { %1796 = vadd.xlane.f32.xlu1 %v1795_v42  ;;  %4949 = vmatmul.msk.bf16.gmra.mxu2 %vm738_vm0, %v6739_v13  ;;  %v1684_v17 = vmul.f32 %v6375_v20, %v1664_v46  ;;  %v1489_v40 = vadd.f32 1e-05, %v1473_v29 }
 0x1f2   : > { %v1683_v26 = vmul.f32 %v6375_v20, %v1663_v31 }
 0x1f3   : > { %v1704_v47 = vadd.f32 %v6391_v33, %v1684_v17  ;;  %5185 = vrsqrt.f32 %v1489_v40  ;;  %v6779_v17 = vsub.f32 %v6488_v19, %v1853_v7  ;;  %vm1637_vm4 = vweird.f32 %v1489_v40 }
 0x1f4   : > { %v1703_v24 = vadd.f32 %v6391_v33, %v1683_v26  ;;  %v2040_v26 = vmul.f32 %v1956_v48, %v5934_v0 }
 0x1f5   : > { %v1917_v19 = vmul.f32 %v6779_v17, %v6779_v17 }
 0x1f6   : > { %v6753_v35 = vpack.c.bf16 %v1704_v47, %v1703_v24  ;;  %v5184_v49 = vpop.eup %5183  ;;  %v6786_v29 = vadd.f32 1e-05, %v2040_v26 }
 0x1f7   : > { %v2130_v63 = vmul.f32 %v5184_v49, %v2070_v44  ;;  %vm2136_vm15 = vweird.f32 %v5184_v49 }
 0x1f8   : > { %8346 = vst [vmem:[#allocation10_spill] sm:$0xff] %v6753_v35  ;;  %vm6773_vm1 = vmor %vm2135_vm14, %vm2136_vm15  ;;  %vm2155_vm11 = vweird.f32 %v6786_v29 }
 0x1f9   : > { %v2131_v57 = vmul.f32 %v5184_v49, %v2130_v63  ;;  %v6760_v23 = vpop.eup %5185 }
 0x1fa   : > { %v1632_v50 = vmul.f32 %v6760_v23, %v1489_v40  ;;  %vm1638_vm5 = vweird.f32 %v6760_v23  ;;  %v5107_v40 = vld [vmem:[%s8273_s17 + $0x18] sm:$0xff] }
 0x1fb   : > { %v2132_v36 = vmul.f32 0.5, %v2131_v57  ;;  %vm6794_vm7 = vmor %vm1637_vm4, %vm1638_vm5  ;;  %3479 = vmatpush.bf16.msrb.mxu2 %v5107_v40 }
 0x1fc   : > { %v1633_v32 = vmul.f32 %v6760_v23, %v1632_v50 }
 0x1fd   : > { %v2133_v18 = vsub.f32 1.5, %v2132_v36  ;;  %v1969_v36 = vsel %vm738_vm0, %v1917_v19, 0.0 }
 0x1fe   : > { %v1634_v46 = vmul.f32 0.5, %v1633_v32  ;;  %v6808_v32 = vld [vmem:[%s8269_s13] ss:$0 sm:$0xff] }
 0x1ff   : > { %v2134_v16 = vmul.f32 %v5184_v49, %v2133_v18 }
 0x200   : > { %4930 = vmatmul.msk.bf16.gmra.mxu1 %vm738_vm0, %v6753_v35  ;;  %v1635_v44 = vsub.f32 1.5, %v1634_v46 }
 0x201   : > { %4950 = vmatmul.msk.bf16.gmra.mxu2 %vm738_vm0, %v6753_v35 }
 0x202   : > { %v1636_v60 = vmul.f32 %v6760_v23, %v1635_v44 }
 0x20f   : > { %v1947_v21 = vpop.xlane.xlu0 %1946 }
 0x210   : > { %v2037_v34 = vmul.f32 %v1947_v21, %v5934_v0 }
 0x212   : > { %v2069_v39 = vadd.f32 1e-05, %v2037_v34 }
 0x214   : > { %5187 = vrsqrt.f32 %v2069_v39  ;;  %vm2125_vm2 = vweird.f32 %v2069_v39 }
 0x217   : > { %v1458_v56 = vpop.xlane.xlu2 %1457  ;;  %v1776_v59 = vpop.xlane.xlu0 %1775 }
 0x218   : > { %v1474_v1 = vmul.f32 %v1458_v56, %v5934_v0  ;;  %v1852_v38 = vmul.f32 %v1776_v59, %v5934_v0  ;;  %v1640_v59 = vsel %vm6794_vm7, %v6760_v23, %v1636_v60  ;;  %v6825_v23 = vld [vmem:[%s8270_s14] ss:$0 sm:$0xff] }
 0x219   : > { %v1665_v4 = vmul.f32 %v1640_v59, %v6481_v43 }
 0x21a   : > { %v5188_v27 = vpop.eup %5187  ;;  %v1490_v52 = vadd.f32 1e-05, %v1474_v1  ;;  %v6769_v42 = vsub.f32 %v6503_v61, %v1852_v38  ;;  %v2138_v61 = vsel %vm6773_vm1, %v5184_v49, %v2134_v16 }
 0x21b   : > { %v2120_v31 = vmul.f32 %v5188_v27, %v2069_v39  ;;  %vm2126_vm3 = vweird.f32 %v5188_v27  ;;  %v2422_v49 = vmul.f32 %v2138_v61, %v6435_v12  ;;  %v6802_v39 = vpop.f32.mrf.mxu1  ;;  %v1685_v44 = vmul.f32 %v6375_v20, %v1665_v4 }
 0x21c   : > { %5189 = vrsqrt.f32 %v1490_v52  ;;  %v1916_v53 = vmul.f32 %v6769_v42, %v6769_v42  ;;  %vm2127_vm6 = vmor %vm2125_vm2, %vm2126_vm3  ;;  %8352 = vst [vmem:[#allocation12_spill] sm:$0xff] %v6802_v39  ;;  %vm1647_vm8 = vweird.f32 %v1490_v52 }
 0x21d   : > { %v2121_v24 = vmul.f32 %v5188_v27, %v2120_v31  ;;  %5191 = vrsqrt.f32 %v6786_v29  ;;  %v2458_v56 = vmul.f32 %v6808_v32, %v2422_v49  ;;  %v6842_v49 = vld [vmem:[%s5688_s24 + $0x90] sm:$0xff] }
 0x21e   : > { %v1966_v47 = vsel %vm738_vm0, %v1916_v53, 0.0 }
 0x21f   : > { %v2122_v8 = vmul.f32 0.5, %v2121_v24  ;;  %1967 = vadd.xlane.f32.xlu2 %v1966_v47  ;;  %v2494_v46 = vadd.f32 %v6825_v23, %v2458_v56 }
 0x221   : > { %v2123_v48 = vsub.f32 1.5, %v2122_v8 }
 0x222   : > { %v5190_v63 = vpop.eup %5189 }
 0x223   : > { %v2124_v57 = vmul.f32 %v5188_v27, %v2123_v48  ;;  %v1642_v21 = vmul.f32 %v5190_v63, %v1490_v52  ;;  %vm1648_vm9 = vweird.f32 %v5190_v63  ;;  %v5192_v16 = vpop.eup %5191  ;;  %v6833_v24 = vpop.f32.mrf.mxu1 }
 0x224   : > { %vm1649_vm10 = vmor %vm1647_vm8, %vm1648_vm9  ;;  %v2150_v43 = vmul.f32 %v5192_v16, %v6786_v29  ;;  %vm2156_vm12 = vweird.f32 %v5192_v16 }
 0x225   : > { %v2128_v12 = vsel %vm2127_vm6, %v5188_v27, %v2124_v57  ;;  %v1643_v50 = vmul.f32 %v5190_v63, %v1642_v21  ;;  %v6819_v27 = vld [vmem:[%s5688_s24 + $0x88] sm:$0xff]  ;;  %v1705_v57 = vadd.f32 %v6391_v33, %v1685_v44  ;;  %v6847_v21 = vpop.f32.mrf.mxu2  ;;  %vm2157_vm13 = vmor %vm2155_vm11, %vm2156_vm12 }
 0x226   : > { %v2421_v18 = vmul.f32 %v2128_v12, %v6495_v22  ;;  %v5106_v22 = vld [vmem:[%s8273_s17 + $0x10] sm:$0xff]  ;;  %v1798_v53 = vsel %vm738_vm0, %v6819_v27, 0.0  ;;  %v2151_v19 = vmul.f32 %v5192_v16, %v2150_v43 }
 0x227   : > { %v1644_v7 = vmul.f32 0.5, %v1643_v50  ;;  %1970 = vadd.xlane.f32.xlu2 %v1969_v36  ;;  %3480 = vmatpush.bf16.msrb.mxu2 %v5106_v22  ;;  %v1801_v36 = vsel %vm738_vm0, %v6842_v49, 0.0 }
 0x228   : > { %v2457_v1 = vmul.f32 %v6808_v32, %v2421_v18  ;;  %v2152_v40 = vmul.f32 0.5, %v2151_v19 }
 0x229   : > { %v1645_v38 = vsub.f32 1.5, %v1644_v7 }
 0x22a   : > { %v2493_v52 = vadd.f32 %v6825_v23, %v2457_v1  ;;  %v2153_v12 = vsub.f32 1.5, %v2152_v40 }
 0x22b   : > { %v1646_v31 = vmul.f32 %v5190_v63, %v1645_v38 }
 0x22c   : > { %v6829_v26 = vpack.c.bf16 %v2494_v46, %v2493_v52  ;;  %v2154_v22 = vmul.f32 %v5192_v16, %v2153_v12  ;;  %v6891_v12 = vld [vmem:[%s5688_s24 + $0x98] sm:$0xff] }
 0x22d   : > { %v1650_v61 = vsel %vm1649_vm10, %v5190_v63, %v1646_v31  ;;  %v6865_v1 = vpop.f32.mrf.mxu2 }
 0x22e   : > { %v1666_v47 = vmul.f32 %v1650_v61, %v6507_v51  ;;  %4901 = vmatmul.msk.bf16.gmra.mxu0 %vm738_vm0, %v6829_v26 }
 0x22f   : > { %1799 = vadd.xlane.f32.xlu2 %v1798_v53  ;;  %v2158_v53 = vsel %vm2157_vm13, %v5192_v16, %v2154_v22 }
 0x230   : > { %v1686_v8 = vmul.f32 %v6375_v20, %v1666_v47  ;;  %v6857_v20 = vpop.f32.mrf.mxu1 }
 0x232   : > { %v1706_v63 = vadd.f32 %v6391_v33, %v1686_v8  ;;  %v1785_v33 = vpop.xlane.xlu2 %1784  ;;  %v2424_v8 = vmul.f32 %v2158_v53, %v6474_v9 }
 0x233   : > { %v1953_v48 = vpop.xlane.xlu0 %1952  ;;  %v1855_v56 = vmul.f32 %v1785_v33, %v5934_v0 }
 0x234   : > { %v2039_v60 = vmul.f32 %v1953_v48, %v5934_v0  ;;  %v6849_v34 = vpack.c.bf16 %v1706_v63, %v1705_v57  ;;  %v2460_v63 = vmul.f32 %v6808_v32, %v2424_v8 }
 0x235   : > { %v6868_v4 = vsub.f32 %v6527_v58, %v1855_v56  ;;  %v6882_v48 = vpop.f32.mrf.mxu2 }
 0x236   : > { %v2071_v51 = vadd.f32 1e-05, %v2039_v60  ;;  %8353 = vst [vmem:[#allocation13_spill] sm:$0xff] %v6849_v34  ;;  %4931 = vmatmul.msk.bf16.gmra.mxu1 %vm738_vm0, %v6849_v34  ;;  %4951 = vmatmul.msk.bf16.gmra.mxu2 %vm738_vm0, %v6849_v34  ;;  %v2496_v56 = vadd.f32 %v6825_v23, %v2460_v63 }
 0x237   : > { %1802 = vadd.xlane.f32.xlu2 %v1801_v36  ;;  %v1919_v47 = vmul.f32 %v6868_v4, %v6868_v4 }
 0x238   : > { %5193 = vrsqrt.f32 %v2071_v51  ;;  %v6873_v29 = vpop.f32.mrf.mxu1  ;;  %vm2145_vm15 = vweird.f32 %v2071_v51 }
 0x239   : > { %v1975_v16 = vsel %vm738_vm0, %v1919_v47, 0.0 }
 0x23b   : > { %v1782_v50 = vpop.xlane.xlu0 %1781 }
 0x23c   : > { %v1854_v18 = vmul.f32 %v1782_v50, %v5934_v0 }
 0x23d   : > { %v6905_v53 = vpop.f32.mrf.mxu2 }
 0x23e   : > { %v5194_v59 = vpop.eup %5193  ;;  %v6863_v7 = vsub.f32 %v6550_v54, %v1854_v18 }
 0x23f   : > { %v2140_v38 = vmul.f32 %v5194_v59, %v2071_v51  ;;  %vm2146_vm14 = vweird.f32 %v5194_v59 }
 0x240   : > { %v1918_v52 = vmul.f32 %v6863_v7, %v6863_v7  ;;  %vm2147_vm1 = vmor %vm2145_vm15, %vm2146_vm14  ;;  %v6888_v40 = vpop.f32.mrf.mxu1  ;;  %vm2875_vm14 = vcmask 130048  }
 0x241   : > { %v2141_v46 = vmul.f32 %v5194_v59, %v2140_v38 }
 0x242   : > { %v1972_v31 = vsel %vm738_vm0, %v1918_v52, 0.0  ;;  %v1804_v52 = vsel %vm738_vm0, %v6891_v12, 0.0 }
 0x243   : > { %v2142_v43 = vmul.f32 0.5, %v2141_v46  ;;  %1973 = vadd.xlane.f32.xlu0 %v1972_v31  ;;  %v1959_v54 = vpop.xlane.xlu0 %1958 }
 0x244   : > { %v2041_v61 = vmul.f32 %v1959_v54, %v5934_v0 }
 0x245   : > { %v2143_v44 = vsub.f32 1.5, %v2142_v43 }
 0x246   : > { %v2073_v58 = vadd.f32 1e-05, %v2041_v61  ;;  %4980 = vmatmul.msk.bf16.vlgmr.msrb.gmra.mxu2 %vm738_vm0, %v6724_v28 }
 0x247   : > { %v2144_v19 = vmul.f32 %v5194_v59, %v2143_v44 }
 0x248   : > { %5195 = vrsqrt.f32 %v2073_v58  ;;  %v6908_v47 = vpop.f32.mrf.mxu1  ;;  %vm2165_vm3 = vweird.f32 %v2073_v58 }
 0x249   : > { %v2148_v60 = vsel %vm2147_vm1, %v5194_v59, %v2144_v19  ;;  %v6913_v19 = vld [vmem:[%s5688_s24 + $0xa0] sm:$0xff] }
 0x24a   : > { %v2423_v57 = vmul.f32 %v2148_v60, %v6536_v45 }
 0x24b   : > { %1976 = vadd.xlane.f32.xlu0 %v1975_v16  ;;  %v1788_v36 = vpop.xlane.xlu0 %1787 }
 0x24c   : > { %v1856_v9 = vmul.f32 %v1788_v36, %v5934_v0  ;;  %v2459_v51 = vmul.f32 %v6808_v32, %v2423_v57  ;;  %v1962_v33 = vpop.xlane.xlu1 %1961  ;;  %v1807_v57 = vsel %vm738_vm0, %v6913_v19, 0.0 }
 0x24d   : > { %v2042_v50 = vmul.f32 %v1962_v33, %v5934_v0  ;;  %v6925_v33 = vpop.f32.mrf.mxu2 }
 0x24e   : > { %v5196_v28 = vpop.eup %5195  ;;  %v6895_v18 = vsub.f32 %v6605_v5, %v1856_v9  ;;  %v2495_v45 = vadd.f32 %v6825_v23, %v2459_v51 }
 0x24f   : > { %v2160_v59 = vmul.f32 %v5196_v28, %v2073_v58  ;;  %v2074_v22 = vadd.f32 1e-05, %v2042_v50  ;;  %vm2166_vm2 = vweird.f32 %v5196_v28 }
 0x250   : > { %v2525_v38 = vpack.c.bf16 %v2496_v56, %v2495_v45  ;;  %v1920_v46 = vmul.f32 %v6895_v18, %v6895_v18  ;;  %vm2167_vm4 = vmor %vm2165_vm3, %vm2166_vm2  ;;  %v6928_v56 = vld [vmem:[%s5688_s24 + $0xa8] sm:$0xff] }
 0x251   : > { %v2161_v31 = vmul.f32 %v5196_v28, %v2160_v59  ;;  %5197 = vrsqrt.f32 %v2074_v22  ;;  %vm2175_vm5 = vweird.f32 %v2074_v22 }
 0x252   : > { %4902 = vmatmul.msk.bf16.gmra.mxu0 %vm738_vm0, %v2525_v38  ;;  %v1978_v5 = vsel %vm738_vm0, %v1920_v46, 0.0 }
 0x253   : > { %v2162_v43 = vmul.f32 0.5, %v2161_v31  ;;  %1805 = vadd.xlane.f32.xlu0 %v1804_v52  ;;  %1979 = vadd.xlane.f32.xlu1 %v1978_v5  ;;  %v1791_v54 = vpop.xlane.xlu0 %1790  ;;  %v6931_v52 = vpop.f32.mrf.mxu1  ;;  %v1810_v31 = vsel %vm738_vm0, %v6928_v56, 0.0 }
 0x254   : > { %v1857_v61 = vmul.f32 %v1791_v54, %v5934_v0  ;;  %v6910_v8 = vpop.xlane.xlu1 %1964 }
 0x255   : > { %v2163_v44 = vsub.f32 1.5, %v2162_v43 }
 0x256   : > { %v6916_v16 = vsub.f32 %v6664_v37, %v1857_v61  ;;  %4981 = vmatmul.msk.bf16.gmra.mxu2 %vm738_vm0, %v6829_v26 }
 0x257   : > { %v5198_v60 = vpop.eup %5197  ;;  %v2164_v36 = vmul.f32 %v5196_v28, %v2163_v44 }
 0x258   : > { %v1921_v63 = vmul.f32 %v6916_v16, %v6916_v16  ;;  %v2170_v9 = vmul.f32 %v5198_v60, %v2074_v22  ;;  %vm2176_vm6 = vweird.f32 %v5198_v60 }
 0x259   : > { %v2168_v26 = vsel %vm2167_vm4, %v5196_v28, %v2164_v36  ;;  %vm2177_vm7 = vmor %vm2175_vm5, %vm2176_vm6 }
 0x25a   : > { %v1981_v51 = vsel %vm738_vm0, %v1921_v63, 0.0  ;;  %v2171_v37 = vmul.f32 %v5198_v60, %v2170_v9  ;;  %v2425_v28 = vmul.f32 %v2168_v26, %v6560_v55  ;;  %v6947_v63 = vld [vmem:[%s5688_s24 + $0xb0] sm:$0xff] }
 0x25b   : > { %1808 = vadd.xlane.f32.xlu0 %v1807_v57  ;;  %1982 = vadd.xlane.f32.xlu1 %v1981_v51  ;;  %v6944_v57 = vpop.f32.mrf.mxu2  ;;  %v6951_v9 = vpop.f32.mrf.mxu1 }
 0x25c   : > { %v2172_v50 = vmul.f32 0.5, %v2171_v37  ;;  %v1794_v45 = vpop.xlane.xlu1 %1793  ;;  %v2461_v44 = vmul.f32 %v6808_v32, %v2425_v28  ;;  %v1813_v37 = vsel %vm738_vm0, %v6947_v63, 0.0  ;;  %v6977_v28 = vld [vmem:[%s5688_s24 + $0xc0] sm:$0xff] }
 0x25d   : > { %v1858_v59 = vmul.f32 %v1794_v45, %v5934_v0 }
 0x25e   : > { %v2173_v46 = vsub.f32 1.5, %v2172_v50 }
 0x25f   : > { %v6934_v58 = vsub.f32 %v6719_v11, %v1858_v59  ;;  %v6968_v59 = vld [vmem:[%s5688_s24 + $0xb8] sm:$0xff] }
 0x260   : > { %v2174_v22 = vmul.f32 %v5198_v60, %v2173_v46 }
 0x261   : > { %v1922_v5 = vmul.f32 %v6934_v58, %v6934_v58 }
 0x262   : > { %v2178_v43 = vsel %vm2177_vm7, %v5198_v60, %v2174_v22  ;;  %v1819_v22 = vsel %vm738_vm0, %v6977_v28, 0.0 }
 0x263   : > { %1811 = vadd.xlane.f32.xlu1 %v1810_v31  ;;  %v1984_v54 = vsel %vm738_vm0, %v1922_v5, 0.0  ;;  %v2426_v61 = vmul.f32 %v2178_v43, %v6632_v14  ;;  %v2497_v14 = vadd.f32 %v6825_v23, %v2461_v44  ;;  %v6965_v45 = vpop.f32.mrf.mxu2  ;;  %v6970_v46 = vpop.f32.mrf.mxu1  ;;  %v2043_v43 = vmul.f32 %v6910_v8, %v5934_v0 }
 0x264   : > { %v1797_v11 = vpop.xlane.xlu1 %1796  ;;  %1985 = vadd.xlane.f32.xlu2 %v1984_v54 }
 0x265   : > { %v1859_v55 = vmul.f32 %v1797_v11, %v5934_v0  ;;  %v2462_v36 = vmul.f32 %v6808_v32, %v2426_v61  ;;  %v2075_v61 = vadd.f32 1e-05, %v2043_v43 }
 0x266   : > { %4982 = vmatmul.msk.bf16.gmra.mxu2 %vm738_vm0, %v2525_v38  ;;  %v1816_v38 = vsel %vm738_vm0, %v6968_v59, 0.0 }
 0x267   : > { %v6954_v60 = vsub.f32 %v6733_v25, %v1859_v55  ;;  %v2498_v51 = vadd.f32 %v6825_v23, %v2462_v36  ;;  %5199 = vrsqrt.f32 %v2075_v61  ;;  %vm2185_vm8 = vweird.f32 %v2075_v61 }
 0x269   : > { %8354 = vst [vmem:[#allocation14_spill] sm:$0xff] %v6954_v60  ;;  %v2526_v26 = vpack.c.bf16 %v2498_v51, %v2497_v14  ;;  %v1923_v50 = vmul.f32 %v6954_v60, %v6954_v60 }
 0x26b   : > { %1814 = vadd.xlane.f32.xlu1 %v1813_v37  ;;  %4903 = vmatmul.msk.bf16.gmra.mxu0 %vm738_vm0, %v2526_v26  ;;  %v1987_v25 = vsel %vm738_vm0, %v1923_v50, 0.0  ;;  %v6974_v31 = vpop.f32.mrf.mxu2  ;;  %v6982_v5 = vpop.f32.mrf.mxu1 }
 0x26c   : > { %1988 = vadd.xlane.f32.xlu2 %v1987_v25 }
 0x26d   : > { %v5200_v55 = vpop.eup %5199 }
 0x26e   : > { %v2180_v14 = vmul.f32 %v5200_v55, %v2075_v61  ;;  %vm2186_vm9 = vweird.f32 %v5200_v55 }
 0x26f   : > { %vm2187_vm10 = vmor %vm2185_vm8, %vm2186_vm9 }
 0x270   : > { %v2181_v51 = vmul.f32 %v5200_v55, %v2180_v14 }
 0x272   : > { %v2182_v8 = vmul.f32 0.5, %v2181_v51 }
 0x273   : > { %v6986_v54 = vpop.f32.mrf.mxu2  ;;  %v6988_v44 = vpop.f32.mrf.mxu1 }
 0x274   : > { %1817 = vadd.xlane.f32.xlu2 %v1816_v38 }
 0x276   : > { %4983 = vmatmul.msk.bf16.gmra.mxu2 %vm738_vm0, %v2526_v26 }
 0x27b   : > { %v6990_v11 = vpop.f32.mrf.mxu2  ;;  %v6992_v36 = vpop.f32.mrf.mxu1 }
 0x27c   : > { %1820 = vadd.xlane.f32.xlu2 %v1819_v22  ;;  %v2183_v22 = vsub.f32 1.5, %v2182_v8 }
 0x27e   : > { %v2184_v15 = vmul.f32 %v5200_v55, %v2183_v22 }
 0x283   : > { %v6994_v26 = vpop.f32.mrf.mxu2  ;;  %v6997_v38 = vpop.f32.mrf.mxu1 }
 0x28b   : > { %v6999_v39 = vpop.f32.mrf.mxu2  ;;  %v7002_v10 = vpop.f32.mrf.mxu1 }
 0x292   : > { %v1968_v37 = vpop.xlane.xlu2 %1967 }
 0x293   : > { %v2044_v50 = vmul.f32 %v1968_v37, %v5934_v0  ;;  %v2188_v37 = vsel %vm2187_vm10, %v5200_v55, %v2184_v15 }
 0x294   : > { %v2427_v22 = vmul.f32 %v2188_v37, %v6641_v30 }
 0x295   : > { %v2076_v25 = vadd.f32 1e-05, %v2044_v50 }
 0x297   : > { %5201 = vrsqrt.f32 %v2076_v25  ;;  %vm2195_vm11 = vweird.f32 %v2076_v25 }
 0x29a   : > { %v1971_v43 = vpop.xlane.xlu2 %1970 }
 0x29b   : > { %v2045_v14 = vmul.f32 %v1971_v43, %v5934_v0  ;;  %v7009_v43 = vpop.f32.mrf.mxu2 }
 0x29d   : > { %v5202_v34 = vpop.eup %5201  ;;  %v2077_v8 = vadd.f32 1e-05, %v2045_v14 }
 0x29e   : > { %v2190_v35 = vmul.f32 %v5202_v34, %v2076_v25  ;;  %vm2196_vm12 = vweird.f32 %v5202_v34  ;;  %v2463_v25 = vmul.f32 %v6808_v32, %v2427_v22 }
 0x29f   : > { %vm2197_vm13 = vmor %vm2195_vm11, %vm2196_vm12  ;;  %5203 = vrsqrt.f32 %v2077_v8  ;;  %vm2205_vm15 = vweird.f32 %v2077_v8 }
 0x2a0   : > { %v2191_v13 = vmul.f32 %v5202_v34, %v2190_v35 }
 0x2a2   : > { %v2192_v51 = vmul.f32 0.5, %v2191_v13  ;;  %v1800_v50 = vpop.xlane.xlu2 %1799 }
 0x2a3   : > { %v1860_v61 = vmul.f32 %v1800_v50, %v5934_v0  ;;  %v2843_v22 = vpop.f32.mrf.mxu2 }
 0x2a4   : > { %v2193_v3 = vsub.f32 1.5, %v2192_v51  ;;  %v3283_v60 = vpack.c.bf16 %v2843_v22, %v7009_v43  ;;  %v7072_v22 = vpop.f32.mrf.mxu0 }
 0x2a5   : > { %v7006_v41 = vsub.f32 %v6819_v27, %v1860_v61  ;;  %v2777_v27 = vpop.f32.mrf.mxu1  ;;  %v7018_v30 = vpop.eup %5203 }
 0x2a6   : > { %v2194_v62 = vmul.f32 %v5202_v34, %v2193_v3  ;;  %v2200_v61 = vmul.f32 %v7018_v30, %v2077_v8  ;;  %vm2206_vm1 = vweird.f32 %v7018_v30 }
 0x2a7   : > { %8355 = vst [vmem:[#allocation15_spill] sm:$0xff] %v7006_v41  ;;  %v1924_v13 = vmul.f32 %v7006_v41, %v7006_v41  ;;  %vm7049_vm2 = vmor %vm2205_vm15, %vm2206_vm1 }
 0x2a8   : > { %v2198_v35 = vsel %vm2197_vm13, %v5202_v34, %v2194_v62  ;;  %v2499_v62 = vadd.f32 %v6825_v23, %v2463_v25 }
 0x2a9   : > { %v1990_v15 = vsel %vm738_vm0, %v1924_v13, 0.0  ;;  %v2428_v55 = vmul.f32 %v2198_v35, %v6769_v42  ;;  %v2201_v35 = vmul.f32 %v7018_v30, %v2200_v61 }
 0x2aa   : > { %v1803_v14 = vpop.xlane.xlu2 %1802  ;;  %1991 = vadd.xlane.f32.xlu0 %v1990_v15 }
 0x2ab   : > { %v1861_v51 = vmul.f32 %v1803_v14, %v5934_v0  ;;  %v2464_v3 = vmul.f32 %v6808_v32, %v2428_v55  ;;  %v7033_v55 = vld [vmem:[%s5688_s24 + $0xc8] sm:$0xff] }
 0x2ac   : > { %8357 = vst [vmem:[#allocation17_spill] sm:$0xff] %v7033_v55 }
 0x2ad   : > { %v7021_v37 = vsub.f32 %v6842_v49, %v1861_v51  ;;  %v2500_v34 = vadd.f32 %v6825_v23, %v2464_v3  ;;  %v1822_v51 = vsel %vm738_vm0, %v7033_v55, 0.0  ;;  %v2202_v3 = vmul.f32 0.5, %v2201_v35 }
 0x2ae   : > { %v1825_v35 = vsel %vm738_vm0, %v7039_v2, 0.0 }
 0x2af   : > { %8356 = vst [vmem:[#allocation16_spill] sm:$0xff] %v7021_v37  ;;  %v2527_v42 = vpack.c.bf16 %v2500_v34, %v2499_v62  ;;  %v1925_v50 = vmul.f32 %v7021_v37, %v7021_v37 }
 0x2b1   : > { %4904 = vmatmul.msk.bf16.gmra.mxu0 %vm738_vm0, %v2527_v42  ;;  %4984 = vmatmul.msk.bf16.gmra.mxu2 %vm738_vm0, %v2527_v42  ;;  %v1993_v13 = vsel %vm738_vm0, %v1925_v50, 0.0  ;;  %v2203_v42 = vsub.f32 1.5, %v2202_v3 }
 0x2b2   : > { %1994 = vadd.xlane.f32.xlu0 %v1993_v13 }
 0x2b3   : > { %v2780_v49 = vpop.f32.mrf.mxu1 }
 0x2b6   : > { %v1974_v15 = vpop.xlane.xlu0 %1973 }
 0x2b7   : > { %v2046_v25 = vmul.f32 %v1974_v15, %v5934_v0 }
 0x2b9   : > { %v2078_v14 = vadd.f32 1e-05, %v2046_v25  ;;  %v2846_v62 = vpop.f32.mrf.mxu2 }
 0x2ba   : > { %1823 = vadd.xlane.f32.xlu0 %v1822_v51 }
 0x2bb   : > { %5205 = vrsqrt.f32 %v2078_v14  ;;  %v2782_v34 = vpop.f32.mrf.mxu1  ;;  %vm2215_vm4 = vweird.f32 %v2078_v14 }
 0x2bc   : > { %v2874_v13 = vpack.c.bf16 %v2782_v34, %v2780_v49  ;;  %v2204_v49 = vmul.f32 %v7018_v30, %v2203_v42  ;;  %v2873_v34 = vpack.c.bf16 %v2777_v27, %v7002_v10 }
 0x2be   : > { %v1977_v50 = vpop.xlane.xlu0 %1976  ;;  %v2946_v15 = vsel %vm2875_vm14, %v2874_v13, 0  ;;  %v2943_v10 = vsel %vm2875_vm14, %v2873_v34, 0 }
 0x2bf   : > { %v2047_v61 = vmul.f32 %v1977_v50, %v5934_v0  ;;  %2948 = vmatpush.bf16.xpose.msrb.mxu0 %v2946_v15  ;;  %5115 = vmatpush.bf16.xpose.msra.mxu3 %v2946_v15 }
 0x2c1   : > { %v5206_v25 = vpop.eup %5205  ;;  %v7044_v6 = vadd.f32 1e-05, %v2047_v61  ;;  %v2848_v8 = vpop.f32.mrf.mxu2  ;;  %v2208_v61 = vsel %vm7049_vm2, %v7018_v30, %v2204_v49 }
 0x2c2   : > { %v2210_v51 = vmul.f32 %v5206_v25, %v2078_v14  ;;  %v3284_v13 = vpack.c.bf16 %v2848_v8, %v2846_v62  ;;  %1826 = vadd.xlane.f32.xlu0 %v1825_v35  ;;  %vm2216_vm3 = vweird.f32 %v5206_v25  ;;  %v2429_v35 = vmul.f32 %v2208_v61, %v6779_v17 }
 0x2c3   : > { %5207 = vrsqrt.f32 %v7044_v6  ;;  %vm2217_vm5 = vmor %vm2215_vm4, %vm2216_vm3  ;;  %v3282_v17 = vpack.c.bf16 %v6999_v39, %v6994_v26  ;;  %v3281_v26 = vpack.c.bf16 %v6990_v11, %v6986_v54  ;;  %vm2225_vm7 = vweird.f32 %v7044_v6 }
 0x2c4   : > { %v2211_v50 = vmul.f32 %v5206_v25, %v2210_v51  ;;  %3285 = vmatpush.bf16.msra.mxu1 %v3284_v13  ;;  %v2465_v49 = vmul.f32 %v6808_v32, %v2429_v35  ;;  %v2871_v35 = vpack.c.bf16 %v6988_v44, %v6982_v5  ;;  %v3279_v44 = vpack.c.bf16 %v6944_v57, %v6925_v33 }
 0x2c6   : > { %v2212_v15 = vmul.f32 0.5, %v2211_v50  ;;  %v1980_v37 = vpop.xlane.xlu1 %1979  ;;  %v1806_v42 = vpop.xlane.xlu0 %1805  ;;  %v2501_v61 = vadd.f32 %v6825_v23, %v2465_v49 }
 0x2c7   : > { %v2048_v2 = vmul.f32 %v1980_v37, %v5934_v0  ;;  %v1862_v41 = vmul.f32 %v1806_v42, %v5934_v0  ;;  %2949 = vmatpush.bf16.xpose.msrb.mxu0 %v2943_v10  ;;  %5116 = vmatpush.bf16.xpose.msra.mxu3 %v2943_v10  ;;  %v3280_v10 = vpack.c.bf16 %v6974_v31, %v6965_v45 }
 0x2c8   : > { %v2213_v55 = vsub.f32 1.5, %v2212_v15  ;;  %3286 = vmatpush.bf16.msra.mxu1 %v3283_v60 }
 0x2c9   : > { %v7062_v27 = vpop.eup %5207  ;;  %v7064_v62 = vadd.f32 1e-05, %v2048_v2  ;;  %v7067_v30 = vsub.f32 %v6891_v12, %v1862_v41  ;;  %v2872_v41 = vpack.c.bf16 %v6997_v38, %v6992_v36 }
 0x2ca   : > { %v2214_v37 = vmul.f32 %v5206_v25, %v2213_v55  ;;  %v2220_v43 = vmul.f32 %v7062_v27, %v7044_v6  ;;  %vm2226_vm6 = vweird.f32 %v7062_v27 }
 0x2cb   : > { %5209 = vrsqrt.f32 %v7064_v62  ;;  %v1926_v2 = vmul.f32 %v7067_v30, %v7067_v30  ;;  %vm7111_vm8 = vmor %vm2225_vm7, %vm2226_vm6  ;;  %vm2235_vm10 = vweird.f32 %v7064_v62 }
 0x2cc   : > { %v2218_v12 = vsel %vm2217_vm5, %v5206_v25, %v2214_v37  ;;  %v2221_v55 = vmul.f32 %v7062_v27, %v2220_v43  ;;  %3287 = vmatpush.bf16.msra.mxu1 %v3282_v17  ;;  %v2940_v25 = vsel %vm2875_vm14, %v2872_v41, 0  ;;  %v7109_v43 = vpop.f32.mrf.mxu0 }
 0x2cd   : > { %v1996_v14 = vsel %vm738_vm0, %v1926_v2, 0.0  ;;  %v2430_v60 = vmul.f32 %v2218_v12, %v6863_v7 }
 0x2ce   : > { %v2222_v51 = vmul.f32 0.5, %v2221_v55  ;;  %v1983_v3 = vpop.xlane.xlu1 %1982  ;;  %1997 = vadd.xlane.f32.xlu1 %v1996_v14  ;;  %v1809_v8 = vpop.xlane.xlu0 %1808  ;;  %v2937_v55 = vsel %vm2875_vm14, %v2871_v35, 0  ;;  %v7126_v14 = vld [vmem:[%s5688_s24 + $0xd8] sm:$0xff] }
 0x2cf   : > { %v2049_v34 = vmul.f32 %v1983_v3, %v5934_v0  ;;  %v1863_v36 = vmul.f32 %v1809_v8, %v5934_v0  ;;  %v2466_v39 = vmul.f32 %v6808_v32, %v2430_v60  ;;  %2950 = vmatpush.bf16.xpose.msrb.mxu0 %v2940_v25  ;;  %5117 = vmatpush.bf16.xpose.msra.mxu3 %v2940_v25 }
 0x2d0   : > { %v2223_v38 = vsub.f32 1.5, %v2222_v51  ;;  %3288 = vmatpush.bf16.msra.mxu1 %v3281_v26 }
 0x2d1   : > { %v5210_v7 = vpop.eup %5209  ;;  %v7091_v50 = vadd.f32 1e-05, %v2049_v34  ;;  %v7094_v13 = vsub.f32 %v6913_v19, %v1863_v36  ;;  %v2502_v15 = vadd.f32 %v6825_v23, %v2466_v39  ;;  %v3278_v34 = vpack.c.bf16 %v6905_v53, %v6882_v48 }
 0x2d2   : > { %v2224_v42 = vmul.f32 %v7062_v27, %v2223_v38  ;;  %v2230_v54 = vmul.f32 %v5210_v7, %v7064_v62  ;;  %vm2236_vm9 = vweird.f32 %v5210_v7 }
 0x2d3   : > { %5211 = vrsqrt.f32 %v7091_v50  ;;  %v2528_v11 = vpack.c.bf16 %v2502_v15, %v2501_v61  ;;  %v1927_v19 = vmul.f32 %v7094_v13, %v7094_v13  ;;  %vm2237_vm11 = vmor %vm2235_vm10, %vm2236_vm9  ;;  %vm2245_vm13 = vweird.f32 %v7091_v50 }
 0x2d4   : > { %v2231_v37 = vmul.f32 %v5210_v7, %v2230_v54  ;;  %v2228_v45 = vsel %vm7111_vm8, %v7062_v27, %v2224_v42  ;;  %3289 = vmatpush.bf16.msra.mxu1 %v3280_v10  ;;  %v7147_v39 = vpop.f32.mrf.mxu0 }
 0x2d5   : > { %4905 = vmatmul.msk.bf16.gmra.mxu0 %vm738_vm0, %v2528_v11  ;;  %4985 = vmatmul.msk.bf16.gmra.mxu2 %vm738_vm0, %v2528_v11  ;;  %v1999_v41 = vsel %vm738_vm0, %v1927_v19, 0.0  ;;  %v2431_v51 = vmul.f32 %v2228_v45, %v6868_v4  ;;  %v2870_v4 = vpack.c.bf16 %v6970_v46, %v6951_v9  ;;  %v3277_v9 = vpack.c.bf16 %v6865_v1, %v6847_v21 }
 0x2d6   : > { %v2232_v31 = vmul.f32 0.5, %v2231_v37  ;;  %v1812_v6 = vpop.xlane.xlu1 %1811  ;;  %2000 = vadd.xlane.f32.xlu1 %v1999_v41  ;;  %v2869_v21 = vpack.c.bf16 %v6931_v52, %v6908_v47 }
 0x2d7   : > { %v1864_v5 = vmul.f32 %v1812_v6, %v5934_v0  ;;  %v1986_v12 = vpop.xlane.xlu2 %1985  ;;  %2951 = vmatpush.bf16.xpose.msrb.mxu0 %v2937_v55  ;;  %5118 = vmatpush.bf16.xpose.msra.mxu3 %v2937_v55  ;;  %v2467_v25 = vmul.f32 %v6808_v32, %v2431_v51  ;;  %v2934_v42 = vsel %vm2875_vm14, %v2870_v4, 0 }
 0x2d8   : > { %v2233_v17 = vsub.f32 1.5, %v2232_v31  ;;  %v2050_v27 = vmul.f32 %v1986_v12, %v5934_v0  ;;  %3290 = vmatpush.bf16.msra.mxu1 %v3279_v44  ;;  %v2931_v45 = vsel %vm2875_vm14, %v2869_v21, 0  ;;  %v7184_v44 = vld [vmem:[%s5688_s24 + $0xe8] sm:$0xff] }
 0x2d9   : > { %v7128_v60 = vpop.eup %5211  ;;  %v7132_v49 = vsub.f32 %v6928_v56, %v1864_v5  ;;  %v1828_v56 = vsel %vm738_vm0, %v7126_v14, 0.0  ;;  %v2503_v11 = vadd.f32 %v6825_v23, %v2467_v25  ;;  %v1834_v55 = vsel %vm738_vm0, %v7184_v44, 0.0 }
 0x2da   : > { %v2234_v3 = vmul.f32 %v5210_v7, %v2233_v17  ;;  %v2240_v33 = vmul.f32 %v7128_v60, %v7091_v50  ;;  %v2082_v57 = vadd.f32 1e-05, %v2050_v27  ;;  %vm2246_vm12 = vweird.f32 %v7128_v60 }
 0x2db   : > { %v1928_v8 = vmul.f32 %v7132_v49, %v7132_v49  ;;  %vm2247_vm15 = vmor %vm2245_vm13, %vm2246_vm12  ;;  %v2868_v27 = vpack.c.bf16 %v6888_v40, %v6873_v29 }
 0x2dc   : > { %v2238_v36 = vsel %vm2237_vm11, %v5210_v7, %v2234_v3  ;;  %v2241_v62 = vmul.f32 %v7128_v60, %v2240_v33  ;;  %5213 = vrsqrt.f32 %v2082_v57  ;;  %3291 = vmatpush.bf16.msra.mxu1 %v3278_v34  ;;  %v7179_v41 = vpop.f32.mrf.mxu0  ;;  %vm2255_vm1 = vweird.f32 %v2082_v57 }
 0x2dd   : > { %v2002_v26 = vsel %vm738_vm0, %v1928_v8, 0.0  ;;  %v2432_v38 = vmul.f32 %v2238_v36, %v6895_v18  ;;  %v7160_v18 = vld [vmem:[%s5688_s24 + $0xe0] sm:$0xff] }
 0x2de   : > { %v2242_v61 = vmul.f32 0.5, %v2241_v62  ;;  %2003 = vadd.xlane.f32.xlu2 %v2002_v26  ;;  %v1815_v15 = vpop.xlane.xlu1 %1814  ;;  %1829 = vadd.xlane.f32.xlu1 %v1828_v56  ;;  %v1831_v37 = vsel %vm738_vm0, %v7160_v18, 0.0 }
 0x2df   : > { %v1865_v48 = vmul.f32 %v1815_v15, %v5934_v0  ;;  %v2468_v53 = vmul.f32 %v6808_v32, %v2432_v38  ;;  %v7156_v7 = vpop.xlane.xlu2 %1988  ;;  %2952 = vmatpush.bf16.xpose.msrb.mxu0 %v2934_v42  ;;  %5119 = vmatpush.bf16.xpose.msra.mxu3 %v2934_v42 }
 0x2e0   : > { %v2243_v46 = vsub.f32 1.5, %v2242_v61  ;;  %3292 = vmatpush.bf16.msra.mxu1 %v3277_v9 }
 0x2e1   : > { %v7163_v54 = vsub.f32 %v6947_v63, %v1865_v48  ;;  %v2504_v19 = vadd.f32 %v6825_v23, %v2468_v53 }
 0x2e2   : > { %v5214_v10 = vpop.eup %5213  ;;  %v2244_v63 = vmul.f32 %v7128_v60, %v2243_v46 }
 0x2e3   : > { %v2529_v1 = vpack.c.bf16 %v2504_v19, %v2503_v11  ;;  %v1929_v35 = vmul.f32 %v7163_v54, %v7163_v54  ;;  %v2250_v2 = vmul.f32 %v5214_v10, %v2082_v57  ;;  %vm2256_vm2 = vweird.f32 %v5214_v10 }
 0x2e4   : > { %v2248_v31 = vsel %vm2247_vm15, %v7128_v60, %v2244_v63  ;;  %vm2257_vm3 = vmor %vm2255_vm1, %vm2256_vm2  ;;  %v2626_v57 = vpop.f32.mrf.mxu0 }
 0x2e5   : > { %4906 = vmatmul.msk.bf16.gmra.mxu0 %vm738_vm0, %v2529_v1  ;;  %4986 = vmatmul.msk.bf16.gmra.mxu2 %vm738_vm0, %v2529_v1  ;;  %v2005_v47 = vsel %vm738_vm0, %v1929_v35, 0.0  ;;  %v2251_v52 = vmul.f32 %v5214_v10, %v2250_v2  ;;  %v2433_v60 = vmul.f32 %v2248_v31, %v6916_v16  ;;  %v2928_v16 = vsel %vm2875_vm14, %v2868_v27, 0 }
 0x2e6   : > { %2006 = vadd.xlane.f32.xlu2 %v2005_v47  ;;  %1832 = vadd.xlane.f32.xlu1 %v1831_v37 }
 0x2e7   : > { %v2252_v6 = vmul.f32 0.5, %v2251_v52  ;;  %v1818_v5 = vpop.xlane.xlu2 %1817  ;;  %2953 = vmatpush.bf16.xpose.msrb.mxu0 %v2931_v45  ;;  %5120 = vmatpush.bf16.xpose.msra.mxu3 %v2931_v45  ;;  %v2469_v56 = vmul.f32 %v6808_v32, %v2433_v60  ;;  %v8363_v60 = vld [vmem:[#allocation17_spill] sm:$0xff] }
 0x2e8   : > { %v1866_v17 = vmul.f32 %v1818_v5, %v5934_v0 }
 0x2e9   : > { %v2253_v50 = vsub.f32 1.5, %v2252_v6  ;;  %v2505_v36 = vadd.f32 %v6825_v23, %v2469_v56  ;;  %v8365_v56 = vld [vmem:[#allocation15_spill] sm:$0xff] }
 0x2ea   : > { %v7188_v12 = vsub.f32 %v6968_v59, %v1866_v17 }
 0x2eb   : > { %v2254_v51 = vmul.f32 %v5214_v10, %v2253_v50 }
 0x2ec   : > { %v1930_v3 = vmul.f32 %v7188_v12, %v7188_v12  ;;  %v2628_v61 = vpop.f32.mrf.mxu0 }
 0x2ed   : > { %v2258_v33 = vsel %vm2257_vm3, %v5214_v10, %v2254_v51  ;;  %v2853_v15 = vpack.c.bf16 %v2628_v61, %v2626_v57  ;;  %v8364_v51 = vld [vmem:[#allocation14_spill] sm:$0xff] }
 0x2ee   : > { %1835 = vadd.xlane.f32.xlu2 %v1834_v55  ;;  %v2008_v8 = vsel %vm738_vm0, %v1930_v3, 0.0  ;;  %v2434_v59 = vmul.f32 %v2258_v33, %v6934_v58  ;;  %v2867_v58 = vpack.c.bf16 %v6857_v20, %v6833_v24  ;;  %v2051_v20 = vmul.f32 %v7156_v7, %v5934_v0 }
 0x2ef   : > { %v1821_v34 = vpop.xlane.xlu2 %1820  ;;  %2009 = vadd.xlane.f32.xlu0 %v2008_v8  ;;  %2954 = vmatpush.bf16.xpose.msrb.mxu0 %v2928_v16 }
 0x2f0   : > { %v1867_v4 = vmul.f32 %v1821_v34, %v5934_v0  ;;  %5121 = vmatpush.bf16.xpose.msra.mxu3 %v2928_v16  ;;  %v2470_v29 = vmul.f32 %v6808_v32, %v2434_v59  ;;  %v2083_v53 = vadd.f32 1e-05, %v2051_v20 }
 0x2f2   : > { %v7204_v40 = vsub.f32 %v6977_v28, %v1867_v4  ;;  %v2506_v62 = vadd.f32 %v6825_v23, %v2470_v29  ;;  %v2925_v28 = vsel %vm2875_vm14, %v2867_v58, 0  ;;  %5215 = vrsqrt.f32 %v2083_v53 }
 0x2f3   : > { %vm2265_vm4 = vweird.f32 %v2083_v53 }
 0x2f4   : > { %v2530_v26 = vpack.c.bf16 %v2506_v62, %v2505_v36  ;;  %v1931_v38 = vmul.f32 %v7204_v40, %v7204_v40  ;;  %v2631_v24 = vpop.f32.mrf.mxu0 }
 0x2f6   : > { %4907 = vmatmul.msk.bf16.gmra.mxu0 %vm738_vm0, %v2530_v26  ;;  %4987 = vmatmul.msk.bf16.gmra.mxu2 %vm738_vm0, %v2530_v26  ;;  %v2011_v25 = vsel %vm738_vm0, %v1931_v38, 0.0  ;;  %v8366_v38 = vld [vmem:[#allocation18_spill] sm:$0xff] }
 0x2f7   : > { %2012 = vadd.xlane.f32.xlu0 %v2011_v25  ;;  %2955 = vmatpush.bf16.xpose.msrb.mxu0 %v2925_v28 }
 0x2f8   : > { %5122 = vmatpush.bf16.xpose.msra.mxu3 %v2925_v28  ;;  %v5216_v46 = vpop.eup %5215 }
 0x2f9   : > { %v2260_v42 = vmul.f32 %v5216_v46, %v2083_v53  ;;  %vm2266_vm5 = vweird.f32 %v5216_v46 }
 0x2fa   : > { %vm2267_vm6 = vmor %vm2265_vm4, %vm2266_vm5 }
 0x2fb   : > { %v2261_v11 = vmul.f32 %v5216_v46, %v2260_v42 }
 0x2fc   : > { %v2633_v48 = vpop.f32.mrf.mxu0 }
 0x2fd   : > { %v2854_v9 = vpack.c.bf16 %v2633_v48, %v2631_v24  ;;  %v2262_v1 = vmul.f32 0.5, %v2261_v11 }
 0x2ff   : > { %4954 = vmatmul.msk.bf16.vlgmr.msra.gmra.mxu3 %vm2875_vm14, %v2853_v15  ;;  %v2263_v35 = vsub.f32 1.5, %v2262_v1 }
 0x301   : > { %v2264_v63 = vmul.f32 %v5216_v46, %v2263_v35 }
 0x303   : > { %v2268_v45 = vsel %vm2267_vm6, %v5216_v46, %v2264_v63 }
 0x304   : > { %v2435_v3 = vmul.f32 %v2268_v45, %v8364_v51 }
 0x306   : > { %v2471_v16 = vmul.f32 %v6808_v32, %v2435_v3 }
 0x308   : > { %v2507_v28 = vadd.f32 %v6825_v23, %v2471_v16 }
 0x30f   : > { %4955 = vmatmul.msk.bf16.gmra.mxu3 %vm2875_vm14, %v2854_v9 }
 0x31d   : > { %v1992_v19 = vpop.xlane.xlu0 %1991 }
 0x31e   : > { %v2052_v10 = vmul.f32 %v1992_v19, %v5934_v0 }
 0x320   : > { %v2084_v21 = vadd.f32 1e-05, %v2052_v10 }
 0x322   : > { %5217 = vrsqrt.f32 %v2084_v21  ;;  %vm2275_vm7 = vweird.f32 %v2084_v21 }
 0x325   : > { %v1995_v37 = vpop.xlane.xlu0 %1994 }
 0x326   : > { %v2053_v47 = vmul.f32 %v1995_v37, %v5934_v0 }
 0x328   : > { %v5218_v7 = vpop.eup %5217  ;;  %v2085_v5 = vadd.f32 1e-05, %v2053_v47 }
 0x329   : > { %v2270_v2 = vmul.f32 %v5218_v7, %v2084_v21  ;;  %vm2276_vm8 = vweird.f32 %v5218_v7 }
 0x32a   : > { %vm2277_vm9 = vmor %vm2275_vm7, %vm2276_vm8  ;;  %5219 = vrsqrt.f32 %v2085_v5  ;;  %vm2285_vm10 = vweird.f32 %v2085_v5 }
 0x32b   : > { %v2271_v52 = vmul.f32 %v5218_v7, %v2270_v2 }
 0x32d   : > { %v2272_v31 = vmul.f32 0.5, %v2271_v52  ;;  %v1824_v6 = vpop.xlane.xlu0 %1823 }
 0x32e   : > { %v1868_v17 = vmul.f32 %v1824_v6, %v5934_v0  ;;  %v2636_v50 = vpop.f32.mrf.mxu0 }
 0x32f   : > { %v2273_v55 = vsub.f32 1.5, %v2272_v31 }
 0x330   : > { %v7224_v27 = vsub.f32 %v8363_v60, %v1868_v17  ;;  %v5220_v26 = vpop.eup %5219  ;;  %v8367_v17 = vld [vmem:[#allocation16_spill] sm:$0xff] }
 0x331   : > { %v2274_v33 = vmul.f32 %v5218_v7, %v2273_v55  ;;  %v2280_v20 = vmul.f32 %v5220_v26, %v2085_v5  ;;  %vm2286_vm11 = vweird.f32 %v5220_v26 }
 0x332   : > { %v1932_v57 = vmul.f32 %v7224_v27, %v7224_v27  ;;  %vm2287_vm12 = vmor %vm2285_vm10, %vm2286_vm11 }
 0x333   : > { %v2278_v8 = vsel %vm2277_vm9, %v5218_v7, %v2274_v33  ;;  %v2281_v48 = vmul.f32 %v5220_v26, %v2280_v20 }
 0x334   : > { %v2014_v59 = vsel %vm738_vm0, %v1932_v57, 0.0  ;;  %v2436_v34 = vmul.f32 %v2278_v8, %v8365_v56 }
 0x335   : > { %2015 = vadd.xlane.f32.xlu1 %v2014_v59  ;;  %v1827_v4 = vpop.xlane.xlu0 %1826 }
 0x336   : > { %v1869_v29 = vmul.f32 %v1827_v4, %v5934_v0  ;;  %v2638_v36 = vpop.f32.mrf.mxu0  ;;  %v2472_v62 = vmul.f32 %v6808_v32, %v2436_v34  ;;  %v7260_v34 = vld [vmem:[%s8269_s13] ss:$0 sm:$0xff] }
 0x337   : > { %v2855_v58 = vpack.c.bf16 %v2638_v36, %v2636_v50 }
 0x338   : > { %v7235_v25 = vsub.f32 %v8366_v38, %v1869_v29  ;;  %v2508_v61 = vadd.f32 %v6825_v23, %v2472_v62  ;;  %v2282_v23 = vmul.f32 0.5, %v2281_v48 }
 0x339   : > { %4956 = vmatmul.msk.bf16.gmra.mxu3 %vm2875_vm14, %v2855_v58 }
 0x33a   : > { %v2531_v15 = vpack.c.bf16 %v2508_v61, %v2507_v28  ;;  %v1933_v24 = vmul.f32 %v7235_v25, %v7235_v25  ;;  %v2283_v42 = vsub.f32 1.5, %v2282_v23 }
 0x33c   : > { %4908 = vmatmul.msk.bf16.gmra.mxu0 %vm738_vm0, %v2531_v15  ;;  %4988 = vmatmul.msk.bf16.gmra.mxu2 %vm738_vm0, %v2531_v15  ;;  %v2017_v32 = vsel %vm738_vm0, %v1933_v24, 0.0  ;;  %v2284_v1 = vmul.f32 %v5220_v26, %v2283_v42  ;;  %v7272_v24 = vld [vmem:[%s8270_s14] ss:$0 sm:$0xff] }
 0x33d   : > { %2018 = vadd.xlane.f32.xlu2 %v2017_v32 }
 0x33e   : > { %v2288_v7 = vsel %vm2287_vm12, %v5220_v26, %v2284_v1 }
 0x33f   : > { %v2437_v50 = vmul.f32 %v2288_v7, %v8367_v17 }
 0x341   : > { %v1998_v53 = vpop.xlane.xlu1 %1997 }
 0x342   : > { %v2054_v9 = vmul.f32 %v1998_v53, %v5934_v0 }
 0x344   : > { %v2086_v46 = vadd.f32 1e-05, %v2054_v9 }
 0x346   : > { %5221 = vrsqrt.f32 %v2086_v46  ;;  %vm2295_vm15 = vweird.f32 %v2086_v46 }
 0x349   : > { %v2001_v11 = vpop.xlane.xlu1 %2000 }
 0x34a   : > { %v2055_v19 = vmul.f32 %v2001_v11, %v5934_v0 }
 0x34c   : > { %v5222_v10 = vpop.eup %5221  ;;  %v2087_v21 = vadd.f32 1e-05, %v2055_v19 }
 0x34d   : > { %v2290_v35 = vmul.f32 %v5222_v10, %v2086_v46  ;;  %vm2296_vm13 = vweird.f32 %v5222_v10 }
 0x34e   : > { %5223 = vrsqrt.f32 %v2087_v21  ;;  %vm2297_vm1 = vmor %vm2295_vm15, %vm2296_vm13  ;;  %vm2305_vm3 = vweird.f32 %v2087_v21 }
 0x34f   : > { %v2291_v37 = vmul.f32 %v5222_v10, %v2290_v35 }
 0x351   : > { %v2292_v63 = vmul.f32 0.5, %v2291_v37  ;;  %v2004_v2 = vpop.xlane.xlu2 %2003  ;;  %v1830_v47 = vpop.xlane.xlu1 %1829 }
 0x352   : > { %v2056_v52 = vmul.f32 %v2004_v2, %v5934_v0  ;;  %v1870_v45 = vmul.f32 %v1830_v47, %v5934_v0  ;;  %v2641_v31 = vpop.f32.mrf.mxu0 }
 0x353   : > { %v2293_v6 = vsub.f32 1.5, %v2292_v63 }
 0x354   : > { %v5224_v5 = vpop.eup %5223  ;;  %v2088_v55 = vadd.f32 1e-05, %v2056_v52  ;;  %v7251_v60 = vsub.f32 %v7126_v14, %v1870_v45  ;;  %v2473_v14 = vmul.f32 %v7260_v34, %v2437_v50 }
 0x355   : > { %v2294_v51 = vmul.f32 %v5222_v10, %v2293_v6  ;;  %v2300_v3 = vmul.f32 %v5224_v5, %v2087_v21  ;;  %vm2306_vm2 = vweird.f32 %v5224_v5 }
 0x356   : > { %5225 = vrsqrt.f32 %v2088_v55  ;;  %v1934_v33 = vmul.f32 %v7251_v60, %v7251_v60  ;;  %v2509_v20 = vadd.f32 %v7272_v24, %v2473_v14  ;;  %vm2307_vm4 = vmor %vm2305_vm3, %vm2306_vm2  ;;  %vm2315_vm6 = vweird.f32 %v2088_v55 }
 0x357   : > { %v2298_v57 = vsel %vm2297_vm1, %v5222_v10, %v2294_v51  ;;  %v2301_v8 = vmul.f32 %v5224_v5, %v2300_v3 }
 0x358   : > { %v2438_v59 = vmul.f32 %v2298_v57, %v7067_v30  ;;  %v2020_v56 = vsel %vm738_vm0, %v1934_v33, 0.0 }
 0x359   : > { %v2302_v16 = vmul.f32 0.5, %v2301_v8  ;;  %v2007_v4 = vpop.xlane.xlu2 %2006  ;;  %2021 = vadd.xlane.f32.xlu0 %v2020_v56  ;;  %v1833_v29 = vpop.xlane.xlu1 %1832 }
 0x35a   : > { %v2057_v36 = vmul.f32 %v2007_v4, %v5934_v0  ;;  %v1871_v62 = vmul.f32 %v1833_v29, %v5934_v0  ;;  %v2643_v58 = vpop.f32.mrf.mxu0  ;;  %v2474_v30 = vmul.f32 %v7260_v34, %v2438_v59 }
 0x35b   : > { %v2303_v26 = vsub.f32 1.5, %v2302_v16  ;;  %v2856_v38 = vpack.c.bf16 %v2643_v58, %v2641_v31 }
 0x35c   : > { %v5226_v28 = vpop.eup %5225  ;;  %v2089_v61 = vadd.f32 1e-05, %v2057_v36  ;;  %v7267_v15 = vsub.f32 %v7160_v18, %v1871_v62  ;;  %v2510_v32 = vadd.f32 %v7272_v24, %v2474_v30 }
 0x35d   : > { %v2304_v48 = vmul.f32 %v5224_v5, %v2303_v26  ;;  %v2310_v53 = vmul.f32 %v5226_v28, %v2088_v55  ;;  %4957 = vmatmul.msk.bf16.gmra.mxu3 %vm2875_vm14, %v2856_v38  ;;  %vm2316_vm5 = vweird.f32 %v5226_v28 }
 0x35e   : > { %5227 = vrsqrt.f32 %v2089_v61  ;;  %v2532_v9 = vpack.c.bf16 %v2510_v32, %v2509_v20  ;;  %v1935_v18 = vmul.f32 %v7267_v15, %v7267_v15  ;;  %vm2317_vm7 = vmor %vm2315_vm6, %vm2316_vm5  ;;  %vm2325_vm9 = vweird.f32 %v2089_v61 }
 0x35f   : > { %v2311_v46 = vmul.f32 %v5226_v28, %v2310_v53  ;;  %v2308_v42 = vsel %vm2307_vm4, %v5224_v5, %v2304_v48 }
 0x360   : > { %4909 = vmatmul.msk.bf16.gmra.mxu0 %vm738_vm0, %v2532_v9  ;;  %4989 = vmatmul.msk.bf16.gmra.mxu2 %vm738_vm0, %v2532_v9  ;;  %v2023_v23 = vsel %vm738_vm0, %v1935_v18, 0.0  ;;  %v2439_v21 = vmul.f32 %v2308_v42, %v7094_v13 }
 0x361   : > { %v2312_v11 = vmul.f32 0.5, %v2311_v46  ;;  %v1836_v19 = vpop.xlane.xlu2 %1835  ;;  %2024 = vadd.xlane.f32.xlu1 %v2023_v23 }
 0x362   : > { %v1872_v10 = vmul.f32 %v1836_v19, %v5934_v0  ;;  %v2646_v1 = vpop.f32.mrf.mxu0  ;;  %v2010_v37 = vpop.xlane.xlu0 %2009 }
 0x363   : > { %v2313_v35 = vsub.f32 1.5, %v2312_v11  ;;  %v2058_v2 = vmul.f32 %v2010_v37, %v5934_v0 }
 0x364   : > { %v5228_v7 = vpop.eup %5227  ;;  %v7285_v63 = vsub.f32 %v7184_v44, %v1872_v10  ;;  %v2475_v44 = vmul.f32 %v7260_v34, %v2439_v21 }
 0x365   : > { %v2314_v47 = vmul.f32 %v5226_v28, %v2313_v35  ;;  %v2320_v52 = vmul.f32 %v5228_v7, %v2089_v61  ;;  %v2090_v45 = vadd.f32 1e-05, %v2058_v2  ;;  %vm2326_vm8 = vweird.f32 %v5228_v7 }
 0x366   : > { %v1936_v31 = vmul.f32 %v7285_v63, %v7285_v63  ;;  %v2511_v57 = vadd.f32 %v7272_v24, %v2475_v44  ;;  %vm2327_vm10 = vmor %vm2325_vm9, %vm2326_vm8 }
 0x367   : > { %v2318_v6 = vsel %vm2317_vm7, %v5226_v28, %v2314_v47  ;;  %v2321_v5 = vmul.f32 %v5228_v7, %v2320_v52  ;;  %5229 = vrsqrt.f32 %v2090_v45  ;;  %vm2335_vm11 = vweird.f32 %v2090_v45 }
 0x368   : > { %v2440_v17 = vmul.f32 %v2318_v6, %v7132_v49  ;;  %v2026_v13 = vsel %vm738_vm0, %v1936_v31, 0.0 }
 0x369   : > { %v2322_v50 = vmul.f32 0.5, %v2321_v5  ;;  %2027 = vadd.xlane.f32.xlu2 %v2026_v13 }
 0x36a   : > { %v2648_v51 = vpop.f32.mrf.mxu0  ;;  %v2476_v55 = vmul.f32 %v7260_v34, %v2440_v17 }
 0x36b   : > { %v2323_v3 = vsub.f32 1.5, %v2322_v50  ;;  %v2857_v33 = vpack.c.bf16 %v2648_v51, %v2646_v1  ;;  %v7312_v50 = vpop.f32.mrf.mxu2 }
 0x36c   : > { %v2512_v8 = vadd.f32 %v7272_v24, %v2476_v55 }
 0x36d   : > { %4958 = vmatmul.msk.bf16.gmra.mxu3 %vm2875_vm14, %v2857_v33  ;;  %v5230_v59 = vpop.eup %5229  ;;  %v2324_v56 = vmul.f32 %v5228_v7, %v2323_v3 }
 0x36e   : > { %v2533_v49 = vpack.c.bf16 %v2512_v8, %v2511_v57  ;;  %v2330_v14 = vmul.f32 %v5230_v59, %v2090_v45  ;;  %vm2336_vm12 = vweird.f32 %v5230_v59 }
 0x36f   : > { %v2328_v4 = vsel %vm2327_vm10, %v5228_v7, %v2324_v56  ;;  %vm2337_vm13 = vmor %vm2335_vm11, %vm2336_vm12 }
 0x370   : > { %4910 = vmatmul.msk.bf16.gmra.mxu0 %vm738_vm0, %v2533_v49  ;;  %4990 = vmatmul.msk.bf16.gmra.mxu2 %vm738_vm0, %v2533_v49  ;;  %v2331_v16 = vmul.f32 %v5230_v59, %v2330_v14  ;;  %v2441_v58 = vmul.f32 %v2328_v4, %v7163_v54  ;;  %v2013_v54 = vpop.xlane.xlu0 %2012 }
 0x372   : > { %v2332_v29 = vmul.f32 0.5, %v2331_v16  ;;  %v2477_v28 = vmul.f32 %v7260_v34, %v2441_v58 }
 0x373   : > { %v2651_v36 = vpop.f32.mrf.mxu0  ;;  %v7320_v16 = vpop.f32.mrf.mxu2 }
 0x374   : > { %v2333_v62 = vsub.f32 1.5, %v2332_v29  ;;  %v2513_v48 = vadd.f32 %v7272_v24, %v2477_v28 }
 0x376   : > { %v2334_v30 = vmul.f32 %v5230_v59, %v2333_v62 }
 0x378   : > { %v2338_v26 = vsel %vm2337_vm13, %v5230_v59, %v2334_v30 }
 0x379   : > { %v2442_v38 = vmul.f32 %v2338_v26, %v7188_v12  ;;  %v2059_v12 = vmul.f32 %v2013_v54, %v5934_v0 }
 0x37b   : > { %v2653_v20 = vpop.f32.mrf.mxu0  ;;  %v2478_v61 = vmul.f32 %v7260_v34, %v2442_v38  ;;  %v2091_v18 = vadd.f32 1e-05, %v2059_v12 }
 0x37c   : > { %v2858_v32 = vpack.c.bf16 %v2653_v20, %v2651_v36 }
 0x37d   : > { %v2514_v53 = vadd.f32 %v7272_v24, %v2478_v61  ;;  %5231 = vrsqrt.f32 %v2091_v18  ;;  %vm2345_vm15 = vweird.f32 %v2091_v18 }
 0x37e   : > { %4959 = vmatmul.msk.bf16.gmra.mxu3 %vm2875_vm14, %v2858_v32  ;;  %v7326_v32 = vpop.f32.mrf.mxu2 }
 0x37f   : > { %v2534_v9 = vpack.c.bf16 %v2514_v53, %v2513_v48 }
 0x381   : > { %4911 = vmatmul.msk.bf16.gmra.mxu0 %vm738_vm0, %v2534_v9  ;;  %4991 = vmatmul.msk.bf16.gmra.mxu2 %vm738_vm0, %v2534_v9 }
 0x383   : > { %v5232_v46 = vpop.eup %5231 }
 0x384   : > { %v2340_v23 = vmul.f32 %v5232_v46, %v2091_v18  ;;  %vm2346_vm1 = vweird.f32 %v5232_v46 }
 0x385   : > { %vm2347_vm2 = vmor %vm2345_vm15, %vm2346_vm1 }
 0x386   : > { %v2341_v42 = vmul.f32 %v5232_v46, %v2340_v23 }
 0x388   : > { %v2342_v1 = vmul.f32 0.5, %v2341_v42 }
 0x38a   : > { %v2343_v35 = vsub.f32 1.5, %v2342_v1 }
 0x38c   : > { %v2344_v21 = vmul.f32 %v5232_v46, %v2343_v35 }
 0x38e   : > { %v2348_v45 = vsel %vm2347_vm2, %v5232_v46, %v2344_v21 }
 0x38f   : > { %v2443_v13 = vmul.f32 %v2348_v45, %v7204_v40 }
 0x391   : > { %v2479_v3 = vmul.f32 %v7260_v34, %v2443_v13 }
 0x393   : > { %v2515_v49 = vadd.f32 %v7272_v24, %v2479_v3 }
 0x3a8   : > { %v2016_v11 = vpop.xlane.xlu1 %2015 }
 0x3a9   : > { %v2060_v19 = vmul.f32 %v2016_v11, %v5934_v0 }
 0x3ab   : > { %v2092_v10 = vadd.f32 1e-05, %v2060_v19 }
 0x3ad   : > { %5233 = vrsqrt.f32 %v2092_v10  ;;  %vm2355_vm3 = vweird.f32 %v2092_v10 }
 0x3b0   : > { %v2019_v37 = vpop.xlane.xlu2 %2018 }
 0x3b1   : > { %v2061_v47 = vmul.f32 %v2019_v37, %v5934_v0  ;;  %v7330_v37 = vpop.f32.mrf.mxu2 }
 0x3b3   : > { %v5234_v7 = vpop.eup %5233  ;;  %v2093_v6 = vadd.f32 1e-05, %v2061_v47 }
 0x3b4   : > { %v2350_v2 = vmul.f32 %v5234_v7, %v2092_v10  ;;  %vm2356_vm4 = vweird.f32 %v5234_v7 }
 0x3b5   : > { %vm2357_vm5 = vmor %vm2355_vm3, %vm2356_vm4  ;;  %5235 = vrsqrt.f32 %v2093_v6  ;;  %vm2365_vm6 = vweird.f32 %v2093_v6 }
 0x3b6   : > { %v2351_v52 = vmul.f32 %v5234_v7, %v2350_v2 }
 0x3b8   : > { %v2352_v31 = vmul.f32 0.5, %v2351_v52 }
 0x3b9   : > { %v2656_v5 = vpop.f32.mrf.mxu0 }
 0x3ba   : > { %v2353_v17 = vsub.f32 1.5, %v2352_v31 }
 0x3bb   : > { %v5236_v59 = vpop.eup %5235 }
 0x3bc   : > { %v2354_v44 = vmul.f32 %v5234_v7, %v2353_v17  ;;  %v2360_v14 = vmul.f32 %v5236_v59, %v2093_v6  ;;  %vm2366_vm7 = vweird.f32 %v5236_v59 }
 0x3bd   : > { %vm2367_vm8 = vmor %vm2365_vm6, %vm2366_vm7 }
 0x3be   : > { %v2358_v51 = vsel %vm2357_vm5, %v5234_v7, %v2354_v44 }
 0x3bf   : > { %v2444_v55 = vmul.f32 %v2358_v51, %v7224_v27  ;;  %v2361_v27 = vmul.f32 %v5236_v59, %v2360_v14 }
 0x3c1   : > { %v2658_v33 = vpop.f32.mrf.mxu0  ;;  %v2480_v57 = vmul.f32 %v7260_v34, %v2444_v55  ;;  %v2362_v62 = vmul.f32 0.5, %v2361_v27  ;;  %v7340_v55 = vpop.f32.mrf.mxu2 }
 0x3c2   : > { %v2859_v8 = vpack.c.bf16 %v2658_v33, %v2656_v5 }
 0x3c3   : > { %v2516_v56 = vadd.f32 %v7272_v24, %v2480_v57  ;;  %v2363_v58 = vsub.f32 1.5, %v2362_v62 }
 0x3c4   : > { %4960 = vmatmul.msk.bf16.gmra.mxu3 %vm2875_vm14, %v2859_v8 }
 0x3c5   : > { %v2535_v40 = vpack.c.bf16 %v2516_v56, %v2515_v49  ;;  %v2364_v20 = vmul.f32 %v5236_v59, %v2363_v58 }
 0x3c7   : > { %4912 = vmatmul.msk.bf16.gmra.mxu0 %vm738_vm0, %v2535_v40  ;;  %4992 = vmatmul.msk.bf16.gmra.mxu2 %vm738_vm0, %v2535_v40  ;;  %v2368_v53 = vsel %vm2367_vm8, %v5236_v59, %v2364_v20  ;;  %v2967_v20 = vpop.f32.mrf.mxu3 }
 0x3c8   : > { %v2445_v42 = vmul.f32 %v2368_v53, %v7235_v25 }
 0x3cc   : > { %v2022_v4 = vpop.xlane.xlu0 %2021 }
 0x3cd   : > { %v2062_v29 = vmul.f32 %v2022_v4, %v5934_v0  ;;  %v7346_v4 = vpop.f32.mrf.mxu2 }
 0x3cf   : > { %v2094_v36 = vadd.f32 1e-05, %v2062_v29 }
 0x3d1   : > { %5237 = vrsqrt.f32 %v2094_v36  ;;  %vm2375_vm10 = vweird.f32 %v2094_v36 }
 0x3d4   : > { %v2025_v30 = vpop.xlane.xlu1 %2024 }
 0x3d5   : > { %v2063_v26 = vmul.f32 %v2025_v30, %v5934_v0  ;;  %v7359_v58 = vpop.f32.mrf.mxu2 }
 0x3d7   : > { %v5238_v38 = vpop.eup %5237  ;;  %v2095_v28 = vadd.f32 1e-05, %v2063_v26  ;;  %v2851_v26 = vpack.c.bf16 %v7109_v43, %v7072_v22  ;;  %v8370_v43 = vld [vmem:[#allocation5_spill] sm:$0xff] }
 0x3d8   : > { %v2370_v61 = vmul.f32 %v5238_v38, %v2094_v36  ;;  %vm2376_vm9 = vweird.f32 %v5238_v38 }
 0x3d9   : > { %5239 = vrsqrt.f32 %v2095_v28  ;;  %vm2377_vm11 = vmor %vm2375_vm10, %vm2376_vm9  ;;  %vm2385_vm12 = vweird.f32 %v2095_v28 }
 0x3da   : > { %v2371_v48 = vmul.f32 %v5238_v38, %v2370_v61  ;;  %v2852_v61 = vpack.c.bf16 %v7179_v41, %v7147_v39 }
 0x3dc   : > { %v2372_v9 = vmul.f32 0.5, %v2371_v48  ;;  %v2028_v54 = vpop.xlane.xlu2 %2027  ;;  %v2969_v48 = vpop.f32.mrf.mxu3 }
 0x3dd   : > { %v2064_v12 = vmul.f32 %v2028_v54, %v5934_v0  ;;  %v2661_v18 = vpop.f32.mrf.mxu0  ;;  %v2481_v0 = vmul.f32 %v7260_v34, %v2445_v42 }
 0x3de   : > { %v2373_v46 = vsub.f32 1.5, %v2372_v9  ;;  %v8369_v9 = vld [vmem:[#allocation4_spill] sm:$0xff] }
 0x3df   : > { %v5240_v23 = vpop.eup %5239  ;;  %v2096_v11 = vadd.f32 1e-05, %v2064_v12  ;;  %v2517_v31 = vadd.f32 %v7272_v24, %v2481_v0 }
 0x3e0   : > { %v2374_v19 = vmul.f32 %v5238_v38, %v2373_v46  ;;  %v2380_v10 = vmul.f32 %v5240_v23, %v2095_v28  ;;  %vm2386_vm13 = vweird.f32 %v5240_v23  ;;  %v8368_v28 = vld [vmem:[#allocation3_spill] sm:$0xff]  ;;  %v8371_v46 = vld [vmem:[#allocation6_spill] sm:$0xff] }
 0x3e1   : > { %5241 = vrsqrt.f32 %v2096_v11  ;;  %vm2387_vm15 = vmor %vm2385_vm12, %vm2386_vm13  ;;  %vm2395_vm2 = vweird.f32 %v2096_v11 }
 0x3e2   : > { %v2378_v1 = vsel %vm2377_vm11, %v5238_v38, %v2374_v19  ;;  %v2381_v35 = vmul.f32 %v5240_v23, %v2380_v10  ;;  %v7364_v38 = vpop.f32.mrf.mxu2 }
 0x3e3   : > { %v2446_v7 = vmul.f32 %v2378_v1, %v7251_v60  ;;  %v8373_v1 = vld [vmem:[#allocation8_spill] sm:$0xff] }
 0x3e4   : > { %v2382_v21 = vmul.f32 0.5, %v2381_v35  ;;  %v7372_v53 = vpop.f32.mrf.mxu3 }
 0x3e5   : > { %v2663_v2 = vpop.f32.mrf.mxu0  ;;  %v2482_v47 = vmul.f32 %v7260_v34, %v2446_v7 }
 0x3e6   : > { %v2383_v52 = vsub.f32 1.5, %v2382_v21  ;;  %v2860_v25 = vpack.c.bf16 %v2663_v2, %v2661_v18 }
 0x3e7   : > { %v5242_v45 = vpop.eup %5241  ;;  %v2518_v6 = vadd.f32 %v7272_v24, %v2482_v47  ;;  %v8374_v47 = vld [vmem:[#allocation9_spill] sm:$0xff] }
 0x3e8   : > { %v2384_v5 = vmul.f32 %v5240_v23, %v2383_v52  ;;  %v2390_v17 = vmul.f32 %v5242_v45, %v2096_v11  ;;  %4961 = vmatmul.msk.bf16.gmra.mxu3 %vm2875_vm14, %v2860_v25  ;;  %vm2396_vm1 = vweird.f32 %v5242_v45  ;;  %v8372_v11 = vld [vmem:[#allocation7_spill] sm:$0xff]  ;;  %v5111_v52 = vld [vmem:[%s8274_s18 + $0x38] sm:$0xff]  ;;  %v2539_v25 = vlaneseq }
 0x3e9   : > { %v2536_v60 = vpack.c.bf16 %v2518_v6, %v2517_v31  ;;  %vm2397_vm3 = vmor %vm2395_vm2, %vm2396_vm1  ;;  %3651 = vmatpush.bf16.msrb.mxu3 %v5111_v52  ;;  %v5110_v6 = vld [vmem:[%s8274_s18 + $0x30] sm:$0xff] }
 0x3ea   : > { %v2391_v13 = vmul.f32 %v5242_v45, %v2390_v17  ;;  %v2388_v44 = vsel %vm2387_vm15, %v5240_v23, %v2384_v5  ;;  %v2540_v5 = vand.u32 127, %v2539_v25 }
 0x3eb   : > { %4913 = vmatmul.msk.bf16.gmra.mxu0 %vm738_vm0, %v2536_v60  ;;  %4993 = vmatmul.msk.bf16.gmra.mxu2 %vm738_vm0, %v2536_v60  ;;  %v2447_v57 = vmul.f32 %v2388_v44, %v7267_v15  ;;  %v5545_v60 = vmov -1e+30  }
 0x3ec   : > { %v2392_v51 = vmul.f32 0.5, %v2391_v13  ;;  %v2974_v22 = vpop.f32.mrf.mxu3  ;;  %vm2541_vm4 = vcmp.lt.s32.totalorder %v2540_v5, 85 }
 0x3ed   : > { %v2666_v3 = vpop.f32.mrf.mxu0  ;;  %v2483_v56 = vmul.f32 %v7260_v34, %v2447_v57  ;;  %3652 = vmatpush.bf16.msrb.mxu3 %v5110_v6  ;;  %v7401_v13 = vsel %vm2541_vm4, 0.0, %v5545_v60 }
 0x3ee   : > { %v2393_v33 = vsub.f32 1.5, %v2392_v51 }
 0x3ef   : > { %v2519_v29 = vadd.f32 %v7272_v24, %v2483_v56 }
 0x3f0   : > { %v2394_v8 = vmul.f32 %v5242_v45, %v2393_v33  ;;  %v8375_v33 = vld [vmem:[#allocation10_spill] sm:$0xff] }
 0x3f2   : > { %v2398_v59 = vsel %vm2397_vm3, %v5242_v45, %v2394_v8  ;;  %v8376_v8 = vld [vmem:[#allocation11_spill] sm:$0xff] }
 0x3f3   : > { %v2448_v49 = vmul.f32 %v2398_v59, %v7285_v63  ;;  %v5109_v63 = vld [vmem:[%s8274_s18 + $0x18] sm:$0xff]  ;;  %v8377_v59 = vld [vmem:[#allocation12_spill] sm:$0xff] }
 0x3f4   : > { %3585 = vmatpush.bf16.msra.mxu0 %v5109_v63  ;;  %v2977_v54 = vpop.f32.mrf.mxu3 }
 0x3f5   : > { %v2668_v40 = vpop.f32.mrf.mxu0  ;;  %v2484_v14 = vmul.f32 %v7260_v34, %v2448_v49  ;;  %v5108_v34 = vld [vmem:[%s8274_s18 + $0x10] sm:$0xff]  ;;  %v2866_v49 = vpack.c.bf16 %v8377_v59, %v8376_v8 }
 0x3f6   : > { %v2861_v27 = vpack.c.bf16 %v2668_v40, %v2666_v3 }
 0x3f7   : > { %v2520_v36 = vadd.f32 %v7272_v24, %v2484_v14 }
 0x3f8   : > { %4962 = vmatmul.msk.bf16.gmra.mxu3 %vm2875_vm14, %v2861_v27  ;;  %3586 = vmatpush.bf16.msra.mxu0 %v5108_v34  ;;  %v7427_v34 = vadd.f32 %v2969_v48, %v7401_v13 }
 0x3f9   : > { %v2537_v15 = vpack.c.bf16 %v2520_v36, %v2519_v29  ;;  %v7420_v29 = vadd.f32 %v2967_v20, %v7401_v13  ;;  %v7447_v20 = vadd.f32 %v2977_v54, %v7401_v13 }
 0x3fb   : > { %4914 = vmatmul.msk.bf16.gmra.mxu0 %vm738_vm0, %v2537_v15  ;;  %4994 = vmatmul.msk.bf16.gmra.mxu2 %vm738_vm0, %v2537_v15  ;;  %v8378_v15 = vld [vmem:[#allocation13_spill] sm:$0xff] }
 0x3fc   : > { %v7378_v12 = vpop.f32.mrf.mxu3 }
 0x3fe   : > { %v2671_v62 = vpop.f32.mrf.mxu0 }
 0x404   : > { %v2982_v39 = vpop.f32.mrf.mxu3 }
 0x406   : > { %v2673_v24 = vpop.f32.mrf.mxu0 }
 0x407   : > { %v2862_v30 = vpack.c.bf16 %v2673_v24, %v2671_v62  ;;  %v7433_v24 = vadd.f32 %v2974_v22, %v7401_v13 }
 0x409   : > { %4963 = vmatmul.msk.bf16.gmra.mxu3 %vm2875_vm14, %v2862_v30 }
 0x40b   : > { %4952 = vmatmul.msk.bf16.vlgmr.msrb.gmra.mxu0 %vm2875_vm14, %v2851_v26  ;;  %4995 = vmatmul.msk.bf16.gmra.mxu2 %vm738_vm0, %v8368_v28  ;;  %v7444_v28 = vadd.f32 %v7372_v53, %v7401_v13  ;;  %v7462_v53 = vadd.f32 %v7378_v12, %v7401_v13 }
 0x40c   : > { %v2984_v42 = vpop.f32.mrf.mxu3 }
 0x40d   : > { %v7458_v22 = vadd.f32 %v2984_v42, %v7401_v13 }
 0x414   : > { %v7385_v19 = vpop.f32.mrf.mxu3 }
 0x41b   : > { %4953 = vmatmul.msk.bf16.gmra.mxu0 %vm2875_vm14, %v2852_v61  ;;  %v7450_v61 = vadd.f32 %v2982_v39, %v7401_v13 }
 0x41c   : > { %v2989_v35 = vpop.f32.mrf.mxu3 }
 0x41d   : > { %v7465_v54 = vadd.f32 %v2989_v35, %v7401_v13 }
 0x424   : > { %v2992_v21 = vpop.f32.mrf.mxu3 }
 0x425   : > { %v7479_v12 = vadd.f32 %v2992_v21, %v7401_v13 }
 0x42b   : > { %5008 = vmatmul.msk.bf16.vlgmr.msra.gmra.mxu0 %vm738_vm0, %v8369_v9 }
 0x42c   : > { %v7395_v45 = vpop.f32.mrf.mxu3 }
 0x43b   : > { %5009 = vmatmul.msk.bf16.gmra.mxu0 %vm738_vm0, %v8370_v43 }
 0x444   : > { %v2676_v18 = vpop.f32.mrf.mxu0 }
 0x447   : > { %v2997_v44 = vpop.f32.mrf.mxu3 }
 0x44b   : > { %5010 = vmatmul.msk.bf16.gmra.mxu0 %vm738_vm0, %v8371_v46 }
 0x44c   : > { %v2678_v41 = vpop.f32.mrf.mxu0 }
 0x44d   : > { %v2863_v23 = vpack.c.bf16 %v2678_v41, %v2676_v18  ;;  %v7476_v41 = vadd.f32 %v7385_v19, %v7401_v13  ;;  %v7494_v19 = vadd.f32 %v7395_v45, %v7401_v13 }
 0x44f   : > { %4964 = vmatmul.msk.bf16.gmra.mxu3 %vm2875_vm14, %v2863_v23  ;;  %v2999_v40 = vpop.f32.mrf.mxu3  ;;  %v7482_v23 = vadd.f32 %v2997_v44, %v7401_v13 }
 0x450   : > { %v7490_v42 = vadd.f32 %v2999_v40, %v7401_v13 }
 0x45b   : > { %5011 = vmatmul.msk.bf16.gmra.mxu0 %vm738_vm0, %v8372_v11 }
 0x468   : > { %v2681_v10 = vpop.f32.mrf.mxu0 }
 0x46b   : > { %5012 = vmatmul.msk.bf16.gmra.mxu0 %vm738_vm0, %v8373_v1  ;;  %v3002_v36 = vpop.f32.mrf.mxu3 }
 0x470   : > { %v2683_v7 = vpop.f32.mrf.mxu0 }
 0x471   : > { %v2864_v0 = vpack.c.bf16 %v2683_v7, %v2681_v10 }
 0x473   : > { %4965 = vmatmul.msk.bf16.gmra.mxu3 %vm2875_vm14, %v2864_v0  ;;  %v3004_v30 = vpop.f32.mrf.mxu3  ;;  %v7507_v0 = vadd.f32 %v3002_v36, %v7401_v13 }
 0x474   : > { %v7497_v35 = vadd.f32 %v3004_v30, %v7401_v13 }
 0x478   : > { %v2686_v2 = vpop.f32.mrf.mxu0 }
 0x47b   : > { %5013 = vmatmul.msk.bf16.gmra.mxu0 %vm738_vm0, %v8374_v47  ;;  %v3007_v48 = vpop.f32.mrf.mxu3 }
 0x47c   : > { %v7510_v21 = vadd.f32 %v3007_v48, %v7401_v13 }
 0x480   : > { %v2688_v31 = vpop.f32.mrf.mxu0 }
 0x481   : > { %v2865_v17 = vpack.c.bf16 %v2688_v31, %v2686_v2 }
 0x483   : > { %4966 = vmatmul.msk.bf16.gmra.mxu3 %vm2875_vm14, %v2865_v17  ;;  %v3009_v18 = vpop.f32.mrf.mxu3 }
 0x484   : > { %v7524_v45 = vadd.f32 %v3009_v18, %v7401_v13 }
 0x488   : > { %v2957_v51 = vpop.f32.mrf.mxu0 }
 0x489   : > { %v7404_v3 = vadd.f32 %v2957_v51, %v7401_v13 }
 0x48b   : > { %5014 = vmatmul.msk.bf16.gmra.mxu0 %vm738_vm0, %v8375_v33  ;;  %3037 = vmax.xlane.f32.xlu0 %v7404_v3 }
 0x48c   : > { %v3012_v10 = vpop.f32.mrf.mxu3 }
 0x48d   : > { %v7513_v2 = vadd.f32 %v3012_v10, %v7401_v13 }
 0x490   : > { %v2959_v57 = vpop.f32.mrf.mxu0 }
 0x491   : > { %v7412_v56 = vadd.f32 %v2959_v57, %v7401_v13 }
 0x493   : > { %3039 = vmax.xlane.f32.xlu1 %v7412_v56  ;;  %4967 = vmatmul.msk.bf16.gmra.mxu3 %vm2875_vm14, %v2866_v49 }
 0x494   : > { %v3014_v52 = vpop.f32.mrf.mxu3 }
 0x498   : > { %v2962_v14 = vpop.f32.mrf.mxu0 }
 0x499   : > { %v7417_v27 = vadd.f32 %v2962_v14, %v7401_v13 }
 0x49b   : > { %5015 = vmatmul.msk.bf16.gmra.mxu0 %vm738_vm0, %v8378_v15  ;;  %3041 = vmax.xlane.f32.xlu2 %v7417_v27 }
 0x49c   : > { %3045 = vmax.xlane.f32.xlu1 %v7420_v29 }
 0x4a0   : > { %v2964_v63 = vpop.f32.mrf.mxu0 }
 0x4a1   : > { %v7430_v62 = vadd.f32 %v2964_v63, %v7401_v13 }
 0x4a3   : > { %3047 = vmax.xlane.f32.xlu2 %v7427_v34  ;;  %3043 = vmax.xlane.f32.xlu0 %v7430_v62 }
 0x4a4   : > { %3051 = vmax.xlane.f32.xlu1 %v7433_v24  ;;  %5028 = vmatmul.msk.bf16.vlgmr.msrb.gmra.mxu3 %vm738_vm0, %v8369_v9 }
 0x4a8   : > { %v7440_v26 = vpop.f32.mrf.mxu0 }
 0x4ab   : > { %3053 = vmax.xlane.f32.xlu2 %v7447_v20  ;;  %3049 = vmax.xlane.f32.xlu0 %v7444_v28 }
 0x4ac   : > { %3057 = vmax.xlane.f32.xlu1 %v7450_v61 }
 0x4b0   : > { %v7455_v9 = vpop.f32.mrf.mxu0 }
 0x4b3   : > { %3059 = vmax.xlane.f32.xlu2 %v7458_v22  ;;  %3055 = vmax.xlane.f32.xlu0 %v7462_v53 }
 0x4b4   : > { %3063 = vmax.xlane.f32.xlu1 %v7465_v54  ;;  %5029 = vmatmul.msk.bf16.gmra.mxu3 %vm738_vm0, %v8370_v43 }
 0x4b8   : > { %v7472_v39 = vpop.f32.mrf.mxu0 }
 0x4bb   : > { %3065 = vmax.xlane.f32.xlu2 %v7479_v12  ;;  %3061 = vmax.xlane.f32.xlu0 %v7476_v41 }
 0x4bc   : > { %3069 = vmax.xlane.f32.xlu1 %v7482_v23 }
 0x4c0   : > { %v7487_v43 = vpop.f32.mrf.mxu0 }
 0x4c3   : > { %3071 = vmax.xlane.f32.xlu2 %v7490_v42  ;;  %3067 = vmax.xlane.f32.xlu0 %v7494_v19 }
 0x4c4   : > { %3075 = vmax.xlane.f32.xlu1 %v7497_v35  ;;  %5030 = vmatmul.msk.bf16.gmra.mxu3 %vm738_vm0, %v8371_v46  ;;  %v7521_v46 = vadd.f32 %v3014_v52, %v7401_v13 }
 0x4c8   : > { %v7504_v7 = vpop.f32.mrf.mxu0 }
 0x4cb   : > { %3077 = vmax.xlane.f32.xlu2 %v7510_v21  ;;  %3073 = vmax.xlane.f32.xlu0 %v7507_v0 }
 0x4cc   : > { %3081 = vmax.xlane.f32.xlu1 %v7513_v2 }
 0x4d0   : > { %v7518_v25 = vpop.f32.mrf.mxu0 }
 0x4d2   : > { %v3017_v31 = vpop.f32.mrf.mxu3 }
 0x4d3   : > { %3083 = vmax.xlane.f32.xlu2 %v7521_v46  ;;  %3079 = vmax.xlane.f32.xlu0 %v7524_v45  ;;  %v7531_v6 = vadd.f32 %v3017_v31, %v7401_v13 }
 0x4d4   : > { %5031 = vmatmul.msk.bf16.gmra.mxu3 %vm738_vm0, %v8372_v11 }
 0x4d8   : > { %v7533_v5 = vpop.f32.mrf.mxu0 }
 0x4da   : > { %v3019_v17 = vpop.f32.mrf.mxu3 }
 0x4db   : > { %3085 = vmax.xlane.f32.xlu0 %v7531_v6  ;;  %v7537_v60 = vadd.f32 %v3019_v17, %v7401_v13 }
 0x4dd   : > { %3087 = vmax.xlane.f32.xlu1 %v7537_v60 }
 0x4e0   : > { %v7540_v44 = vpop.f32.mrf.mxu0 }
 0x4e4   : > { %5032 = vmatmul.msk.bf16.gmra.mxu3 %vm738_vm0, %v8373_v1 }
 0x4e8   : > { %v7544_v11 = vpop.f32.mrf.mxu0 }
 0x4f0   : > { %v7546_v51 = vpop.f32.mrf.mxu0 }
 0x4f4   : > { %5033 = vmatmul.msk.bf16.gmra.mxu3 %vm738_vm0, %v8374_v47 }
 0x4f6   : > { %v3022_v57 = vpop.f32.mrf.mxu3 }
 0x4f7   : > { %v7551_v8 = vadd.f32 %v3022_v57, %v7401_v13 }
 0x4f8   : > { %v7553_v59 = vpop.f32.mrf.mxu0 }
 0x4f9   : > { %3089 = vmax.xlane.f32.xlu2 %v7551_v8 }
 0x4fe   : > { %v3024_v49 = vpop.f32.mrf.mxu3  ;;  %v3038_v40 = vpop.xlane.xlu0 %3037 }
 0x4ff   : > { %v7557_v14 = vadd.f32 %v3024_v49, %v7401_v13  ;;  %v3101_v36 = vsub.f32 %v7404_v3, %v3038_v40 }
 0x500   : > { %v7559_v1 = vpop.f32.mrf.mxu0 }
 0x501   : > { %3091 = vmax.xlane.f32.xlu0 %v7557_v14  ;;  %v3133_v47 = vmul.f32 1.442695, %v3101_v36 }
 0x503   : > { %5243 = vpow2.f32 %v3133_v47 }
 0x504   : > { %5034 = vmatmul.msk.bf16.gmra.mxu3 %vm738_vm0, %v8375_v33 }
 0x506   : > { %v3040_v63 = vpop.xlane.xlu1 %3039  ;;  %v3027_v30 = vpop.f32.mrf.mxu3 }
 0x507   : > { %v3102_v48 = vsub.f32 %v7412_v56, %v3040_v63  ;;  %v7567_v18 = vadd.f32 %v3027_v30, %v7401_v13 }
 0x508   : > { %v3618_v10 = vpop.f32.mrf.mxu0 }
 0x509   : > { %v3135_v52 = vmul.f32 1.442695, %v3102_v48  ;;  %3093 = vmax.xlane.f32.xlu1 %v7567_v18  ;;  %v7573_v17 = vpop.eup %5243 }
 0x50a   : > { %8379 = vst [vmem:[#allocation17_spill] sm:$0xff] %v7573_v17 }
 0x50b   : > { %5245 = vpow2.f32 %v3135_v52 }
 0x50e   : > { %v3029_v31 = vpop.f32.mrf.mxu3  ;;  %v3042_v49 = vpop.xlane.xlu2 %3041 }
 0x50f   : > { %v7571_v3 = vadd.f32 %v3029_v31, %v7401_v13  ;;  %v3103_v40 = vsub.f32 %v7417_v27, %v3042_v49 }
 0x510   : > { %v3620_v33 = vpop.f32.mrf.mxu0 }
 0x511   : > { %v7575_v57 = vpop.eup %5245  ;;  %3095 = vmax.xlane.f32.xlu2 %v7571_v3  ;;  %v3137_v30 = vmul.f32 1.442695, %v3103_v40 }
 0x512   : > { %8380 = vst [vmem:[#allocation14_spill] sm:$0xff] %v7575_v57  ;;  %v3261_v56 = vpack.c.bf16 %v7575_v57, %v7573_v17 }
 0x513   : > { %5247 = vpow2.f32 %v3137_v30 }
 0x514   : > { %5035 = vmatmul.msk.bf16.gmra.mxu3 %vm738_vm0, %v8378_v15  ;;  %3293 = vmatmul.bf16.vlgmr.msra.gmra.mxu1 %v3261_v56 }
 0x516   : > { %v3044_v36 = vpop.xlane.xlu0 %3043  ;;  %v3032_v63 = vpop.f32.mrf.mxu3 }
 0x517   : > { %v3104_v47 = vsub.f32 %v7430_v62, %v3044_v36  ;;  %v7585_v48 = vadd.f32 %v3032_v63, %v7401_v13  ;;  %v3048_v27 = vpop.xlane.xlu2 %3047  ;;  %v3046_v62 = vpop.xlane.xlu1 %3045 }
 0x518   : > { %v3623_v52 = vpop.f32.mrf.mxu0  ;;  %v3106_v36 = vsub.f32 %v7427_v34, %v3048_v27  ;;  %v3105_v30 = vsub.f32 %v7420_v29, %v3046_v62  ;;  %v3715_v34 = vpack.c.bf16 %v7559_v1, %v7553_v59  ;;  %v3714_v59 = vpack.c.bf16 %v7546_v51, %v7544_v11 }
 0x519   : > { %8381 = vst [vmem:[#allocation15_spill] sm:$0xff] %v7585_v48  ;;  %v3139_v31 = vmul.f32 1.442695, %v3104_v47  ;;  %3097 = vmax.xlane.f32.xlu0 %v7585_v48  ;;  %v7591_v17 = vpop.eup %5247 }
 0x51b   : > { %5249 = vpow2.f32 %v3139_v31 }
 0x51e   : > { %v3034_v57 = vpop.f32.mrf.mxu3 }
 0x51f   : > { %v7589_v15 = vadd.f32 %v3034_v57, %v7401_v13  ;;  %v3716_v57 = vpack.c.bf16 %v3620_v33, %v3618_v10  ;;  %v3052_v29 = vpop.xlane.xlu1 %3051  ;;  %v3782_v33 = vsel %vm2875_vm14, %v3715_v34, 0  ;;  %v3054_v34 = vpop.xlane.xlu2 %3053 }
 0x520   : > { %v3625_v49 = vpop.f32.mrf.mxu0 }
 0x521   : > { %v3717_v56 = vpack.c.bf16 %v3625_v49, %v3623_v52  ;;  %3099 = vmax.xlane.f32.xlu1 %v7589_v15  ;;  %v7594_v40 = vpop.eup %5249  ;;  %v3143_v52 = vmul.f32 1.442695, %v3106_v36  ;;  %v3141_v49 = vmul.f32 1.442695, %v3105_v30  ;;  %v3785_v48 = vsel %vm2875_vm14, %v3716_v57, 0 }
 0x522   : > { %v3262_v63 = vpack.c.bf16 %v7594_v40, %v7591_v17  ;;  %v3779_v57 = vsel %vm2875_vm14, %v3714_v59, 0 }
 0x523   : > { %v3788_v47 = vsel %vm2875_vm14, %v3717_v56, 0  ;;  %5251 = vpow2.f32 %v3143_v52  ;;  %v3050_v56 = vpop.xlane.xlu0 %3049 }
 0x524   : > { %3790 = vmatpush.bf16.xpose.msrb.mxu0 %v3788_v47  ;;  %3298 = vmatmul.bf16.gmra.mxu1 %v3262_v63  ;;  %5253 = vpow2.f32 %v3141_v49  ;;  %v3107_v10 = vsub.f32 %v7444_v28, %v3050_v56  ;;  %v3713_v28 = vpack.c.bf16 %v7540_v44, %v7533_v5  ;;  %v3712_v5 = vpack.c.bf16 %v7518_v25, %v7504_v7 }
 0x526   : > { %v3145_v1 = vmul.f32 1.442695, %v3107_v10  ;;  %v3776_v51 = vsel %vm2875_vm14, %v3713_v28, 0  ;;  %v3109_v10 = vsub.f32 %v7447_v20, %v3054_v34 }
 0x527   : > { %v7601_v31 = vpop.f32.mrf.mxu3 }
 0x528   : > { %5255 = vpow2.f32 %v3145_v1  ;;  %v3060_v1 = vpop.xlane.xlu2 %3059 }
 0x529   : > { %v7608_v47 = vpop.eup %5251  ;;  %v3112_v7 = vsub.f32 %v7458_v22, %v3060_v1 }
 0x52a   : > { %v7610_v62 = vpop.eup %5253 }
 0x52b   : > { %v3263_v36 = vpack.c.bf16 %v7608_v47, %v7610_v62  ;;  %v3056_v49 = vpop.xlane.xlu0 %3055 }
 0x52c   : > { %3791 = vmatpush.bf16.xpose.msrb.mxu0 %v3785_v48  ;;  %v3108_v48 = vsub.f32 %v7433_v24, %v3052_v29  ;;  %v3110_v11 = vsub.f32 %v7462_v53, %v3056_v49  ;;  %v3711_v53 = vpack.c.bf16 %v7487_v43, %v7472_v39  ;;  %v3710_v39 = vpack.c.bf16 %v7455_v9, %v7440_v26 }
 0x52d   : > { %v3155_v43 = vmul.f32 1.442695, %v3112_v7  ;;  %v3502_v7 = vpop.f32.mrf.mxu2 }
 0x52e   : > { %v3147_v30 = vmul.f32 1.442695, %v3108_v48  ;;  %v7626_v24 = vpop.eup %5255  ;;  %v3151_v44 = vmul.f32 1.442695, %v3110_v11  ;;  %v3773_v48 = vsel %vm2875_vm14, %v3712_v5, 0  ;;  %v3770_v25 = vsel %vm2875_vm14, %v3711_v53, 0 }
 0x52f   : > { %v7606_v27 = vpop.f32.mrf.mxu3 }
 0x530   : > { %5257 = vpow2.f32 %v3147_v30  ;;  %v3058_v30 = vpop.xlane.xlu1 %3057 }
 0x531   : > { %5259 = vpow2.f32 %v3151_v44  ;;  %v3111_v49 = vsub.f32 %v7450_v61, %v3058_v30  ;;  %v3694_v61 = vpack.c.bf16 %v7320_v16, %v7312_v50 }
 0x533   : > { %v3153_v11 = vmul.f32 1.442695, %v3111_v49 }
 0x534   : > { %3792 = vmatpush.bf16.xpose.msrb.mxu0 %v3782_v33  ;;  %3303 = vmatmul.bf16.gmra.mxu1 %v3263_v36  ;;  %v3149_v36 = vmul.f32 1.442695, %v3109_v10 }
 0x536   : > { %v7628_v56 = vpop.eup %5257  ;;  %5261 = vpow2.f32 %v3149_v36 }
 0x537   : > { %v7619_v63 = vpop.f32.mrf.mxu3  ;;  %v3264_v29 = vpack.c.bf16 %v7628_v56, %v7626_v24  ;;  %v7644_v20 = vpop.eup %5259  ;;  %5263 = vpow2.f32 %v3155_v43 }
 0x538   : > { %5265 = vpow2.f32 %v3153_v11  ;;  %v3064_v5 = vpop.xlane.xlu1 %3063 }
 0x539   : > { %v3114_v36 = vsub.f32 %v7465_v54, %v3064_v5 }
 0x53b   : > { %v3159_v1 = vmul.f32 1.442695, %v3114_v36 }
 0x53c   : > { %3793 = vmatpush.bf16.xpose.msrb.mxu0 %v3779_v57  ;;  %v7646_v57 = vpop.eup %5261 }
 0x53d   : > { %v3265_v28 = vpack.c.bf16 %v7644_v20, %v7646_v57  ;;  %v7660_v10 = vpop.eup %5263 }
 0x53e   : > { %v7664_v44 = vpop.eup %5265 }
 0x53f   : > { %v7624_v52 = vpop.f32.mrf.mxu3  ;;  %v3266_v9 = vpack.c.bf16 %v7660_v10, %v7664_v44 }
 0x540   : > { %v3070_v5 = vpop.xlane.xlu1 %3069 }
 0x544   : > { %3794 = vmatpush.bf16.xpose.msrb.mxu0 %v3776_v51  ;;  %3308 = vmatmul.bf16.gmra.mxu1 %v3264_v29  ;;  %v3767_v51 = vsel %vm2875_vm14, %v3710_v39, 0  ;;  %v3062_v29 = vpop.xlane.xlu0 %3061 }
 0x545   : > { %v3113_v26 = vsub.f32 %v7476_v41, %v3062_v29  ;;  %v3695_v41 = vpack.c.bf16 %v7330_v37, %v7326_v32  ;;  %v3504_v29 = vpop.f32.mrf.mxu2 }
 0x547   : > { %v7637_v33 = vpop.f32.mrf.mxu3 }
 0x54c   : > { %3795 = vmatpush.bf16.xpose.msrb.mxu0 %v3773_v48  ;;  %v3157_v48 = vmul.f32 1.442695, %v3113_v26  ;;  %v3068_v16 = vpop.xlane.xlu0 %3067 }
 0x54d   : > { %v3116_v54 = vsub.f32 %v7494_v19, %v3068_v16  ;;  %v3696_v19 = vpack.c.bf16 %v7346_v4, %v7340_v55 }
 0x54e   : > { %5267 = vpow2.f32 %v3157_v48  ;;  %v3117_v48 = vsub.f32 %v7482_v23, %v3070_v5 }
 0x54f   : > { %v7642_v59 = vpop.f32.mrf.mxu3  ;;  %5269 = vpow2.f32 %v3159_v1  ;;  %v3163_v43 = vmul.f32 1.442695, %v3116_v54 }
 0x551   : > { %5271 = vpow2.f32 %v3163_v43 }
 0x554   : > { %3796 = vmatpush.bf16.xpose.msrb.mxu0 %v3770_v25  ;;  %3313 = vmatmul.bf16.gmra.mxu1 %v3265_v28  ;;  %v7675_v30 = vpop.eup %5267  ;;  %v3066_v25 = vpop.xlane.xlu2 %3065 }
 0x555   : > { %v7679_v28 = vpop.eup %5269  ;;  %v3115_v39 = vsub.f32 %v7479_v12, %v3066_v25  ;;  %v3507_v12 = vpop.f32.mrf.mxu2 }
 0x556   : > { %v3267_v49 = vpack.c.bf16 %v7679_v28, %v7675_v30  ;;  %v3074_v25 = vpop.xlane.xlu0 %3073 }
 0x557   : > { %v7655_v34 = vpop.f32.mrf.mxu3  ;;  %v3119_v43 = vsub.f32 %v7507_v0, %v3074_v25  ;;  %v3698_v0 = vpack.c.bf16 %v3504_v29, %v3502_v7 }
 0x55c   : > { %3797 = vmatpush.bf16.xpose.msrb.mxu0 %v3767_v51  ;;  %v3161_v51 = vmul.f32 1.442695, %v3115_v39  ;;  %v3072_v37 = vpop.xlane.xlu2 %3071 }
 0x55d   : > { %v3509_v55 = vpop.f32.mrf.mxu2 }
 0x55e   : > { %5273 = vpow2.f32 %v3161_v51 }
 0x55f   : > { %v7658_v22 = vpop.f32.mrf.mxu3 }
 0x563   : > { %5036 = vmatmul.msk.bf16.vlgmr.msrb.gmra.mxu0 %vm2875_vm14, %v3694_v61  ;;  %v7686_v61 = vpop.eup %5271 }
 0x564   : > { %3318 = vmatmul.bf16.gmra.mxu1 %v3266_v9  ;;  %v7690_v26 = vpop.eup %5273  ;;  %v3118_v9 = vsub.f32 %v7490_v42, %v3072_v37  ;;  %v3697_v42 = vpack.c.bf16 %v7364_v38, %v7359_v58  ;;  %v3169_v37 = vmul.f32 1.442695, %v3119_v43  ;;  %v3080_v38 = vpop.xlane.xlu0 %3079 }
 0x565   : > { %v3268_v36 = vpack.c.bf16 %v7686_v61, %v7690_v26  ;;  %v7708_v5 = vpop.f32.mrf.mxu2 }
 0x566   : > { %v3167_v1 = vmul.f32 1.442695, %v3118_v9 }
 0x567   : > { %v7671_v53 = vpop.f32.mrf.mxu3 }
 0x568   : > { %5275 = vpow2.f32 %v3167_v1 }
 0x56d   : > { %v3514_v1 = vpop.f32.mrf.mxu2 }
 0x56e   : > { %v7697_v54 = vpop.eup %5275 }
 0x56f   : > { %v7673_v50 = vpop.f32.mrf.mxu3 }
 0x573   : > { %5037 = vmatmul.msk.bf16.gmra.mxu0 %vm2875_vm14, %v3695_v41  ;;  %v3165_v41 = vmul.f32 1.442695, %v3117_v48 }
 0x574   : > { %3323 = vmatmul.bf16.gmra.mxu1 %v3267_v49  ;;  %v3076_v49 = vpop.xlane.xlu1 %3075 }
 0x575   : > { %5277 = vpow2.f32 %v3165_v41  ;;  %v3120_v51 = vsub.f32 %v7497_v35, %v3076_v49  ;;  %v3078_v41 = vpop.xlane.xlu2 %3077  ;;  %v3122_v35 = vsub.f32 %v7524_v45, %v3080_v38  ;;  %v4123_v45 = vpack.c.bf16 %v7673_v50, %v7671_v53 }
 0x576   : > { %5279 = vpow2.f32 %v3169_v37  ;;  %v3121_v49 = vsub.f32 %v7510_v21, %v3078_v41  ;;  %v3517_v37 = vpop.f32.mrf.mxu2  ;;  %v3699_v21 = vpack.c.bf16 %v3509_v55, %v3507_v12  ;;  %v4121_v50 = vpack.c.bf16 %v7642_v59, %v7637_v33  ;;  %v3086_v41 = vpop.xlane.xlu0 %3085 }
 0x577   : > { %v3679_v11 = vpop.f32.mrf.mxu3  ;;  %v3171_v9 = vmul.f32 1.442695, %v3120_v51  ;;  %v4119_v38 = vpack.c.bf16 %v7606_v27, %v7601_v31  ;;  %v3125_v27 = vsub.f32 %v7531_v6, %v3086_v41 }
 0x578   : > { %v3173_v51 = vmul.f32 1.442695, %v3121_v49 }
 0x579   : > { %5281 = vpow2.f32 %v3171_v9  ;;  %v3181_v49 = vmul.f32 1.442695, %v3125_v27 }
 0x57b   : > { %v7701_v39 = vpop.eup %5277 }
 0x57c   : > { %v3269_v23 = vpack.c.bf16 %v7697_v54, %v7701_v39  ;;  %v7710_v48 = vpop.eup %5279 }
 0x57e   : > { %v3519_v55 = vpop.f32.mrf.mxu2 }
 0x57f   : > { %v3681_v32 = vpop.f32.mrf.mxu3  ;;  %v7712_v25 = vpop.eup %5281 }
 0x580   : > { %v4124_v7 = vpack.c.bf16 %v3681_v32, %v3679_v11 }
 0x583   : > { %5038 = vmatmul.msk.bf16.gmra.mxu0 %vm2875_vm14, %v3696_v19 }
 0x584   : > { %3328 = vmatmul.bf16.gmra.mxu1 %v3268_v36 }
 0x587   : > { %v3684_v16 = vpop.f32.mrf.mxu3 }
 0x58f   : > { %v3686_v4 = vpop.f32.mrf.mxu3 }
 0x590   : > { %v4125_v43 = vpack.c.bf16 %v3686_v4, %v3684_v16  ;;  %v4122_v16 = vpack.c.bf16 %v7658_v22, %v7655_v34  ;;  %v3082_v4 = vpop.xlane.xlu1 %3081 }
 0x591   : > { %v7719_v29 = vpop.f32.mrf.mxu1  ;;  %v3123_v53 = vsub.f32 %v7513_v2, %v3082_v4  ;;  %v3522_v2 = vpop.f32.mrf.mxu2 }
 0x593   : > { %5039 = vmatmul.msk.bf16.gmra.mxu0 %vm2875_vm14, %v3697_v42  ;;  %v3270_v42 = vpack.c.bf16 %v7712_v25, %v7710_v48  ;;  %v3177_v22 = vmul.f32 1.442695, %v3123_v53 }
 0x594   : > { %3333 = vmatmul.bf16.gmra.mxu1 %v3269_v23  ;;  %v3175_v23 = vmul.f32 1.442695, %v3122_v35 }
 0x596   : > { %5283 = vpow2.f32 %v3175_v23 }
 0x597   : > { %v3689_v19 = vpop.f32.mrf.mxu3  ;;  %5285 = vpow2.f32 %v3173_v51 }
 0x598   : > { %v3088_v33 = vpop.xlane.xlu1 %3087 }
 0x599   : > { %v7736_v12 = vpop.f32.mrf.mxu1 }
 0x59c   : > { %v7723_v9 = vpop.eup %5283 }
 0x59f   : > { %v3691_v58 = vpop.f32.mrf.mxu3 }
 0x5a0   : > { %v4126_v36 = vpack.c.bf16 %v3691_v58, %v3689_v19  ;;  %v3084_v19 = vpop.xlane.xlu2 %3083  ;;  %v7727_v58 = vpop.eup %5285 }
 0x5a1   : > { %v3124_v11 = vsub.f32 %v7521_v46, %v3084_v19  ;;  %v3271_v32 = vpack.c.bf16 %v7723_v9, %v7727_v58  ;;  %v4120_v46 = vpack.c.bf16 %v7624_v52, %v7619_v63  ;;  %v3126_v63 = vsub.f32 %v7537_v60, %v3088_v33 }
 0x5a2   : > { %4127 = vmatpush.bf16.msrb.mxu1 %v4126_v36  ;;  %v7742_v36 = vpop.f32.mrf.mxu1  ;;  %v3701_v60 = vpack.c.bf16 %v3519_v55, %v3517_v37 }
 0x5a3   : > { %5040 = vmatmul.msk.bf16.gmra.mxu0 %vm2875_vm14, %v3698_v0  ;;  %v3179_v34 = vmul.f32 1.442695, %v3124_v11  ;;  %v3700_v0 = vpack.c.bf16 %v3514_v1, %v7708_v5  ;;  %v3183_v52 = vmul.f32 1.442695, %v3126_v63  ;;  %v3092_v1 = vpop.xlane.xlu0 %3091 }
 0x5a4   : > { %3338 = vmatmul.bf16.gmra.mxu1 %v3270_v42  ;;  %v3524_v42 = vpop.f32.mrf.mxu2 }
 0x5a5   : > { %5287 = vpow2.f32 %v3179_v34  ;;  %v3094_v34 = vpop.xlane.xlu1 %3093 }
 0x5a6   : > { %4128 = vmatpush.bf16.msrb.mxu1 %v4125_v43  ;;  %5289 = vpow2.f32 %v3177_v22  ;;  %v3129_v33 = vsub.f32 %v7567_v18, %v3094_v34 }
 0x5a7   : > { %5291 = vpow2.f32 %v3183_v52 }
 0x5a8   : > { %5293 = vpow2.f32 %v3181_v49  ;;  %v3090_v51 = vpop.xlane.xlu2 %3089  ;;  %v3189_v63 = vmul.f32 1.442695, %v3129_v33 }
 0x5aa   : > { %4129 = vmatpush.bf16.msrb.mxu1 %v4124_v7  ;;  %v7754_v43 = vpop.f32.mrf.mxu1 }
 0x5ab   : > { %v7744_v59 = vpop.eup %5287 }
 0x5ac   : > { %v7747_v35 = vpop.eup %5289  ;;  %v3527_v5 = vpop.f32.mrf.mxu2 }
 0x5ad   : > { %v3272_v31 = vpack.c.bf16 %v7744_v59, %v7747_v35  ;;  %v7756_v23 = vpop.eup %5291  ;;  %v3100_v27 = vpop.xlane.xlu1 %3099 }
 0x5ae   : > { %4130 = vmatpush.bf16.msrb.mxu1 %v4123_v45  ;;  %v7758_v7 = vpop.eup %5293  ;;  %v3128_v45 = vsub.f32 %v7557_v14, %v3092_v1 }
 0x5af   : > { %v3273_v6 = vpack.c.bf16 %v7756_v23, %v7758_v7 }
 0x5b2   : > { %4131 = vmatpush.bf16.msrb.mxu1 %v4122_v16  ;;  %v7761_v19 = vpop.f32.mrf.mxu1  ;;  %v3187_v16 = vmul.f32 1.442695, %v3128_v45  ;;  %v3132_v45 = vsub.f32 %v7589_v15, %v3100_v27 }
 0x5b3   : > { %5041 = vmatmul.msk.bf16.gmra.mxu0 %vm2875_vm14, %v3699_v21  ;;  %v3127_v21 = vsub.f32 %v7551_v8, %v3090_v51 }
 0x5b4   : > { %3343 = vmatmul.bf16.gmra.mxu1 %v3271_v32  ;;  %v3529_v11 = vpop.f32.mrf.mxu2  ;;  %5295 = vpow2.f32 %v3187_v16  ;;  %v3096_v32 = vpop.xlane.xlu2 %3095 }
 0x5b5   : > { %v3185_v4 = vmul.f32 1.442695, %v3127_v21  ;;  %v3130_v8 = vsub.f32 %v7571_v3, %v3096_v32  ;;  %v3703_v49 = vpack.c.bf16 %v3529_v11, %v3527_v5  ;;  %v8385_v21 = vld [vmem:[#allocation15_spill] sm:$0xff]  ;;  %v3195_v5 = vmul.f32 1.442695, %v3132_v45 }
 0x5b6   : > { %4132 = vmatpush.bf16.msrb.mxu1 %v4121_v50  ;;  %v3702_v50 = vpack.c.bf16 %v3524_v42, %v3522_v2 }
 0x5b7   : > { %5297 = vpow2.f32 %v3185_v4  ;;  %v3191_v2 = vmul.f32 1.442695, %v3130_v8 }
 0x5b9   : > { %5299 = vpow2.f32 %v3191_v2 }
 0x5ba   : > { %4133 = vmatpush.bf16.msrb.mxu1 %v4120_v46  ;;  %v7767_v37 = vpop.f32.mrf.mxu1  ;;  %v7769_v14 = vpop.eup %5295  ;;  %5301 = vpow2.f32 %v3189_v63 }
 0x5bb   : > { %8382 = vst [vmem:[#allocation18_spill] sm:$0xff] %v7769_v14  ;;  %5303 = vpow2.f32 %v3195_v5 }
 0x5bc   : > { %v3532_v46 = vpop.f32.mrf.mxu2 }
 0x5bd   : > { %v7774_v22 = vpop.eup %5297 }
 0x5be   : > { %4134 = vmatpush.bf16.msrb.mxu1 %v4119_v38  ;;  %v3274_v38 = vpack.c.bf16 %v7769_v14, %v7774_v22 }
 0x5bf   : > { %v7788_v42 = vpop.eup %5299 }
 0x5c0   : > { %8383 = vst [vmem:[#allocation16_spill] sm:$0xff] %v7788_v42  ;;  %v7795_v51 = vpop.eup %5301 }
 0x5c1   : > { %8384 = vst [vmem:[#allocation3_spill] sm:$0xff] %v7795_v51  ;;  %v7809_v34 = vpop.eup %5303 }
 0x5c2   : > { %8386 = vst [vmem:[#allocation4_spill] sm:$0xff] %v7809_v34 }
 0x5c3   : > { %5042 = vmatmul.msk.bf16.gmra.mxu0 %vm2875_vm14, %v3700_v0  ;;  %v7782_v0 = vpop.f32.mrf.mxu1 }
 0x5c4   : > { %3348 = vmatmul.bf16.gmra.mxu1 %v3272_v31  ;;  %v3534_v3 = vpop.f32.mrf.mxu2 }
 0x5c5   : > { %v3704_v8 = vpack.c.bf16 %v3534_v3, %v3532_v46 }
 0x5cb   : > { %v7790_v18 = vpop.f32.mrf.mxu1 }
 0x5cc   : > { %v3537_v4 = vpop.f32.mrf.mxu2 }
 0x5d3   : > { %5043 = vmatmul.msk.bf16.gmra.mxu0 %vm2875_vm14, %v3701_v60  ;;  %v3098_v60 = vpop.xlane.xlu0 %3097 }
 0x5d4   : > { %3353 = vmatmul.bf16.gmra.mxu1 %v3273_v6  ;;  %v3275_v6 = vpack.c.bf16 %v7788_v42, %v7795_v51  ;;  %v3131_v16 = vsub.f32 %v8385_v21, %v3098_v60  ;;  %v3539_v33 = vpop.f32.mrf.mxu2 }
 0x5d5   : > { %v3705_v60 = vpack.c.bf16 %v3539_v33, %v3537_v4 }
 0x5d6   : > { %v3193_v32 = vmul.f32 1.442695, %v3131_v16 }
 0x5d8   : > { %5305 = vpow2.f32 %v3193_v32 }
 0x5dc   : > { %v3542_v46 = vpop.f32.mrf.mxu2 }
 0x5de   : > { %v7814_v2 = vpop.eup %5305 }
 0x5df   : > { %8387 = vst [vmem:[#allocation5_spill] sm:$0xff] %v7814_v2 }
 0x5e0   : > { %v3799_v53 = vpop.f32.mrf.mxu0 }
 0x5e1   : > { %v7772_v55 = vadd.f32 %v3799_v53, %v7401_v13 }
 0x5e3   : > { %5044 = vmatmul.msk.bf16.gmra.mxu0 %vm2875_vm14, %v3702_v50  ;;  %3879 = vmax.xlane.f32.xlu2 %v7772_v55  ;;  %v7806_v50 = vpop.f32.mrf.mxu1 }
 0x5e4   : > { %3358 = vmatmul.bf16.gmra.mxu1 %v3274_v38  ;;  %v3544_v21 = vpop.f32.mrf.mxu2 }
 0x5e8   : > { %v3801_v41 = vpop.f32.mrf.mxu0 }
 0x5e9   : > { %v7785_v31 = vadd.f32 %v3801_v41, %v7401_v13  ;;  %v3276_v41 = vpack.c.bf16 %v7809_v34, %v7814_v2 }
 0x5eb   : > { %3881 = vmax.xlane.f32.xlu0 %v7785_v31  ;;  %v7820_v63 = vpop.f32.mrf.mxu1 }
 0x5ec   : > { %8388 = vst [vmem:[#allocation6_spill] sm:$0xff] %v7820_v63  ;;  %v3547_v4 = vpop.f32.mrf.mxu2 }
 0x5f0   : > { %v3804_v52 = vpop.f32.mrf.mxu0 }
 0x5f1   : > { %v7793_v1 = vadd.f32 %v3804_v52, %v7401_v13 }
 0x5f3   : > { %5045 = vmatmul.msk.bf16.gmra.mxu0 %vm2875_vm14, %v3703_v49  ;;  %3883 = vmax.xlane.f32.xlu1 %v7793_v1  ;;  %v7826_v3 = vpop.f32.mrf.mxu1 }
 0x5f4   : > { %3363 = vmatmul.bf16.gmra.mxu1 %v3275_v6  ;;  %8389 = vst [vmem:[#allocation7_spill] sm:$0xff] %v7826_v3  ;;  %v5112_v6 = vld [vmem:[%s8275_s19 + $0x8] sm:$0xff] }
 0x5f5   : > { %4360 = vmatpush.bf16.msra.mxu2 %v5112_v6 }
 0x5f8   : > { %v3806_v11 = vpop.f32.mrf.mxu0 }
 0x5f9   : > { %v7804_v53 = vadd.f32 %v3806_v11, %v7401_v13 }
 0x5fb   : > { %3885 = vmax.xlane.f32.xlu2 %v7804_v53  ;;  %v7836_v5 = vpop.f32.mrf.mxu1 }
 0x5fc   : > { %8390 = vst [vmem:[#allocation8_spill] sm:$0xff] %v7836_v5 }
 0x600   : > { %v3809_v15 = vpop.f32.mrf.mxu0 }
 0x601   : > { %v7812_v38 = vadd.f32 %v3809_v15, %v7401_v13  ;;  %v3706_v15 = vpack.c.bf16 %v3544_v21, %v3542_v46 }
 0x603   : > { %5046 = vmatmul.msk.bf16.gmra.mxu0 %vm2875_vm14, %v3704_v8  ;;  %3887 = vmax.xlane.f32.xlu0 %v7812_v38  ;;  %v7845_v33 = vpop.f32.mrf.mxu1 }
 0x604   : > { %3368 = vmatmul.bf16.gmra.mxu1 %v3276_v41  ;;  %8391 = vst [vmem:[#allocation9_spill] sm:$0xff] %v7845_v33  ;;  %v3549_v41 = vpop.f32.mrf.mxu2 }
 0x605   : > { %v3707_v21 = vpack.c.bf16 %v3549_v41, %v3547_v4 }
 0x608   : > { %v3811_v27 = vpop.f32.mrf.mxu0 }
 0x609   : > { %v7823_v52 = vadd.f32 %v3811_v27, %v7401_v13 }
 0x60b   : > { %3889 = vmax.xlane.f32.xlu1 %v7823_v52 }
 0x60c   : > { %v3552_v6 = vpop.f32.mrf.mxu2 }
 0x610   : > { %v3814_v49 = vpop.f32.mrf.mxu0 }
 0x611   : > { %v7829_v45 = vadd.f32 %v3814_v49, %v7401_v13 }
 0x613   : > { %5047 = vmatmul.msk.bf16.gmra.mxu0 %vm2875_vm14, %v3705_v60  ;;  %3891 = vmax.xlane.f32.xlu2 %v7829_v45  ;;  %v7853_v60 = vpop.f32.mrf.mxu1 }
 0x614   : > { %8392 = vst [vmem:[#allocation10_spill] sm:$0xff] %v7853_v60  ;;  %v3554_v34 = vpop.f32.mrf.mxu2 }
 0x615   : > { %v3708_v33 = vpack.c.bf16 %v3554_v34, %v3552_v6 }
 0x618   : > { %v3816_v16 = vpop.f32.mrf.mxu0 }
 0x619   : > { %v7839_v11 = vadd.f32 %v3816_v16, %v7401_v13 }
 0x61b   : > { %3893 = vmax.xlane.f32.xlu0 %v7839_v11 }
 0x61c   : > { %v3557_v41 = vpop.f32.mrf.mxu2 }
 0x620   : > { %v3819_v32 = vpop.f32.mrf.mxu0 }
 0x621   : > { %v7843_v8 = vadd.f32 %v3819_v32, %v7401_v13  ;;  %v7860_v32 = vpop.f32.mrf.mxu1 }
 0x622   : > { %8393 = vst [vmem:[#allocation11_spill] sm:$0xff] %v7860_v32 }
 0x623   : > { %5048 = vmatmul.msk.bf16.gmra.mxu0 %vm2875_vm14, %v3706_v15  ;;  %3895 = vmax.xlane.f32.xlu1 %v7843_v8 }
 0x624   : > { %v3559_v32 = vpop.f32.mrf.mxu2 }
 0x625   : > { %v3709_v6 = vpack.c.bf16 %v3559_v32, %v3557_v41 }
 0x628   : > { %v3821_v27 = vpop.f32.mrf.mxu0 }
 0x629   : > { %v7850_v49 = vadd.f32 %v3821_v27, %v7401_v13  ;;  %v7866_v2 = vpop.f32.mrf.mxu1 }
 0x62a   : > { %8394 = vst [vmem:[#allocation12_spill] sm:$0xff] %v7866_v2 }
 0x62b   : > { %3897 = vmax.xlane.f32.xlu2 %v7850_v49 }
 0x630   : > { %v3824_v46 = vpop.f32.mrf.mxu0 }
 0x631   : > { %v7856_v16 = vadd.f32 %v3824_v46, %v7401_v13 }
 0x633   : > { %5049 = vmatmul.msk.bf16.gmra.mxu0 %vm2875_vm14, %v3707_v21  ;;  %3899 = vmax.xlane.f32.xlu0 %v7856_v16 }
 0x638   : > { %v3826_v15 = vpop.f32.mrf.mxu0 }
 0x639   : > { %v7863_v27 = vadd.f32 %v3826_v15, %v7401_v13  ;;  %v7876_v15 = vpop.f32.mrf.mxu1 }
 0x63a   : > { %8395 = vst [vmem:[#allocation13_spill] sm:$0xff] %v7876_v15 }
 0x63b   : > { %3901 = vmax.xlane.f32.xlu1 %v7863_v27 }
 0x640   : > { %v3829_v60 = vpop.f32.mrf.mxu0 }
 0x641   : > { %v7869_v4 = vadd.f32 %v3829_v60, %v7401_v13 }
 0x643   : > { %5050 = vmatmul.msk.bf16.gmra.mxu0 %vm2875_vm14, %v3708_v33  ;;  %3903 = vmax.xlane.f32.xlu2 %v7869_v4  ;;  %v7884_v33 = vpop.f32.mrf.mxu1 }
 0x644   : > { %8396 = vst [vmem:[#allocation15_spill] sm:$0xff] %v7884_v33 }
 0x648   : > { %v3831_v46 = vpop.f32.mrf.mxu0 }
 0x649   : > { %v7874_v21 = vadd.f32 %v3831_v46, %v7401_v13 }
 0x64b   : > { %3905 = vmax.xlane.f32.xlu0 %v7874_v21  ;;  %v7891_v41 = vpop.f32.mrf.mxu1 }
 0x64c   : > { %8397 = vst [vmem:[#allocation19_spill] sm:$0xff] %v7891_v41 }
 0x650   : > { %v3834_v34 = vpop.f32.mrf.mxu0 }
 0x651   : > { %v7880_v2 = vadd.f32 %v3834_v34, %v7401_v13 }
 0x653   : > { %5051 = vmatmul.msk.bf16.gmra.mxu0 %vm2875_vm14, %v3709_v6  ;;  %3907 = vmax.xlane.f32.xlu1 %v7880_v2  ;;  %v7899_v14 = vpop.f32.mrf.mxu1 }
 0x656   : > { %v3880_v60 = vpop.xlane.xlu2 %3879 }
 0x657   : > { %v3943_v15 = vsub.f32 %v7772_v55, %v3880_v60 }
 0x658   : > { %v3836_v42 = vpop.f32.mrf.mxu0 }
 0x659   : > { %v7887_v46 = vadd.f32 %v3836_v42, %v7401_v13  ;;  %v3975_v5 = vmul.f32 1.442695, %v3943_v15  ;;  %v8398_v42 = vld [vmem:[#allocation17_spill] sm:$0xff] }
 0x65a   : > { %8399 = vst [vmem:[#allocation17_spill] sm:$0xff] %v7899_v14 }
 0x65b   : > { %3909 = vmax.xlane.f32.xlu2 %v7887_v46  ;;  %5307 = vpow2.f32 %v3975_v5 }
 0x65e   : > { %v3882_v32 = vpop.xlane.xlu0 %3881 }
 0x65f   : > { %v3944_v34 = vsub.f32 %v7785_v31, %v3882_v32 }
 0x660   : > { %v3839_v6 = vpop.f32.mrf.mxu0 }
 0x661   : > { %v3977_v3 = vmul.f32 1.442695, %v3944_v34  ;;  %v7895_v51 = vadd.f32 %v3839_v6, %v7401_v13  ;;  %v5308_v60 = vpop.eup %5307  ;;  %v8400_v34 = vld [vmem:[#allocation14_spill] sm:$0xff] }
 0x663   : > { %5309 = vpow2.f32 %v3977_v3  ;;  %3911 = vmax.xlane.f32.xlu0 %v7895_v51  ;;  %3197 = vadd.xlane.f32.xlu2 %v8398_v42 }
 0x666   : > { %v3884_v55 = vpop.xlane.xlu1 %3883 }
 0x667   : > { %v3945_v32 = vsub.f32 %v7793_v1, %v3884_v55 }
 0x668   : > { %v3841_v33 = vpop.f32.mrf.mxu0 }
 0x669   : > { %v5310_v15 = vpop.eup %5309  ;;  %v7902_v41 = vadd.f32 %v3841_v33, %v7401_v13  ;;  %v3979_v3 = vmul.f32 1.442695, %v3945_v32  ;;  %v7911_v33 = vpop.f32.mrf.mxu1 }
 0x66a   : > { %v4103_v31 = vpack.c.bf16 %v5310_v15, %v5308_v60 }
 0x66b   : > { %3199 = vadd.xlane.f32.xlu0 %v8400_v34  ;;  %4041 = vadd.xlane.f32.xlu2 %v5310_v15  ;;  %5311 = vpow2.f32 %v3979_v3 }
 0x66c   : > { %3913 = vmax.xlane.f32.xlu1 %v7902_v41  ;;  %4135 = vmatmul.bf16.vlgmr.msrb.gmra.mxu1 %v4103_v31 }
 0x66e   : > { %v3886_v5 = vpop.xlane.xlu2 %3885 }
 0x66f   : > { %v3946_v6 = vsub.f32 %v7804_v53, %v3886_v5 }
 0x670   : > { %v3844_v42 = vpop.f32.mrf.mxu0 }
 0x671   : > { %v3981_v63 = vmul.f32 1.442695, %v3946_v6  ;;  %v7909_v14 = vadd.f32 %v3844_v42, %v7401_v13  ;;  %v5312_v55 = vpop.eup %5311 }
 0x673   : > { %5313 = vpow2.f32 %v3981_v63  ;;  %3915 = vmax.xlane.f32.xlu0 %v7909_v14  ;;  %3201 = vadd.xlane.f32.xlu2 %v7591_v17  ;;  %v7921_v63 = vpop.f32.mrf.mxu1 }
 0x674   : > { %4039 = vadd.xlane.f32.xlu1 %v5308_v60 }
 0x676   : > { %v3888_v1 = vpop.xlane.xlu0 %3887 }
 0x677   : > { %v3947_v32 = vsub.f32 %v7812_v38, %v3888_v1 }
 0x678   : > { %v3846_v15 = vpop.f32.mrf.mxu0 }
 0x679   : > { %v5314_v31 = vpop.eup %5313  ;;  %v7916_v53 = vadd.f32 %v3846_v15, %v7401_v13  ;;  %v3983_v17 = vmul.f32 1.442695, %v3947_v32 }
 0x67a   : > { %v4104_v34 = vpack.c.bf16 %v5314_v31, %v5312_v55 }
 0x67b   : > { %3203 = vadd.xlane.f32.xlu0 %v7594_v40  ;;  %4045 = vadd.xlane.f32.xlu2 %v5314_v31  ;;  %5315 = vpow2.f32 %v3983_v17  ;;  %v7929_v40 = vpop.f32.mrf.mxu1 }
 0x67c   : > { %3917 = vmax.xlane.f32.xlu1 %v7916_v53  ;;  %4140 = vmatmul.bf16.gmra.mxu1 %v4104_v34 }
 0x67e   : > { %v3890_v60 = vpop.xlane.xlu1 %3889 }
 0x67f   : > { %v3948_v3 = vsub.f32 %v7823_v52, %v3890_v60 }
 0x680   : > { %v3849_v5 = vpop.f32.mrf.mxu0 }
 0x681   : > { %v3985_v6 = vmul.f32 1.442695, %v3948_v3  ;;  %v7925_v42 = vadd.f32 %v3849_v5, %v7401_v13  ;;  %v5316_v1 = vpop.eup %5315 }
 0x683   : > { %5317 = vpow2.f32 %v3985_v6  ;;  %3919 = vmax.xlane.f32.xlu0 %v7925_v42  ;;  %3205 = vadd.xlane.f32.xlu2 %v7610_v62  ;;  %v7938_v3 = vpop.f32.mrf.mxu1 }
 0x684   : > { %4043 = vadd.xlane.f32.xlu1 %v5312_v55 }
 0x686   : > { %v3892_v38 = vpop.xlane.xlu2 %3891 }
 0x687   : > { %v3949_v32 = vsub.f32 %v7829_v45, %v3892_v38 }
 0x688   : > { %v3851_v15 = vpop.f32.mrf.mxu0 }
 0x689   : > { %v5318_v31 = vpop.eup %5317  ;;  %v7932_v52 = vadd.f32 %v3851_v15, %v7401_v13  ;;  %v3987_v62 = vmul.f32 1.442695, %v3949_v32 }
 0x68a   : > { %v4105_v34 = vpack.c.bf16 %v5318_v31, %v5316_v1 }
 0x68b   : > { %3207 = vadd.xlane.f32.xlu0 %v7608_v47  ;;  %4049 = vadd.xlane.f32.xlu2 %v5318_v31  ;;  %5319 = vpow2.f32 %v3987_v62 }
 0x68c   : > { %3921 = vmax.xlane.f32.xlu1 %v7932_v52  ;;  %4145 = vmatmul.bf16.gmra.mxu1 %v4105_v34  ;;  %v7949_v34 = vpop.f32.mrf.mxu1 }
 0x68e   : > { %v3894_v55 = vpop.xlane.xlu0 %3893 }
 0x68f   : > { %v3950_v17 = vsub.f32 %v7839_v11, %v3894_v55 }
 0x690   : > { %v3854_v60 = vpop.f32.mrf.mxu0 }
 0x691   : > { %v3989_v5 = vmul.f32 1.442695, %v3950_v17  ;;  %v7941_v6 = vadd.f32 %v3854_v60, %v7401_v13  ;;  %v5320_v45 = vpop.eup %5319 }
 0x693   : > { %5321 = vpow2.f32 %v3989_v5  ;;  %3923 = vmax.xlane.f32.xlu0 %v7941_v6  ;;  %3209 = vadd.xlane.f32.xlu2 %v7626_v24  ;;  %v5105_v24 = vld [vmem:[%s8275_s19] sm:$0xff] }
 0x694   : > { %4047 = vadd.xlane.f32.xlu1 %v5316_v1  ;;  %4503 = vmatpush.bf16.msra.mxu3 %v5105_v24 }
 0x696   : > { %v3896_v47 = vpop.xlane.xlu1 %3895 }
 0x697   : > { %v3951_v31 = vsub.f32 %v7843_v8, %v3896_v47 }
 0x698   : > { %v3856_v38 = vpop.f32.mrf.mxu0 }
 0x699   : > { %v5322_v15 = vpop.eup %5321  ;;  %v7946_v11 = vadd.f32 %v3856_v38, %v7401_v13  ;;  %v3991_v1 = vmul.f32 1.442695, %v3951_v31 }
 0x69a   : > { %v4106_v32 = vpack.c.bf16 %v5322_v15, %v5320_v45 }
 0x69b   : > { %3211 = vadd.xlane.f32.xlu0 %v7628_v56  ;;  %4053 = vadd.xlane.f32.xlu2 %v5322_v15  ;;  %5323 = vpow2.f32 %v3991_v1  ;;  %v7962_v56 = vpop.f32.mrf.mxu1 }
 0x69c   : > { %3925 = vmax.xlane.f32.xlu1 %v7946_v11  ;;  %4150 = vmatmul.bf16.gmra.mxu1 %v4106_v32 }
 0x69e   : > { %v3898_v62 = vpop.xlane.xlu2 %3897 }
 0x69f   : > { %v3952_v55 = vsub.f32 %v7850_v49, %v3898_v62 }
 0x6a0   : > { %v3859_v17 = vpop.f32.mrf.mxu0 }
 0x6a1   : > { %v3993_v8 = vmul.f32 1.442695, %v3952_v55  ;;  %v7958_v60 = vadd.f32 %v3859_v17, %v7401_v13  ;;  %v5324_v47 = vpop.eup %5323 }
 0x6a3   : > { %5325 = vpow2.f32 %v3993_v8  ;;  %3927 = vmax.xlane.f32.xlu0 %v7958_v60  ;;  %3213 = vadd.xlane.f32.xlu2 %v7646_v57  ;;  %v7970_v24 = vpop.f32.mrf.mxu1 }
 0x6a4   : > { %4051 = vadd.xlane.f32.xlu1 %v5320_v45 }
 0x6a6   : > { %v3900_v5 = vpop.xlane.xlu0 %3899 }
 0x6a7   : > { %v3953_v31 = vsub.f32 %v7856_v16, %v3900_v5 }
 0x6a8   : > { %v3861_v38 = vpop.f32.mrf.mxu0 }
 0x6a9   : > { %v5326_v15 = vpop.eup %5325  ;;  %v7965_v49 = vadd.f32 %v3861_v38, %v7401_v13  ;;  %v3995_v57 = vmul.f32 1.442695, %v3953_v31 }
 0x6aa   : > { %v4107_v32 = vpack.c.bf16 %v5326_v15, %v5324_v47 }
 0x6ab   : > { %3215 = vadd.xlane.f32.xlu0 %v7644_v20  ;;  %4057 = vadd.xlane.f32.xlu2 %v5326_v15  ;;  %5327 = vpow2.f32 %v3995_v57  ;;  %v7978_v38 = vpop.f32.mrf.mxu1 }
 0x6ac   : > { %3929 = vmax.xlane.f32.xlu1 %v7965_v49  ;;  %4155 = vmatmul.bf16.gmra.mxu1 %v4107_v32 }
 0x6ae   : > { %v3902_v45 = vpop.xlane.xlu1 %3901 }
 0x6af   : > { %v3954_v1 = vsub.f32 %v7863_v27, %v3902_v45 }
 0x6b0   : > { %v3864_v62 = vpop.f32.mrf.mxu0 }
 0x6b1   : > { %v3997_v55 = vmul.f32 1.442695, %v3954_v1  ;;  %v7974_v17 = vadd.f32 %v3864_v62, %v7401_v13  ;;  %v5328_v16 = vpop.eup %5327 }
 0x6b3   : > { %5329 = vpow2.f32 %v3997_v55  ;;  %3931 = vmax.xlane.f32.xlu0 %v7974_v17  ;;  %3217 = vadd.xlane.f32.xlu2 %v7664_v44  ;;  %v7990_v62 = vpop.f32.mrf.mxu1 }
 0x6b4   : > { %4055 = vadd.xlane.f32.xlu1 %v5324_v47 }
 0x6b6   : > { %v3904_v20 = vpop.xlane.xlu2 %3903 }
 0x6b7   : > { %v3955_v15 = vsub.f32 %v7869_v4, %v3904_v20 }
 0x6b8   : > { %v3866_v8 = vpop.f32.mrf.mxu0 }
 0x6b9   : > { %v5330_v5 = vpop.eup %5329  ;;  %v7981_v27 = vadd.f32 %v3866_v8, %v7401_v13  ;;  %v3999_v44 = vmul.f32 1.442695, %v3955_v15 }
 0x6ba   : > { %v4108_v31 = vpack.c.bf16 %v5330_v5, %v5328_v16 }
 0x6bb   : > { %3219 = vadd.xlane.f32.xlu0 %v7660_v10  ;;  %4061 = vadd.xlane.f32.xlu2 %v5330_v5  ;;  %5331 = vpow2.f32 %v3999_v44  ;;  %v8000_v15 = vpop.f32.mrf.mxu1 }
 0x6bc   : > { %3933 = vmax.xlane.f32.xlu1 %v7981_v27  ;;  %4160 = vmatmul.bf16.gmra.mxu1 %v4108_v31 }
 0x6be   : > { %v3906_v47 = vpop.xlane.xlu0 %3905 }
 0x6bf   : > { %v3956_v32 = vsub.f32 %v7874_v21, %v3906_v47 }
 0x6c0   : > { %v3869_v57 = vpop.f32.mrf.mxu0 }
 0x6c1   : > { %v4001_v45 = vmul.f32 1.442695, %v3956_v32  ;;  %v7988_v1 = vadd.f32 %v3869_v57, %v7401_v13  ;;  %v5332_v4 = vpop.eup %5331 }
 0x6c3   : > { %5333 = vpow2.f32 %v4001_v45  ;;  %3935 = vmax.xlane.f32.xlu0 %v7988_v1  ;;  %3221 = vadd.xlane.f32.xlu2 %v7675_v30  ;;  %v8008_v57 = vpop.f32.mrf.mxu1 }
 0x6c4   : > { %4059 = vadd.xlane.f32.xlu1 %v5328_v16 }
 0x6c6   : > { %v3908_v10 = vpop.xlane.xlu1 %3907 }
 0x6c7   : > { %v3957_v8 = vsub.f32 %v7880_v2, %v3908_v10 }
 0x6c8   : > { %v3871_v55 = vpop.f32.mrf.mxu0 }
 0x6c9   : > { %v5334_v20 = vpop.eup %5333  ;;  %v7995_v21 = vadd.f32 %v3871_v55, %v7401_v13  ;;  %v4003_v30 = vmul.f32 1.442695, %v3957_v8 }
 0x6ca   : > { %v4109_v5 = vpack.c.bf16 %v5334_v20, %v5332_v4 }
 0x6cb   : > { %3223 = vadd.xlane.f32.xlu0 %v7679_v28  ;;  %4065 = vadd.xlane.f32.xlu2 %v5334_v20  ;;  %5335 = vpow2.f32 %v4003_v30 }
 0x6cc   : > { %3937 = vmax.xlane.f32.xlu1 %v7995_v21  ;;  %4165 = vmatmul.bf16.gmra.mxu1 %v4109_v5 }
 0x6ce   : > { %v3910_v16 = vpop.xlane.xlu2 %3909 }
 0x6cf   : > { %v3958_v31 = vsub.f32 %v7887_v46, %v3910_v16 }
 0x6d0   : > { %v3874_v44 = vpop.f32.mrf.mxu0 }
 0x6d1   : > { %v4005_v47 = vmul.f32 1.442695, %v3958_v31  ;;  %v8004_v32 = vadd.f32 %v3874_v44, %v7401_v13  ;;  %v5336_v10 = vpop.eup %5335  ;;  %v8017_v31 = vpop.f32.mrf.mxu1 }
 0x6d3   : > { %5337 = vpow2.f32 %v4005_v47  ;;  %3939 = vmax.xlane.f32.xlu0 %v8004_v32  ;;  %3225 = vadd.xlane.f32.xlu2 %v7690_v26 }
 0x6d4   : > { %4063 = vadd.xlane.f32.xlu1 %v5332_v4 }
 0x6d6   : > { %v3912_v28 = vpop.xlane.xlu0 %3911  ;;  %v3198_v2 = vpop.xlane.xlu2 %3197 }
 0x6d7   : > { %v3959_v45 = vsub.f32 %v7895_v51, %v3912_v28 }
 0x6d8   : > { %v3876_v46 = vpop.f32.mrf.mxu0 }
 0x6d9   : > { %v5338_v55 = vpop.eup %5337  ;;  %v4007_v20 = vmul.f32 1.442695, %v3959_v45  ;;  %v8012_v8 = vadd.f32 %v3876_v46, %v7401_v13 }
 0x6da   : > { %v4110_v5 = vpack.c.bf16 %v5338_v55, %v5336_v10 }
 0x6db   : > { %5339 = vpow2.f32 %v4007_v20  ;;  %3227 = vadd.xlane.f32.xlu0 %v7686_v61  ;;  %4069 = vadd.xlane.f32.xlu2 %v5338_v55 }
 0x6dc   : > { %3941 = vmax.xlane.f32.xlu1 %v8012_v8  ;;  %4170 = vmatmul.bf16.gmra.mxu1 %v4110_v5  ;;  %5341 = vrcp.f32 %v3198_v2 }
 0x6de   : > { %v3200_v26 = vpop.xlane.xlu0 %3199  ;;  %v4042_v4 = vpop.xlane.xlu2 %4041 }
 0x6df   : > { %5343 = vrcp.f32 %v3200_v26  ;;  %v3914_v51 = vpop.xlane.xlu1 %3913 }
 0x6e0   : > { %v3960_v30 = vsub.f32 %v7902_v41, %v3914_v51 }
 0x6e1   : > { %v5340_v16 = vpop.eup %5339 }
 0x6e2   : > { %v4009_v13 = vmul.f32 1.442695, %v3960_v30  ;;  %v5342_v44 = vpop.eup %5341 }
 0x6e3   : > { %3229 = vadd.xlane.f32.xlu0 %v7701_v39  ;;  %4071 = vadd.xlane.f32.xlu2 %v5340_v16  ;;  %v3406_v47 = vmul.f32 %v5342_v44, %v7719_v29 }
 0x6e4   : > { %5345 = vpow2.f32 %v4009_v13  ;;  %4067 = vadd.xlane.f32.xlu1 %v5336_v10 }
 0x6e5   : > { %v5344_v61 = vpop.eup %5343 }
 0x6e6   : > { %v3407_v28 = vmul.f32 %v5344_v61, %v7736_v12  ;;  %v3916_v2 = vpop.xlane.xlu0 %3915  ;;  %v3202_v45 = vpop.xlane.xlu2 %3201 }
 0x6e7   : > { %v3961_v46 = vsub.f32 %v7909_v14, %v3916_v2  ;;  %v4040_v41 = vpop.xlane.xlu1 %4039 }
 0x6e8   : > { %v3438_v55 = vpack.c.bf16 %v3407_v28, %v3406_v47  ;;  %5347 = vrcp.f32 %v4040_v41 }
 0x6e9   : > { %v4011_v20 = vmul.f32 1.442695, %v3961_v46  ;;  %v4136_v5 = vpop.f32.mrf.mxu1  ;;  %5349 = vrcp.f32 %v4042_v4 }
 0x6ea   : > { %v5346_v26 = vpop.eup %5345  ;;  %5078 = vmatmul.msk.bf16.vlgmr.msra.gmra.mxu3 %vm2875_vm14, %v3438_v55 }
 0x6eb   : > { %5351 = vpow2.f32 %v4011_v20  ;;  %3235 = vadd.xlane.f32.xlu2 %v7712_v25  ;;  %4073 = vadd.xlane.f32.xlu0 %v5346_v26  ;;  %v4111_v39 = vpack.c.bf16 %v5346_v26, %v5340_v16 }
 0x6ec   : > { %3231 = vadd.xlane.f32.xlu1 %v7697_v54  ;;  %5353 = vrcp.f32 %v3202_v45 }
 0x6ed   : > { %4175 = vmatmul.bf16.gmra.mxu1 %v4111_v39 }
 0x6ee   : > { %v3204_v29 = vpop.xlane.xlu0 %3203  ;;  %v4046_v12 = vpop.xlane.xlu2 %4045 }
 0x6ef   : > { %v5348_v14 = vpop.eup %5347  ;;  %5355 = vrcp.f32 %v3204_v29  ;;  %v3918_v10 = vpop.xlane.xlu1 %3917 }
 0x6f0   : > { %v5350_v51 = vpop.eup %5349  ;;  %v3962_v30 = vsub.f32 %v7916_v53, %v3918_v10  ;;  %v4248_v44 = vmul.f32 %v5348_v14, %v4136_v5 }
 0x6f1   : > { %v5352_v4 = vpop.eup %5351  ;;  %v4138_v13 = vpop.f32.mrf.mxu1 }
 0x6f2   : > { %v4013_v61 = vmul.f32 1.442695, %v3962_v30  ;;  %v4249_v47 = vmul.f32 %v5350_v51, %v4138_v13  ;;  %v5354_v25 = vpop.eup %5353 }
 0x6f3   : > { %3237 = vadd.xlane.f32.xlu2 %v7727_v58  ;;  %4075 = vadd.xlane.f32.xlu0 %v5352_v4  ;;  %v3408_v28 = vmul.f32 %v5354_v25, %v7742_v36 }
 0x6f4   : > { %5357 = vpow2.f32 %v4013_v61  ;;  %v4280_v54 = vpack.c.bf16 %v4249_v47, %v4248_v44  ;;  %3233 = vadd.xlane.f32.xlu1 %v7710_v48 }
 0x6f5   : > { %v5356_v16 = vpop.eup %5355 }
 0x6f6   : > { %v3409_v2 = vmul.f32 %v5356_v16, %v7754_v43  ;;  %v3920_v45 = vpop.xlane.xlu0 %3919  ;;  %v3206_v53 = vpop.xlane.xlu2 %3205  ;;  %5058 = vmatmul.msk.bf16.vlgmr.msra.gmra.mxu2 %vm2875_vm14, %v4280_v54 }
 0x6f7   : > { %v3963_v46 = vsub.f32 %v7925_v42, %v3920_v45  ;;  %v4044_v41 = vpop.xlane.xlu1 %4043 }
 0x6f8   : > { %v3439_v55 = vpack.c.bf16 %v3409_v2, %v3408_v28  ;;  %5359 = vrcp.f32 %v4044_v41 }
 0x6f9   : > { %v4015_v20 = vmul.f32 1.442695, %v3963_v46  ;;  %v4141_v58 = vpop.f32.mrf.mxu1  ;;  %5361 = vrcp.f32 %v4046_v12 }
 0x6fa   : > { %v5358_v5 = vpop.eup %5357  ;;  %5079 = vmatmul.msk.bf16.gmra.mxu3 %vm2875_vm14, %v3439_v55 }
 0x6fb   : > { %5363 = vpow2.f32 %v4015_v20  ;;  %3239 = vadd.xlane.f32.xlu0 %v7723_v9  ;;  %v4112_v48 = vpack.c.bf16 %v5358_v5, %v5352_v4 }
 0x6fc   : > { %4077 = vadd.xlane.f32.xlu1 %v5358_v5  ;;  %5365 = vrcp.f32 %v3206_v53 }
 0x6fd   : > { %4180 = vmatmul.bf16.gmra.mxu1 %v4112_v48 }
 0x6fe   : > { %v3208_v36 = vpop.xlane.xlu0 %3207  ;;  %v4050_v43 = vpop.xlane.xlu2 %4049 }
 0x6ff   : > { %v5360_v26 = vpop.eup %5359  ;;  %5367 = vrcp.f32 %v3208_v36  ;;  %v3922_v42 = vpop.xlane.xlu1 %3921 }
 0x700   : > { %v5362_v39 = vpop.eup %5361  ;;  %v3964_v29 = vsub.f32 %v7932_v52, %v3922_v42  ;;  %v4250_v12 = vmul.f32 %v5360_v26, %v4141_v58 }
 0x701   : > { %v5364_v14 = vpop.eup %5363  ;;  %v4143_v10 = vpop.f32.mrf.mxu1 }
 0x702   : > { %v4017_v51 = vmul.f32 1.442695, %v3964_v29  ;;  %v4251_v30 = vmul.f32 %v5362_v39, %v4143_v10  ;;  %v5366_v13 = vpop.eup %5365 }
 0x703   : > { %3241 = vadd.xlane.f32.xlu0 %v7747_v35  ;;  %v3410_v44 = vmul.f32 %v5366_v13, %v7761_v19 }
 0x704   : > { %5369 = vpow2.f32 %v4017_v51  ;;  %v4281_v9 = vpack.c.bf16 %v4251_v30, %v4250_v12  ;;  %4079 = vadd.xlane.f32.xlu1 %v5364_v14 }
 0x705   : > { %v5368_v4 = vpop.eup %5367 }
 0x706   : > { %v3411_v61 = vmul.f32 %v5368_v4, %v7767_v37  ;;  %v3924_v47 = vpop.xlane.xlu0 %3923  ;;  %v3210_v25 = vpop.xlane.xlu2 %3209  ;;  %5059 = vmatmul.msk.bf16.gmra.mxu2 %vm2875_vm14, %v4281_v9 }
 0x707   : > { %v3965_v52 = vsub.f32 %v7941_v6, %v3924_v47  ;;  %v4048_v54 = vpop.xlane.xlu1 %4047 }
 0x708   : > { %v3440_v16 = vpack.c.bf16 %v3411_v61, %v3410_v44  ;;  %5371 = vrcp.f32 %v4048_v54 }
 0x709   : > { %v4019_v28 = vmul.f32 1.442695, %v3965_v52  ;;  %v4146_v2 = vpop.f32.mrf.mxu1  ;;  %5373 = vrcp.f32 %v4050_v43 }
 0x70a   : > { %v5370_v35 = vpop.eup %5369  ;;  %5080 = vmatmul.msk.bf16.gmra.mxu3 %vm2875_vm14, %v3440_v16 }
 0x70b   : > { %5375 = vpow2.f32 %v4019_v28  ;;  %4081 = vadd.xlane.f32.xlu2 %v5370_v35  ;;  %v4113_v19 = vpack.c.bf16 %v5370_v35, %v5364_v14 }
 0x70c   : > { %3243 = vadd.xlane.f32.xlu1 %v7744_v59  ;;  %5377 = vrcp.f32 %v3210_v25 }
 0x70d   : > { %4185 = vmatmul.bf16.gmra.mxu1 %v4113_v19 }
 0x70e   : > { %v3212_v37 = vpop.xlane.xlu0 %3211  ;;  %v4054_v45 = vpop.xlane.xlu2 %4053 }
 0x70f   : > { %v5372_v53 = vpop.eup %5371  ;;  %5379 = vrcp.f32 %v3212_v37  ;;  %v3926_v6 = vpop.xlane.xlu1 %3925 }
 0x710   : > { %v5374_v46 = vpop.eup %5373  ;;  %v3966_v41 = vsub.f32 %v7946_v11, %v3926_v6  ;;  %v4252_v58 = vmul.f32 %v5372_v53, %v4146_v2  ;;  %v8401_v2 = vld [vmem:[#allocation6_spill] sm:$0xff] }
 0x711   : > { %v5376_v55 = vpop.eup %5375  ;;  %v4148_v20 = vpop.f32.mrf.mxu1 }
 0x712   : > { %v4021_v5 = vmul.f32 1.442695, %v3966_v41  ;;  %v4253_v48 = vmul.f32 %v5374_v46, %v4148_v20  ;;  %v5378_v36 = vpop.eup %5377  ;;  %v8402_v41 = vld [vmem:[#allocation18_spill] sm:$0xff] }
 0x713   : > { %4083 = vadd.xlane.f32.xlu2 %v5376_v55  ;;  %v3412_v26 = vmul.f32 %v5378_v36, %v7782_v0 }
 0x714   : > { %5381 = vpow2.f32 %v4021_v5  ;;  %v4282_v43 = vpack.c.bf16 %v4253_v48, %v4252_v58  ;;  %3245 = vadd.xlane.f32.xlu1 %v7758_v7 }
 0x715   : > { %v5380_v59 = vpop.eup %5379 }
 0x716   : > { %v3413_v42 = vmul.f32 %v5380_v59, %v7790_v18  ;;  %v3928_v39 = vpop.xlane.xlu0 %3927  ;;  %v3214_v29 = vpop.xlane.xlu2 %3213  ;;  %5060 = vmatmul.msk.bf16.gmra.mxu2 %vm2875_vm14, %v4282_v43 }
 0x717   : > { %v3967_v11 = vsub.f32 %v7958_v60, %v3928_v39  ;;  %v4052_v14 = vpop.xlane.xlu1 %4051 }
 0x718   : > { %v3441_v10 = vpack.c.bf16 %v3413_v42, %v3412_v26  ;;  %5383 = vrcp.f32 %v4052_v14 }
 0x719   : > { %v4023_v12 = vmul.f32 1.442695, %v3967_v11  ;;  %v4151_v51 = vpop.f32.mrf.mxu1  ;;  %5385 = vrcp.f32 %v4054_v45 }
 0x71a   : > { %v5382_v30 = vpop.eup %5381  ;;  %5081 = vmatmul.msk.bf16.gmra.mxu3 %vm2875_vm14, %v3441_v10  ;;  %v8404_v10 = vld [vmem:[#allocation7_spill] sm:$0xff] }
 0x71b   : > { %5387 = vpow2.f32 %v4023_v12  ;;  %3247 = vadd.xlane.f32.xlu2 %v7756_v23  ;;  %4085 = vadd.xlane.f32.xlu0 %v5382_v30  ;;  %v4114_v7 = vpack.c.bf16 %v5382_v30, %v5376_v55 }
 0x71c   : > { %5389 = vrcp.f32 %v3214_v29  ;;  %v8403_v29 = vld [vmem:[#allocation3_spill] sm:$0xff] }
 0x71d   : > { %4190 = vmatmul.bf16.gmra.mxu1 %v4114_v7 }
 0x71e   : > { %v3216_v0 = vpop.xlane.xlu0 %3215  ;;  %v4058_v18 = vpop.xlane.xlu2 %4057 }
 0x71f   : > { %v5384_v13 = vpop.eup %5383  ;;  %5391 = vrcp.f32 %v3216_v0  ;;  %v3930_v60 = vpop.xlane.xlu1 %3929 }
 0x720   : > { %v5386_v9 = vpop.eup %5385  ;;  %v3968_v4 = vsub.f32 %v7965_v49, %v3930_v60  ;;  %v4254_v47 = vmul.f32 %v5384_v13, %v4151_v51  ;;  %v8405_v51 = vld [vmem:[#allocation8_spill] sm:$0xff] }
 0x721   : > { %v5388_v44 = vpop.eup %5387  ;;  %v4153_v61 = vpop.f32.mrf.mxu1 }
 0x722   : > { %v4025_v25 = vmul.f32 1.442695, %v3968_v4  ;;  %v4255_v52 = vmul.f32 %v5386_v9, %v4153_v61  ;;  %v5390_v54 = vpop.eup %5389 }
 0x723   : > { %3249 = vadd.xlane.f32.xlu2 %v7774_v22  ;;  %4087 = vadd.xlane.f32.xlu0 %v5388_v44  ;;  %v3414_v28 = vmul.f32 %v5390_v54, %v7806_v50 }
 0x724   : > { %5393 = vpow2.f32 %v4025_v25  ;;  %v4283_v23 = vpack.c.bf16 %v4255_v52, %v4254_v47 }
 0x725   : > { %v5392_v16 = vpop.eup %5391 }
 0x726   : > { %v3415_v35 = vmul.f32 %v5392_v16, %v8401_v2  ;;  %v3932_v19 = vpop.xlane.xlu0 %3931  ;;  %v3218_v37 = vpop.xlane.xlu2 %3217  ;;  %5061 = vmatmul.msk.bf16.gmra.mxu2 %vm2875_vm14, %v4283_v23 }
 0x727   : > { %v3969_v49 = vsub.f32 %v7974_v17, %v3932_v19  ;;  %v4056_v45 = vpop.xlane.xlu1 %4055 }
 0x728   : > { %v3442_v53 = vpack.c.bf16 %v3415_v35, %v3414_v28  ;;  %5395 = vrcp.f32 %v4056_v45 }
 0x729   : > { %v4027_v6 = vmul.f32 1.442695, %v3969_v49  ;;  %v4156_v46 = vpop.f32.mrf.mxu1  ;;  %5397 = vrcp.f32 %v4058_v18  ;;  %v8407_v49 = vld [vmem:[#allocation5_spill] sm:$0xff] }
 0x72a   : > { %v5394_v22 = vpop.eup %5393  ;;  %5082 = vmatmul.msk.bf16.gmra.mxu3 %vm2875_vm14, %v3442_v53 }
 0x72b   : > { %5399 = vpow2.f32 %v4027_v6  ;;  %3251 = vadd.xlane.f32.xlu0 %v8402_v41  ;;  %4089 = vadd.xlane.f32.xlu1 %v5394_v22  ;;  %v4115_v50 = vpack.c.bf16 %v5394_v22, %v5388_v44  ;;  %v8406_v44 = vld [vmem:[#allocation16_spill] sm:$0xff]  ;;  %v8408_v6 = vld [vmem:[#allocation9_spill] sm:$0xff]  ;;  %v8409_v22 = vld [vmem:[#allocation10_spill] sm:$0xff] }
 0x72c   : > { %5401 = vrcp.f32 %v3218_v37 }
 0x72d   : > { %4195 = vmatmul.bf16.gmra.mxu1 %v4115_v50 }
 0x72e   : > { %v3220_v55 = vpop.xlane.xlu0 %3219  ;;  %v4062_v20 = vpop.xlane.xlu2 %4061 }
 0x72f   : > { %v5396_v58 = vpop.eup %5395  ;;  %5403 = vrcp.f32 %v3220_v55  ;;  %v3934_v17 = vpop.xlane.xlu1 %3933 }
 0x730   : > { %v5398_v5 = vpop.eup %5397  ;;  %v3970_v48 = vsub.f32 %v7981_v27, %v3934_v17  ;;  %v4256_v59 = vmul.f32 %v5396_v58, %v4156_v46 }
 0x731   : > { %v5400_v36 = vpop.eup %5399  ;;  %v4158_v43 = vpop.f32.mrf.mxu1 }
 0x732   : > { %v4029_v26 = vmul.f32 1.442695, %v3970_v48  ;;  %v4257_v42 = vmul.f32 %v5398_v5, %v4158_v43  ;;  %v5402_v39 = vpop.eup %5401 }
 0x733   : > { %3253 = vadd.xlane.f32.xlu0 %v8403_v29  ;;  %4091 = vadd.xlane.f32.xlu1 %v5400_v36  ;;  %v3416_v12 = vmul.f32 %v5402_v39, %v8404_v10 }
 0x734   : > { %5405 = vpow2.f32 %v4029_v26  ;;  %v4284_v11 = vpack.c.bf16 %v4257_v42, %v4256_v59 }
 0x735   : > { %v5404_v14 = vpop.eup %5403 }
 0x736   : > { %v3417_v30 = vmul.f32 %v5404_v14, %v8405_v51  ;;  %v3936_v7 = vpop.xlane.xlu0 %3935  ;;  %v3222_v0 = vpop.xlane.xlu2 %3221  ;;  %5062 = vmatmul.msk.bf16.gmra.mxu2 %vm2875_vm14, %v4284_v11 }
 0x737   : > { %v3971_v27 = vsub.f32 %v7988_v1, %v3936_v7  ;;  %v4060_v18 = vpop.xlane.xlu1 %4059 }
 0x738   : > { %v3443_v13 = vpack.c.bf16 %v3417_v30, %v3416_v12  ;;  %5407 = vrcp.f32 %v4060_v18  ;;  %v8412_v18 = vld [vmem:[#allocation12_spill] sm:$0xff] }
 0x739   : > { %v4031_v60 = vmul.f32 1.442695, %v3971_v27  ;;  %v4161_v9 = vpop.f32.mrf.mxu1  ;;  %5409 = vrcp.f32 %v4062_v20 }
 0x73a   : > { %v5406_v4 = vpop.eup %5405  ;;  %5083 = vmatmul.msk.bf16.gmra.mxu3 %vm2875_vm14, %v3443_v13 }
 0x73b   : > { %5411 = vpow2.f32 %v4031_v60  ;;  %3255 = vadd.xlane.f32.xlu1 %v8406_v44  ;;  %4093 = vadd.xlane.f32.xlu2 %v5406_v4  ;;  %v4116_v61 = vpack.c.bf16 %v5406_v4, %v5400_v36  ;;  %v8410_v36 = vld [vmem:[#allocation4_spill] sm:$0xff] }
 0x73c   : > { %5413 = vrcp.f32 %v3222_v0  ;;  %v8411_v0 = vld [vmem:[#allocation11_spill] sm:$0xff] }
 0x73d   : > { %4200 = vmatmul.bf16.gmra.mxu1 %v4116_v61 }
 0x73e   : > { %v3224_v47 = vpop.xlane.xlu0 %3223  ;;  %v5408_v25 = vpop.eup %5407 }
 0x73f   : > { %5415 = vrcp.f32 %v3224_v47  ;;  %v3938_v1 = vpop.xlane.xlu1 %3937  ;;  %v5410_v52 = vpop.eup %5409  ;;  %v4258_v2 = vmul.f32 %v5408_v25, %v4161_v9 }
 0x740   : > { %v4066_v54 = vpop.xlane.xlu2 %4065  ;;  %v3972_v23 = vsub.f32 %v7995_v21, %v3938_v1 }
 0x741   : > { %v5412_v16 = vpop.eup %5411  ;;  %v4163_v28 = vpop.f32.mrf.mxu1 }
 0x742   : > { %v4033_v35 = vmul.f32 1.442695, %v3972_v23  ;;  %v4259_v19 = vmul.f32 %v5410_v52, %v4163_v28  ;;  %v5414_v37 = vpop.eup %5413 }
 0x743   : > { %3257 = vadd.xlane.f32.xlu1 %v8407_v49  ;;  %4095 = vadd.xlane.f32.xlu2 %v5412_v16  ;;  %v3418_v46 = vmul.f32 %v5414_v37, %v8408_v6  ;;  %v8413_v49 = vld [vmem:[#allocation13_spill] sm:$0xff] }
 0x744   : > { %5417 = vpow2.f32 %v4033_v35  ;;  %v4285_v45 = vpack.c.bf16 %v4259_v19, %v4258_v2 }
 0x745   : > { %v5416_v53 = vpop.eup %5415 }
 0x746   : > { %v3419_v41 = vmul.f32 %v5416_v53, %v8409_v22  ;;  %v3940_v50 = vpop.xlane.xlu0 %3939  ;;  %5063 = vmatmul.msk.bf16.gmra.mxu2 %vm2875_vm14, %v4285_v45  ;;  %v8414_v53 = vld [vmem:[#allocation15_spill] sm:$0xff] }
 0x747   : > { %v3973_v21 = vsub.f32 %v8004_v32, %v3940_v50  ;;  %v4064_v55 = vpop.xlane.xlu1 %4063 }
 0x748   : > { %v3444_v20 = vpack.c.bf16 %v3419_v41, %v3418_v46  ;;  %5419 = vrcp.f32 %v4064_v55  ;;  %v3226_v48 = vpop.xlane.xlu2 %3225 }
 0x749   : > { %v4035_v58 = vmul.f32 1.442695, %v3973_v21  ;;  %v4166_v17 = vpop.f32.mrf.mxu1  ;;  %5421 = vrcp.f32 %v4066_v54 }
 0x74a   : > { %v5418_v5 = vpop.eup %5417  ;;  %5084 = vmatmul.msk.bf16.gmra.mxu3 %vm2875_vm14, %v3444_v20 }
 0x74b   : > { %5423 = vpow2.f32 %v4035_v58  ;;  %3259 = vadd.xlane.f32.xlu2 %v8410_v36  ;;  %4097 = vadd.xlane.f32.xlu0 %v5418_v5  ;;  %v4117_v43 = vpack.c.bf16 %v5418_v5, %v5412_v16 }
 0x74c   : > { %5425 = vrcp.f32 %v3226_v48 }
 0x74d   : > { %4205 = vmatmul.bf16.gmra.mxu1 %v4117_v43 }
 0x74e   : > { %v3228_v59 = vpop.xlane.xlu0 %3227  ;;  %v5420_v26 = vpop.eup %5419 }
 0x74f   : > { %5427 = vrcp.f32 %v3228_v59  ;;  %v3942_v32 = vpop.xlane.xlu1 %3941  ;;  %v5422_v42 = vpop.eup %5421  ;;  %v4260_v14 = vmul.f32 %v5420_v26, %v4166_v17 }
 0x750   : > { %v3974_v39 = vsub.f32 %v8012_v8, %v3942_v32  ;;  %v4070_v9 = vpop.xlane.xlu2 %4069  ;;  %v8415_v32 = vld [vmem:[#allocation19_spill] sm:$0xff] }
 0x751   : > { %v5424_v29 = vpop.eup %5423  ;;  %v4168_v11 = vpop.f32.mrf.mxu1 }
 0x752   : > { %v4037_v10 = vmul.f32 1.442695, %v3974_v39  ;;  %v4261_v12 = vmul.f32 %v5422_v42, %v4168_v11  ;;  %v5426_v51 = vpop.eup %5425 }
 0x753   : > { %4099 = vadd.xlane.f32.xlu0 %v5424_v29  ;;  %v3420_v27 = vmul.f32 %v5426_v51, %v8411_v0 }
 0x754   : > { %5429 = vpow2.f32 %v4037_v10  ;;  %v4286_v30 = vpack.c.bf16 %v4261_v12, %v4260_v14 }
 0x755   : > { %v5428_v7 = vpop.eup %5427 }
 0x756   : > { %v3421_v13 = vmul.f32 %v5428_v7, %v8412_v18  ;;  %5064 = vmatmul.msk.bf16.gmra.mxu2 %vm2875_vm14, %v4286_v30  ;;  %v3230_v47 = vpop.xlane.xlu0 %3229  ;;  %v8090_v30 = vld [vmem:[%s8276_s20] ss:$0 sm:$0xff] }
 0x757   : > { %v4068_v60 = vpop.xlane.xlu1 %4067 }
 0x758   : > { %v3445_v4 = vpack.c.bf16 %v3421_v13, %v3420_v27  ;;  %5431 = vrcp.f32 %v4068_v60  ;;  %v4072_v23 = vpop.xlane.xlu2 %4071  ;;  %v5503_v27 = vld [vmem:[%s5688_s24] sm:$0xff] }
 0x759   : > { %v4171_v8 = vpop.f32.mrf.mxu1  ;;  %5433 = vrcp.f32 %v4070_v9 }
 0x75a   : > { %v5430_v44 = vpop.eup %5429  ;;  %5085 = vmatmul.msk.bf16.gmra.mxu3 %vm2875_vm14, %v3445_v4  ;;  %5435 = vrcp.f32 %v3230_v47 }
 0x75b   : > { %4101 = vadd.xlane.f32.xlu1 %v5430_v44  ;;  %v4118_v61 = vpack.c.bf16 %v5430_v44, %v5424_v29  ;;  %v8416_v29 = vld [vmem:[#allocation17_spill] sm:$0xff] }
 0x75d   : > { %4210 = vmatmul.bf16.gmra.mxu1 %v4118_v61 }
 0x75e   : > { %v5432_v25 = vpop.eup %5431  ;;  %v4074_v19 = vpop.xlane.xlu0 %4073 }
 0x75f   : > { %v3232_v1 = vpop.xlane.xlu1 %3231  ;;  %v5434_v52 = vpop.eup %5433  ;;  %v4262_v16 = vmul.f32 %v5432_v25, %v4171_v8 }
 0x760   : > { %5437 = vrcp.f32 %v3232_v1  ;;  %v5436_v35 = vpop.eup %5435  ;;  %v3236_v50 = vpop.xlane.xlu2 %3235 }
 0x761   : > { %v4173_v54 = vpop.f32.mrf.mxu1  ;;  %v3422_v45 = vmul.f32 %v5436_v35, %v8413_v49  ;;  %5439 = vrcp.f32 %v4072_v23 }
 0x762   : > { %v4263_v28 = vmul.f32 %v5434_v52, %v4173_v54  ;;  %5441 = vrcp.f32 %v4074_v19  ;;  %v5504_v54 = vld [vmem:[%s5688_s24 + $0x8] sm:$0xff] }
 0x764   : > { %v4287_v2 = vpack.c.bf16 %v4263_v28, %v4262_v16 }
 0x766   : > { %5065 = vmatmul.msk.bf16.gmra.mxu2 %vm2875_vm14, %v4287_v2  ;;  %v5438_v37 = vpop.eup %5437  ;;  %v4076_v55 = vpop.xlane.xlu0 %4075 }
 0x767   : > { %v3423_v6 = vmul.f32 %v5438_v37, %v8414_v53  ;;  %v3234_v46 = vpop.xlane.xlu1 %3233  ;;  %v5440_v20 = vpop.eup %5439 }
 0x768   : > { %5443 = vrcp.f32 %v3234_v46  ;;  %v5442_v58 = vpop.eup %5441  ;;  %v3238_v0 = vpop.xlane.xlu2 %3237 }
 0x769   : > { %v3446_v41 = vpack.c.bf16 %v3423_v6, %v3422_v45  ;;  %5445 = vrcp.f32 %v3236_v50  ;;  %v5505_v50 = vld [vmem:[%s5688_s24 + $0x10] sm:$0xff] }
 0x76a   : > { %v4176_v22 = vpop.f32.mrf.mxu1  ;;  %5447 = vrcp.f32 %v4076_v55 }
 0x76b   : > { %5086 = vmatmul.msk.bf16.gmra.mxu3 %vm2875_vm14, %v3446_v41  ;;  %v4264_v48 = vmul.f32 %v5440_v20, %v4176_v22 }
 0x76d   : > { %v4505_v21 = vpop.f32.mrf.mxu3 }
 0x76e   : > { %v5444_v5 = vpop.eup %5443  ;;  %v3240_v10 = vpop.xlane.xlu0 %3239 }
 0x76f   : > { %v5446_v43 = vpop.eup %5445  ;;  %v3424_v42 = vmul.f32 %v5444_v5, %v8415_v32  ;;  %v4078_v39 = vpop.xlane.xlu1 %4077 }
 0x770   : > { %v3425_v11 = vmul.f32 %v5446_v43, %v8416_v29  ;;  %5449 = vrcp.f32 %v4078_v39  ;;  %v5448_v4 = vpop.eup %5447 }
 0x771   : > { %5451 = vrcp.f32 %v3240_v10 }
 0x772   : > { %v4178_v17 = vpop.f32.mrf.mxu1  ;;  %v3447_v7 = vpack.c.bf16 %v3425_v11, %v3424_v42  ;;  %5453 = vrcp.f32 %v3238_v0 }
 0x773   : > { %v4265_v36 = vmul.f32 %v5442_v58, %v4178_v17 }
 0x775   : > { %v4288_v59 = vpack.c.bf16 %v4265_v36, %v4264_v48  ;;  %v4507_v26 = vpop.f32.mrf.mxu3 }
 0x776   : > { %v5450_v44 = vpop.eup %5449  ;;  %v3242_v41 = vpop.xlane.xlu0 %3241 }
 0x777   : > { %5066 = vmatmul.msk.bf16.gmra.mxu2 %vm2875_vm14, %v4288_v59  ;;  %v4080_v9 = vpop.xlane.xlu1 %4079  ;;  %v5452_v25 = vpop.eup %5451 }
 0x778   : > { %v5454_v16 = vpop.eup %5453  ;;  %v3427_v35 = vmul.f32 %v5452_v25, %v7921_v63  ;;  %5455 = vrcp.f32 %v4080_v9 }
 0x779   : > { %v4362_v14 = vpop.f32.mrf.mxu2  ;;  %v3426_v49 = vmul.f32 %v5454_v16, %v7911_v33 }
 0x77a   : > { %v4181_v12 = vpop.f32.mrf.mxu1  ;;  %v4506_v51 = vadd.f32 %v4505_v21, %v4362_v14 }
 0x77b   : > { %5087 = vmatmul.msk.bf16.gmra.mxu3 %vm2875_vm14, %v3447_v7  ;;  %v4266_v1 = vmul.f32 %v5448_v4, %v4181_v12  ;;  %v3448_v22 = vpack.c.bf16 %v3427_v35, %v3426_v49 }
 0x77c   : > { %v4585_v18 = vadd.f32 %v5503_v27, %v4506_v51 }
 0x77d   : > { %v4510_v13 = vpop.f32.mrf.mxu3 }
 0x77e   : > { %v4621_v60 = vadd.f32 %v8090_v30, %v4585_v18  ;;  %v4082_v19 = vpop.xlane.xlu2 %4081  ;;  %v5456_v20 = vpop.eup %5455 }
 0x77f   : > { %v3244_v53 = vpop.xlane.xlu1 %3243  ;;  %5457 = vrcp.f32 %v4082_v19 }
 0x780   : > { %4653 = vst.msk [vmem:[%s8099_s0] sm:$0xff] %vm738_vm0, %v4621_v60  ;;  %5459 = vrcp.f32 %v3244_v53  ;;  %v5507_v60 = vld [vmem:[%s5688_s24 + $0x20] sm:$0xff] }
 0x781   : > { %v4364_v8 = vpop.f32.mrf.mxu2  ;;  %5461 = vrcp.f32 %v3242_v41 }
 0x782   : > { %v4183_v61 = vpop.f32.mrf.mxu1  ;;  %v4508_v47 = vadd.f32 %v4507_v26, %v4364_v8  ;;  %v5506_v26 = vld [vmem:[%s5688_s24 + $0x18] sm:$0xff] }
 0x783   : > { %v4267_v52 = vmul.f32 %v5450_v44, %v4183_v61 }
 0x784   : > { %v4586_v23 = vadd.f32 %v5504_v54, %v4508_v47 }
 0x785   : > { %v4289_v28 = vpack.c.bf16 %v4267_v52, %v4266_v1  ;;  %v4512_v2 = vpop.f32.mrf.mxu3  ;;  %v5458_v17 = vpop.eup %5457 }
 0x786   : > { %v4622_v37 = vadd.f32 %v8090_v30, %v4586_v23  ;;  %v4084_v55 = vpop.xlane.xlu2 %4083  ;;  %v5460_v36 = vpop.eup %5459  ;;  %v5508_v23 = vld [vmem:[%s5688_s24 + $0x28] sm:$0xff] }
 0x787   : > { %5067 = vmatmul.msk.bf16.gmra.mxu2 %vm2875_vm14, %v4289_v28  ;;  %v5462_v42 = vpop.eup %5461  ;;  %v3429_v11 = vmul.f32 %v5460_v36, %v7938_v3  ;;  %5463 = vrcp.f32 %v4084_v55 }
 0x788   : > { %4654 = vst.msk [vmem:[%s8099_s0 + $0x8] sm:$0xff] %vm738_vm0, %v4622_v37  ;;  %v3428_v12 = vmul.f32 %v5462_v42, %v7929_v40 }
 0x789   : > { %v4367_v45 = vpop.f32.mrf.mxu2 }
 0x78a   : > { %v4186_v6 = vpop.f32.mrf.mxu1  ;;  %v4511_v46 = vadd.f32 %v4510_v13, %v4367_v45  ;;  %v3449_v18 = vpack.c.bf16 %v3429_v11, %v3428_v12  ;;  %v3246_v13 = vpop.xlane.xlu1 %3245 }
 0x78b   : > { %5088 = vmatmul.msk.bf16.gmra.mxu3 %vm2875_vm14, %v3448_v22  ;;  %v4268_v43 = vmul.f32 %v5456_v20, %v4186_v6 }
 0x78c   : > { %v4587_v63 = vadd.f32 %v5505_v50, %v4511_v46 }
 0x78d   : > { %v4515_v21 = vpop.f32.mrf.mxu3  ;;  %v5464_v8 = vpop.eup %5463 }
 0x78e   : > { %v4623_v33 = vadd.f32 %v8090_v30, %v4587_v63  ;;  %v4086_v14 = vpop.xlane.xlu0 %4085  ;;  %v3248_v7 = vpop.xlane.xlu2 %3247  ;;  %v5509_v63 = vld [vmem:[%s5688_s24 + $0x30] sm:$0xff] }
 0x78f   : > { %5465 = vrcp.f32 %v4086_v14 }
 0x790   : > { %4655 = vst.msk [vmem:[%s8099_s0 + $0x10] sm:$0xff] %vm738_vm0, %v4623_v33  ;;  %5467 = vrcp.f32 %v3248_v7 }
 0x791   : > { %v4369_v58 = vpop.f32.mrf.mxu2  ;;  %5469 = vrcp.f32 %v3246_v13  ;;  %v5511_v13 = vld [vmem:[%s5688_s24 + $0x40] sm:$0xff] }
 0x792   : > { %v4188_v5 = vpop.f32.mrf.mxu1  ;;  %v4513_v48 = vadd.f32 %v4512_v2, %v4369_v58 }
 0x793   : > { %v4269_v59 = vmul.f32 %v5458_v17, %v4188_v5 }
 0x794   : > { %v4588_v32 = vadd.f32 %v5506_v26, %v4513_v48 }
 0x795   : > { %v4290_v39 = vpack.c.bf16 %v4269_v59, %v4268_v43  ;;  %v4517_v29 = vpop.f32.mrf.mxu3  ;;  %v5466_v61 = vpop.eup %5465  ;;  %v5510_v59 = vld [vmem:[%s5688_s24 + $0x38] sm:$0xff] }
 0x796   : > { %v4624_v10 = vadd.f32 %v8090_v30, %v4588_v32  ;;  %v4088_v4 = vpop.xlane.xlu0 %4087  ;;  %v5468_v1 = vpop.eup %5467 }
 0x797   : > { %5068 = vmatmul.msk.bf16.gmra.mxu2 %vm2875_vm14, %v4290_v39  ;;  %v5470_v28 = vpop.eup %5469  ;;  %v3431_v19 = vmul.f32 %v5468_v1, %v7962_v56  ;;  %5471 = vrcp.f32 %v4088_v4  ;;  %v3250_v50 = vpop.xlane.xlu2 %3249  ;;  %v5512_v1 = vld [vmem:[%s5688_s24 + $0x48] sm:$0xff] }
 0x798   : > { %4656 = vst.msk [vmem:[%s8099_s0 + $0x18] sm:$0xff] %vm738_vm0, %v4624_v10  ;;  %v3430_v45 = vmul.f32 %v5470_v28, %v7949_v34 }
 0x799   : > { %v4372_v51 = vpop.f32.mrf.mxu2 }
 0x79a   : > { %v4191_v0 = vpop.f32.mrf.mxu1  ;;  %v4516_v27 = vadd.f32 %v4515_v21, %v4372_v51  ;;  %v3450_v41 = vpack.c.bf16 %v3431_v19, %v3430_v45 }
 0x79b   : > { %5089 = vmatmul.msk.bf16.gmra.mxu3 %vm2875_vm14, %v3449_v18  ;;  %v4270_v52 = vmul.f32 %v5464_v8, %v4191_v0 }
 0x79c   : > { %v4589_v3 = vadd.f32 %v5507_v60, %v4516_v27 }
 0x79d   : > { %v4520_v9 = vpop.f32.mrf.mxu3  ;;  %v5472_v55 = vpop.eup %5471 }
 0x79e   : > { %v4625_v40 = vadd.f32 %v8090_v30, %v4589_v3  ;;  %v4090_v37 = vpop.xlane.xlu1 %4089  ;;  %v3252_v6 = vpop.xlane.xlu0 %3251 }
 0x79f   : > { %5473 = vrcp.f32 %v4090_v37 }
 0x7a0   : > { %4657 = vst.msk [vmem:[%s8099_s0 + $0x20] sm:$0xff] %vm738_vm0, %v4625_v40  ;;  %5475 = vrcp.f32 %v3252_v6 }
 0x7a1   : > { %v4374_v44 = vpop.f32.mrf.mxu2  ;;  %5477 = vrcp.f32 %v3250_v50 }
 0x7a2   : > { %v4193_v47 = vpop.f32.mrf.mxu1  ;;  %v4518_v25 = vadd.f32 %v4517_v29, %v4374_v44 }
 0x7a3   : > { %v4271_v54 = vmul.f32 %v5466_v61, %v4193_v47 }
 0x7a4   : > { %v4590_v16 = vadd.f32 %v5508_v23, %v4518_v25 }
 0x7a5   : > { %v4291_v2 = vpack.c.bf16 %v4271_v54, %v4270_v52  ;;  %v4522_v35 = vpop.f32.mrf.mxu3  ;;  %v5474_v58 = vpop.eup %5473 }
 0x7a6   : > { %v4626_v49 = vadd.f32 %v8090_v30, %v4590_v16  ;;  %v4092_v33 = vpop.xlane.xlu1 %4091  ;;  %v5476_v48 = vpop.eup %5475 }
 0x7a7   : > { %5069 = vmatmul.msk.bf16.gmra.mxu2 %vm2875_vm14, %v4291_v2  ;;  %v5478_v32 = vpop.eup %5477  ;;  %v3433_v29 = vmul.f32 %v5476_v48, %v7978_v38  ;;  %5479 = vrcp.f32 %v4092_v33  ;;  %v3254_v18 = vpop.xlane.xlu0 %3253 }
 0x7a8   : > { %4658 = vst.msk [vmem:[%s8099_s0 + $0x28] sm:$0xff] %vm738_vm0, %v4626_v49  ;;  %v3432_v10 = vmul.f32 %v5478_v32, %v7970_v24 }
 0x7a9   : > { %v4377_v53 = vpop.f32.mrf.mxu2 }
 0x7aa   : > { %v4196_v46 = vpop.f32.mrf.mxu1  ;;  %v4521_v22 = vadd.f32 %v4520_v9, %v4377_v53  ;;  %v3451_v27 = vpack.c.bf16 %v3433_v29, %v3432_v10  ;;  %v5515_v10 = vld [vmem:[%s5688_s24 + $0x60] sm:$0xff] }
 0x7ab   : > { %5090 = vmatmul.msk.bf16.gmra.mxu3 %vm2875_vm14, %v3450_v41  ;;  %v4272_v36 = vmul.f32 %v5472_v55, %v4196_v46 }
 0x7ac   : > { %v4591_v56 = vadd.f32 %v5509_v63, %v4521_v22  ;;  %v5513_v22 = vld [vmem:[%s5688_s24 + $0x50] sm:$0xff] }
 0x7ad   : > { %v4525_v21 = vpop.f32.mrf.mxu3  ;;  %v5480_v9 = vpop.eup %5479 }
 0x7ae   : > { %v4627_v34 = vadd.f32 %v8090_v30, %v4591_v56  ;;  %v4094_v11 = vpop.xlane.xlu2 %4093  ;;  %v3256_v51 = vpop.xlane.xlu1 %3255 }
 0x7af   : > { %5481 = vrcp.f32 %v4094_v11 }
 0x7b0   : > { %4659 = vst.msk [vmem:[%s8099_s0 + $0x30] sm:$0xff] %vm738_vm0, %v4627_v34  ;;  %5483 = vrcp.f32 %v3256_v51 }
 0x7b1   : > { %v4379_v20 = vpop.f32.mrf.mxu2  ;;  %5485 = vrcp.f32 %v3254_v18 }
 0x7b2   : > { %v4198_v17 = vpop.f32.mrf.mxu1  ;;  %v4523_v5 = vadd.f32 %v4522_v35, %v4379_v20 }
 0x7b3   : > { %v4273_v43 = vmul.f32 %v5474_v58, %v4198_v17  ;;  %v5514_v58 = vld [vmem:[%s5688_s24 + $0x58] sm:$0xff] }
 0x7b4   : > { %v4592_v26 = vadd.f32 %v5510_v59, %v4523_v5 }
 0x7b5   : > { %v4292_v42 = vpack.c.bf16 %v4273_v43, %v4272_v36  ;;  %v4527_v39 = vpop.f32.mrf.mxu3  ;;  %v5482_v4 = vpop.eup %5481 }
 0x7b6   : > { %v4628_v14 = vadd.f32 %v8090_v30, %v4592_v26  ;;  %v4096_v3 = vpop.xlane.xlu2 %4095  ;;  %v5484_v61 = vpop.eup %5483 }
 0x7b7   : > { %5070 = vmatmul.msk.bf16.gmra.mxu2 %vm2875_vm14, %v4292_v42  ;;  %v5486_v54 = vpop.eup %5485  ;;  %v3435_v28 = vmul.f32 %v5484_v61, %v8000_v15  ;;  %5487 = vrcp.f32 %v4096_v3  ;;  %v3258_v46 = vpop.xlane.xlu1 %3257 }
 0x7b8   : > { %4660 = vst.msk [vmem:[%s8099_s0 + $0x38] sm:$0xff] %vm738_vm0, %v4628_v14  ;;  %v3434_v35 = vmul.f32 %v5486_v54, %v7990_v62  ;;  %v5518_v54 = vld [vmem:[%s5688_s24 + $0x78] sm:$0xff] }
 0x7b9   : > { %v4382_v12 = vpop.f32.mrf.mxu2 }
 0x7ba   : > { %v4201_v7 = vpop.f32.mrf.mxu1  ;;  %v4526_v0 = vadd.f32 %v4525_v21, %v4382_v12  ;;  %v3452_v6 = vpack.c.bf16 %v3435_v28, %v3434_v35 }
 0x7bb   : > { %5091 = vmatmul.msk.bf16.gmra.mxu3 %vm2875_vm14, %v3451_v27  ;;  %v4274_v47 = vmul.f32 %v5480_v9, %v4201_v7 }
 0x7bc   : > { %v4593_v38 = vadd.f32 %v5511_v13, %v4526_v0 }
 0x7bd   : > { %v4530_v60 = vpop.f32.mrf.mxu3  ;;  %v5488_v50 = vpop.eup %5487 }
 0x7be   : > { %v4629_v24 = vadd.f32 %v8090_v30, %v4593_v38  ;;  %v4098_v19 = vpop.xlane.xlu0 %4097  ;;  %v3260_v49 = vpop.xlane.xlu2 %3259 }
 0x7bf   : > { %5489 = vrcp.f32 %v4098_v19  ;;  %v5519_v19 = vld [vmem:[%s5688_s24 + $0x80] sm:$0xff] }
 0x7c0   : > { %4661 = vst.msk [vmem:[%s8099_s0 + $0x40] sm:$0xff] %vm738_vm0, %v4629_v24  ;;  %5491 = vrcp.f32 %v3260_v49 }
 0x7c1   : > { %v4384_v40 = vpop.f32.mrf.mxu2  ;;  %5493 = vrcp.f32 %v3258_v46  ;;  %v5520_v46 = vld [vmem:[%s5688_s24 + $0x88] sm:$0xff] }
 0x7c2   : > { %v4203_v8 = vpop.f32.mrf.mxu1  ;;  %v4528_v44 = vadd.f32 %v4527_v39, %v4384_v40 }
 0x7c3   : > { %v4275_v25 = vmul.f32 %v5482_v4, %v4203_v8 }
 0x7c4   : > { %v4594_v52 = vadd.f32 %v5512_v1, %v4528_v44  ;;  %v5517_v44 = vld [vmem:[%s5688_s24 + $0x70] sm:$0xff] }
 0x7c5   : > { %v4293_v23 = vpack.c.bf16 %v4275_v25, %v4274_v47  ;;  %v4532_v16 = vpop.f32.mrf.mxu3  ;;  %v5490_v56 = vpop.eup %5489 }
 0x7c6   : > { %v4630_v2 = vadd.f32 %v8090_v30, %v4594_v52  ;;  %v5492_v33 = vpop.eup %5491  ;;  %v4100_v32 = vpop.xlane.xlu0 %4099 }
 0x7c7   : > { %5071 = vmatmul.msk.bf16.gmra.mxu2 %vm2875_vm14, %v4293_v23  ;;  %v5494_v5 = vpop.eup %5493  ;;  %v3437_v43 = vmul.f32 %v5492_v33, %v8017_v31  ;;  %5495 = vrcp.f32 %v4100_v32 }
 0x7c8   : > { %4662 = vst.msk [vmem:[%s8099_s0 + $0x48] sm:$0xff] %vm738_vm0, %v4630_v2  ;;  %v3436_v26 = vmul.f32 %v5494_v5, %v8008_v57 }
 0x7c9   : > { %v4387_v37 = vpop.f32.mrf.mxu2 }
 0x7ca   : > { %v4206_v45 = vpop.f32.mrf.mxu1  ;;  %v4531_v53 = vadd.f32 %v4530_v60, %v4387_v37  ;;  %v3453_v14 = vpack.c.bf16 %v3437_v43, %v3436_v26  ;;  %v5516_v60 = vld [vmem:[%s5688_s24 + $0x68] sm:$0xff]  ;;  %v5523_v43 = vld [vmem:[%s5688_s24 + $0xa0] sm:$0xff] }
 0x7cb   : > { %5092 = vmatmul.msk.bf16.gmra.mxu3 %vm2875_vm14, %v3452_v6  ;;  %v4276_v55 = vmul.f32 %v5488_v50, %v4206_v45 }
 0x7cc   : > { %v4595_v15 = vadd.f32 %v5513_v22, %v4531_v53 }
 0x7cd   : > { %v4535_v41 = vpop.f32.mrf.mxu3  ;;  %v5496_v57 = vpop.eup %5495 }
 0x7ce   : > { %v4631_v62 = vadd.f32 %v8090_v30, %v4595_v15  ;;  %v4102_v42 = vpop.xlane.xlu1 %4101 }
 0x7cf   : > { %5497 = vrcp.f32 %v4102_v42 }
 0x7d0   : > { %4663 = vst.msk [vmem:[%s8099_s0 + $0x50] sm:$0xff] %vm738_vm0, %v4631_v62 }
 0x7d1   : > { %v4389_v63 = vpop.f32.mrf.mxu2 }
 0x7d2   : > { %v4208_v21 = vpop.f32.mrf.mxu1  ;;  %v4533_v34 = vadd.f32 %v4532_v16, %v4389_v63  ;;  %v5521_v63 = vld [vmem:[%s5688_s24 + $0x90] sm:$0xff] }
 0x7d3   : > { %v4277_v20 = vmul.f32 %v5490_v56, %v4208_v21 }
 0x7d4   : > { %v4596_v17 = vadd.f32 %v5514_v58, %v4533_v34 }
 0x7d5   : > { %v4294_v48 = vpack.c.bf16 %v4277_v20, %v4276_v55  ;;  %v4537_v36 = vpop.f32.mrf.mxu3  ;;  %v5498_v0 = vpop.eup %5497  ;;  %v5522_v20 = vld [vmem:[%s5688_s24 + $0x98] sm:$0xff] }
 0x7d6   : > { %v4632_v59 = vadd.f32 %v8090_v30, %v4596_v17 }
 0x7d7   : > { %5072 = vmatmul.msk.bf16.gmra.mxu2 %vm2875_vm14, %v4294_v48 }
 0x7d8   : > { %4664 = vst.msk [vmem:[%s8099_s0 + $0x58] sm:$0xff] %vm738_vm0, %v4632_v59 }
 0x7d9   : > { %v4392_v39 = vpop.f32.mrf.mxu2 }
 0x7da   : > { %v4211_v29 = vpop.f32.mrf.mxu1  ;;  %v4536_v11 = vadd.f32 %v4535_v41, %v4392_v39 }
 0x7db   : > { %5093 = vmatmul.msk.bf16.gmra.mxu3 %vm2875_vm14, %v3453_v14  ;;  %v4278_v13 = vmul.f32 %v5496_v57, %v4211_v29  ;;  %v5524_v29 = vld [vmem:[%s5688_s24 + $0xa8] sm:$0xff] }
 0x7dc   : > { %v4597_v31 = vadd.f32 %v5515_v10, %v4536_v11 }
 0x7dd   : > { %v4540_v12 = vpop.f32.mrf.mxu3 }
 0x7de   : > { %v4633_v51 = vadd.f32 %v8090_v30, %v4597_v31 }
 0x7e0   : > { %4665 = vst.msk [vmem:[%s8099_s0 + $0x60] sm:$0xff] %vm738_vm0, %v4633_v51  ;;  %v5525_v51 = vld [vmem:[%s5688_s24 + $0xb0] sm:$0xff] }
 0x7e1   : > { %v4394_v7 = vpop.f32.mrf.mxu2 }
 0x7e2   : > { %v4213_v27 = vpop.f32.mrf.mxu1  ;;  %v4538_v18 = vadd.f32 %v4537_v36, %v4394_v7 }
 0x7e3   : > { %v4279_v38 = vmul.f32 %v5498_v0, %v4213_v27 }
 0x7e4   : > { %v4598_v24 = vadd.f32 %v5516_v60, %v4538_v18 }
 0x7e5   : > { %v4295_v3 = vpack.c.bf16 %v4279_v38, %v4278_v13  ;;  %v4542_v9 = vpop.f32.mrf.mxu3  ;;  %v5526_v13 = vld [vmem:[%s5688_s24 + $0xb8] sm:$0xff] }
 0x7e6   : > { %v4634_v40 = vadd.f32 %v8090_v30, %v4598_v24 }
 0x7e7   : > { %5073 = vmatmul.msk.bf16.gmra.mxu2 %vm2875_vm14, %v4295_v3 }
 0x7e8   : > { %4666 = vst.msk [vmem:[%s8099_s0 + $0x68] sm:$0xff] %vm738_vm0, %v4634_v40  ;;  %v5527_v40 = vld [vmem:[%s5688_s24 + $0xc0] sm:$0xff] }
 0x7e9   : > { %v4397_v4 = vpop.f32.mrf.mxu2 }
 0x7ea   : > { %v4541_v8 = vadd.f32 %v4540_v12, %v4397_v4 }
 0x7ec   : > { %v4599_v61 = vadd.f32 %v5517_v44, %v4541_v8 }
 0x7ee   : > { %v4635_v47 = vadd.f32 %v8090_v30, %v4599_v61  ;;  %v4545_v25 = vpop.f32.mrf.mxu3 }
 0x7f0   : > { %4667 = vst.msk [vmem:[%s8099_s0 + $0x70] sm:$0xff] %vm738_vm0, %v4635_v47 }
 0x7f1   : > { %v4399_v1 = vpop.f32.mrf.mxu2 }
 0x7f2   : > { %v4543_v52 = vadd.f32 %v4542_v9, %v4399_v1 }
 0x7f4   : > { %v4600_v23 = vadd.f32 %v5518_v54, %v4543_v52 }
 0x7f6   : > { %v4636_v16 = vadd.f32 %v8090_v30, %v4600_v23  ;;  %v4547_v28 = vpop.f32.mrf.mxu3 }
 0x7f8   : > { %4668 = vst.msk [vmem:[%s8099_s0 + $0x78] sm:$0xff] %vm738_vm0, %v4636_v16 }
 0x7fa   : > { %v4402_v2 = vpop.f32.mrf.mxu2 }
 0x7fb   : > { %v4546_v35 = vadd.f32 %v4545_v25, %v4402_v2  ;;  %v5528_v25 = vld [vmem:[%s5688_s24 + $0xc8] sm:$0xff] }
 0x7fd   : > { %v4601_v37 = vadd.f32 %v5519_v19, %v4546_v35 }
 0x7fe   : > { %v4550_v45 = vpop.f32.mrf.mxu3 }
 0x7ff   : > { %v4637_v49 = vadd.f32 %v8090_v30, %v4601_v37 }
 0x801   : > { %4669 = vst.msk [vmem:[%s8099_s0 + $0x80] sm:$0xff] %vm738_vm0, %v4637_v49 }
 0x802   : > { %v4404_v53 = vpop.f32.mrf.mxu2 }
 0x803   : > { %v4548_v6 = vadd.f32 %v4547_v28, %v4404_v53  ;;  %v5529_v28 = vld [vmem:[%s5688_s24 + $0xd0] sm:$0xff] }
 0x805   : > { %v4602_v22 = vadd.f32 %v5520_v46, %v4548_v6 }
 0x806   : > { %v4552_v41 = vpop.f32.mrf.mxu3 }
 0x807   : > { %v4638_v15 = vadd.f32 %v8090_v30, %v4602_v22 }
 0x809   : > { %4670 = vst.msk [vmem:[%s8099_s0 + $0x88] sm:$0xff] %vm738_vm0, %v4638_v15  ;;  %v5531_v15 = vld [vmem:[%s5688_s24 + $0xe0] sm:$0xff] }
 0x80a   : > { %v4407_v62 = vpop.f32.mrf.mxu2 }
 0x80b   : > { %v4551_v50 = vadd.f32 %v4550_v45, %v4407_v62  ;;  %v5530_v45 = vld [vmem:[%s5688_s24 + $0xd8] sm:$0xff] }
 0x80d   : > { %v4603_v56 = vadd.f32 %v5521_v63, %v4551_v50 }
 0x80e   : > { %v4555_v34 = vpop.f32.mrf.mxu3 }
 0x80f   : > { %v4639_v21 = vadd.f32 %v8090_v30, %v4603_v56 }
 0x811   : > { %4671 = vst.msk [vmem:[%s8099_s0 + $0x90] sm:$0xff] %vm738_vm0, %v4639_v21  ;;  %v5532_v21 = vld [vmem:[%s5688_s24 + $0xe8] sm:$0xff] }
 0x812   : > { %v4409_v33 = vpop.f32.mrf.mxu2 }
 0x813   : > { %v4553_v55 = vadd.f32 %v4552_v41, %v4409_v33 }
 0x815   : > { %v4604_v58 = vadd.f32 %v5522_v20, %v4553_v55 }
 0x816   : > { %v4557_v5 = vpop.f32.mrf.mxu3 }
 0x817   : > { %v4640_v17 = vadd.f32 %v8090_v30, %v4604_v58 }
 0x819   : > { %4672 = vst.msk [vmem:[%s8099_s0 + $0x98] sm:$0xff] %vm738_vm0, %v4640_v17  ;;  %v5533_v17 = vld [vmem:[%s5688_s24 + $0xf0] sm:$0xff] }
 0x81a   : > { %v4412_v48 = vpop.f32.mrf.mxu2 }
 0x81b   : > { %v4556_v36 = vadd.f32 %v4555_v34, %v4412_v48 }
 0x81d   : > { %v4605_v59 = vadd.f32 %v5523_v43, %v4556_v36 }
 0x81e   : > { %v4560_v32 = vpop.f32.mrf.mxu3 }
 0x81f   : > { %v4641_v26 = vadd.f32 %v8090_v30, %v4605_v59 }
 0x821   : > { %4673 = vst.msk [vmem:[%s8099_s0 + $0xa0] sm:$0xff] %vm738_vm0, %v4641_v26  ;;  %v5534_v26 = vld [vmem:[%s5688_s24 + $0xf8] sm:$0xff] }
 0x822   : > { %v4414_v42 = vpop.f32.mrf.mxu2 }
 0x823   : > { %v4558_v39 = vadd.f32 %v4557_v5, %v4414_v42 }
 0x825   : > { %v4606_v11 = vadd.f32 %v5524_v29, %v4558_v39 }
 0x826   : > { %v4562_v10 = vpop.f32.mrf.mxu3 }
 0x827   : > { %v4642_v14 = vadd.f32 %v8090_v30, %v4606_v11 }
 0x829   : > { %4674 = vst.msk [vmem:[%s8099_s0 + $0xa8] sm:$0xff] %vm738_vm0, %v4642_v14 }
 0x82a   : > { %v4417_v31 = vpop.f32.mrf.mxu2 }
 0x82b   : > { %v4561_v12 = vadd.f32 %v4560_v32, %v4417_v31 }
 0x82d   : > { %v4607_v57 = vadd.f32 %v5525_v51, %v4561_v12 }
 0x82e   : > { %v4565_v0 = vpop.f32.mrf.mxu3 }
 0x82f   : > { %v4643_v7 = vadd.f32 %v8090_v30, %v4607_v57 }
 0x831   : > { %4675 = vst.msk [vmem:[%s8099_s0 + $0xb0] sm:$0xff] %vm738_vm0, %v4643_v7 }
 0x832   : > { %v4419_v27 = vpop.f32.mrf.mxu2 }
 0x833   : > { %v4563_v18 = vadd.f32 %v4562_v10, %v4419_v27 }
 0x835   : > { %v4608_v38 = vadd.f32 %v5526_v13, %v4563_v18 }
 0x836   : > { %v4567_v24 = vpop.f32.mrf.mxu3 }
 0x837   : > { %v4644_v60 = vadd.f32 %v8090_v30, %v4608_v38 }
 0x839   : > { %4676 = vst.msk [vmem:[%s8099_s0 + $0xb8] sm:$0xff] %vm738_vm0, %v4644_v60 }
 0x83a   : > { %v4422_v3 = vpop.f32.mrf.mxu2 }
 0x83b   : > { %v4566_v9 = vadd.f32 %v4565_v0, %v4422_v3 }
 0x83d   : > { %v4609_v4 = vadd.f32 %v5527_v40, %v4566_v9 }
 0x83e   : > { %v4570_v44 = vpop.f32.mrf.mxu3 }
 0x83f   : > { %v4645_v8 = vadd.f32 %v8090_v30, %v4609_v4 }
 0x841   : > { %4677 = vst.msk [vmem:[%s8099_s0 + $0xc0] sm:$0xff] %vm738_vm0, %v4645_v8 }
 0x842   : > { %v4424_v61 = vpop.f32.mrf.mxu2 }
 0x843   : > { %v4568_v47 = vadd.f32 %v4567_v24, %v4424_v61 }
 0x845   : > { %v4610_v1 = vadd.f32 %v5528_v25, %v4568_v47 }
 0x846   : > { %v4572_v54 = vpop.f32.mrf.mxu3 }
 0x847   : > { %v4646_v52 = vadd.f32 %v8090_v30, %v4610_v1 }
 0x849   : > { %4678 = vst.msk [vmem:[%s8099_s0 + $0xc8] sm:$0xff] %vm738_vm0, %v4646_v52 }
 0x84a   : > { %v4427_v23 = vpop.f32.mrf.mxu2 }
 0x84b   : > { %v4571_v16 = vadd.f32 %v4570_v44, %v4427_v23 }
 0x84d   : > { %v4611_v2 = vadd.f32 %v5529_v28, %v4571_v16 }
 0x84e   : > { %v4575_v49 = vpop.f32.mrf.mxu3 }
 0x84f   : > { %v4647_v35 = vadd.f32 %v8090_v30, %v4611_v2 }
 0x851   : > { %4679 = vst.msk [vmem:[%s8099_s0 + $0xd0] sm:$0xff] %vm738_vm0, %v4647_v35 }
 0x852   : > { %v4429_v19 = vpop.f32.mrf.mxu2 }
 0x853   : > { %v4573_v37 = vadd.f32 %v4572_v54, %v4429_v19 }
 0x855   : > { %v4612_v53 = vadd.f32 %v5530_v45, %v4573_v37 }
 0x856   : > { %v4577_v62 = vpop.f32.mrf.mxu3 }
 0x857   : > { %v4648_v6 = vadd.f32 %v8090_v30, %v4612_v53 }
 0x859   : > { %4680 = vst.msk [vmem:[%s8099_s0 + $0xd8] sm:$0xff] %vm738_vm0, %v4648_v6 }
 0x85a   : > { %v4432_v46 = vpop.f32.mrf.mxu2 }
 0x85b   : > { %v4576_v22 = vadd.f32 %v4575_v49, %v4432_v46 }
 0x85d   : > { %v4613_v41 = vadd.f32 %v5531_v15, %v4576_v22 }
 0x85e   : > { %v4580_v55 = vpop.f32.mrf.mxu3 }
 0x85f   : > { %v4649_v50 = vadd.f32 %v8090_v30, %v4613_v41 }
 0x861   : > { %4681 = vst.msk [vmem:[%s8099_s0 + $0xe0] sm:$0xff] %vm738_vm0, %v4649_v50 }
 0x862   : > { %v4434_v63 = vpop.f32.mrf.mxu2 }
 0x863   : > { %v4578_v56 = vadd.f32 %v4577_v62, %v4434_v63 }
 0x865   : > { %v4614_v34 = vadd.f32 %v5532_v21, %v4578_v56 }
 0x866   : > { %v4582_v36 = vpop.f32.mrf.mxu3 }
 0x867   : > { %v4650_v33 = vadd.f32 %v8090_v30, %v4614_v34 }
 0x869   : > { %4682 = vst.msk [vmem:[%s8099_s0 + $0xe8] sm:$0xff] %vm738_vm0, %v4650_v33 }
 0x86a   : > { %v4437_v20 = vpop.f32.mrf.mxu2 }
 0x86b   : > { %v4581_v58 = vadd.f32 %v4580_v55, %v4437_v20 }
 0x86d   : > { %v4615_v5 = vadd.f32 %v5533_v17, %v4581_v58 }
 0x86f   : > { %v4651_v48 = vadd.f32 %v8090_v30, %v4615_v5 }
 0x871   : > { %4683 = vst.msk [vmem:[%s8099_s0 + $0xf0] sm:$0xff] %vm738_vm0, %v4651_v48 }
 0x872   : > { %v4439_v43 = vpop.f32.mrf.mxu2 }
 0x873   : > { %v4583_v59 = vadd.f32 %v4582_v36, %v4439_v43 }
 0x875   : > { %v4616_v32 = vadd.f32 %v5534_v26, %v4583_v59 }
 0x877   : > { %v4652_v42 = vadd.f32 %v8090_v30, %v4616_v32 }
 0x879   : > { %4684 = vst.msk [vmem:[%s8099_s0 + $0xf8] sm:$0xff] %vm738_vm0, %v4652_v42 }
 0x87a PF: > { %s31_s2 = sadd.s32 1, %s5541_s2  }
 0x87b   : > { %p28_p4 = scmp.ge.s32.totalorder %s31_s2, 4  }
 0x87d   :  { %30 = sbr.rel (!%p28_p4) target bundleno = 7 (0x7), region = 163 }

</bundles_post_ra>
